<compile_context>
chip_gen: v7x
topology: tpu7x:2x2x1
jax: 0.10.0
libtpu: 0.0.40
codegen_flags: <defaults>
</compile_context>

<pallas_src>
import math
import functools

import jax
import jax.numpy as jnp
from jax import lax
from jax.experimental import pallas as pl
from jax.experimental.pallas import tpu as pltpu

# ---------------- small config (module constants scaled down) ----------------
N_LAYER = 2              # module: 32
N_EMBD = 64              # module: 512
VOCAB = 512              # module: 50257
BLOCK_SIZE = 64          # config['block_size']
NUM_EXPERTS = 4          # module: 32
SPARSE_TOP_K = 32        # module: 32
HIDDEN = 4 * N_EMBD

HEAD_TILE_V = 512        # = VOCAB here; at module scale sweep ~2k (v7x, 64 MiB VMEM) .. 4-8k (v5e/v6e)
TOKEN_TILE = 128         # MoE token tile ("parallel" axis; == N at this toy scale)
TOPK_QUARTER_ITERS = 8   # interval quartering: 3 candidates/iter ~= 16 bisection steps of precision
VMEM_LIMIT = 32 * 1024 * 1024   # safe scoped limit on v5e/v6e/v7x; retune per generation at module scale


# ---------------- in-kernel helpers ----------------
def _gelu(x):
    # tanh-approx GELU: tanh rides the otherwise-idle EUP slot.
    c = math.sqrt(2.0 / math.pi)
    return 0.5 * x * (1.0 + jnp.tanh(c * (x + 0.044715 * x * x * x)))


# ---------------- kernel 1: embed-add + fused QKV + rotary + sparse attention ----
def _attn_kernel(tok_ref, pos_ref, pe_ref, wqkv_ref, bqkv_ref, o_ref,
                 *, T, D, top_k, scale):
    # embed_dropout / proj_dropout / attn_dropout: identity (eval mode)
    x = tok_ref[0] + pos_ref[0]                                   # (T, D) f32
    xf = x.astype(jnp.bfloat16)

    # fused Q|K|V projection: one lane-dense (T, 3D) MXU pass instead of three (T, D) ones
    qkv = jnp.dot(xf, wqkv_ref[...], preferred_element_type=jnp.float32) + bqkv_ref[...]

    # apply_rotary_emb: elementwise multiply by the sinusoidal positional encoding
    pe = pe_ref[...]                                              # (T, D)
    q = (qkv[:, :D] * pe).astype(jnp.bfloat16)
    k = (qkv[:, D:2 * D] * pe).astype(jnp.bfloat16)
    v = qkv[:, 2 * D:].astype(jnp.bfloat16)

    s = lax.dot_general(q, k, (((1,), (1,)), ((), ())),
                        preferred_element_type=jnp.float32) * scale   # (T, T) f32

    # k-th-largest threshold via per-row interval quartering.
    # The 3 candidate counts per iteration are independent (parallel VPU cmp + XLU
    # reduce); the serial chain is 8 long instead of 16 for plain bisection.
    # invariant: count(s >= lo) >= k, count(s >= hi) < k
    row_max = jnp.max(s, axis=-1, keepdims=True)
    row_min = jnp.min(s, axis=-1, keepdims=True)
    kf = jnp.float32(top_k)

    def _count_ge(t):
        return jnp.sum((s >= t).astype(jnp.float32), axis=-1, keepdims=True) >= kf

    def _quarter(_, carry):
        lo, hi = carry
        span = hi - lo
        m1 = lo + 0.25 * span
        m2 = lo + 0.50 * span
        m3 = lo + 0.75 * span
        c1, c2, c3 = _count_ge(m1), _count_ge(m2), _count_ge(m3)
        new_lo = jnp.where(c3, m3, jnp.where(c2, m2, jnp.where(c1, m1, lo)))
        new_hi = jnp.where(c1, jnp.where(c2, jnp.where(c3, hi, m3), m2), m1)
        return new_lo, new_hi

    thresh, _ = lax.fori_loop(0, TOPK_QUARTER_ITERS, _quarter,
                              (row_min, row_max + 1.0), unroll=True)

    # reference: scatter top-k scores into zeros, softmax over the FULL row
    sparse = jnp.where(s >= thresh, s, 0.0)
    m = jnp.max(sparse, axis=-1, keepdims=True)
    p = jnp.exp(sparse - m)
    attn = p * pl.reciprocal(jnp.sum(p, axis=-1, keepdims=True), approx=True)

    o_ref[0] = jnp.dot(attn.astype(jnp.bfloat16), v, preferred_element_type=jnp.float32)


def fused_attention_pallas(tok_emb, pos_emb, pe, wqkv, bqkv, top_k):
    B, T, D = tok_emb.shape
    kern = functools.partial(_attn_kernel, T=T, D=D,
                             top_k=min(top_k, T), scale=1.0 / math.sqrt(D))
    # grid over batch ("parallel"): shards across v7x's two TensorCores and keeps
    # only one (T,T) f32 score tile live per step.
    # TODO(synk): at module scale add a query-tile grid axis so the serial top-k
    # threshold phase of tile i pipelines against the score matmul of tile i+1.
    return pl.pallas_call(
        kern,
        out_shape=jax.ShapeDtypeStruct((B, T, D), jnp.float32),
        grid_spec=pltpu.PrefetchScalarGridSpec(
            num_scalar_prefetch=0,
            grid=(B,),
            in_specs=[
                pl.BlockSpec((1, T, D), lambda b: (b, 0, 0)),   # tok_emb (per-batch tile)
                pl.BlockSpec((1, T, D), lambda b: (0, 0, 0)),   # pos_emb param (broadcast)
                pl.BlockSpec((T, D), lambda b: (0, 0)),         # sinusoidal pe
                pl.BlockSpec((D, 3 * D), lambda b: (0, 0)),     # fused wq|wk|wv (bf16)
                pl.BlockSpec((1, 3 * D), lambda b: (0, 0)),     # fused bq|bk|bv
            ],
            out_specs=pl.BlockSpec((1, T, D), lambda b: (b, 0, 0)),
        ),
        compiler_params=pltpu.CompilerParams(
            dimension_semantics=("parallel",),
            vmem_limit_bytes=VMEM_LIMIT,
        ),
    )(tok_emb, pos_emb, pe, wqkv, bqkv)


# ---------------- kernel 2: fused Top2Gate + MoE expert FFN ----------------
# grid = (token tiles [parallel], experts [arbitrary accumulation axis]).
# The gate (matmul + softmax + top-2 + combine weights + balance stats) runs once
# per token tile at e == 0 into a VMEM scratch, reused across expert steps.
def _moe_kernel(x_ref, wg_ref, w1_ref, b1_ref, w2_ref, b2_ref,
                o_ref, gsum_ref, msum_ref, comb_ref):
    e = pl.program_id(1)
    n_e = wg_ref.shape[-1]

    @pl.when(e == 0)
    def _():
        # --- fused Top2Gate (dense, no capacity limit / token dropping) ---
        x = x_ref[...]                                                       # (tn, D) f32
        logits = jnp.dot(x, wg_ref[...], preferred_element_type=jnp.float32)  # (tn, E)
        gm = jnp.max(logits, axis=-1, keepdims=True)
        eg = jnp.exp(logits - gm)
        gates = eg / jnp.sum(eg, axis=-1, keepdims=True)
        eidx = lax.broadcasted_iota(jnp.int32, gates.shape, 1)
        m1 = jnp.max(gates, axis=-1, keepdims=True)
        i1 = jnp.min(jnp.where(gates == m1, eidx, n_e), axis=-1, keepdims=True)
        mask1 = (eidx == i1).astype(jnp.float32)                  # first-index argmax tie-break
        g_wo1 = gates * (1.0 - mask1)
        m2 = jnp.max(g_wo1, axis=-1, keepdims=True)
        i2 = jnp.min(jnp.where(g_wo1 == m2, eidx, n_e), axis=-1, keepdims=True)
        mask2 = (eidx == i2).astype(jnp.float32)
        g1 = jnp.sum(gates * mask1, axis=-1, keepdims=True)
        g2 = jnp.sum(gates * mask2, axis=-1, keepdims=True)
        denom = jnp.maximum(g1 + g2, 1e-9)
        comb_ref[...] = (g1 / denom) * mask1 + (g2 / denom) * mask2          # (tn, E)
        # per-tile load-balance statistics (aux loss finished in XLA)
        gsum_ref[0] = jnp.sum(gates, axis=0, keepdims=True)                  # (1, E)
        msum_ref[0] = jnp.sum(mask1, axis=0, keepdims=True)                  # (1, E)
        o_ref[...] = jnp.zeros_like(o_ref)

    # --- dense expert FFN, accumulated over the expert ("arbitrary") axis ---
    x = x_ref[...].astype(jnp.bfloat16)                                        # (tn, D)
    h = jnp.dot(x, w1_ref[0], preferred_element_type=jnp.float32) + b1_ref[0]  # (tn, 4D)
    h = _gelu(h)
    y = jnp.dot(h.astype(jnp.bfloat16), w2_ref[0],
                preferred_element_type=jnp.float32) + b2_ref[0]                # (tn, D)
    # combine weight of this expert from the resident VMEM scratch (tiny (tn,E) reduce)
    onehot = (lax.broadcasted_iota(jnp.int32, (1, n_e), 1) == e).astype(jnp.float32)
    cvec = jnp.sum(comb_ref[...] * onehot, axis=-1, keepdims=True)             # (tn, 1)
    o_ref[...] += cvec * y


def moe_layer_pallas(x2d, wg, w1, b1, w2, b2):
    # x2d: (N, D) f32; wg: (D, E) f32; w1: (E, D, H) bf16; b1: (E, 1, H) f32;
    # w2: (E, H, D) bf16; b2: (E, 1, D) f32.
    N, D = x2d.shape
    E, _, H = w1.shape
    tn = min(TOKEN_TILE, N)
    nt = N // tn
    # TODO(synk): at module scale with nt > 1 restructure so w1/w2 stay resident
    # across token tiles (experts outer + inner token pipeline) to avoid
    # re-streaming every expert's weights once per token tile; here nt == 1 so
    # each expert's weights are DMA'd exactly once.
    y, gsum, msum = pl.pallas_call(
        _moe_kernel,
        out_shape=(
            jax.ShapeDtypeStruct((N, D), jnp.float32),
            jax.ShapeDtypeStruct((nt, 1, E), jnp.float32),
            jax.ShapeDtypeStruct((nt, 1, E), jnp.float32),
        ),
        grid_spec=pltpu.PrefetchScalarGridSpec(
            num_scalar_prefetch=0,
            grid=(nt, E),
            in_specs=[
                pl.BlockSpec((tn, D), lambda i, e: (i, 0)),
                pl.BlockSpec((D, E), lambda i, e: (0, 0)),
                pl.BlockSpec((1, D, H), lambda i, e: (e, 0, 0)),
                pl.BlockSpec((1, 1, H), lambda i, e: (e, 0, 0)),
                pl.BlockSpec((1, H, D), lambda i, e: (e, 0, 0)),
                pl.BlockSpec((1, 1, D), lambda i, e: (e, 0, 0)),
            ],
            out_specs=[
                pl.BlockSpec((tn, D), lambda i, e: (i, 0)),
                pl.BlockSpec((1, 1, E), lambda i, e: (i, 0, 0)),
                pl.BlockSpec((1, 1, E), lambda i, e: (i, 0, 0)),
            ],
            scratch_shapes=[pltpu.VMEM((tn, E), jnp.float32)],   # combine weights per tile
        ),
        compiler_params=pltpu.CompilerParams(
            dimension_semantics=("parallel", "arbitrary"),
            vmem_limit_bytes=VMEM_LIMIT,
        ),
    )(x2d, wg, w1, b1, w2, b2)
    me = jnp.sum(gsum[:, 0, :], axis=0) / N
    ce = jnp.sum(msum[:, 0, :], axis=0) / N
    l_aux = jnp.mean(me * ce) * E * E
    return y, l_aux


# ---------------- kernel 3: final LayerNorm + LM head matmul ----------------
def _head_kernel(x_ref, g_ref, b_ref, w_ref, o_ref):
    # LayerNorm recomputed per vocab tile (cheap VPU work next to the matmul) so the
    # vocab grid axis can stay "parallel" (uses both v7x TensorCores).  The (N, D)
    # activation block index is constant so it is DMA'd once and stays resident.
    x = x_ref[...]                                      # (N, D) f32
    mu = jnp.mean(x, axis=-1, keepdims=True)
    var = jnp.mean(jnp.square(x - mu), axis=-1, keepdims=True)
    xn = ((x - mu) * lax.rsqrt(var + 1e-5)) * g_ref[...] + b_ref[...]
    # final_dropout: identity (eval mode)
    o_ref[...] = jnp.dot(xn.astype(jnp.bfloat16), w_ref[...],
                         preferred_element_type=jnp.float32)


def ln_head_pallas(x2d, gamma, beta, w_head):
    N, D = x2d.shape
    V = w_head.shape[1]
    tile_v = min(HEAD_TILE_V, V)
    # TODO(synk): at module scale (V=50257) consider bf16 logits output (halves the
    # dominant HBM write on v6e/v7x) and pipeline_mode=pl.Buffered(3) on w_head.
    return pl.pallas_call(
        _head_kernel,
        out_shape=jax.ShapeDtypeStruct((N, V), jnp.float32),
        grid_spec=pltpu.PrefetchScalarGridSpec(
            num_scalar_prefetch=0,
            grid=(V // tile_v,),
            in_specs=[
                pl.BlockSpec((N, D), lambda j: (0, 0)),
                pl.BlockSpec((1, D), lambda j: (0, 0)),
                pl.BlockSpec((1, D), lambda j: (0, 0)),
                pl.BlockSpec((D, tile_v), lambda j: (0, j)),   # w_head tile (bf16)
            ],
            out_specs=pl.BlockSpec((N, tile_v), lambda j: (0, j)),
        ),
        compiler_params=pltpu.CompilerParams(
            dimension_semantics=("parallel",),
            vmem_limit_bytes=VMEM_LIMIT,
        ),
    )(x2d, gamma, beta, w_head)


# ---------------- plain-JAX glue ----------------
def rotary_pos_enc(seq_len, dim, base=10000.0):
    position = jnp.arange(seq_len, dtype=jnp.float32)[:, None]
    div_term = jnp.exp(jnp.arange(0.0, dim, 2.0, dtype=jnp.float32) * (-math.log(base) / dim))
    pe = jnp.zeros((seq_len, dim), jnp.float32)
    pe = pe.at[:, 0::2].set(jnp.sin(position * div_term))
    pe = pe.at[:, 1::2].set(jnp.cos(position * div_term))
    return pe


def init_params(key):
    keys = jax.random.split(key, 6 + N_LAYER)

    def lin(k, fi, fo):
        kw, kb = jax.random.split(k)
        w = 0.02 * jax.random.normal(kw, (fi, fo), jnp.float32)
        b = 0.02 * jax.random.normal(kb, (1, fo), jnp.float32)
        return w, b

    p = {}
    p["tok_emb"] = 0.02 * jax.random.normal(keys[0], (VOCAB, N_EMBD), jnp.float32)
    p["pos_emb"] = jnp.zeros((1, BLOCK_SIZE, N_EMBD), jnp.float32)   # torch.zeros init
    wq, bq = lin(keys[1], N_EMBD, N_EMBD)
    wk, bk = lin(keys[2], N_EMBD, N_EMBD)
    wv, bv = lin(keys[3], N_EMBD, N_EMBD)
    # fused Q|K|V weight: one lane-dense (D, 3D) MXU pass instead of three (D, D) ones
    p["wqkv"] = jnp.concatenate([wq, wk, wv], axis=1).astype(jnp.bfloat16)
    p["bqkv"] = jnp.concatenate([bq, bk, bv], axis=1)
    p["ln_g"] = jnp.ones((1, N_EMBD), jnp.float32)
    p["ln_b"] = jnp.zeros((1, N_EMBD), jnp.float32)
    p["w_head"] = (0.02 * jax.random.normal(keys[4], (N_EMBD, VOCAB),
                                            jnp.float32)).astype(jnp.bfloat16)   # bias=False
    layers = []
    for li in range(N_LAYER):
        k1, k2, k3 = jax.random.split(keys[5 + li], 3)
        layers.append(dict(
            wg=0.02 * jax.random.normal(k1, (N_EMBD, NUM_EXPERTS), jnp.float32),
            w1=(0.02 * jax.random.normal(k2, (NUM_EXPERTS, N_EMBD, HIDDEN),
                                         jnp.float32)).astype(jnp.bfloat16),
            b1=jnp.zeros((NUM_EXPERTS, 1, HIDDEN), jnp.float32),
            w2=(0.02 * jax.random.normal(k3, (NUM_EXPERTS, HIDDEN, N_EMBD),
                                         jnp.float32)).astype(jnp.bfloat16),
            b2=jnp.zeros((NUM_EXPERTS, 1, N_EMBD), jnp.float32),
        ))
    p["moe_layers"] = layers
    return p


def model_forward(params, idx, targets=None):
    B, T = idx.shape
    D = N_EMBD
    tok_emb = params["tok_emb"][idx]                       # (B, T, D); embedding gather stays in XLA
    tcap = min(T, BLOCK_SIZE)
    pos_emb = params["pos_emb"][:, :tcap, :]               # T == block_size => padding branches are no-ops
    pe = rotary_pos_enc(T, D)

    # embed add + fused QKV + rotary + sparse attention in one kernel (grid over batch)
    x = fused_attention_pallas(tok_emb, pos_emb, pe,
                               params["wqkv"], params["bqkv"], SPARSE_TOP_K)

    x2d = x.reshape(B * T, D)
    moe_loss = jnp.float32(0.0)
    for lp in params["moe_layers"]:
        x2d, l = moe_layer_pallas(x2d, lp["wg"], lp["w1"], lp["b1"], lp["w2"], lp["b2"])
        moe_loss = moe_loss + l

    logits2d = ln_head_pallas(x2d, params["ln_g"], params["ln_b"], params["w_head"])
    logits = logits2d.reshape(B, T, VOCAB)
    # mirror forward(): targets is None -> return ((logits, moe_loss), None)
    return (logits, moe_loss), None


if __name__ == "__main__":
    key = jax.random.PRNGKey(0)
    pkey, ikey = jax.random.split(key)
    params = init_params(pkey)
    idx = jax.random.randint(ikey, (2, BLOCK_SIZE), 0, VOCAB, dtype=jnp.int32)  # (B=2, T=64)

    fwd = jax.jit(model_forward)
    (logits, moe_loss), _ = fwd(params, idx)
    jax.block_until_ready(logits)
    jax.block_until_ready(moe_loss)

    assert logits.shape == (2, BLOCK_SIZE, VOCAB) and logits.dtype == jnp.float32
    assert bool(jnp.all(jnp.isfinite(logits)))
    assert bool(jnp.isfinite(moe_loss))
    print("KERNEL_OK")
</pallas_src>

<mosaic_0001>
module attributes {stable_mosaic.version = 11 : i64} {
  func.func @_attn_kernel(%arg0: i32, %arg1: memref<1x64x64xf32, #tpu.memory_space<vmem>>, %arg2: memref<1x64x64xf32, #tpu.memory_space<vmem>>, %arg3: memref<64x64xf32, #tpu.memory_space<vmem>>, %arg4: memref<64x192xbf16, #tpu.memory_space<vmem>>, %arg5: memref<1x192xf32, #tpu.memory_space<vmem>>, %arg6: memref<1x64x64xf32, #tpu.memory_space<vmem>>) attributes {dimension_semantics = [#tpu.dimension_semantics<parallel>], iteration_bounds = array<i64: 2>, scalar_prefetch = 0 : i64, scratch_operands = 0 : i64, tpu.core_type = #tpu.core_type<tc>, window_params = [{transform_indices = @transform_0, window_bounds = array<i64: 1, 64, 64>}, {pipeline_mode = #tpu.pipeline_mode<synchronous>, transform_indices = @transform_1, window_bounds = array<i64: 1, 64, 64>}, {pipeline_mode = #tpu.pipeline_mode<synchronous>, transform_indices = @transform_2, window_bounds = array<i64: 64, 64>}, {pipeline_mode = #tpu.pipeline_mode<synchronous>, transform_indices = @transform_3, window_bounds = array<i64: 64, 192>}, {pipeline_mode = #tpu.pipeline_mode<synchronous>, transform_indices = @transform_4, window_bounds = array<i64: 1, 192>}, {transform_indices = @transform_5, window_bounds = array<i64: 1, 64, 64>}]} {
    %c0 = arith.constant 0 : index
    %c0_0 = arith.constant 0 : index
    %c0_1 = arith.constant 0 : index
    %0 = vector.load %arg1[%c0, %c0_0, %c0_1] : memref<1x64x64xf32, #tpu.memory_space<vmem>>, vector<1x64x64xf32>
    %1 = vector.shape_cast %0 : vector<1x64x64xf32> to vector<64x64xf32>
    %c0_2 = arith.constant 0 : index
    %c0_3 = arith.constant 0 : index
    %c0_4 = arith.constant 0 : index
    %2 = vector.load %arg2[%c0_2, %c0_3, %c0_4] : memref<1x64x64xf32, #tpu.memory_space<vmem>>, vector<1x64x64xf32>
    %3 = vector.shape_cast %2 : vector<1x64x64xf32> to vector<64x64xf32>
    %4 = arith.addf %1, %3 : vector<64x64xf32>
    %5 = arith.truncf %4 : vector<64x64xf32> to vector<64x64xbf16>
    %c0_5 = arith.constant 0 : index
    %c0_6 = arith.constant 0 : index
    %6 = vector.load %arg4[%c0_5, %c0_6] : memref<64x192xbf16, #tpu.memory_space<vmem>>, vector<64x192xbf16>
    %cst = arith.constant dense<0.000000e+00> : vector<64x192xf32>
    %7 = tpu.matmul %5, %6, %cst {dimension_numbers = #tpu.dot_dimension_numbers<[1], [0], [0], [1], [0, 0, 1, 1], [], []>} : vector<64x64xbf16>, vector<64x192xbf16>, vector<64x192xf32> -> vector<64x192xf32>
    %c0_7 = arith.constant 0 : index
    %c0_8 = arith.constant 0 : index
    %8 = vector.load %arg5[%c0_7, %c0_8] : memref<1x192xf32, #tpu.memory_space<vmem>>, vector<1x192xf32>
    %9 = vector.broadcast %8 : vector<1x192xf32> to vector<64x192xf32>
    %10 = arith.addf %7, %9 : vector<64x192xf32>
    %c0_9 = arith.constant 0 : index
    %c0_10 = arith.constant 0 : index
    %11 = vector.load %arg3[%c0_9, %c0_10] : memref<64x64xf32, #tpu.memory_space<vmem>>, vector<64x64xf32>
    %12 = vector.extract_strided_slice %10 {offsets = [0, 0], sizes = [64, 64], strides = [1, 1]} : vector<64x192xf32> to vector<64x64xf32>
    %13 = arith.mulf %12, %11 : vector<64x64xf32>
    %14 = arith.truncf %13 : vector<64x64xf32> to vector<64x64xbf16>
    %15 = vector.extract_strided_slice %10 {offsets = [0, 64], sizes = [64, 64], strides = [1, 1]} : vector<64x192xf32> to vector<64x64xf32>
    %16 = arith.mulf %15, %11 : vector<64x64xf32>
    %17 = arith.truncf %16 : vector<64x64xf32> to vector<64x64xbf16>
    %18 = vector.extract_strided_slice %10 {offsets = [0, 128], sizes = [64, 64], strides = [1, 1]} : vector<64x192xf32> to vector<64x64xf32>
    %19 = arith.truncf %18 : vector<64x64xf32> to vector<64x64xbf16>
    %cst_11 = arith.constant dense<0.000000e+00> : vector<64x64xf32>
    %20 = tpu.matmul %14, %17, %cst_11 {dimension_numbers = #tpu.dot_dimension_numbers<[1], [1], [0], [0], [0, 0, 1, 0], [], []>} : vector<64x64xbf16>, vector<64x64xbf16>, vector<64x64xf32> -> vector<64x64xf32>
    %cst_12 = arith.constant 1.250000e-01 : f32
    %21 = vector.broadcast %cst_12 : f32 to vector<64x64xf32>
    %22 = arith.mulf %20, %21 : vector<64x64xf32>
    %cst_13 = arith.constant dense<0xFF800000> : vector<64xf32>
    %23 = vector.multi_reduction <maximumf>, %22, %cst_13 [1] : vector<64x64xf32> to vector<64xf32>
    %24 = vector.shape_cast %23 : vector<64xf32> to vector<64x1xf32>
    %cst_14 = arith.constant dense<0x7F800000> : vector<64xf32>
    %25 = vector.multi_reduction <minimumf>, %22, %cst_14 [1] : vector<64x64xf32> to vector<64xf32>
    %26 = vector.shape_cast %25 : vector<64xf32> to vector<64x1xf32>
    %cst_15 = arith.constant 1.000000e+00 : f32
    %27 = vector.broadcast %cst_15 : f32 to vector<64x1xf32>
    %28 = arith.addf %24, %27 : vector<64x1xf32>
    %cst_16 = arith.constant 3.200000e+01 : f32
    %c0_i32 = arith.constant 0 : i32
    %29 = arith.subf %28, %26 : vector<64x1xf32>
    %cst_17 = arith.constant 2.500000e-01 : f32
    %30 = vector.broadcast %cst_17 : f32 to vector<64x1xf32>
    %31 = arith.mulf %30, %29 : vector<64x1xf32>
    %32 = arith.addf %26, %31 : vector<64x1xf32>
    %cst_18 = arith.constant 5.000000e-01 : f32
    %33 = vector.broadcast %cst_18 : f32 to vector<64x1xf32>
    %34 = arith.mulf %33, %29 : vector<64x1xf32>
    %35 = arith.addf %26, %34 : vector<64x1xf32>
    %cst_19 = arith.constant 7.500000e-01 : f32
    %36 = vector.broadcast %cst_19 : f32 to vector<64x1xf32>
    %37 = arith.mulf %36, %29 : vector<64x1xf32>
    %38 = arith.addf %26, %37 : vector<64x1xf32>
    %39 = vector.broadcast %32 : vector<64x1xf32> to vector<64x64xf32>
    %40 = arith.cmpf oge, %22, %39 : vector<64x64xf32>
    %41 = arith.extui %40 : vector<64x64xi1> to vector<64x64xi32>
    %42 = arith.sitofp %41 : vector<64x64xi32> to vector<64x64xf32>
    %cst_20 = arith.constant dense<0.000000e+00> : vector<64xf32>
    %43 = vector.multi_reduction <add>, %42, %cst_20 [1] : vector<64x64xf32> to vector<64xf32>
    %44 = vector.shape_cast %43 : vector<64xf32> to vector<64x1xf32>
    %45 = vector.broadcast %cst_16 : f32 to vector<64x1xf32>
    %46 = arith.cmpf oge, %44, %45 : vector<64x1xf32>
    %47 = vector.broadcast %35 : vector<64x1xf32> to vector<64x64xf32>
    %48 = arith.cmpf oge, %22, %47 : vector<64x64xf32>
    %49 = arith.extui %48 : vector<64x64xi1> to vector<64x64xi32>
    %50 = arith.sitofp %49 : vector<64x64xi32> to vector<64x64xf32>
    %cst_21 = arith.constant dense<0.000000e+00> : vector<64xf32>
    %51 = vector.multi_reduction <add>, %50, %cst_21 [1] : vector<64x64xf32> to vector<64xf32>
    %52 = vector.shape_cast %51 : vector<64xf32> to vector<64x1xf32>
    %53 = vector.broadcast %cst_16 : f32 to vector<64x1xf32>
    %54 = arith.cmpf oge, %52, %53 : vector<64x1xf32>
    %55 = vector.broadcast %38 : vector<64x1xf32> to vector<64x64xf32>
    %56 = arith.cmpf oge, %22, %55 : vector<64x64xf32>
    %57 = arith.extui %56 : vector<64x64xi1> to vector<64x64xi32>
    %58 = arith.sitofp %57 : vector<64x64xi32> to vector<64x64xf32>
    %cst_22 = arith.constant dense<0.000000e+00> : vector<64xf32>
    %59 = vector.multi_reduction <add>, %58, %cst_22 [1] : vector<64x64xf32> to vector<64xf32>
    %60 = vector.shape_cast %59 : vector<64xf32> to vector<64x1xf32>
    %61 = vector.broadcast %cst_16 : f32 to vector<64x1xf32>
    %62 = arith.cmpf oge, %60, %61 : vector<64x1xf32>
    %63 = arith.select %46, %32, %26 : vector<64x1xi1>, vector<64x1xf32>
    %64 = arith.select %54, %35, %63 : vector<64x1xi1>, vector<64x1xf32>
    %65 = arith.select %62, %38, %64 : vector<64x1xi1>, vector<64x1xf32>
    %66 = arith.select %62, %28, %38 : vector<64x1xi1>, vector<64x1xf32>
    %67 = arith.select %54, %66, %35 : vector<64x1xi1>, vector<64x1xf32>
    %68 = arith.select %46, %67, %32 : vector<64x1xi1>, vector<64x1xf32>
    %c1_i32 = arith.constant 1 : i32
    %69 = arith.subf %68, %65 : vector<64x1xf32>
    %cst_23 = arith.constant 2.500000e-01 : f32
    %70 = vector.broadcast %cst_23 : f32 to vector<64x1xf32>
    %71 = arith.mulf %70, %69 : vector<64x1xf32>
    %72 = arith.addf %65, %71 : vector<64x1xf32>
    %cst_24 = arith.constant 5.000000e-01 : f32
    %73 = vector.broadcast %cst_24 : f32 to vector<64x1xf32>
    %74 = arith.mulf %73, %69 : vector<64x1xf32>
    %75 = arith.addf %65, %74 : vector<64x1xf32>
    %cst_25 = arith.constant 7.500000e-01 : f32
    %76 = vector.broadcast %cst_25 : f32 to vector<64x1xf32>
    %77 = arith.mulf %76, %69 : vector<64x1xf32>
    %78 = arith.addf %65, %77 : vector<64x1xf32>
    %79 = vector.broadcast %72 : vector<64x1xf32> to vector<64x64xf32>
    %80 = arith.cmpf oge, %22, %79 : vector<64x64xf32>
    %81 = arith.extui %80 : vector<64x64xi1> to vector<64x64xi32>
    %82 = arith.sitofp %81 : vector<64x64xi32> to vector<64x64xf32>
    %cst_26 = arith.constant dense<0.000000e+00> : vector<64xf32>
    %83 = vector.multi_reduction <add>, %82, %cst_26 [1] : vector<64x64xf32> to vector<64xf32>
    %84 = vector.shape_cast %83 : vector<64xf32> to vector<64x1xf32>
    %85 = vector.broadcast %cst_16 : f32 to vector<64x1xf32>
    %86 = arith.cmpf oge, %84, %85 : vector<64x1xf32>
    %87 = vector.broadcast %75 : vector<64x1xf32> to vector<64x64xf32>
    %88 = arith.cmpf oge, %22, %87 : vector<64x64xf32>
    %89 = arith.extui %88 : vector<64x64xi1> to vector<64x64xi32>
    %90 = arith.sitofp %89 : vector<64x64xi32> to vector<64x64xf32>
    %cst_27 = arith.constant dense<0.000000e+00> : vector<64xf32>
    %91 = vector.multi_reduction <add>, %90, %cst_27 [1] : vector<64x64xf32> to vector<64xf32>
    %92 = vector.shape_cast %91 : vector<64xf32> to vector<64x1xf32>
    %93 = vector.broadcast %cst_16 : f32 to vector<64x1xf32>
    %94 = arith.cmpf oge, %92, %93 : vector<64x1xf32>
    %95 = vector.broadcast %78 : vector<64x1xf32> to vector<64x64xf32>
    %96 = arith.cmpf oge, %22, %95 : vector<64x64xf32>
    %97 = arith.extui %96 : vector<64x64xi1> to vector<64x64xi32>
    %98 = arith.sitofp %97 : vector<64x64xi32> to vector<64x64xf32>
    %cst_28 = arith.constant dense<0.000000e+00> : vector<64xf32>
    %99 = vector.multi_reduction <add>, %98, %cst_28 [1] : vector<64x64xf32> to vector<64xf32>
    %100 = vector.shape_cast %99 : vector<64xf32> to vector<64x1xf32>
    %101 = vector.broadcast %cst_16 : f32 to vector<64x1xf32>
    %102 = arith.cmpf oge, %100, %101 : vector<64x1xf32>
    %103 = arith.select %86, %72, %65 : vector<64x1xi1>, vector<64x1xf32>
    %104 = arith.select %94, %75, %103 : vector<64x1xi1>, vector<64x1xf32>
    %105 = arith.select %102, %78, %104 : vector<64x1xi1>, vector<64x1xf32>
    %106 = arith.select %102, %68, %78 : vector<64x1xi1>, vector<64x1xf32>
    %107 = arith.select %94, %106, %75 : vector<64x1xi1>, vector<64x1xf32>
    %108 = arith.select %86, %107, %72 : vector<64x1xi1>, vector<64x1xf32>
    %c2_i32 = arith.constant 2 : i32
    %109 = arith.subf %108, %105 : vector<64x1xf32>
    %cst_29 = arith.constant 2.500000e-01 : f32
    %110 = vector.broadcast %cst_29 : f32 to vector<64x1xf32>
    %111 = arith.mulf %110, %109 : vector<64x1xf32>
    %112 = arith.addf %105, %111 : vector<64x1xf32>
    %cst_30 = arith.constant 5.000000e-01 : f32
    %113 = vector.broadcast %cst_30 : f32 to vector<64x1xf32>
    %114 = arith.mulf %113, %109 : vector<64x1xf32>
    %115 = arith.addf %105, %114 : vector<64x1xf32>
    %cst_31 = arith.constant 7.500000e-01 : f32
    %116 = vector.broadcast %cst_31 : f32 to vector<64x1xf32>
    %117 = arith.mulf %116, %109 : vector<64x1xf32>
    %118 = arith.addf %105, %117 : vector<64x1xf32>
    %119 = vector.broadcast %112 : vector<64x1xf32> to vector<64x64xf32>
    %120 = arith.cmpf oge, %22, %119 : vector<64x64xf32>
    %121 = arith.extui %120 : vector<64x64xi1> to vector<64x64xi32>
    %122 = arith.sitofp %121 : vector<64x64xi32> to vector<64x64xf32>
    %cst_32 = arith.constant dense<0.000000e+00> : vector<64xf32>
    %123 = vector.multi_reduction <add>, %122, %cst_32 [1] : vector<64x64xf32> to vector<64xf32>
    %124 = vector.shape_cast %123 : vector<64xf32> to vector<64x1xf32>
    %125 = vector.broadcast %cst_16 : f32 to vector<64x1xf32>
    %126 = arith.cmpf oge, %124, %125 : vector<64x1xf32>
    %127 = vector.broadcast %115 : vector<64x1xf32> to vector<64x64xf32>
    %128 = arith.cmpf oge, %22, %127 : vector<64x64xf32>
    %129 = arith.extui %128 : vector<64x64xi1> to vector<64x64xi32>
    %130 = arith.sitofp %129 : vector<64x64xi32> to vector<64x64xf32>
    %cst_33 = arith.constant dense<0.000000e+00> : vector<64xf32>
    %131 = vector.multi_reduction <add>, %130, %cst_33 [1] : vector<64x64xf32> to vector<64xf32>
    %132 = vector.shape_cast %131 : vector<64xf32> to vector<64x1xf32>
    %133 = vector.broadcast %cst_16 : f32 to vector<64x1xf32>
    %134 = arith.cmpf oge, %132, %133 : vector<64x1xf32>
    %135 = vector.broadcast %118 : vector<64x1xf32> to vector<64x64xf32>
    %136 = arith.cmpf oge, %22, %135 : vector<64x64xf32>
    %137 = arith.extui %136 : vector<64x64xi1> to vector<64x64xi32>
    %138 = arith.sitofp %137 : vector<64x64xi32> to vector<64x64xf32>
    %cst_34 = arith.constant dense<0.000000e+00> : vector<64xf32>
    %139 = vector.multi_reduction <add>, %138, %cst_34 [1] : vector<64x64xf32> to vector<64xf32>
    %140 = vector.shape_cast %139 : vector<64xf32> to vector<64x1xf32>
    %141 = vector.broadcast %cst_16 : f32 to vector<64x1xf32>
    %142 = arith.cmpf oge, %140, %141 : vector<64x1xf32>
    %143 = arith.select %126, %112, %105 : vector<64x1xi1>, vector<64x1xf32>
    %144 = arith.select %134, %115, %143 : vector<64x1xi1>, vector<64x1xf32>
    %145 = arith.select %142, %118, %144 : vector<64x1xi1>, vector<64x1xf32>
    %146 = arith.select %142, %108, %118 : vector<64x1xi1>, vector<64x1xf32>
    %147 = arith.select %134, %146, %115 : vector<64x1xi1>, vector<64x1xf32>
    %148 = arith.select %126, %147, %112 : vector<64x1xi1>, vector<64x1xf32>
    %c3_i32 = arith.constant 3 : i32
    %149 = arith.subf %148, %145 : vector<64x1xf32>
    %cst_35 = arith.constant 2.500000e-01 : f32
    %150 = vector.broadcast %cst_35 : f32 to vector<64x1xf32>
    %151 = arith.mulf %150, %149 : vector<64x1xf32>
    %152 = arith.addf %145, %151 : vector<64x1xf32>
    %cst_36 = arith.constant 5.000000e-01 : f32
    %153 = vector.broadcast %cst_36 : f32 to vector<64x1xf32>
    %154 = arith.mulf %153, %149 : vector<64x1xf32>
    %155 = arith.addf %145, %154 : vector<64x1xf32>
    %cst_37 = arith.constant 7.500000e-01 : f32
    %156 = vector.broadcast %cst_37 : f32 to vector<64x1xf32>
    %157 = arith.mulf %156, %149 : vector<64x1xf32>
    %158 = arith.addf %145, %157 : vector<64x1xf32>
    %159 = vector.broadcast %152 : vector<64x1xf32> to vector<64x64xf32>
    %160 = arith.cmpf oge, %22, %159 : vector<64x64xf32>
    %161 = arith.extui %160 : vector<64x64xi1> to vector<64x64xi32>
    %162 = arith.sitofp %161 : vector<64x64xi32> to vector<64x64xf32>
    %cst_38 = arith.constant dense<0.000000e+00> : vector<64xf32>
    %163 = vector.multi_reduction <add>, %162, %cst_38 [1] : vector<64x64xf32> to vector<64xf32>
    %164 = vector.shape_cast %163 : vector<64xf32> to vector<64x1xf32>
    %165 = vector.broadcast %cst_16 : f32 to vector<64x1xf32>
    %166 = arith.cmpf oge, %164, %165 : vector<64x1xf32>
    %167 = vector.broadcast %155 : vector<64x1xf32> to vector<64x64xf32>
    %168 = arith.cmpf oge, %22, %167 : vector<64x64xf32>
    %169 = arith.extui %168 : vector<64x64xi1> to vector<64x64xi32>
    %170 = arith.sitofp %169 : vector<64x64xi32> to vector<64x64xf32>
    %cst_39 = arith.constant dense<0.000000e+00> : vector<64xf32>
    %171 = vector.multi_reduction <add>, %170, %cst_39 [1] : vector<64x64xf32> to vector<64xf32>
    %172 = vector.shape_cast %171 : vector<64xf32> to vector<64x1xf32>
    %173 = vector.broadcast %cst_16 : f32 to vector<64x1xf32>
    %174 = arith.cmpf oge, %172, %173 : vector<64x1xf32>
    %175 = vector.broadcast %158 : vector<64x1xf32> to vector<64x64xf32>
    %176 = arith.cmpf oge, %22, %175 : vector<64x64xf32>
    %177 = arith.extui %176 : vector<64x64xi1> to vector<64x64xi32>
    %178 = arith.sitofp %177 : vector<64x64xi32> to vector<64x64xf32>
    %cst_40 = arith.constant dense<0.000000e+00> : vector<64xf32>
    %179 = vector.multi_reduction <add>, %178, %cst_40 [1] : vector<64x64xf32> to vector<64xf32>
    %180 = vector.shape_cast %179 : vector<64xf32> to vector<64x1xf32>
    %181 = vector.broadcast %cst_16 : f32 to vector<64x1xf32>
    %182 = arith.cmpf oge, %180, %181 : vector<64x1xf32>
    %183 = arith.select %166, %152, %145 : vector<64x1xi1>, vector<64x1xf32>
    %184 = arith.select %174, %155, %183 : vector<64x1xi1>, vector<64x1xf32>
    %185 = arith.select %182, %158, %184 : vector<64x1xi1>, vector<64x1xf32>
    %186 = arith.select %182, %148, %158 : vector<64x1xi1>, vector<64x1xf32>
    %187 = arith.select %174, %186, %155 : vector<64x1xi1>, vector<64x1xf32>
    %188 = arith.select %166, %187, %152 : vector<64x1xi1>, vector<64x1xf32>
    %c4_i32 = arith.constant 4 : i32
    %189 = arith.subf %188, %185 : vector<64x1xf32>
    %cst_41 = arith.constant 2.500000e-01 : f32
    %190 = vector.broadcast %cst_41 : f32 to vector<64x1xf32>
    %191 = arith.mulf %190, %189 : vector<64x1xf32>
    %192 = arith.addf %185, %191 : vector<64x1xf32>
    %cst_42 = arith.constant 5.000000e-01 : f32
    %193 = vector.broadcast %cst_42 : f32 to vector<64x1xf32>
    %194 = arith.mulf %193, %189 : vector<64x1xf32>
    %195 = arith.addf %185, %194 : vector<64x1xf32>
    %cst_43 = arith.constant 7.500000e-01 : f32
    %196 = vector.broadcast %cst_43 : f32 to vector<64x1xf32>
    %197 = arith.mulf %196, %189 : vector<64x1xf32>
    %198 = arith.addf %185, %197 : vector<64x1xf32>
    %199 = vector.broadcast %192 : vector<64x1xf32> to vector<64x64xf32>
    %200 = arith.cmpf oge, %22, %199 : vector<64x64xf32>
    %201 = arith.extui %200 : vector<64x64xi1> to vector<64x64xi32>
    %202 = arith.sitofp %201 : vector<64x64xi32> to vector<64x64xf32>
    %cst_44 = arith.constant dense<0.000000e+00> : vector<64xf32>
    %203 = vector.multi_reduction <add>, %202, %cst_44 [1] : vector<64x64xf32> to vector<64xf32>
    %204 = vector.shape_cast %203 : vector<64xf32> to vector<64x1xf32>
    %205 = vector.broadcast %cst_16 : f32 to vector<64x1xf32>
    %206 = arith.cmpf oge, %204, %205 : vector<64x1xf32>
    %207 = vector.broadcast %195 : vector<64x1xf32> to vector<64x64xf32>
    %208 = arith.cmpf oge, %22, %207 : vector<64x64xf32>
    %209 = arith.extui %208 : vector<64x64xi1> to vector<64x64xi32>
    %210 = arith.sitofp %209 : vector<64x64xi32> to vector<64x64xf32>
    %cst_45 = arith.constant dense<0.000000e+00> : vector<64xf32>
    %211 = vector.multi_reduction <add>, %210, %cst_45 [1] : vector<64x64xf32> to vector<64xf32>
    %212 = vector.shape_cast %211 : vector<64xf32> to vector<64x1xf32>
    %213 = vector.broadcast %cst_16 : f32 to vector<64x1xf32>
    %214 = arith.cmpf oge, %212, %213 : vector<64x1xf32>
    %215 = vector.broadcast %198 : vector<64x1xf32> to vector<64x64xf32>
    %216 = arith.cmpf oge, %22, %215 : vector<64x64xf32>
    %217 = arith.extui %216 : vector<64x64xi1> to vector<64x64xi32>
    %218 = arith.sitofp %217 : vector<64x64xi32> to vector<64x64xf32>
    %cst_46 = arith.constant dense<0.000000e+00> : vector<64xf32>
    %219 = vector.multi_reduction <add>, %218, %cst_46 [1] : vector<64x64xf32> to vector<64xf32>
    %220 = vector.shape_cast %219 : vector<64xf32> to vector<64x1xf32>
    %221 = vector.broadcast %cst_16 : f32 to vector<64x1xf32>
    %222 = arith.cmpf oge, %220, %221 : vector<64x1xf32>
    %223 = arith.select %206, %192, %185 : vector<64x1xi1>, vector<64x1xf32>
    %224 = arith.select %214, %195, %223 : vector<64x1xi1>, vector<64x1xf32>
    %225 = arith.select %222, %198, %224 : vector<64x1xi1>, vector<64x1xf32>
    %226 = arith.select %222, %188, %198 : vector<64x1xi1>, vector<64x1xf32>
    %227 = arith.select %214, %226, %195 : vector<64x1xi1>, vector<64x1xf32>
    %228 = arith.select %206, %227, %192 : vector<64x1xi1>, vector<64x1xf32>
    %c5_i32 = arith.constant 5 : i32
    %229 = arith.subf %228, %225 : vector<64x1xf32>
    %cst_47 = arith.constant 2.500000e-01 : f32
    %230 = vector.broadcast %cst_47 : f32 to vector<64x1xf32>
    %231 = arith.mulf %230, %229 : vector<64x1xf32>
    %232 = arith.addf %225, %231 : vector<64x1xf32>
    %cst_48 = arith.constant 5.000000e-01 : f32
    %233 = vector.broadcast %cst_48 : f32 to vector<64x1xf32>
    %234 = arith.mulf %233, %229 : vector<64x1xf32>
    %235 = arith.addf %225, %234 : vector<64x1xf32>
    %cst_49 = arith.constant 7.500000e-01 : f32
    %236 = vector.broadcast %cst_49 : f32 to vector<64x1xf32>
    %237 = arith.mulf %236, %229 : vector<64x1xf32>
    %238 = arith.addf %225, %237 : vector<64x1xf32>
    %239 = vector.broadcast %232 : vector<64x1xf32> to vector<64x64xf32>
    %240 = arith.cmpf oge, %22, %239 : vector<64x64xf32>
    %241 = arith.extui %240 : vector<64x64xi1> to vector<64x64xi32>
    %242 = arith.sitofp %241 : vector<64x64xi32> to vector<64x64xf32>
    %cst_50 = arith.constant dense<0.000000e+00> : vector<64xf32>
    %243 = vector.multi_reduction <add>, %242, %cst_50 [1] : vector<64x64xf32> to vector<64xf32>
    %244 = vector.shape_cast %243 : vector<64xf32> to vector<64x1xf32>
    %245 = vector.broadcast %cst_16 : f32 to vector<64x1xf32>
    %246 = arith.cmpf oge, %244, %245 : vector<64x1xf32>
    %247 = vector.broadcast %235 : vector<64x1xf32> to vector<64x64xf32>
    %248 = arith.cmpf oge, %22, %247 : vector<64x64xf32>
    %249 = arith.extui %248 : vector<64x64xi1> to vector<64x64xi32>
    %250 = arith.sitofp %249 : vector<64x64xi32> to vector<64x64xf32>
    %cst_51 = arith.constant dense<0.000000e+00> : vector<64xf32>
    %251 = vector.multi_reduction <add>, %250, %cst_51 [1] : vector<64x64xf32> to vector<64xf32>
    %252 = vector.shape_cast %251 : vector<64xf32> to vector<64x1xf32>
    %253 = vector.broadcast %cst_16 : f32 to vector<64x1xf32>
    %254 = arith.cmpf oge, %252, %253 : vector<64x1xf32>
    %255 = vector.broadcast %238 : vector<64x1xf32> to vector<64x64xf32>
    %256 = arith.cmpf oge, %22, %255 : vector<64x64xf32>
    %257 = arith.extui %256 : vector<64x64xi1> to vector<64x64xi32>
    %258 = arith.sitofp %257 : vector<64x64xi32> to vector<64x64xf32>
    %cst_52 = arith.constant dense<0.000000e+00> : vector<64xf32>
    %259 = vector.multi_reduction <add>, %258, %cst_52 [1] : vector<64x64xf32> to vector<64xf32>
    %260 = vector.shape_cast %259 : vector<64xf32> to vector<64x1xf32>
    %261 = vector.broadcast %cst_16 : f32 to vector<64x1xf32>
    %262 = arith.cmpf oge, %260, %261 : vector<64x1xf32>
    %263 = arith.select %246, %232, %225 : vector<64x1xi1>, vector<64x1xf32>
    %264 = arith.select %254, %235, %263 : vector<64x1xi1>, vector<64x1xf32>
    %265 = arith.select %262, %238, %264 : vector<64x1xi1>, vector<64x1xf32>
    %266 = arith.select %262, %228, %238 : vector<64x1xi1>, vector<64x1xf32>
    %267 = arith.select %254, %266, %235 : vector<64x1xi1>, vector<64x1xf32>
    %268 = arith.select %246, %267, %232 : vector<64x1xi1>, vector<64x1xf32>
    %c6_i32 = arith.constant 6 : i32
    %269 = arith.subf %268, %265 : vector<64x1xf32>
    %cst_53 = arith.constant 2.500000e-01 : f32
    %270 = vector.broadcast %cst_53 : f32 to vector<64x1xf32>
    %271 = arith.mulf %270, %269 : vector<64x1xf32>
    %272 = arith.addf %265, %271 : vector<64x1xf32>
    %cst_54 = arith.constant 5.000000e-01 : f32
    %273 = vector.broadcast %cst_54 : f32 to vector<64x1xf32>
    %274 = arith.mulf %273, %269 : vector<64x1xf32>
    %275 = arith.addf %265, %274 : vector<64x1xf32>
    %cst_55 = arith.constant 7.500000e-01 : f32
    %276 = vector.broadcast %cst_55 : f32 to vector<64x1xf32>
    %277 = arith.mulf %276, %269 : vector<64x1xf32>
    %278 = arith.addf %265, %277 : vector<64x1xf32>
    %279 = vector.broadcast %272 : vector<64x1xf32> to vector<64x64xf32>
    %280 = arith.cmpf oge, %22, %279 : vector<64x64xf32>
    %281 = arith.extui %280 : vector<64x64xi1> to vector<64x64xi32>
    %282 = arith.sitofp %281 : vector<64x64xi32> to vector<64x64xf32>
    %cst_56 = arith.constant dense<0.000000e+00> : vector<64xf32>
    %283 = vector.multi_reduction <add>, %282, %cst_56 [1] : vector<64x64xf32> to vector<64xf32>
    %284 = vector.shape_cast %283 : vector<64xf32> to vector<64x1xf32>
    %285 = vector.broadcast %cst_16 : f32 to vector<64x1xf32>
    %286 = arith.cmpf oge, %284, %285 : vector<64x1xf32>
    %287 = vector.broadcast %275 : vector<64x1xf32> to vector<64x64xf32>
    %288 = arith.cmpf oge, %22, %287 : vector<64x64xf32>
    %289 = arith.extui %288 : vector<64x64xi1> to vector<64x64xi32>
    %290 = arith.sitofp %289 : vector<64x64xi32> to vector<64x64xf32>
    %cst_57 = arith.constant dense<0.000000e+00> : vector<64xf32>
    %291 = vector.multi_reduction <add>, %290, %cst_57 [1] : vector<64x64xf32> to vector<64xf32>
    %292 = vector.shape_cast %291 : vector<64xf32> to vector<64x1xf32>
    %293 = vector.broadcast %cst_16 : f32 to vector<64x1xf32>
    %294 = arith.cmpf oge, %292, %293 : vector<64x1xf32>
    %295 = vector.broadcast %278 : vector<64x1xf32> to vector<64x64xf32>
    %296 = arith.cmpf oge, %22, %295 : vector<64x64xf32>
    %297 = arith.extui %296 : vector<64x64xi1> to vector<64x64xi32>
    %298 = arith.sitofp %297 : vector<64x64xi32> to vector<64x64xf32>
    %cst_58 = arith.constant dense<0.000000e+00> : vector<64xf32>
    %299 = vector.multi_reduction <add>, %298, %cst_58 [1] : vector<64x64xf32> to vector<64xf32>
    %300 = vector.shape_cast %299 : vector<64xf32> to vector<64x1xf32>
    %301 = vector.broadcast %cst_16 : f32 to vector<64x1xf32>
    %302 = arith.cmpf oge, %300, %301 : vector<64x1xf32>
    %303 = arith.select %286, %272, %265 : vector<64x1xi1>, vector<64x1xf32>
    %304 = arith.select %294, %275, %303 : vector<64x1xi1>, vector<64x1xf32>
    %305 = arith.select %302, %278, %304 : vector<64x1xi1>, vector<64x1xf32>
    %306 = arith.select %302, %268, %278 : vector<64x1xi1>, vector<64x1xf32>
    %307 = arith.select %294, %306, %275 : vector<64x1xi1>, vector<64x1xf32>
    %308 = arith.select %286, %307, %272 : vector<64x1xi1>, vector<64x1xf32>
    %c7_i32 = arith.constant 7 : i32
    %309 = arith.subf %308, %305 : vector<64x1xf32>
    %cst_59 = arith.constant 2.500000e-01 : f32
    %310 = vector.broadcast %cst_59 : f32 to vector<64x1xf32>
    %311 = arith.mulf %310, %309 : vector<64x1xf32>
    %312 = arith.addf %305, %311 : vector<64x1xf32>
    %cst_60 = arith.constant 5.000000e-01 : f32
    %313 = vector.broadcast %cst_60 : f32 to vector<64x1xf32>
    %314 = arith.mulf %313, %309 : vector<64x1xf32>
    %315 = arith.addf %305, %314 : vector<64x1xf32>
    %cst_61 = arith.constant 7.500000e-01 : f32
    %316 = vector.broadcast %cst_61 : f32 to vector<64x1xf32>
    %317 = arith.mulf %316, %309 : vector<64x1xf32>
    %318 = arith.addf %305, %317 : vector<64x1xf32>
    %319 = vector.broadcast %312 : vector<64x1xf32> to vector<64x64xf32>
    %320 = arith.cmpf oge, %22, %319 : vector<64x64xf32>
    %321 = arith.extui %320 : vector<64x64xi1> to vector<64x64xi32>
    %322 = arith.sitofp %321 : vector<64x64xi32> to vector<64x64xf32>
    %cst_62 = arith.constant dense<0.000000e+00> : vector<64xf32>
    %323 = vector.multi_reduction <add>, %322, %cst_62 [1] : vector<64x64xf32> to vector<64xf32>
    %324 = vector.shape_cast %323 : vector<64xf32> to vector<64x1xf32>
    %325 = vector.broadcast %cst_16 : f32 to vector<64x1xf32>
    %326 = arith.cmpf oge, %324, %325 : vector<64x1xf32>
    %327 = vector.broadcast %315 : vector<64x1xf32> to vector<64x64xf32>
    %328 = arith.cmpf oge, %22, %327 : vector<64x64xf32>
    %329 = arith.extui %328 : vector<64x64xi1> to vector<64x64xi32>
    %330 = arith.sitofp %329 : vector<64x64xi32> to vector<64x64xf32>
    %cst_63 = arith.constant dense<0.000000e+00> : vector<64xf32>
    %331 = vector.multi_reduction <add>, %330, %cst_63 [1] : vector<64x64xf32> to vector<64xf32>
    %332 = vector.shape_cast %331 : vector<64xf32> to vector<64x1xf32>
    %333 = vector.broadcast %cst_16 : f32 to vector<64x1xf32>
    %334 = arith.cmpf oge, %332, %333 : vector<64x1xf32>
    %335 = vector.broadcast %318 : vector<64x1xf32> to vector<64x64xf32>
    %336 = arith.cmpf oge, %22, %335 : vector<64x64xf32>
    %337 = arith.extui %336 : vector<64x64xi1> to vector<64x64xi32>
    %338 = arith.sitofp %337 : vector<64x64xi32> to vector<64x64xf32>
    %cst_64 = arith.constant dense<0.000000e+00> : vector<64xf32>
    %339 = vector.multi_reduction <add>, %338, %cst_64 [1] : vector<64x64xf32> to vector<64xf32>
    %340 = vector.shape_cast %339 : vector<64xf32> to vector<64x1xf32>
    %341 = vector.broadcast %cst_16 : f32 to vector<64x1xf32>
    %342 = arith.cmpf oge, %340, %341 : vector<64x1xf32>
    %343 = arith.select %326, %312, %305 : vector<64x1xi1>, vector<64x1xf32>
    %344 = arith.select %334, %315, %343 : vector<64x1xi1>, vector<64x1xf32>
    %345 = arith.select %342, %318, %344 : vector<64x1xi1>, vector<64x1xf32>
    %346 = arith.select %342, %308, %318 : vector<64x1xi1>, vector<64x1xf32>
    %347 = arith.select %334, %346, %315 : vector<64x1xi1>, vector<64x1xf32>
    %348 = arith.select %326, %347, %312 : vector<64x1xi1>, vector<64x1xf32>
    %349 = vector.broadcast %345 : vector<64x1xf32> to vector<64x64xf32>
    %350 = arith.cmpf oge, %22, %349 : vector<64x64xf32>
    %cst_65 = arith.constant 0.000000e+00 : f32
    %351 = vector.broadcast %cst_65 : f32 to vector<64x64xf32>
    %352 = arith.select %350, %22, %351 : vector<64x64xi1>, vector<64x64xf32>
    %cst_66 = arith.constant dense<0xFF800000> : vector<64xf32>
    %353 = vector.multi_reduction <maximumf>, %352, %cst_66 [1] : vector<64x64xf32> to vector<64xf32>
    %354 = vector.shape_cast %353 : vector<64xf32> to vector<64x1xf32>
    %355 = vector.broadcast %354 : vector<64x1xf32> to vector<64x64xf32>
    %356 = arith.subf %352, %355 : vector<64x64xf32>
    %357 = math.exp %356 : vector<64x64xf32>
    %cst_67 = arith.constant dense<0.000000e+00> : vector<64xf32>
    %358 = vector.multi_reduction <add>, %357, %cst_67 [1] : vector<64x64xf32> to vector<64xf32>
    %359 = vector.shape_cast %358 : vector<64xf32> to vector<64x1xf32>
    %360 = tpu.reciprocal %359 {approx = true} : vector<64x1xf32> -> vector<64x1xf32>
    %361 = vector.broadcast %360 : vector<64x1xf32> to vector<64x64xf32>
    %362 = arith.mulf %357, %361 : vector<64x64xf32>
    %363 = arith.truncf %362 : vector<64x64xf32> to vector<64x64xbf16>
    %cst_68 = arith.constant dense<0.000000e+00> : vector<64x64xf32>
    %364 = tpu.matmul %363, %19, %cst_68 {dimension_numbers = #tpu.dot_dimension_numbers<[1], [0], [0], [1], [0, 0, 1, 1], [], []>} : vector<64x64xbf16>, vector<64x64xbf16>, vector<64x64xf32> -> vector<64x64xf32>
    %c0_69 = arith.constant 0 : index
    %c0_70 = arith.constant 0 : index
    %c0_71 = arith.constant 0 : index
    %365 = vector.load %arg6[%c0_69, %c0_70, %c0_71] : memref<1x64x64xf32, #tpu.memory_space<vmem>>, vector<1x64x64xf32>
    %366 = vector.shape_cast %365 : vector<1x64x64xf32> to vector<64x64xf32>
    %367 = vector.shape_cast %364 : vector<64x64xf32> to vector<1x64x64xf32>
    tpu.vector_store %arg6[%c0_69, %c0_70, %c0_71], %367 {strides = array<i32>} : memref<1x64x64xf32, #tpu.memory_space<vmem>>, vector<1x64x64xf32>,
    return
  }
  func.func @transform_0(%arg0: i32) -> (i32, i32, i32) {
    %c0_i32 = arith.constant 0 : i32
    %c0_i32_0 = arith.constant 0 : i32
    %c0_i32_1 = arith.constant 0 : i32
    return %arg0, %c0_i32, %c0_i32_0 : i32, i32, i32
  }
  func.func @transform_1(%arg0: i32) -> (i32, i32, i32) {
    %c0_i32 = arith.constant 0 : i32
    %c0_i32_0 = arith.constant 0 : i32
    %c0_i32_1 = arith.constant 0 : i32
    %c0_i32_2 = arith.constant 0 : i32
    return %c0_i32, %c0_i32_0, %c0_i32_1 : i32, i32, i32
  }
  func.func @transform_2(%arg0: i32) -> (i32, i32) {
    %c0_i32 = arith.constant 0 : i32
    %c0_i32_0 = arith.constant 0 : i32
    %c0_i32_1 = arith.constant 0 : i32
    return %c0_i32, %c0_i32_0 : i32, i32
  }
  func.func @transform_3(%arg0: i32) -> (i32, i32) {
    %c0_i32 = arith.constant 0 : i32
    %c0_i32_0 = arith.constant 0 : i32
    %c0_i32_1 = arith.constant 0 : i32
    return %c0_i32, %c0_i32_0 : i32, i32
  }
  func.func @transform_4(%arg0: i32) -> (i32, i32) {
    %c0_i32 = arith.constant 0 : i32
    %c0_i32_0 = arith.constant 0 : i32
    %c0_i32_1 = arith.constant 0 : i32
    return %c0_i32, %c0_i32_0 : i32, i32
  }
  func.func @transform_5(%arg0: i32) -> (i32, i32, i32) {
    %c0_i32 = arith.constant 0 : i32
    %c0_i32_0 = arith.constant 0 : i32
    %c0_i32_1 = arith.constant 0 : i32
    return %arg0, %c0_i32, %c0_i32_0 : i32, i32, i32
  }
}

module attributes {stable_mosaic.version = 11 : i64} {
  func.func @_moe_kernel(%arg0: i32, %arg1: i32, %arg2: memref<128x64xf32, #tpu.memory_space<vmem>>, %arg3: memref<64x4xf32, #tpu.memory_space<vmem>>, %arg4: memref<1x64x256xbf16, #tpu.memory_space<vmem>>, %arg5: memref<1x1x256xf32, #tpu.memory_space<vmem>>, %arg6: memref<1x256x64xbf16, #tpu.memory_space<vmem>>, %arg7: memref<1x1x64xf32, #tpu.memory_space<vmem>>, %arg8: memref<128x64xf32, #tpu.memory_space<vmem>>, %arg9: memref<1x1x4xf32, #tpu.memory_space<vmem>>, %arg10: memref<1x1x4xf32, #tpu.memory_space<vmem>>, %arg11: memref<128x4xf32, #tpu.memory_space<vmem>>) attributes {dimension_semantics = [#tpu.dimension_semantics<parallel>, #tpu.dimension_semantics<arbitrary>], iteration_bounds = array<i64: 1, 4>, scalar_prefetch = 0 : i64, scratch_operands = 1 : i64, tpu.core_type = #tpu.core_type<tc>, window_params = [{transform_indices = @transform_0, window_bounds = array<i64: 128, 64>}, {pipeline_mode = #tpu.pipeline_mode<synchronous>, transform_indices = @transform_1, window_bounds = array<i64: 64, 4>}, {transform_indices = @transform_2, window_bounds = array<i64: 1, 64, 256>}, {transform_indices = @transform_3, window_bounds = array<i64: 1, 1, 256>}, {transform_indices = @transform_4, window_bounds = array<i64: 1, 256, 64>}, {transform_indices = @transform_5, window_bounds = array<i64: 1, 1, 64>}, {transform_indices = @transform_6, window_bounds = array<i64: 128, 64>}, {transform_indices = @transform_7, window_bounds = array<i64: 1, 1, 4>}, {transform_indices = @transform_8, window_bounds = array<i64: 1, 1, 4>}]} {
    %c0_i32 = arith.constant 0 : i32
    %0 = arith.cmpi eq, %arg1, %c0_i32 : i32
    %1 = arith.extui %0 : i1 to i32
    %c0_i32_0 = arith.constant 0 : i32
    %2 = arith.cmpi ne, %1, %c0_i32_0 : i32
    scf.if %2 {
      %c0_26 = arith.constant 0 : index
      %c0_27 = arith.constant 0 : index
      %48 = vector.load %arg2[%c0_26, %c0_27] : memref<128x64xf32, #tpu.memory_space<vmem>>, vector<128x64xf32>
      %c0_28 = arith.constant 0 : index
      %c0_29 = arith.constant 0 : index
      %49 = vector.load %arg3[%c0_28, %c0_29] : memref<64x4xf32, #tpu.memory_space<vmem>>, vector<64x4xf32>
      %cst_30 = arith.constant dense<0.000000e+00> : vector<128x4xf32>
      %50 = tpu.matmul %48, %49, %cst_30 {dimension_numbers = #tpu.dot_dimension_numbers<[1], [0], [0], [1], [0, 0, 1, 1], [], []>} : vector<128x64xf32>, vector<64x4xf32>, vector<128x4xf32> -> vector<128x4xf32>
      %cst_31 = arith.constant dense<0xFF800000> : vector<128xf32>
      %51 = vector.multi_reduction <maximumf>, %50, %cst_31 [1] : vector<128x4xf32> to vector<128xf32>
      %52 = vector.shape_cast %51 : vector<128xf32> to vector<128x1xf32>
      %53 = vector.broadcast %52 : vector<128x1xf32> to vector<128x4xf32>
      %54 = arith.subf %50, %53 : vector<128x4xf32>
      %55 = math.exp %54 : vector<128x4xf32>
      %cst_32 = arith.constant dense<0.000000e+00> : vector<128xf32>
      %56 = vector.multi_reduction <add>, %55, %cst_32 [1] : vector<128x4xf32> to vector<128xf32>
      %57 = vector.shape_cast %56 : vector<128xf32> to vector<128x1xf32>
      %58 = vector.broadcast %57 : vector<128x1xf32> to vector<128x4xf32>
      %59 = arith.divf %55, %58 : vector<128x4xf32>
      %60 = tpu.iota {dimensions = array<i32: 1>} : vector<128x4xi32>
      %cst_33 = arith.constant dense<0xFF800000> : vector<128xf32>
      %61 = vector.multi_reduction <maximumf>, %59, %cst_33 [1] : vector<128x4xf32> to vector<128xf32>
      %62 = vector.shape_cast %61 : vector<128xf32> to vector<128x1xf32>
      %63 = vector.broadcast %62 : vector<128x1xf32> to vector<128x4xf32>
      %64 = arith.cmpf oeq, %59, %63 : vector<128x4xf32>
      %c4_i32 = arith.constant 4 : i32
      %65 = vector.broadcast %c4_i32 : i32 to vector<128x4xi32>
      %66 = arith.select %64, %60, %65 : vector<128x4xi1>, vector<128x4xi32>
      %cst_34 = arith.constant dense<2147483647> : vector<128xi32>
      %67 = vector.multi_reduction <minsi>, %66, %cst_34 [1] : vector<128x4xi32> to vector<128xi32>
      %68 = vector.shape_cast %67 : vector<128xi32> to vector<128x1xi32>
      %69 = vector.broadcast %68 : vector<128x1xi32> to vector<128x4xi32>
      %70 = arith.cmpi eq, %60, %69 : vector<128x4xi32>
      %71 = arith.extui %70 : vector<128x4xi1> to vector<128x4xi32>
      %72 = arith.sitofp %71 : vector<128x4xi32> to vector<128x4xf32>
      %cst_35 = arith.constant 1.000000e+00 : f32
      %73 = vector.broadcast %cst_35 : f32 to vector<128x4xf32>
      %74 = arith.subf %73, %72 : vector<128x4xf32>
      %75 = arith.mulf %59, %74 : vector<128x4xf32>
      %cst_36 = arith.constant dense<0xFF800000> : vector<128xf32>
      %76 = vector.multi_reduction <maximumf>, %75, %cst_36 [1] : vector<128x4xf32> to vector<128xf32>
      %77 = vector.shape_cast %76 : vector<128xf32> to vector<128x1xf32>
      %78 = vector.broadcast %77 : vector<128x1xf32> to vector<128x4xf32>
      %79 = arith.cmpf oeq, %75, %78 : vector<128x4xf32>
      %c4_i32_37 = arith.constant 4 : i32
      %80 = vector.broadcast %c4_i32_37 : i32 to vector<128x4xi32>
      %81 = arith.select %79, %60, %80 : vector<128x4xi1>, vector<128x4xi32>
      %cst_38 = arith.constant dense<2147483647> : vector<128xi32>
      %82 = vector.multi_reduction <minsi>, %81, %cst_38 [1] : vector<128x4xi32> to vector<128xi32>
      %83 = vector.shape_cast %82 : vector<128xi32> to vector<128x1xi32>
      %84 = vector.broadcast %83 : vector<128x1xi32> to vector<128x4xi32>
      %85 = arith.cmpi eq, %60, %84 : vector<128x4xi32>
      %86 = arith.extui %85 : vector<128x4xi1> to vector<128x4xi32>
      %87 = arith.sitofp %86 : vector<128x4xi32> to vector<128x4xf32>
      %88 = arith.mulf %59, %72 : vector<128x4xf32>
      %cst_39 = arith.constant dense<0.000000e+00> : vector<128xf32>
      %89 = vector.multi_reduction <add>, %88, %cst_39 [1] : vector<128x4xf32> to vector<128xf32>
      %90 = vector.shape_cast %89 : vector<128xf32> to vector<128x1xf32>
      %91 = arith.mulf %59, %87 : vector<128x4xf32>
      %cst_40 = arith.constant dense<0.000000e+00> : vector<128xf32>
      %92 = vector.multi_reduction <add>, %91, %cst_40 [1] : vector<128x4xf32> to vector<128xf32>
      %93 = vector.shape_cast %92 : vector<128xf32> to vector<128x1xf32>
      %94 = arith.addf %90, %93 : vector<128x1xf32>
      %cst_41 = arith.constant 9.99999971E-10 : f32
      %95 = vector.broadcast %cst_41 : f32 to vector<128x1xf32>
      %96 = arith.maximumf %94, %95 : vector<128x1xf32>
      %97 = arith.divf %90, %96 : vector<128x1xf32>
      %98 = vector.broadcast %97 : vector<128x1xf32> to vector<128x4xf32>
      %99 = arith.mulf %98, %72 : vector<128x4xf32>
      %100 = arith.divf %93, %96 : vector<128x1xf32>
      %101 = vector.broadcast %100 : vector<128x1xf32> to vector<128x4xf32>
      %102 = arith.mulf %101, %87 : vector<128x4xf32>
      %103 = arith.addf %99, %102 : vector<128x4xf32>
      %c0_42 = arith.constant 0 : index
      %c0_43 = arith.constant 0 : index
      %104 = vector.load %arg11[%c0_42, %c0_43] : memref<128x4xf32, #tpu.memory_space<vmem>>, vector<128x4xf32>
      tpu.vector_store %arg11[%c0_42, %c0_43], %103 {strides = array<i32>} : memref<128x4xf32, #tpu.memory_space<vmem>>, vector<128x4xf32>,
      %cst_44 = arith.constant dense<0.000000e+00> : vector<4xf32>
      %105 = vector.multi_reduction <add>, %59, %cst_44 [0] : vector<128x4xf32> to vector<4xf32>
      %106 = vector.shape_cast %105 : vector<4xf32> to vector<1x4xf32>
      %c0_45 = arith.constant 0 : index
      %c0_46 = arith.constant 0 : index
      %c0_47 = arith.constant 0 : index
      %107 = vector.load %arg9[%c0_45, %c0_46, %c0_47] : memref<1x1x4xf32, #tpu.memory_space<vmem>>, vector<1x1x4xf32>
      %108 = vector.shape_cast %107 : vector<1x1x4xf32> to vector<1x4xf32>
      %109 = vector.shape_cast %106 : vector<1x4xf32> to vector<1x1x4xf32>
      tpu.vector_store %arg9[%c0_45, %c0_46, %c0_47], %109 {strides = array<i32>} : memref<1x1x4xf32, #tpu.memory_space<vmem>>, vector<1x1x4xf32>,
      %cst_48 = arith.constant dense<0.000000e+00> : vector<4xf32>
      %110 = vector.multi_reduction <add>, %72, %cst_48 [0] : vector<128x4xf32> to vector<4xf32>
      %111 = vector.shape_cast %110 : vector<4xf32> to vector<1x4xf32>
      %c0_49 = arith.constant 0 : index
      %c0_50 = arith.constant 0 : index
      %c0_51 = arith.constant 0 : index
      %112 = vector.load %arg10[%c0_49, %c0_50, %c0_51] : memref<1x1x4xf32, #tpu.memory_space<vmem>>, vector<1x1x4xf32>
      %113 = vector.shape_cast %112 : vector<1x1x4xf32> to vector<1x4xf32>
      %114 = vector.shape_cast %111 : vector<1x4xf32> to vector<1x1x4xf32>
      tpu.vector_store %arg10[%c0_49, %c0_50, %c0_51], %114 {strides = array<i32>} : memref<1x1x4xf32, #tpu.memory_space<vmem>>, vector<1x1x4xf32>,
      %cst_52 = arith.constant 0.000000e+00 : f32
      %115 = vector.broadcast %cst_52 : f32 to vector<128x64xf32>
      %c0_53 = arith.constant 0 : index
      %c0_54 = arith.constant 0 : index
      %116 = vector.load %arg8[%c0_53, %c0_54] : memref<128x64xf32, #tpu.memory_space<vmem>>, vector<128x64xf32>
      tpu.vector_store %arg8[%c0_53, %c0_54], %115 {strides = array<i32>} : memref<128x64xf32, #tpu.memory_space<vmem>>, vector<128x64xf32>,
    } else {
    }
    %c0 = arith.constant 0 : index
    %c0_1 = arith.constant 0 : index
    %3 = vector.load %arg2[%c0, %c0_1] : memref<128x64xf32, #tpu.memory_space<vmem>>, vector<128x64xf32>
    %4 = arith.truncf %3 : vector<128x64xf32> to vector<128x64xbf16>
    %c0_2 = arith.constant 0 : index
    %c0_3 = arith.constant 0 : index
    %c0_4 = arith.constant 0 : index
    %5 = vector.load %arg4[%c0_2, %c0_3, %c0_4] : memref<1x64x256xbf16, #tpu.memory_space<vmem>>, vector<1x64x256xbf16>
    %6 = vector.shape_cast %5 : vector<1x64x256xbf16> to vector<64x256xbf16>
    %cst = arith.constant dense<0.000000e+00> : vector<128x256xf32>
    %7 = tpu.matmul %4, %6, %cst {dimension_numbers = #tpu.dot_dimension_numbers<[1], [0], [0], [1], [0, 0, 1, 1], [], []>} : vector<128x64xbf16>, vector<64x256xbf16>, vector<128x256xf32> -> vector<128x256xf32>
    %c0_5 = arith.constant 0 : index
    %c0_6 = arith.constant 0 : index
    %c0_7 = arith.constant 0 : index
    %8 = vector.load %arg5[%c0_5, %c0_6, %c0_7] : memref<1x1x256xf32, #tpu.memory_space<vmem>>, vector<1x1x256xf32>
    %9 = vector.shape_cast %8 : vector<1x1x256xf32> to vector<1x256xf32>
    %10 = vector.broadcast %9 : vector<1x256xf32> to vector<128x256xf32>
    %11 = arith.addf %7, %10 : vector<128x256xf32>
    %cst_8 = arith.constant 5.000000e-01 : f32
    %12 = vector.broadcast %cst_8 : f32 to vector<128x256xf32>
    %13 = arith.mulf %12, %11 : vector<128x256xf32>
    %cst_9 = arith.constant 4.471500e-02 : f32
    %14 = vector.broadcast %cst_9 : f32 to vector<128x256xf32>
    %15 = arith.mulf %14, %11 : vector<128x256xf32>
    %16 = arith.mulf %15, %11 : vector<128x256xf32>
    %17 = arith.mulf %16, %11 : vector<128x256xf32>
    %18 = arith.addf %11, %17 : vector<128x256xf32>
    %cst_10 = arith.constant 0.797884583 : f32
    %19 = vector.broadcast %cst_10 : f32 to vector<128x256xf32>
    %20 = arith.mulf %19, %18 : vector<128x256xf32>
    %21 = math.tanh %20 : vector<128x256xf32>
    %cst_11 = arith.constant 1.000000e+00 : f32
    %22 = vector.broadcast %cst_11 : f32 to vector<128x256xf32>
    %23 = arith.addf %22, %21 : vector<128x256xf32>
    %24 = arith.mulf %13, %23 : vector<128x256xf32>
    %25 = arith.truncf %24 : vector<128x256xf32> to vector<128x256xbf16>
    %c0_12 = arith.constant 0 : index
    %c0_13 = arith.constant 0 : index
    %c0_14 = arith.constant 0 : index
    %26 = vector.load %arg6[%c0_12, %c0_13, %c0_14] : memref<1x256x64xbf16, #tpu.memory_space<vmem>>, vector<1x256x64xbf16>
    %27 = vector.shape_cast %26 : vector<1x256x64xbf16> to vector<256x64xbf16>
    %cst_15 = arith.constant dense<0.000000e+00> : vector<128x64xf32>
    %28 = tpu.matmul %25, %27, %cst_15 {dimension_numbers = #tpu.dot_dimension_numbers<[1], [0], [0], [1], [0, 0, 1, 1], [], []>} : vector<128x256xbf16>, vector<256x64xbf16>, vector<128x64xf32> -> vector<128x64xf32>
    %c0_16 = arith.constant 0 : index
    %c0_17 = arith.constant 0 : index
    %c0_18 = arith.constant 0 : index
    %29 = vector.load %arg7[%c0_16, %c0_17, %c0_18] : memref<1x1x64xf32, #tpu.memory_space<vmem>>, vector<1x1x64xf32>
    %30 = vector.shape_cast %29 : vector<1x1x64xf32> to vector<1x64xf32>
    %31 = vector.broadcast %30 : vector<1x64xf32> to vector<128x64xf32>
    %32 = arith.addf %28, %31 : vector<128x64xf32>
    %33 = tpu.iota {dimensions = array<i32: 1>} : vector<1x4xi32>
    %34 = vector.broadcast %arg1 : i32 to vector<1x4xi32>
    %35 = arith.cmpi eq, %33, %34 : vector<1x4xi32>
    %36 = arith.extui %35 : vector<1x4xi1> to vector<1x4xi32>
    %37 = arith.sitofp %36 : vector<1x4xi32> to vector<1x4xf32>
    %c0_19 = arith.constant 0 : index
    %c0_20 = arith.constant 0 : index
    %38 = vector.load %arg11[%c0_19, %c0_20] : memref<128x4xf32, #tpu.memory_space<vmem>>, vector<128x4xf32>
    %39 = vector.broadcast %37 : vector<1x4xf32> to vector<128x4xf32>
    %40 = arith.mulf %38, %39 : vector<128x4xf32>
    %cst_21 = arith.constant dense<0.000000e+00> : vector<128xf32>
    %41 = vector.multi_reduction <add>, %40, %cst_21 [1] : vector<128x4xf32> to vector<128xf32>
    %42 = vector.shape_cast %41 : vector<128xf32> to vector<128x1xf32>
    %c0_22 = arith.constant 0 : index
    %c0_23 = arith.constant 0 : index
    %43 = vector.load %arg8[%c0_22, %c0_23] : memref<128x64xf32, #tpu.memory_space<vmem>>, vector<128x64xf32>
    %44 = vector.broadcast %42 : vector<128x1xf32> to vector<128x64xf32>
    %45 = arith.mulf %44, %32 : vector<128x64xf32>
    %46 = arith.addf %43, %45 : vector<128x64xf32>
    %c0_24 = arith.constant 0 : index
    %c0_25 = arith.constant 0 : index
    %47 = vector.load %arg8[%c0_24, %c0_25] : memref<128x64xf32, #tpu.memory_space<vmem>>, vector<128x64xf32>
    tpu.vector_store %arg8[%c0_24, %c0_25], %46 {strides = array<i32>} : memref<128x64xf32, #tpu.memory_space<vmem>>, vector<128x64xf32>,
    return
  }
  func.func @transform_0(%arg0: i32, %arg1: i32) -> (i32, i32) {
    %c0_i32 = arith.constant 0 : i32
    %c0_i32_0 = arith.constant 0 : i32
    return %arg0, %c0_i32 : i32, i32
  }
  func.func @transform_1(%arg0: i32, %arg1: i32) -> (i32, i32) {
    %c0_i32 = arith.constant 0 : i32
    %c0_i32_0 = arith.constant 0 : i32
    %c0_i32_1 = arith.constant 0 : i32
    return %c0_i32, %c0_i32_0 : i32, i32
  }
  func.func @transform_2(%arg0: i32, %arg1: i32) -> (i32, i32, i32) {
    %c0_i32 = arith.constant 0 : i32
    %c0_i32_0 = arith.constant 0 : i32
    %c0_i32_1 = arith.constant 0 : i32
    return %arg1, %c0_i32, %c0_i32_0 : i32, i32, i32
  }
  func.func @transform_3(%arg0: i32, %arg1: i32) -> (i32, i32, i32) {
    %c0_i32 = arith.constant 0 : i32
    %c0_i32_0 = arith.constant 0 : i32
    %c0_i32_1 = arith.constant 0 : i32
    return %arg1, %c0_i32, %c0_i32_0 : i32, i32, i32
  }
  func.func @transform_4(%arg0: i32, %arg1: i32) -> (i32, i32, i32) {
    %c0_i32 = arith.constant 0 : i32
    %c0_i32_0 = arith.constant 0 : i32
    %c0_i32_1 = arith.constant 0 : i32
    return %arg1, %c0_i32, %c0_i32_0 : i32, i32, i32
  }
  func.func @transform_5(%arg0: i32, %arg1: i32) -> (i32, i32, i32) {
    %c0_i32 = arith.constant 0 : i32
    %c0_i32_0 = arith.constant 0 : i32
    %c0_i32_1 = arith.constant 0 : i32
    return %arg1, %c0_i32, %c0_i32_0 : i32, i32, i32
  }
  func.func @transform_6(%arg0: i32, %arg1: i32) -> (i32, i32) {
    %c0_i32 = arith.constant 0 : i32
    %c0_i32_0 = arith.constant 0 : i32
    return %arg0, %c0_i32 : i32, i32
  }
  func.func @transform_7(%arg0: i32, %arg1: i32) -> (i32, i32, i32) {
    %c0_i32 = arith.constant 0 : i32
    %c0_i32_0 = arith.constant 0 : i32
    %c0_i32_1 = arith.constant 0 : i32
    return %arg0, %c0_i32, %c0_i32_0 : i32, i32, i32
  }
  func.func @transform_8(%arg0: i32, %arg1: i32) -> (i32, i32, i32) {
    %c0_i32 = arith.constant 0 : i32
    %c0_i32_0 = arith.constant 0 : i32
    %c0_i32_1 = arith.constant 0 : i32
    return %arg0, %c0_i32, %c0_i32_0 : i32, i32, i32
  }
}

module attributes {stable_mosaic.version = 11 : i64} {
  func.func @_head_kernel(%arg0: i32, %arg1: memref<128x64xf32, #tpu.memory_space<vmem>>, %arg2: memref<1x64xf32, #tpu.memory_space<vmem>>, %arg3: memref<1x64xf32, #tpu.memory_space<vmem>>, %arg4: memref<64x512xbf16, #tpu.memory_space<vmem>>, %arg5: memref<128x512xf32, #tpu.memory_space<vmem>>) attributes {dimension_semantics = [#tpu.dimension_semantics<parallel>], iteration_bounds = array<i64: 1>, scalar_prefetch = 0 : i64, scratch_operands = 0 : i64, tpu.core_type = #tpu.core_type<tc>, window_params = [{pipeline_mode = #tpu.pipeline_mode<synchronous>, transform_indices = @transform_0, window_bounds = array<i64: 128, 64>}, {pipeline_mode = #tpu.pipeline_mode<synchronous>, transform_indices = @transform_1, window_bounds = array<i64: 1, 64>}, {pipeline_mode = #tpu.pipeline_mode<synchronous>, transform_indices = @transform_2, window_bounds = array<i64: 1, 64>}, {transform_indices = @transform_3, window_bounds = array<i64: 64, 512>}, {transform_indices = @transform_4, window_bounds = array<i64: 128, 512>}]} {
    %c0 = arith.constant 0 : index
    %c0_0 = arith.constant 0 : index
    %0 = vector.load %arg1[%c0, %c0_0] : memref<128x64xf32, #tpu.memory_space<vmem>>, vector<128x64xf32>
    %cst = arith.constant dense<0.000000e+00> : vector<128xf32>
    %1 = vector.multi_reduction <add>, %0, %cst [1] : vector<128x64xf32> to vector<128xf32>
    %2 = vector.shape_cast %1 : vector<128xf32> to vector<128x1xf32>
    %cst_1 = arith.constant 6.400000e+01 : f32
    %3 = vector.broadcast %cst_1 : f32 to vector<128x1xf32>
    %4 = arith.divf %2, %3 : vector<128x1xf32>
    %5 = vector.broadcast %4 : vector<128x1xf32> to vector<128x64xf32>
    %6 = arith.subf %0, %5 : vector<128x64xf32>
    %7 = arith.mulf %6, %6 : vector<128x64xf32>
    %cst_2 = arith.constant dense<0.000000e+00> : vector<128xf32>
    %8 = vector.multi_reduction <add>, %7, %cst_2 [1] : vector<128x64xf32> to vector<128xf32>
    %9 = vector.shape_cast %8 : vector<128xf32> to vector<128x1xf32>
    %cst_3 = arith.constant 6.400000e+01 : f32
    %10 = vector.broadcast %cst_3 : f32 to vector<128x1xf32>
    %11 = arith.divf %9, %10 : vector<128x1xf32>
    %12 = vector.broadcast %4 : vector<128x1xf32> to vector<128x64xf32>
    %13 = arith.subf %0, %12 : vector<128x64xf32>
    %cst_4 = arith.constant 9.99999974E-6 : f32
    %14 = vector.broadcast %cst_4 : f32 to vector<128x1xf32>
    %15 = arith.addf %11, %14 : vector<128x1xf32>
    %16 = math.rsqrt %15 : vector<128x1xf32>
    %17 = vector.broadcast %16 : vector<128x1xf32> to vector<128x64xf32>
    %18 = arith.mulf %13, %17 : vector<128x64xf32>
    %c0_5 = arith.constant 0 : index
    %c0_6 = arith.constant 0 : index
    %19 = vector.load %arg2[%c0_5, %c0_6] : memref<1x64xf32, #tpu.memory_space<vmem>>, vector<1x64xf32>
    %20 = vector.broadcast %19 : vector<1x64xf32> to vector<128x64xf32>
    %21 = arith.mulf %18, %20 : vector<128x64xf32>
    %c0_7 = arith.constant 0 : index
    %c0_8 = arith.constant 0 : index
    %22 = vector.load %arg3[%c0_7, %c0_8] : memref<1x64xf32, #tpu.memory_space<vmem>>, vector<1x64xf32>
    %23 = vector.broadcast %22 : vector<1x64xf32> to vector<128x64xf32>
    %24 = arith.addf %21, %23 : vector<128x64xf32>
    %25 = arith.truncf %24 : vector<128x64xf32> to vector<128x64xbf16>
    %c0_9 = arith.constant 0 : index
    %c0_10 = arith.constant 0 : index
    %26 = vector.load %arg4[%c0_9, %c0_10] : memref<64x512xbf16, #tpu.memory_space<vmem>>, vector<64x512xbf16>
    %cst_11 = arith.constant dense<0.000000e+00> : vector<128x512xf32>
    %27 = tpu.matmul %25, %26, %cst_11 {dimension_numbers = #tpu.dot_dimension_numbers<[1], [0], [0], [1], [0, 0, 1, 1], [], []>} : vector<128x64xbf16>, vector<64x512xbf16>, vector<128x512xf32> -> vector<128x512xf32>
    %c0_12 = arith.constant 0 : index
    %c0_13 = arith.constant 0 : index
    %28 = vector.load %arg5[%c0_12, %c0_13] : memref<128x512xf32, #tpu.memory_space<vmem>>, vector<128x512xf32>
    tpu.vector_store %arg5[%c0_12, %c0_13], %27 {strides = array<i32>} : memref<128x512xf32, #tpu.memory_space<vmem>>, vector<128x512xf32>,
    return
  }
  func.func @transform_0(%arg0: i32) -> (i32, i32) {
    %c0_i32 = arith.constant 0 : i32
    %c0_i32_0 = arith.constant 0 : i32
    %c0_i32_1 = arith.constant 0 : i32
    return %c0_i32, %c0_i32_0 : i32, i32
  }
  func.func @transform_1(%arg0: i32) -> (i32, i32) {
    %c0_i32 = arith.constant 0 : i32
    %c0_i32_0 = arith.constant 0 : i32
    %c0_i32_1 = arith.constant 0 : i32
    return %c0_i32, %c0_i32_0 : i32, i32
  }
  func.func @transform_2(%arg0: i32) -> (i32, i32) {
    %c0_i32 = arith.constant 0 : i32
    %c0_i32_0 = arith.constant 0 : i32
    %c0_i32_1 = arith.constant 0 : i32
    return %c0_i32, %c0_i32_0 : i32, i32
  }
  func.func @transform_3(%arg0: i32) -> (i32, i32) {
    %c0_i32 = arith.constant 0 : i32
    %c0_i32_0 = arith.constant 0 : i32
    return %c0_i32, %arg0 : i32, i32
  }
  func.func @transform_4(%arg0: i32) -> (i32, i32) {
    %c0_i32 = arith.constant 0 : i32
    %c0_i32_0 = arith.constant 0 : i32
    return %c0_i32, %arg0 : i32, i32
  }
}

</mosaic_0001>

<bundles_post_ra>
// kernel: model_forward.7
= control target key start
LH: loop header
LB: loop body
LE: loop exit
PB: predicated region body
PF: predicated region fallthrough
CT: control target
= control target key end

     0   :  { %vm35_vm0 = vcmask 523264   ;;  %s1206_s0 = inlined_call_operand.vmem [shape: f32[128,64], index: 0, kind: input, shape index: {}]   ;;  %s1207_s1 = inlined_call_operand.vmem [shape: f32[1,64], index: 1, kind: input, shape index: {}]   ;;  %s1208_s2 = inlined_call_operand.vmem [shape: f32[1,64], index: 2, kind: input, shape index: {}]   ;;  %s1209_s3 = inlined_call_operand.vmem [shape: bf16[64,512], index: 3, kind: input, shape index: {}]   ;;  %s1210_s4 = inlined_call_operand.hbm [shape: f32[128,512], index: 4, kind: output, shape index: {}]  }
   0x1   :  { %v19_v0 = vld [vmem:[%s1206_s0] sm:$0xff]  ;;  %v21_v1 = vld [vmem:[%s1206_s0 + $0x10] sm:$0xff]  ;;  %v20_v2 = vld [vmem:[%s1206_s0 + $0x8] sm:$0xff] }
   0x2   :  { %v36_v3 = vsel %vm35_vm0, %v19_v0, 0.0  ;;  %v42_v4 = vsel %vm35_vm0, %v21_v1, 0.0  ;;  %v22_v5 = vld [vmem:[%s1206_s0 + $0x18] sm:$0xff]  ;;  %v39_v6 = vsel %vm35_vm0, %v20_v2, 0.0  ;;  %v23_v8 = vld [vmem:[%s1206_s0 + $0x20] sm:$0xff]  ;;  %v24_v9 = vld [vmem:[%s1206_s0 + $0x28] sm:$0xff] }
   0x3   :  { %37 = vadd.xlane.f32.xlu0 %v36_v3  ;;  %43 = vadd.xlane.f32.xlu1 %v42_v4  ;;  %v45_v7 = vsel %vm35_vm0, %v22_v5, 0.0  ;;  %v897_v10 = vld [vmem:[%s1206_s0 + $0x30] sm:$0xff]  ;;  %v902_v11 = vld [vmem:[%s1206_s0 + $0x38] sm:$0xff]  ;;  %v48_v12 = vsel %vm35_vm0, %v23_v8, 0.0  ;;  %v51_v13 = vsel %vm35_vm0, %v24_v9, 0.0 }
   0x7   :  { %40 = vadd.xlane.f32.xlu0 %v39_v6  ;;  %46 = vadd.xlane.f32.xlu1 %v45_v7 }
   0xb   :  { %49 = vadd.xlane.f32.xlu0 %v48_v12  ;;  %52 = vadd.xlane.f32.xlu1 %v51_v13 }
   0xc   :  { %9 = vsyncpa [#allocation3], 0  ;;  %v54_v14 = vsel %vm35_vm0, %v897_v10, 0.0  ;;  %v57_v15 = vsel %vm35_vm0, %v902_v11, 0.0  ;;  %v913_v16 = vld [vmem:[%s1206_s0 + $0x40] sm:$0xff]  ;;  %v918_v17 = vld [vmem:[%s1206_s0 + $0x48] sm:$0xff] }
   0xd   :  { %v60_v18 = vsel %vm35_vm0, %v913_v16, 0.0  ;;  %v63_v19 = vsel %vm35_vm0, %v918_v17, 0.0  ;;  %v927_v20 = vld [vmem:[%s1206_s0 + $0x50] sm:$0xff]  ;;  %v932_v21 = vld [vmem:[%s1206_s0 + $0x58] sm:$0xff]  ;;  %v941_v24 = vld [vmem:[%s1206_s0 + $0x60] sm:$0xff] }
   0xe   :  { %v66_v22 = vsel %vm35_vm0, %v927_v20, 0.0  ;;  %v69_v23 = vsel %vm35_vm0, %v932_v21, 0.0  ;;  %v946_v25 = vld [vmem:[%s1206_s0 + $0x68] sm:$0xff]  ;;  %v72_v26 = vsel %vm35_vm0, %v941_v24, 0.0  ;;  %v955_v28 = vld [vmem:[%s1206_s0 + $0x70] sm:$0xff]  ;;  %v960_v29 = vld [vmem:[%s1206_s0 + $0x78] sm:$0xff] }
   0xf   :  { %55 = vadd.xlane.f32.xlu0 %v54_v14  ;;  %58 = vadd.xlane.f32.xlu1 %v57_v15  ;;  %v75_v27 = vsel %vm35_vm0, %v946_v25, 0.0  ;;  %v78_v30 = vsel %vm35_vm0, %v955_v28, 0.0  ;;  %v81_v31 = vsel %vm35_vm0, %v960_v29, 0.0 }
  0x13   :  { %61 = vadd.xlane.f32.xlu0 %v60_v18  ;;  %64 = vadd.xlane.f32.xlu1 %v63_v19 }
  0x17   :  { %67 = vadd.xlane.f32.xlu0 %v66_v22  ;;  %70 = vadd.xlane.f32.xlu1 %v69_v23 }
  0x1b   :  { %73 = vadd.xlane.f32.xlu0 %v72_v26  ;;  %76 = vadd.xlane.f32.xlu1 %v75_v27 }
  0x1f   :  { %79 = vadd.xlane.f32.xlu0 %v78_v30  ;;  %82 = vadd.xlane.f32.xlu1 %v81_v31 }
  0x90   :  { %v38_v32 = vpop.xlane.xlu0 %37  ;;  %v44_v33 = vpop.xlane.xlu1 %43 }
  0x91   :  { %v85_v34 = vmul.f32 0.015625, %v38_v32  ;;  %v87_v35 = vmul.f32 0.015625, %v44_v33 }
  0x93   :  { %v966_v36 = vsub.f32 %v19_v0, %v85_v34  ;;  %v968_v37 = vsub.f32 %v21_v1, %v87_v35 }
  0x94   :  { %v41_v38 = vpop.xlane.xlu0 %40  ;;  %v47_v39 = vpop.xlane.xlu1 %46 }
  0x95   :  { %v86_v40 = vmul.f32 0.015625, %v41_v38  ;;  %v88_v41 = vmul.f32 0.015625, %v47_v39  ;;  %v117_v42 = vmul.f32 %v966_v36, %v966_v36  ;;  %v119_v43 = vmul.f32 %v968_v37, %v968_v37 }
  0x97   :  { %v974_v44 = vsub.f32 %v20_v2, %v86_v40  ;;  %v976_v45 = vsub.f32 %v22_v5, %v88_v41  ;;  %v133_v46 = vsel %vm35_vm0, %v117_v42, 0.0  ;;  %v139_v49 = vsel %vm35_vm0, %v119_v43, 0.0 }
  0x98   :  { %134 = vadd.xlane.f32.xlu0 %v133_v46  ;;  %v50_v47 = vpop.xlane.xlu0 %49  ;;  %v53_v48 = vpop.xlane.xlu1 %52 }
  0x99   :  { %v89_v50 = vmul.f32 0.015625, %v50_v47  ;;  %v90_v51 = vmul.f32 0.015625, %v53_v48  ;;  %v118_v52 = vmul.f32 %v974_v44, %v974_v44  ;;  %v120_v53 = vmul.f32 %v976_v45, %v976_v45 }
  0x9b   :  { %v984_v54 = vsub.f32 %v23_v8, %v89_v50  ;;  %v986_v55 = vsub.f32 %v24_v9, %v90_v51  ;;  %v136_v56 = vsel %vm35_vm0, %v118_v52, 0.0  ;;  %v142_v59 = vsel %vm35_vm0, %v120_v53, 0.0  ;;  %v765_v50 = vld [vmem:[%s1209_s3 + $0xc] ss:$16 sps:$4 sm:$0xff]   ;;  %v767_v52 = vld [vmem:[%s1209_s3] ss:$16 sps:$4 sm:$0xff]  }
  0x9c   :  { %140 = vadd.xlane.f32.xlu0 %v139_v49  ;;  %137 = vadd.xlane.f32.xlu1 %v136_v56  ;;  %v56_v57 = vpop.xlane.xlu0 %55  ;;  %v59_v58 = vpop.xlane.xlu1 %58  ;;  %v763_v49 = vld [vmem:[%s1209_s3 + $0x4] ss:$16 sps:$4 sm:$0xff]   ;;  %v768_v53 = vld [vmem:[%s1209_s3 + $0x8] ss:$16 sps:$4 sm:$0xff]  }
  0x9d   :  { %v91_v60 = vmul.f32 0.015625, %v56_v57  ;;  %v92_v61 = vmul.f32 0.015625, %v59_v58  ;;  %v121_v62 = vmul.f32 %v984_v54, %v984_v54  ;;  %v122_v63 = vmul.f32 %v986_v55, %v986_v55  ;;  %419 = vmatprep.subr.bf16.mxu0 %v763_v49  ;;  %532 = vmatprep.subr.bf16.mxu1 %v765_v50  ;;  %v769_v57 = vld [vmem:[%s1209_s3 + $0x24] ss:$16 sps:$4 sm:$0xff]   ;;  %v771_v58 = vld [vmem:[%s1209_s3 + $0x2c] ss:$16 sps:$4 sm:$0xff]  }
  0x9e   :  { %420 = vmatpush1.bf16.msra.mxu0 %v767_v52  ;;  %533 = vmatpush1.bf16.msra.mxu1 %v768_v53 }
  0x9f   :  { %v995_v0 = vsub.f32 %v897_v10, %v91_v60  ;;  %v998_v1 = vsub.f32 %v902_v11, %v92_v61  ;;  %v145_v2 = vsel %vm35_vm0, %v121_v62, 0.0  ;;  %v148_v5 = vsel %vm35_vm0, %v122_v63, 0.0  ;;  %v773_v60 = vld [vmem:[%s1209_s3 + $0x20] ss:$16 sps:$4 sm:$0xff]   ;;  %v774_v61 = vld [vmem:[%s1209_s3 + $0x28] ss:$16 sps:$4 sm:$0xff]   ;;  %421 = vmatprep.subr.bf16.mxu0 %v769_v57  ;;  %534 = vmatprep.subr.bf16.mxu1 %v771_v58 }
  0xa0   :  { %143 = vadd.xlane.f32.xlu1 %v142_v59  ;;  %146 = vadd.xlane.f32.xlu0 %v145_v2  ;;  %v62_v3 = vpop.xlane.xlu0 %61  ;;  %v65_v4 = vpop.xlane.xlu1 %64  ;;  %v775_v62 = vld [vmem:[%s1209_s3 + $0x44] ss:$16 sps:$4 sm:$0xff]   ;;  %v777_v63 = vld [vmem:[%s1209_s3 + $0x4c] ss:$16 sps:$4 sm:$0xff]   ;;  %v779_v2 = vld [vmem:[%s1209_s3 + $0x40] ss:$16 sps:$4 sm:$0xff]  }
  0xa1   :  { %v93_v6 = vmul.f32 0.015625, %v62_v3  ;;  %v94_v7 = vmul.f32 0.015625, %v65_v4  ;;  %v123_v8 = vmul.f32 %v995_v0, %v995_v0  ;;  %v124_v9 = vmul.f32 %v998_v1, %v998_v1  ;;  %v780_v3 = vld [vmem:[%s1209_s3 + $0x48] ss:$16 sps:$4 sm:$0xff]   ;;  %v781_v4 = vld [vmem:[%s1209_s3 + $0x64] ss:$16 sps:$4 sm:$0xff]  }
  0xa2   :  { %422 = vmatpush1.bf16.msra.mxu0 %v773_v60  ;;  %535 = vmatpush1.bf16.msra.mxu1 %v774_v61 }
  0xa3   :  { %v1007_v10 = vsub.f32 %v913_v16, %v93_v6  ;;  %v1010_v11 = vsub.f32 %v918_v17, %v94_v7  ;;  %v151_v12 = vsel %vm35_vm0, %v123_v8, 0.0  ;;  %v154_v15 = vsel %vm35_vm0, %v124_v9, 0.0  ;;  %423 = vmatprep.subr.bf16.mxu0 %v775_v62  ;;  %536 = vmatprep.subr.bf16.mxu1 %v777_v63  ;;  %v785_v6 = vld [vmem:[%s1209_s3 + $0x60] ss:$16 sps:$4 sm:$0xff]   ;;  %v786_v7 = vld [vmem:[%s1209_s3 + $0x68] ss:$16 sps:$4 sm:$0xff]  }
  0xa4   :  { %149 = vadd.xlane.f32.xlu1 %v148_v5  ;;  %152 = vadd.xlane.f32.xlu0 %v151_v12  ;;  %v68_v13 = vpop.xlane.xlu0 %67  ;;  %v71_v14 = vpop.xlane.xlu1 %70  ;;  %v783_v5 = vld [vmem:[%s1209_s3 + $0x6c] ss:$16 sps:$4 sm:$0xff]   ;;  %v843_v8 = vmov 0  }
  0xa5   :  { %v95_v18 = vmul.f32 0.015625, %v68_v13  ;;  %v96_v19 = vmul.f32 0.015625, %v71_v14  ;;  %v125_v22 = vmul.f32 %v1007_v10, %v1007_v10  ;;  %v126_v16 = vmul.f32 %v1010_v11, %v1010_v11  ;;  %451 = vmatprep.mubr.bf16.mxu0 %v843_v8  ;;  %564 = vmatprep.mubr.bf16.mxu1 %v843_v8 }
  0xa6   :  { %424 = vmatpush1.bf16.msra.mxu0 %v779_v2  ;;  %537 = vmatpush1.bf16.msra.mxu1 %v780_v3 }
  0xa7   :  { %v1019_v23 = vsub.f32 %v927_v20, %v95_v18  ;;  %v1022_v17 = vsub.f32 %v932_v21, %v96_v19  ;;  %v157_v26 = vsel %vm35_vm0, %v125_v22, 0.0  ;;  %v160_v31 = vsel %vm35_vm0, %v126_v16, 0.0  ;;  %425 = vmatprep.subr.bf16.mxu0 %v781_v4  ;;  %538 = vmatprep.subr.bf16.mxu1 %v783_v5 }
  0xa8   :  { %155 = vadd.xlane.f32.xlu1 %v154_v15  ;;  %158 = vadd.xlane.f32.xlu0 %v157_v26  ;;  %v74_v27 = vpop.xlane.xlu0 %73  ;;  %v77_v30 = vpop.xlane.xlu1 %76 }
  0xa9   :  { %v97_v32 = vmul.f32 0.015625, %v74_v27  ;;  %v98_v33 = vmul.f32 0.015625, %v77_v30  ;;  %v127_v34 = vmul.f32 %v1019_v23, %v1019_v23  ;;  %v128_v20 = vmul.f32 %v1022_v17, %v1022_v17 }
  0xaa   :  { %426 = vmatpush1.bf16.msra.mxu0 %v785_v6  ;;  %539 = vmatpush1.bf16.msra.mxu1 %v786_v7 }
  0xab   :  { %v1031_v35 = vsub.f32 %v941_v24, %v97_v32  ;;  %v1034_v21 = vsub.f32 %v946_v25, %v98_v33  ;;  %v163_v38 = vsel %vm35_vm0, %v127_v34, 0.0  ;;  %v166_v41 = vsel %vm35_vm0, %v128_v20, 0.0 }
  0xac   :  { %161 = vadd.xlane.f32.xlu1 %v160_v31  ;;  %164 = vadd.xlane.f32.xlu0 %v163_v38  ;;  %v80_v39 = vpop.xlane.xlu0 %79  ;;  %v83_v40 = vpop.xlane.xlu1 %82 }
  0xad   :  { %v99_v42 = vmul.f32 0.015625, %v80_v39  ;;  %v100_v43 = vmul.f32 0.015625, %v83_v40  ;;  %v129_v46 = vmul.f32 %v1031_v35, %v1031_v35  ;;  %v130_v24 = vmul.f32 %v1034_v21, %v1034_v21 }
  0xaf   :  { %v1043_v47 = vsub.f32 %v955_v28, %v99_v42  ;;  %v1046_v25 = vsub.f32 %v960_v29, %v100_v43  ;;  %v169_v48 = vsel %vm35_vm0, %v129_v46, 0.0  ;;  %v172_v51 = vsel %vm35_vm0, %v130_v24, 0.0  ;;  %v1110_v46 = vld [vmem:[%s1207_s1] ss:$0 sm:$0xff]  ;;  %s844_s1 = smov [#allocation2]  }
  0xb0   :  { %167 = vadd.xlane.f32.xlu1 %v166_v41  ;;  %170 = vadd.xlane.f32.xlu0 %v169_v48 }
  0xb1   :  { %v131_v28 = vmul.f32 %v1043_v47, %v1043_v47  ;;  %v132_v29 = vmul.f32 %v1046_v25, %v1046_v25 }
  0xb3   :  { %v175_v56 = vsel %vm35_vm0, %v131_v28, 0.0  ;;  %v178_v59 = vsel %vm35_vm0, %v132_v29, 0.0 }
  0xb4   :  { %173 = vadd.xlane.f32.xlu1 %v172_v51  ;;  %176 = vadd.xlane.f32.xlu0 %v175_v56 }
  0xb8   :  { %179 = vadd.xlane.f32.xlu1 %v178_v59 }
 0x125   :  { %v135_v9 = vpop.xlane.xlu0 %134 }
 0x126   :  { %v181_v12 = vmul.f32 0.015625, %v135_v9 }
 0x128   :  { %v197_v13 = vadd.f32 1e-05, %v181_v12 }
 0x129   :  { %v138_v14 = vpop.xlane.xlu1 %137  ;;  %v141_v15 = vpop.xlane.xlu0 %140 }
 0x12a   :  { %787 = vrsqrt.f32 %v197_v13  ;;  %v182_v18 = vmul.f32 0.015625, %v138_v14  ;;  %v183_v19 = vmul.f32 0.015625, %v141_v15 }
 0x12c   :  { %v198_v22 = vadd.f32 1e-05, %v182_v18  ;;  %v199_v16 = vadd.f32 1e-05, %v183_v19 }
 0x12d   :  { %v144_v26 = vpop.xlane.xlu1 %143  ;;  %v147_v27 = vpop.xlane.xlu0 %146 }
 0x12e   :  { %789 = vrsqrt.f32 %v198_v22  ;;  %v184_v30 = vmul.f32 0.015625, %v144_v26  ;;  %v185_v32 = vmul.f32 0.015625, %v147_v27 }
 0x12f   :  { %791 = vrsqrt.f32 %v199_v16 }
 0x130   :  { %v200_v31 = vadd.f32 1e-05, %v184_v30  ;;  %v201_v38 = vadd.f32 1e-05, %v185_v32 }
 0x131   :  { %v150_v33 = vpop.xlane.xlu1 %149  ;;  %v153_v41 = vpop.xlane.xlu0 %152 }
 0x132   :  { %793 = vrsqrt.f32 %v200_v31  ;;  %v186_v34 = vmul.f32 0.015625, %v150_v33  ;;  %v187_v48 = vmul.f32 0.015625, %v153_v41 }
 0x134   :  { %v788_v20 = vpop.eup %787  ;;  %v202_v39 = vadd.f32 1e-05, %v186_v34  ;;  %v203_v56 = vadd.f32 1e-05, %v187_v48 }
 0x135   :  { %v229_v40 = vmul.f32 %v788_v20, %v966_v36  ;;  %v156_v42 = vpop.xlane.xlu1 %155  ;;  %v1117_v36 = vld [vmem:[%s1208_s2] ss:$0 sm:$0xff]  ;;  %v159_v59 = vpop.xlane.xlu0 %158  ;;  %s714_s2 = sshll.u32 %s844_s1, 4  ;;  %s715_s2 = int_to_ptr.vmem [resolvable:$true] %s714_s2 }
 0x136   :  { %795 = vrsqrt.f32 %v202_v39  ;;  %v188_v43 = vmul.f32 0.015625, %v156_v42  ;;  %v189_v3 = vmul.f32 0.015625, %v159_v59  ;;  %s819_s28 = scalar_lea.vmem %s715_s2, 8192  ;;  %p824_p1 = scmp.lt.s32.totalorder %s715_s2, %s715_s2 }
 0x137   :  { %797 = vrsqrt.f32 %v201_v38  ;;  %v252_v50 = vmul.f32 %v1110_v46, %v229_v40  ;;  %p820_p0 = scmp.ne.s32.totalorder %s715_s2, %s819_s28  ;;  %p825_p2 = scmp.lt.s32.totalorder %s819_s28, %s819_s28 }
 0x138   :  { %v790_v24 = vpop.eup %789  ;;  %v204_v28 = vadd.f32 1e-05, %v188_v43  ;;  %v205_v9 = vadd.f32 1e-05, %v189_v3 }
 0x139   :  { %v230_v49 = vmul.f32 %v790_v24, %v974_v44  ;;  %v792_v51 = vpop.eup %791  ;;  %v162_v29 = vpop.xlane.xlu1 %161  ;;  %v275_v44 = vadd.f32 %v1117_v36, %v252_v50  ;;  %p826_p3 = por %p825_p2, %p824_p1 }
 0x13a   :  { %v231_v57 = vmul.f32 %v792_v51, %v968_v37  ;;  %799 = vrsqrt.f32 %v204_v28  ;;  %v190_v61 = vmul.f32 0.015625, %v162_v29  ;;  %v165_v13 = vpop.xlane.xlu0 %164 }
 0x13b   :  { %v253_v52 = vmul.f32 %v1110_v46, %v230_v49  ;;  %801 = vrsqrt.f32 %v203_v56  ;;  %v191_v16 = vmul.f32 0.015625, %v165_v13  ;;  %p827_p4 = pnand %p826_p3, %p820_p0 }
 0x13c   :  { %v794_v53 = vpop.eup %793  ;;  %v254_v37 = vmul.f32 %v1110_v46, %v231_v57  ;;  %v206_v4 = vadd.f32 1e-05, %v190_v61 }
 0x13d   :  { %v232_v58 = vmul.f32 %v794_v53, %v976_v45  ;;  %v276_v60 = vadd.f32 %v1117_v36, %v253_v52  ;;  %v168_v6 = vpop.xlane.xlu1 %167  ;;  %v207_v32 = vadd.f32 1e-05, %v191_v16 }
 0x13e   :  { %v277_v14 = vadd.f32 %v1117_v36, %v254_v37  ;;  %803 = vrsqrt.f32 %v206_v4  ;;  %v192_v15 = vmul.f32 0.015625, %v168_v6  ;;  %v171_v34 = vpop.xlane.xlu0 %170 }
 0x13f   :  { %v291_v62 = vpack.c.bf16 %v276_v60, %v275_v44  ;;  %v255_v63 = vmul.f32 %v1110_v46, %v232_v58  ;;  %805 = vrsqrt.f32 %v205_v9  ;;  %v193_v42 = vmul.f32 0.015625, %v171_v34 }
 0x140   :  { %v796_v2 = vpop.eup %795  ;;  %v208_v27 = vadd.f32 1e-05, %v192_v15 }
 0x141   :  { %743 = vmatmul.mubr.msk.bf16.vlgmr.msra.gmra.mrb[0].mxu0 %vm35_vm0, %v291_v62  ;;  %751 = vmatmul.mubr.msk.bf16.vlgmr.msra.gmra.mrb[0].mxu1 %vm35_vm0, %v291_v62  ;;  %v798_v45 = vpop.eup %797  ;;  %v234_v5 = vmul.f32 %v796_v2, %v986_v55  ;;  %v278_v7 = vadd.f32 %v1117_v36, %v255_v63  ;;  %v174_v30 = vpop.xlane.xlu1 %173  ;;  %v209_v50 = vadd.f32 1e-05, %v193_v42 }
 0x142   :  { %461 = vmatprep.mubr.bf16.mxu0 %v843_v8  ;;  %574 = vmatprep.mubr.bf16.mxu1 %v843_v8  ;;  %v233_v12 = vmul.f32 %v798_v45, %v984_v54  ;;  %807 = vrsqrt.f32 %v208_v27  ;;  %v194_v38 = vmul.f32 0.015625, %v174_v30  ;;  %v177_v28 = vpop.xlane.xlu0 %176 }
 0x143   :  { %v292_v18 = vpack.c.bf16 %v278_v7, %v277_v14  ;;  %v257_v19 = vmul.f32 %v1110_v46, %v234_v5  ;;  %809 = vrsqrt.f32 %v207_v32  ;;  %v195_v58 = vmul.f32 0.015625, %v177_v28 }
 0x144   :  { %v800_v22 = vpop.eup %799  ;;  %v256_v55 = vmul.f32 %v1110_v46, %v233_v12  ;;  %v210_v24 = vadd.f32 1e-05, %v194_v38 }
 0x145   :  { %v802_v26 = vpop.eup %801  ;;  %v236_v54 = vmul.f32 %v800_v22, %v998_v1  ;;  %v280_v31 = vadd.f32 %v1117_v36, %v257_v19  ;;  %v180_v48 = vpop.xlane.xlu1 %179  ;;  %v211_v61 = vadd.f32 1e-05, %v195_v58 }
 0x146   :  { %v235_v33 = vmul.f32 %v802_v26, %v995_v0  ;;  %v279_v20 = vadd.f32 %v1117_v36, %v256_v55  ;;  %811 = vrsqrt.f32 %v210_v24  ;;  %v196_v52 = vmul.f32 0.015625, %v180_v48 }
 0x147   :  { %v259_v40 = vmul.f32 %v1110_v46, %v236_v54  ;;  %813 = vrsqrt.f32 %v209_v50 }
 0x148   :  { %v293_v39 = vpack.c.bf16 %v280_v31, %v279_v20  ;;  %v804_v41 = vpop.eup %803  ;;  %v258_v1 = vmul.f32 %v1110_v46, %v235_v33  ;;  %v212_v44 = vadd.f32 1e-05, %v196_v52 }
 0x149   :  { %744 = vmatmul.mubr.msk.bf16.gmra.mrb[4].mxu0 %vm35_vm0, %v292_v18  ;;  %752 = vmatmul.mubr.msk.bf16.gmra.mrb[4].mxu1 %vm35_vm0, %v292_v18  ;;  %v806_v43 = vpop.eup %805  ;;  %v238_v0 = vmul.f32 %v804_v41, %v1010_v11  ;;  %v282_v49 = vadd.f32 %v1117_v36, %v259_v40 }
 0x14a   :  { %471 = vmatprep.mubr.bf16.mxu0 %v843_v8  ;;  %584 = vmatprep.mubr.bf16.mxu1 %v843_v8  ;;  %v237_v51 = vmul.f32 %v806_v43, %v1007_v10  ;;  %v281_v29 = vadd.f32 %v1117_v36, %v258_v1  ;;  %815 = vrsqrt.f32 %v212_v44 }
 0x14b   :  { %v261_v56 = vmul.f32 %v1110_v46, %v238_v0  ;;  %817 = vrsqrt.f32 %v211_v61 }
 0x14c   :  { %v294_v53 = vpack.c.bf16 %v282_v49, %v281_v29  ;;  %v808_v57 = vpop.eup %807  ;;  %v260_v11 = vmul.f32 %v1110_v46, %v237_v51 }
 0x14d   :  { %v810_v59 = vpop.eup %809  ;;  %v240_v10 = vmul.f32 %v808_v57, %v1022_v17  ;;  %v284_v60 = vadd.f32 %v1117_v36, %v261_v56 }
 0x14e   :  { %v239_v62 = vmul.f32 %v810_v59, %v1019_v23  ;;  %v283_v63 = vadd.f32 %v1117_v36, %v260_v11 }
 0x14f   :  { %v263_v3 = vmul.f32 %v1110_v46, %v240_v10 }
 0x150   :  { %v295_v2 = vpack.c.bf16 %v284_v60, %v283_v63  ;;  %v812_v37 = vpop.eup %811  ;;  %v262_v45 = vmul.f32 %v1110_v46, %v239_v62 }
 0x151   :  { %745 = vmatmul.mubr.msk.bf16.gmra.mrb[8].mxu0 %vm35_vm0, %v293_v39  ;;  %753 = vmatmul.mubr.msk.bf16.gmra.mrb[8].mxu1 %vm35_vm0, %v293_v39  ;;  %v814_v17 = vpop.eup %813  ;;  %v242_v23 = vmul.f32 %v812_v37, %v1034_v21  ;;  %v286_v4 = vadd.f32 %v1117_v36, %v263_v3 }
 0x152   :  { %481 = vmatprep.mubr.bf16.mxu0 %v843_v8  ;;  %594 = vmatprep.mubr.bf16.mxu1 %v843_v8  ;;  %v241_v5 = vmul.f32 %v814_v17, %v1031_v35  ;;  %v285_v6 = vadd.f32 %v1117_v36, %v262_v45 }
 0x153   :  { %v265_v9 = vmul.f32 %v1110_v46, %v242_v23 }
 0x154   :  { %v296_v7 = vpack.c.bf16 %v286_v4, %v285_v6  ;;  %v816_v12 = vpop.eup %815  ;;  %v264_v13 = vmul.f32 %v1110_v46, %v241_v5 }
 0x155   :  { %v818_v14 = vpop.eup %817  ;;  %v244_v21 = vmul.f32 %v816_v12, %v1046_v25  ;;  %v288_v35 = vadd.f32 %v1117_v36, %v265_v9 }
 0x156   :  { %v243_v15 = vmul.f32 %v818_v14, %v1043_v47  ;;  %v287_v18 = vadd.f32 %v1117_v36, %v264_v13 }
 0x157   :  { %v267_v22 = vmul.f32 %v1110_v46, %v244_v21 }
 0x158   :  { %v297_v19 = vpack.c.bf16 %v288_v35, %v287_v18  ;;  %v266_v16 = vmul.f32 %v1110_v46, %v243_v15 }
 0x159   :  { %746 = vmatmul.mubr.msk.bf16.gmra.mrb[12].mxu0 %vm35_vm0, %v294_v53  ;;  %754 = vmatmul.mubr.msk.bf16.gmra.mrb[12].mxu1 %vm35_vm0, %v294_v53  ;;  %v290_v25 = vadd.f32 %v1117_v36, %v267_v22 }
 0x15a   :  { %491 = vmatprep.mubr.bf16.mxu0 %v843_v8  ;;  %604 = vmatprep.mubr.bf16.mxu1 %v843_v8  ;;  %v289_v55 = vadd.f32 %v1117_v36, %v266_v16 }
 0x15c   :  { %v298_v47 = vpack.c.bf16 %v290_v25, %v289_v55 }
 0x161   :  { %747 = vmatmul.mubr.msk.bf16.gmra.mrb[16].mxu0 %vm35_vm0, %v295_v2  ;;  %755 = vmatmul.mubr.msk.bf16.gmra.mrb[16].mxu1 %vm35_vm0, %v295_v2 }
 0x162   :  { %501 = vmatprep.mubr.bf16.mxu0 %v843_v8  ;;  %614 = vmatprep.mubr.bf16.mxu1 %v843_v8 }
 0x169   :  { %748 = vmatmul.mubr.msk.bf16.gmra.mrb[20].mxu0 %vm35_vm0, %v296_v7  ;;  %756 = vmatmul.mubr.msk.bf16.gmra.mrb[20].mxu1 %vm35_vm0, %v296_v7 }
 0x16a   :  { %511 = vmatprep.mubr.bf16.mxu0 %v843_v8  ;;  %624 = vmatprep.mubr.bf16.mxu1 %v843_v8 }
 0x171   :  { %749 = vmatmul.mubr.msk.bf16.gmra.mrb[24].mxu0 %vm35_vm0, %v297_v19  ;;  %757 = vmatmul.mubr.msk.bf16.gmra.mrb[24].mxu1 %vm35_vm0, %v297_v19 }
 0x172   :  { %521 = vmatprep.mubr.bf16.mxu0 %v843_v8  ;;  %634 = vmatprep.mubr.bf16.mxu1 %v843_v8 }
 0x179   :  { %750 = vmatmul.mubr.msk.bf16.gmra.mrb[28].mxu0 %vm35_vm0, %v298_v47  ;;  %758 = vmatmul.mubr.msk.bf16.gmra.mrb[28].mxu1 %vm35_vm0, %v298_v47 }
 0x214   :  { %v453_v26 = vpop.f32.mrb[0].mxu0  ;;  %v566_v27 = vpop.f32.mrb[0].mxu1 }
 0x215   :  { %645 = vst [vmem:[#allocation2] sm:$0xff] %v453_v26  ;;  %647 = vst [vmem:[#allocation2 + $0x10] sm:$0xff] %v566_v27  ;;  %v455_v54 = vpop.f32.mrb[1].mxu0  ;;  %v568_v30 = vpop.f32.mrb[1].mxu1 }
 0x216   :  { %646 = vst [vmem:[#allocation2 + $0x8] sm:$0xff] %v455_v54  ;;  %648 = vst [vmem:[#allocation2 + $0x18] sm:$0xff] %v568_v30  ;;  %v457_v46 = vpop.f32.mrb[2].mxu0  ;;  %v570_v31 = vpop.f32.mrb[2].mxu1 }
 0x217   :  { %649 = vst [vmem:[#allocation2 + $0x20] sm:$0xff] %v457_v46  ;;  %651 = vst [vmem:[#allocation2 + $0x30] sm:$0xff] %v570_v31  ;;  %v459_v8 = vpop.f32.mrb[3].mxu0  ;;  %v572_v32 = vpop.f32.mrb[3].mxu1 }
 0x218   :  { %650 = vst [vmem:[#allocation2 + $0x28] sm:$0xff] %v459_v8  ;;  %652 = vst [vmem:[#allocation2 + $0x38] sm:$0xff] %v572_v32 }
 0x21c   :  { %v463_v36 = vpop.f32.mrb[4].mxu0  ;;  %v576_v33 = vpop.f32.mrb[4].mxu1 }
 0x21d   :  { %653 = vst [vmem:[#allocation2 + $0x40] sm:$0xff] %v463_v36  ;;  %655 = vst [vmem:[#allocation2 + $0x50] sm:$0xff] %v576_v33  ;;  %v465_v34 = vpop.f32.mrb[5].mxu0  ;;  %v578_v20 = vpop.f32.mrb[5].mxu1 }
 0x21e   :  { %654 = vst [vmem:[#allocation2 + $0x48] sm:$0xff] %v465_v34  ;;  %656 = vst [vmem:[#allocation2 + $0x58] sm:$0xff] %v578_v20  ;;  %v467_v38 = vpop.f32.mrb[6].mxu0  ;;  %v580_v39 = vpop.f32.mrb[6].mxu1 }
 0x21f   :  { %657 = vst [vmem:[#allocation2 + $0x60] sm:$0xff] %v467_v38  ;;  %659 = vst [vmem:[#allocation2 + $0x70] sm:$0xff] %v580_v39  ;;  %v469_v40 = vpop.f32.mrb[7].mxu0  ;;  %v582_v41 = vpop.f32.mrb[7].mxu1 }
 0x220   :  { %658 = vst [vmem:[#allocation2 + $0x68] sm:$0xff] %v469_v40  ;;  %660 = vst [vmem:[#allocation2 + $0x78] sm:$0xff] %v582_v41 }
 0x224   :  { %v473_v42 = vpop.f32.mrb[8].mxu0  ;;  %v586_v1 = vpop.f32.mrb[8].mxu1 }
 0x225   :  { %661 = vst [vmem:[#allocation2 + $0x80] sm:$0xff] %v473_v42  ;;  %663 = vst [vmem:[#allocation2 + $0x90] sm:$0xff] %v586_v1  ;;  %v475_v43 = vpop.f32.mrb[9].mxu0  ;;  %v588_v24 = vpop.f32.mrb[9].mxu1 }
 0x226   :  { %662 = vst [vmem:[#allocation2 + $0x88] sm:$0xff] %v475_v43  ;;  %664 = vst [vmem:[#allocation2 + $0x98] sm:$0xff] %v588_v24  ;;  %v477_v0 = vpop.f32.mrb[10].mxu0  ;;  %v590_v48 = vpop.f32.mrb[10].mxu1 }
 0x227   :  { %665 = vst [vmem:[#allocation2 + $0xa0] sm:$0xff] %v477_v0  ;;  %667 = vst [vmem:[#allocation2 + $0xb0] sm:$0xff] %v590_v48  ;;  %v479_v49 = vpop.f32.mrb[11].mxu0  ;;  %v592_v50 = vpop.f32.mrb[11].mxu1 }
 0x228   :  { %666 = vst [vmem:[#allocation2 + $0xa8] sm:$0xff] %v479_v49  ;;  %668 = vst [vmem:[#allocation2 + $0xb8] sm:$0xff] %v592_v50 }
 0x22c   :  { %v483_v51 = vpop.f32.mrb[12].mxu0  ;;  %v596_v28 = vpop.f32.mrb[12].mxu1 }
 0x22d   :  { %669 = vst [vmem:[#allocation2 + $0xc0] sm:$0xff] %v483_v51  ;;  %671 = vst [vmem:[#allocation2 + $0xd0] sm:$0xff] %v596_v28  ;;  %v485_v29 = vpop.f32.mrb[13].mxu0  ;;  %v598_v52 = vpop.f32.mrb[13].mxu1 }
 0x22e   :  { %670 = vst [vmem:[#allocation2 + $0xc8] sm:$0xff] %v485_v29  ;;  %672 = vst [vmem:[#allocation2 + $0xd8] sm:$0xff] %v598_v52  ;;  %v487_v53 = vpop.f32.mrb[14].mxu0  ;;  %v600_v56 = vpop.f32.mrb[14].mxu1 }
 0x22f   :  { %673 = vst [vmem:[#allocation2 + $0xe0] sm:$0xff] %v487_v53  ;;  %675 = vst [vmem:[#allocation2 + $0xf0] sm:$0xff] %v600_v56  ;;  %v489_v57 = vpop.f32.mrb[15].mxu0  ;;  %v602_v58 = vpop.f32.mrb[15].mxu1 }
 0x230   :  { %674 = vst [vmem:[#allocation2 + $0xe8] sm:$0xff] %v489_v57  ;;  %676 = vst [vmem:[#allocation2 + $0xf8] sm:$0xff] %v602_v58 }
 0x234   :  { %v493_v11 = vpop.f32.mrb[16].mxu0  ;;  %v606_v59 = vpop.f32.mrb[16].mxu1 }
 0x235   :  { %677 = vst [vmem:[#allocation2 + $0x100] sm:$0xff] %v493_v11  ;;  %679 = vst [vmem:[#allocation2 + $0x110] sm:$0xff] %v606_v59  ;;  %v495_v44 = vpop.f32.mrb[17].mxu0  ;;  %v608_v10 = vpop.f32.mrb[17].mxu1 }
 0x236   :  { %678 = vst [vmem:[#allocation2 + $0x108] sm:$0xff] %v495_v44  ;;  %680 = vst [vmem:[#allocation2 + $0x118] sm:$0xff] %v608_v10  ;;  %v497_v60 = vpop.f32.mrb[18].mxu0  ;;  %v610_v61 = vpop.f32.mrb[18].mxu1 }
 0x237   :  { %681 = vst [vmem:[#allocation2 + $0x120] sm:$0xff] %v497_v60  ;;  %683 = vst [vmem:[#allocation2 + $0x130] sm:$0xff] %v610_v61  ;;  %v499_v62 = vpop.f32.mrb[19].mxu0  ;;  %v612_v63 = vpop.f32.mrb[19].mxu1 }
 0x238   :  { %682 = vst [vmem:[#allocation2 + $0x128] sm:$0xff] %v499_v62  ;;  %684 = vst [vmem:[#allocation2 + $0x138] sm:$0xff] %v612_v63 }
 0x23c   :  { %v503_v2 = vpop.f32.mrb[20].mxu0  ;;  %v616_v3 = vpop.f32.mrb[20].mxu1 }
 0x23d   :  { %685 = vst [vmem:[#allocation2 + $0x140] sm:$0xff] %v503_v2  ;;  %687 = vst [vmem:[#allocation2 + $0x150] sm:$0xff] %v616_v3  ;;  %v505_v37 = vpop.f32.mrb[21].mxu0  ;;  %v618_v45 = vpop.f32.mrb[21].mxu1 }
 0x23e   :  { %686 = vst [vmem:[#allocation2 + $0x148] sm:$0xff] %v505_v37  ;;  %688 = vst [vmem:[#allocation2 + $0x158] sm:$0xff] %v618_v45  ;;  %v507_v17 = vpop.f32.mrb[22].mxu0  ;;  %v620_v23 = vpop.f32.mrb[22].mxu1 }
 0x23f   :  { %689 = vst [vmem:[#allocation2 + $0x160] sm:$0xff] %v507_v17  ;;  %691 = vst [vmem:[#allocation2 + $0x170] sm:$0xff] %v620_v23  ;;  %v509_v4 = vpop.f32.mrb[23].mxu0  ;;  %v622_v5 = vpop.f32.mrb[23].mxu1 }
 0x240   :  { %690 = vst [vmem:[#allocation2 + $0x168] sm:$0xff] %v509_v4  ;;  %692 = vst [vmem:[#allocation2 + $0x178] sm:$0xff] %v622_v5 }
 0x244   :  { %v513_v6 = vpop.f32.mrb[24].mxu0  ;;  %v626_v7 = vpop.f32.mrb[24].mxu1 }
 0x245   :  { %693 = vst [vmem:[#allocation2 + $0x180] sm:$0xff] %v513_v6  ;;  %695 = vst [vmem:[#allocation2 + $0x190] sm:$0xff] %v626_v7  ;;  %v515_v9 = vpop.f32.mrb[25].mxu0  ;;  %v628_v12 = vpop.f32.mrb[25].mxu1 }
 0x246   :  { %694 = vst [vmem:[#allocation2 + $0x188] sm:$0xff] %v515_v9  ;;  %696 = vst [vmem:[#allocation2 + $0x198] sm:$0xff] %v628_v12  ;;  %v517_v13 = vpop.f32.mrb[26].mxu0  ;;  %v630_v14 = vpop.f32.mrb[26].mxu1 }
 0x247   :  { %697 = vst [vmem:[#allocation2 + $0x1a0] sm:$0xff] %v517_v13  ;;  %699 = vst [vmem:[#allocation2 + $0x1b0] sm:$0xff] %v630_v14  ;;  %v519_v21 = vpop.f32.mrb[27].mxu0  ;;  %v632_v35 = vpop.f32.mrb[27].mxu1 }
 0x248   :  { %698 = vst [vmem:[#allocation2 + $0x1a8] sm:$0xff] %v519_v21  ;;  %700 = vst [vmem:[#allocation2 + $0x1b8] sm:$0xff] %v632_v35 }
 0x24c   :  { %v523_v15 = vpop.f32.mrb[28].mxu0  ;;  %v636_v18 = vpop.f32.mrb[28].mxu1 }
 0x24d   :  { %701 = vst [vmem:[#allocation2 + $0x1c0] sm:$0xff] %v523_v15  ;;  %703 = vst [vmem:[#allocation2 + $0x1d0] sm:$0xff] %v636_v18  ;;  %v525_v19 = vpop.f32.mrb[29].mxu0  ;;  %v638_v22 = vpop.f32.mrb[29].mxu1 }
 0x24e   :  { %702 = vst [vmem:[#allocation2 + $0x1c8] sm:$0xff] %v525_v19  ;;  %704 = vst [vmem:[#allocation2 + $0x1d8] sm:$0xff] %v638_v22  ;;  %v527_v16 = vpop.f32.mrb[30].mxu0  ;;  %v640_v25 = vpop.f32.mrb[30].mxu1 }
 0x24f   :  { %705 = vst [vmem:[#allocation2 + $0x1e0] sm:$0xff] %v527_v16  ;;  %707 = vst [vmem:[#allocation2 + $0x1f0] sm:$0xff] %v640_v25  ;;  %v529_v55 = vpop.f32.mrb[31].mxu0  ;;  %v642_v47 = vpop.f32.mrb[31].mxu1 }
 0x250   :  { %706 = vst [vmem:[#allocation2 + $0x1e8] sm:$0xff] %v529_v55  ;;  %708 = vst [vmem:[#allocation2 + $0x1f8] sm:$0xff] %v642_v47 }
 0x251   :  { %830 = shalt.err (!%p827_p4)
}
 0x252   :  { %s831_s5 = scalar_lea.hbm %s1210_s4, 8192 }
 0x253   :  { %p832_p5 = scmp.ne.s32.totalorder %s1210_s4, %s831_s5  ;;  %p835_p6 = scmp.lt.u32.totalorder %s831_s5, %s1210_s4 }
 0x255   :  { %p837_p7 = pnand %p835_p6, %p832_p5 }
 0x257   :  { %840 = shalt.err (!%p837_p7)
}
 0x258   :  { %s845_s10 = smov 512   ;;  %s846_s11 = smov 32  }
 0x259   :  { %720 = dma.vmem_to_hbm [thread:$0]  %s715_s2, 8192, %s1210_s4, [#allocation3], %s845_s10, %s845_s10, %s846_s11  }
 0x25a   :  { %841 = dma.done.wait [#allocation3], 8192  }
 0x25b   :  { %842 = vsyncadd [#allocation3], 4294959104 }
 0x25c   :  { %724 = vsyncpa [#allocation3], 1 }

// kernel: model_forward.5
= control target key start
LH: loop header
LB: loop body
LE: loop exit
PB: predicated region body
PF: predicated region fallthrough
CT: control target
= control target key end

     0   :  { %s3563_s27 = smov 0   ;;  %s3565_s28 = smov 0   ;;  %s5535_s0 = inlined_call_operand.vmem [shape: f32[128,64], index: 0, kind: input, shape index: {}]   ;;  %s5536_s1 = inlined_call_operand.vmem [shape: f32[64,4], index: 1, kind: input, shape index: {}]   ;;  %s5537_s2 = inlined_call_operand.vmem [shape: bf16[4,64,256], index: 2, kind: input, shape index: {}]   ;;  %s5538_s3 = inlined_call_operand.vmem [shape: f32[4,1,256], index: 3, kind: input, shape index: {}]   ;;  %s5539_s4 = inlined_call_operand.vmem [shape: bf16[4,256,64], index: 4, kind: input, shape index: {}]   ;;  %s5540_s5 = inlined_call_operand.vmem [shape: f32[4,1,64], index: 5, kind: input, shape index: {}]   ;;  %s5541_s6 = inlined_call_operand.vmem [shape: f32[128,64], index: 6, kind: output, shape index: {0}]   ;;  %s5542_s7 = inlined_call_operand.vmem [shape: f32[1,1,4], index: 7, kind: output, shape index: {1}]   ;;  %s5543_s8 = inlined_call_operand.vmem [shape: f32[1,1,4], index: 8, kind: output, shape index: {2}]  }
   0x1   :  { %s3567_s29 = smov 0  }
   0x2 LB: > { %s28_s30 = sadd.s32 1, %s3509_s28  ;;  %p3011_p0 = scmp.ge.s32.totalorder %s3513_s29, 1  ;;  %s3513_s29 = sphi %s3567_s29, %s19_s29   ;;  %s3509_s28 = sphi %s3565_s28, %s5606_s28   ;;  %s3505_s27 = sphi %s3563_s27, %s5605_s27  }
   0x3   : > { %p29_p1 = scmp.ge.s32.totalorder %s28_s30, 4  ;;  %p317_p2 = scmp.lt.s32.totalorder %s3513_s29, 5 }
   0x5   : > { %s5608_s30 = smov (%p29_p1, %s28_s30), 0  ;;  %p318_p3 = pnand %p3011_p0, %p317_p2 }
   0x6   : > { %p380_p4 = scmp.lt.s32.totalorder (!%p318_p3), %s3505_s27, 3  ;;  %p3017_p5 = scmp.ne.s32.totalorder (!%p318_p3), %s3505_s27, 0 }
   0x7   : > { %321 = sbr.rel (%p318_p3) target bundleno = 2218 (0x8aa), region = 44 }
   0xe   : > { %s3585_s9 = scalar_select %p380_p4, %s3505_s27, 3 }
   0xf   : > { %413 = sbr.rel (%p3017_p5) target bundleno = 1660 (0x67c), region = 48 }
  0x10   : > { %s3106_s10 = sshll.u32 %s3585_s9, 6  ;;  %s3014_s11 = sshll.u32 %s3585_s9, 1 }
  0x11   : > { %s3592_s14 = scalar_lea.vmem %s5537_s2, %s3106_s10  ;;  %s3597_s17 = scalar_lea.vmem %s5538_s3, %s3014_s11 }
  0x12   : > { %s3107_s18 = sshll.u32 %s3585_s9, 7  ;;  %s396_s21 = scalar_lea.vmem %s5540_s5, %s3585_s9 }
  0x13   : > { %s3607_s24 = scalar_lea.vmem %s5539_s4, %s3107_s18 }
  0x16   : > { %v430_v0 = vld [vmem:[%s5536_s1] sm:$0xff]  ;;  %v431_v1 = vld [vmem:[%s5536_s1 + $0x8] sm:$0xff]  ;;  %v432_v2 = vld [vmem:[%s5536_s1 + $0x10] sm:$0xff]  ;;  %vm438_vm0 = vcmask 523264   ;;  %v5544_v5 = vmov 0.0   ;;  %vm632_vm1 = vcmask 31744  }
  0x17   : > { %v3236_v3 = vpack.c.bf16 %v431_v1, %v430_v0  ;;  %v433_v4 = vld [vmem:[%s5536_s1 + $0x18] sm:$0xff]  ;;  %1928 = vst.msk [vmem:[%s5541_s6] sm:$0xff] %vm438_vm0, %v5544_v5  ;;  %1929 = vst.msk [vmem:[%s5541_s6 + $0x8] sm:$0xff] %vm438_vm0, %v5544_v5  ;;  %v434_v7 = vld [vmem:[%s5536_s1 + $0x20] sm:$0xff]  ;;  %vm1888_vm2 = vcmask 24576  }
  0x18   : > { %1930 = vst.msk [vmem:[%s5541_s6 + $0x10] sm:$0xff] %vm438_vm0, %v5544_v5  ;;  %1931 = vst.msk [vmem:[%s5541_s6 + $0x18] sm:$0xff] %vm438_vm0, %v5544_v5  ;;  %v3240_v6 = vpack.c.bf16 %v433_v4, %v432_v2  ;;  %v435_v8 = vld [vmem:[%s5536_s1 + $0x28] sm:$0xff]  ;;  %v414_v9 = vld [vmem:[%s5535_s0] sm:$0xff] }
  0x19   : > { %1932 = vst.msk [vmem:[%s5541_s6 + $0x20] sm:$0xff] %vm438_vm0, %v5544_v5  ;;  %1933 = vst.msk [vmem:[%s5541_s6 + $0x28] sm:$0xff] %vm438_vm0, %v5544_v5  ;;  %3237 = vmatprep.subr.bf16.mxu0 %v3236_v3  ;;  %3252 = vmatprep.subr.bf16.mxu1 %v3236_v3  ;;  %v422_v10 = vld [vmem:[%s5535_s0 + $0x40] sm:$0xff]  ;;  %v3244_v11 = vpack.c.bf16 %v435_v8, %v434_v7  ;;  %v436_v12 = vld [vmem:[%s5536_s1 + $0x30] sm:$0xff] }
  0x1a   : > { %1934 = vst.msk [vmem:[%s5541_s6 + $0x30] sm:$0xff] %vm438_vm0, %v5544_v5  ;;  %1935 = vst.msk [vmem:[%s5541_s6 + $0x38] sm:$0xff] %vm438_vm0, %v5544_v5  ;;  %3239 = vmatpush3.bf16.msra.mxu0 %v3236_v3  ;;  %3256 = vmatpush3.bf16.msra.mxu1 %v3236_v3  ;;  %v437_v13 = vld [vmem:[%s5536_s1 + $0x38] sm:$0xff]  ;;  %v415_v15 = vld [vmem:[%s5535_s0 + $0x8] sm:$0xff] }
  0x1b   : > { %1936 = vst.msk [vmem:[%s5541_s6 + $0x40] sm:$0xff] %vm438_vm0, %v5544_v5  ;;  %1937 = vst.msk [vmem:[%s5541_s6 + $0x48] sm:$0xff] %vm438_vm0, %v5544_v5  ;;  %3241 = vmatprep.subr.bf16.mxu0 %v3240_v6  ;;  %3253 = vmatprep.subr.bf16.mxu1 %v3240_v6  ;;  %v3248_v14 = vpack.c.bf16 %v437_v13, %v436_v12  ;;  %v423_v16 = vld [vmem:[%s5535_s0 + $0x48] sm:$0xff]  ;;  %v416_v17 = vld [vmem:[%s5535_s0 + $0x10] sm:$0xff] }
  0x1c   : > { %1938 = vst.msk [vmem:[%s5541_s6 + $0x50] sm:$0xff] %vm438_vm0, %v5544_v5  ;;  %1939 = vst.msk [vmem:[%s5541_s6 + $0x58] sm:$0xff] %vm438_vm0, %v5544_v5  ;;  %3212 = vmatprep.mubr.msk.f32.mxu0 %vm438_vm0, %v414_v9  ;;  %3224 = vmatprep.mubr.msk.f32.mxu1 %vm438_vm0, %v422_v10  ;;  %v424_v18 = vld [vmem:[%s5535_s0 + $0x50] sm:$0xff]  ;;  %v417_v19 = vld [vmem:[%s5535_s0 + $0x18] sm:$0xff] }
  0x1d   : > { %1940 = vst.msk [vmem:[%s5541_s6 + $0x60] sm:$0xff] %vm438_vm0, %v5544_v5  ;;  %1941 = vst.msk [vmem:[%s5541_s6 + $0x68] sm:$0xff] %vm438_vm0, %v5544_v5  ;;  %v425_v20 = vld [vmem:[%s5535_s0 + $0x58] sm:$0xff]  ;;  %v418_v21 = vld [vmem:[%s5535_s0 + $0x20] sm:$0xff] }
  0x1e   : > { %1942 = vst.msk [vmem:[%s5541_s6 + $0x70] sm:$0xff] %vm438_vm0, %v5544_v5  ;;  %1943 = vst.msk [vmem:[%s5541_s6 + $0x78] sm:$0xff] %vm438_vm0, %v5544_v5  ;;  %3243 = vmatpush3.bf16.msra.mxu0 %v3240_v6  ;;  %3257 = vmatpush3.bf16.msra.mxu1 %v3240_v6  ;;  %v426_v22 = vld [vmem:[%s5535_s0 + $0x60] sm:$0xff]  ;;  %v419_v23 = vld [vmem:[%s5535_s0 + $0x28] sm:$0xff] }
  0x1f   : > { %3245 = vmatprep.subr.bf16.mxu0 %v3244_v11  ;;  %3254 = vmatprep.subr.bf16.mxu1 %v3244_v11  ;;  %v427_v24 = vld [vmem:[%s5535_s0 + $0x68] sm:$0xff]  ;;  %v420_v25 = vld [vmem:[%s5535_s0 + $0x30] sm:$0xff]  ;;  %v421_v27 = vld [vmem:[%s5535_s0 + $0x38] sm:$0xff] }
  0x20   : > { %v428_v26 = vld [vmem:[%s5535_s0 + $0x70] sm:$0xff]  ;;  %v429_v28 = vld [vmem:[%s5535_s0 + $0x78] sm:$0xff] }
  0x22   : > { %3247 = vmatpush3.bf16.msra.mxu0 %v3244_v11  ;;  %3258 = vmatpush3.bf16.msra.mxu1 %v3244_v11 }
  0x23   : > { %3249 = vmatprep.subr.bf16.mxu0 %v3248_v14  ;;  %3255 = vmatprep.subr.bf16.mxu1 %v3248_v14 }
  0x26   : > { %3251 = vmatpush3.bf16.msra.mxu0 %v3248_v14  ;;  %3259 = vmatpush3.bf16.msra.mxu1 %v3248_v14 }
  0x29   : > { %3213 = vmatmul.mubr.msk.f32.vlgmr.msra.gmra.mrb[0].mxu0 %vm438_vm0, %v415_v15  ;;  %3225 = vmatmul.mubr.msk.f32.vlgmr.msra.gmra.mrb[0].mxu1 %vm438_vm0, %v423_v16 }
  0x2a   : > { %3215 = vmatprep.mubr.msk.f32.mxu0 %vm438_vm0, %v416_v17  ;;  %3227 = vmatprep.mubr.msk.f32.mxu1 %vm438_vm0, %v424_v18 }
  0x2d   : > { %3216 = vmatmul.mubr.msk.f32.gmra.mrb[2].mxu0 %vm438_vm0, %v417_v19  ;;  %3228 = vmatmul.mubr.msk.f32.gmra.mrb[2].mxu1 %vm438_vm0, %v425_v20 }
  0x2e   : > { %3218 = vmatprep.mubr.msk.f32.mxu0 %vm438_vm0, %v418_v21  ;;  %3230 = vmatprep.mubr.msk.f32.mxu1 %vm438_vm0, %v426_v22 }
  0x31   : > { %3219 = vmatmul.mubr.msk.f32.gmra.mrb[4].mxu0 %vm438_vm0, %v419_v23  ;;  %3231 = vmatmul.mubr.msk.f32.gmra.mrb[4].mxu1 %vm438_vm0, %v427_v24 }
  0x32   : > { %3221 = vmatprep.mubr.msk.f32.mxu0 %vm438_vm0, %v420_v25  ;;  %3233 = vmatprep.mubr.msk.f32.mxu1 %vm438_vm0, %v428_v26 }
  0x35   : > { %3222 = vmatmul.mubr.msk.f32.gmra.mrb[6].mxu0 %vm438_vm0, %v421_v27  ;;  %3234 = vmatmul.mubr.msk.f32.gmra.mrb[6].mxu1 %vm438_vm0, %v429_v28 }
  0xfc   : > { %v3214_v29 = vpop.f32.mrb[0].mxu0  ;;  %v3226_v30 = vpop.f32.mrb[0].mxu1 }
  0xfd   : > { %v553_v31 = vpop.f32.mrb[1].mxu0  ;;  %v3778_v32 = vpop.f32.mrb[1].mxu1  ;;  %v660_v33 = vsel %vm632_vm1, %v3226_v30, -inf  ;;  %v636_v34 = vsel %vm632_vm1, %v3214_v29, -inf }
  0xfe   : > { %661 = vmax.xlane.f32.xlu1 %v660_v33  ;;  %637 = vmax.xlane.f32.xlu0 %v636_v34  ;;  %v633_v38 = vsel %vm632_vm1, %v553_v31, -inf  ;;  %v657_v44 = vsel %vm632_vm1, %v3778_v32, -inf }
 0x100   : > { %v3217_v35 = vpop.f32.mrb[2].mxu0  ;;  %v3229_v36 = vpop.f32.mrb[2].mxu1 }
 0x101   : > { %v3782_v37 = vpop.f32.mrb[3].mxu0  ;;  %v642_v39 = vsel %vm632_vm1, %v3217_v35, -inf  ;;  %v3786_v40 = vpop.f32.mrb[3].mxu1  ;;  %v666_v41 = vsel %vm632_vm1, %v3229_v36, -inf }
 0x102   : > { %634 = vmax.xlane.f32.xlu0 %v633_v38  ;;  %643 = vmax.xlane.f32.xlu1 %v642_v39  ;;  %v663_v49 = vsel %vm632_vm1, %v3786_v40, -inf  ;;  %v639_v50 = vsel %vm632_vm1, %v3782_v37, -inf }
 0x104   : > { %v3789_v42 = vpop.f32.mrb[4].mxu0  ;;  %v3791_v43 = vpop.f32.mrb[4].mxu1 }
 0x105   : > { %v3795_v45 = vpop.f32.mrb[5].mxu0  ;;  %v3797_v46 = vpop.f32.mrb[5].mxu1  ;;  %v648_v53 = vsel %vm632_vm1, %v3789_v42, -inf  ;;  %v672_v55 = vsel %vm632_vm1, %v3791_v43, -inf }
 0x106   : > { %658 = vmax.xlane.f32.xlu0 %v657_v44  ;;  %667 = vmax.xlane.f32.xlu1 %v666_v41  ;;  %v645_v54 = vsel %vm632_vm1, %v3795_v45, -inf  ;;  %v669_v56 = vsel %vm632_vm1, %v3797_v46, -inf }
 0x108   : > { %v3799_v47 = vpop.f32.mrb[6].mxu0  ;;  %v3801_v48 = vpop.f32.mrb[6].mxu1 }
 0x109   : > { %v3807_v51 = vpop.f32.mrb[7].mxu0  ;;  %v3809_v52 = vpop.f32.mrb[7].mxu1  ;;  %v654_v57 = vsel %vm632_vm1, %v3799_v47, -inf  ;;  %v678_v59 = vsel %vm632_vm1, %v3801_v48, -inf }
 0x10a   : > { %664 = vmax.xlane.f32.xlu0 %v663_v49  ;;  %640 = vmax.xlane.f32.xlu1 %v639_v50  ;;  %v651_v58 = vsel %vm632_vm1, %v3807_v51, -inf  ;;  %v675_v60 = vsel %vm632_vm1, %v3809_v52, -inf }
 0x10e   : > { %649 = vmax.xlane.f32.xlu1 %v648_v53  ;;  %646 = vmax.xlane.f32.xlu0 %v645_v54 }
 0x112   : > { %673 = vmax.xlane.f32.xlu1 %v672_v55  ;;  %670 = vmax.xlane.f32.xlu0 %v669_v56 }
 0x116   : > { %655 = vmax.xlane.f32.xlu1 %v654_v57  ;;  %652 = vmax.xlane.f32.xlu0 %v651_v58 }
 0x11a   : > { %679 = vmax.xlane.f32.xlu1 %v678_v59  ;;  %676 = vmax.xlane.f32.xlu0 %v675_v60 }
 0x18b   : > { %v662_v61 = vpop.xlane.xlu1 %661  ;;  %v638_v62 = vpop.xlane.xlu0 %637 }
 0x18c   : > { %v690_v63 = vsub.f32 %v3226_v30, %v662_v61  ;;  %v682_v0 = vsub.f32 %v3214_v29, %v638_v62 }
 0x18e   : > { %v699_v1 = vmul.f32 1.442695, %v682_v0  ;;  %v715_v2 = vmul.f32 1.442695, %v690_v63 }
 0x18f   : > { %v635_v3 = vpop.xlane.xlu0 %634  ;;  %v644_v4 = vpop.xlane.xlu1 %643 }
 0x190   : > { %v681_v6 = vsub.f32 %v553_v31, %v635_v3  ;;  %v684_v7 = vsub.f32 %v3217_v35, %v644_v4  ;;  %3303 = vpow2.f32 %v699_v1 }
 0x191   : > { %3305 = vpow2.f32 %v715_v2 }
 0x192   : > { %v697_v8 = vmul.f32 1.442695, %v681_v6  ;;  %v703_v9 = vmul.f32 1.442695, %v684_v7 }
 0x193   : > { %v659_v10 = vpop.xlane.xlu0 %658  ;;  %v668_v11 = vpop.xlane.xlu1 %667 }
 0x194   : > { %3307 = vpow2.f32 %v697_v8  ;;  %v689_v12 = vsub.f32 %v3778_v32, %v659_v10  ;;  %v692_v13 = vsub.f32 %v3229_v36, %v668_v11 }
 0x195   : > { %3309 = vpow2.f32 %v703_v9 }
 0x196   : > { %v713_v14 = vmul.f32 1.442695, %v689_v12  ;;  %v719_v15 = vmul.f32 1.442695, %v692_v13 }
 0x197   : > { %v665_v16 = vpop.xlane.xlu0 %664  ;;  %v641_v17 = vpop.xlane.xlu1 %640 }
 0x198   : > { %3311 = vpow2.f32 %v713_v14  ;;  %v691_v18 = vsub.f32 %v3786_v40, %v665_v16  ;;  %v683_v19 = vsub.f32 %v3782_v37, %v641_v17 }
 0x199   : > { %3313 = vpow2.f32 %v719_v15 }
 0x19a   : > { %v701_v20 = vmul.f32 1.442695, %v683_v19  ;;  %v3830_v21 = vpop.eup %3303  ;;  %v717_v22 = vmul.f32 1.442695, %v691_v18 }
 0x19b   : > { %v650_v23 = vpop.xlane.xlu1 %649  ;;  %v647_v24 = vpop.xlane.xlu0 %646  ;;  %v732_v27 = vsel %vm632_vm1, %v3830_v21, 0.0 }
 0x19c   : > { %v686_v25 = vsub.f32 %v3789_v42, %v650_v23  ;;  %v685_v26 = vsub.f32 %v3795_v45, %v647_v24  ;;  %v3836_v28 = vpop.eup %3305  ;;  %3315 = vpow2.f32 %v701_v20  ;;  %733 = vadd.xlane.f32.xlu1 %v732_v27 }
 0x19d   : > { %3317 = vpow2.f32 %v717_v22  ;;  %v756_v37 = vsel %vm632_vm1, %v3836_v28, 0.0 }
 0x19e   : > { %v3838_v29 = vpop.eup %3307  ;;  %v707_v30 = vmul.f32 1.442695, %v686_v25  ;;  %v705_v31 = vmul.f32 1.442695, %v685_v26 }
 0x19f   : > { %v674_v32 = vpop.xlane.xlu1 %673  ;;  %v671_v33 = vpop.xlane.xlu0 %670  ;;  %v729_v34 = vsel %vm632_vm1, %v3838_v29, 0.0 }
 0x1a0   : > { %3319 = vpow2.f32 %v707_v30  ;;  %v694_v35 = vsub.f32 %v3791_v43, %v674_v32  ;;  %v693_v36 = vsub.f32 %v3797_v46, %v671_v33  ;;  %730 = vadd.xlane.f32.xlu0 %v729_v34  ;;  %v3846_v38 = vpop.eup %3309  ;;  %757 = vadd.xlane.f32.xlu1 %v756_v37 }
 0x1a1   : > { %3321 = vpow2.f32 %v705_v31  ;;  %v738_v50 = vsel %vm632_vm1, %v3846_v38, 0.0 }
 0x1a2   : > { %v3848_v39 = vpop.eup %3311  ;;  %v723_v40 = vmul.f32 1.442695, %v694_v35  ;;  %v721_v41 = vmul.f32 1.442695, %v693_v36 }
 0x1a3   : > { %v656_v42 = vpop.xlane.xlu1 %655  ;;  %v653_v44 = vpop.xlane.xlu0 %652  ;;  %v753_v45 = vsel %vm632_vm1, %v3848_v39, 0.0 }
 0x1a4   : > { %v3852_v43 = vpop.eup %3313  ;;  %3323 = vpow2.f32 %v723_v40  ;;  %v688_v46 = vsub.f32 %v3799_v47, %v656_v42  ;;  %v687_v49 = vsub.f32 %v3807_v51, %v653_v44  ;;  %754 = vadd.xlane.f32.xlu0 %v753_v45  ;;  %739 = vadd.xlane.f32.xlu1 %v738_v50 }
 0x1a5   : > { %3325 = vpow2.f32 %v721_v41  ;;  %v762_v58 = vsel %vm632_vm1, %v3852_v43, 0.0 }
 0x1a6   : > { %v711_v53 = vmul.f32 1.442695, %v688_v46  ;;  %v3858_v54 = vpop.eup %3315  ;;  %v709_v55 = vmul.f32 1.442695, %v687_v49 }
 0x1a7   : > { %v680_v56 = vpop.xlane.xlu1 %679  ;;  %v677_v57 = vpop.xlane.xlu0 %676  ;;  %v735_v59 = vsel %vm632_vm1, %v3858_v54, 0.0 }
 0x1a8   : > { %3327 = vpow2.f32 %v711_v53  ;;  %v696_v47 = vsub.f32 %v3801_v48, %v680_v56  ;;  %v695_v51 = vsub.f32 %v3809_v52, %v677_v57  ;;  %v3866_v60 = vpop.eup %3317  ;;  %763 = vadd.xlane.f32.xlu1 %v762_v58  ;;  %736 = vadd.xlane.f32.xlu0 %v735_v59 }
 0x1a9   : > { %3329 = vpow2.f32 %v709_v55  ;;  %v759_v48 = vsel %vm632_vm1, %v3866_v60, 0.0 }
 0x1aa   : > { %v3868_v61 = vpop.eup %3319  ;;  %v727_v62 = vmul.f32 1.442695, %v696_v47  ;;  %v725_v63 = vmul.f32 1.442695, %v695_v51 }
 0x1ab   : > { %v744_v0 = vsel %vm632_vm1, %v3868_v61, 0.0  ;;  %v3874_v52 = vpop.eup %3321 }
 0x1ac   : > { %3331 = vpow2.f32 %v727_v62  ;;  %745 = vadd.xlane.f32.xlu1 %v744_v0  ;;  %760 = vadd.xlane.f32.xlu0 %v759_v48  ;;  %v741_v3 = vsel %vm632_vm1, %v3874_v52, 0.0 }
 0x1ad   : > { %3333 = vpow2.f32 %v725_v63 }
 0x1ae   : > { %v3876_v1 = vpop.eup %3323 }
 0x1af   : > { %v768_v2 = vsel %vm632_vm1, %v3876_v1, 0.0  ;;  %v3882_v4 = vpop.eup %3325 }
 0x1b0   : > { %769 = vadd.xlane.f32.xlu1 %v768_v2  ;;  %742 = vadd.xlane.f32.xlu0 %v741_v3  ;;  %v765_v8 = vsel %vm632_vm1, %v3882_v4, 0.0 }
 0x1b2   : > { %v3884_v6 = vpop.eup %3327 }
 0x1b3   : > { %v750_v7 = vsel %vm632_vm1, %v3884_v6, 0.0  ;;  %v3890_v9 = vpop.eup %3329 }
 0x1b4   : > { %751 = vadd.xlane.f32.xlu1 %v750_v7  ;;  %766 = vadd.xlane.f32.xlu0 %v765_v8  ;;  %v747_v12 = vsel %vm632_vm1, %v3890_v9, 0.0 }
 0x1b6   : > { %v3892_v10 = vpop.eup %3331 }
 0x1b7   : > { %v774_v11 = vsel %vm632_vm1, %v3892_v10, 0.0  ;;  %v3898_v13 = vpop.eup %3333 }
 0x1b8   : > { %775 = vadd.xlane.f32.xlu1 %v774_v11  ;;  %748 = vadd.xlane.f32.xlu0 %v747_v12  ;;  %v771_v14 = vsel %vm632_vm1, %v3898_v13, 0.0 }
 0x1bc   : > { %772 = vadd.xlane.f32.xlu0 %v771_v14 }
 0x229   : > { %v734_v15 = vpop.xlane.xlu1 %733 }
 0x22a   : > { %3335 = vrcp.f32 %v734_v15 }
 0x22d   : > { %v731_v16 = vpop.xlane.xlu0 %730  ;;  %v758_v17 = vpop.xlane.xlu1 %757 }
 0x22e   : > { %3337 = vrcp.f32 %v731_v16 }
 0x22f   : > { %3339 = vrcp.f32 %v758_v17 }
 0x231   : > { %v755_v18 = vpop.xlane.xlu0 %754  ;;  %v740_v19 = vpop.xlane.xlu1 %739 }
 0x232   : > { %3341 = vrcp.f32 %v755_v18 }
 0x233   : > { %3343 = vrcp.f32 %v740_v19 }
 0x234   : > { %v3336_v20 = vpop.eup %3335 }
 0x235   : > { %v3903_v22 = vmul.f32 %v3336_v20, %v3830_v21  ;;  %v764_v23 = vpop.xlane.xlu1 %763  ;;  %v737_v24 = vpop.xlane.xlu0 %736 }
 0x236   : > { %3345 = vrcp.f32 %v764_v23 }
 0x237   : > { %3347 = vrcp.f32 %v737_v24  ;;  %v814_v26 = vsel %vm632_vm1, %v3903_v22, -inf  ;;  %v1852_v47 = vsel %vm632_vm1, %v3903_v22, 0.0 }
 0x238   : > { %v3338_v25 = vpop.eup %3337  ;;  %815 = vmax.xlane.f32.xlu1 %v814_v26 }
 0x239   : > { %v3340_v27 = vpop.eup %3339  ;;  %v3908_v30 = vmul.f32 %v3338_v25, %v3838_v29  ;;  %v746_v32 = vpop.xlane.xlu1 %745 }
 0x23a   : > { %v3911_v31 = vmul.f32 %v3340_v27, %v3836_v28  ;;  %v761_v33 = vpop.xlane.xlu0 %760  ;;  %3349 = vrcp.f32 %v746_v32 }
 0x23b   : > { %v811_v21 = vsel %vm632_vm1, %v3908_v30, -inf  ;;  %3351 = vrcp.f32 %v761_v33  ;;  %v1851_v55 = vsel %vm632_vm1, %v3908_v30, 0.0 }
 0x23c   : > { %v3342_v34 = vpop.eup %3341  ;;  %v838_v35 = vsel %vm632_vm1, %v3911_v31, -inf  ;;  %812 = vmax.xlane.f32.xlu0 %v811_v21  ;;  %v1853_v62 = vadd.f32 %v1852_v47, %v1851_v55 }
 0x23d   : > { %v3344_v36 = vpop.eup %3343  ;;  %v3918_v29 = vmul.f32 %v3342_v34, %v3848_v39  ;;  %839 = vmax.xlane.f32.xlu1 %v838_v35  ;;  %v770_v37 = vpop.xlane.xlu1 %769 }
 0x23e   : > { %v3921_v28 = vmul.f32 %v3344_v36, %v3846_v38  ;;  %v743_v40 = vpop.xlane.xlu0 %742  ;;  %3353 = vrcp.f32 %v770_v37 }
 0x23f   : > { %v835_v41 = vsel %vm632_vm1, %v3918_v29, -inf  ;;  %3355 = vrcp.f32 %v743_v40  ;;  %v1866_v37 = vsel %vm632_vm1, %v3918_v29, 0.0 }
 0x240   : > { %v820_v42 = vsel %vm632_vm1, %v3921_v28, -inf  ;;  %836 = vmax.xlane.f32.xlu0 %v835_v41  ;;  %v3346_v44 = vpop.eup %3345  ;;  %v1856_v12 = vsel %vm632_vm1, %v3921_v28, 0.0  ;;  %v1868_v41 = vsel %vm632_vm1, %v3911_v31, 0.0 }
 0x241   : > { %821 = vmax.xlane.f32.xlu1 %v820_v42  ;;  %v3348_v45 = vpop.eup %3347  ;;  %v3928_v39 = vmul.f32 %v3346_v44, %v3852_v43  ;;  %v752_v46 = vpop.xlane.xlu1 %751 }
 0x242   : > { %v767_v38 = vpop.xlane.xlu0 %766  ;;  %v3931_v49 = vmul.f32 %v3348_v45, %v3858_v54  ;;  %3357 = vrcp.f32 %v752_v46 }
 0x243   : > { %3359 = vrcp.f32 %v767_v38  ;;  %v844_v50 = vsel %vm632_vm1, %v3928_v39, -inf  ;;  %v1872_v45 = vsel %vm632_vm1, %v3928_v39, 0.0 }
 0x244   : > { %v3350_v53 = vpop.eup %3349  ;;  %v817_v56 = vsel %vm632_vm1, %v3931_v49, -inf  ;;  %v1854_v51 = vsel %vm632_vm1, %v3931_v49, 0.0 }
 0x245   : > { %845 = vmax.xlane.f32.xlu1 %v844_v50  ;;  %v3352_v43 = vpop.eup %3351  ;;  %v3940_v57 = vmul.f32 %v3350_v53, %v3868_v61  ;;  %818 = vmax.xlane.f32.xlu0 %v817_v56  ;;  %v776_v54 = vpop.xlane.xlu1 %775  ;;  %v1855_v2 = vadd.f32 %v1854_v51, %v1853_v62 }
 0x246   : > { %v749_v58 = vpop.xlane.xlu0 %748  ;;  %v3947_v59 = vmul.f32 %v3352_v43, %v3866_v60  ;;  %3361 = vrcp.f32 %v776_v54 }
 0x247   : > { %3363 = vrcp.f32 %v749_v58  ;;  %v826_v63 = vsel %vm632_vm1, %v3940_v57, -inf  ;;  %v1857_v16 = vadd.f32 %v1856_v12, %v1855_v2 }
 0x248   : > { %5572 = vst [vmem:[#allocation3_spill] sm:$0xff] %v3947_v59  ;;  %v3354_v61 = vpop.eup %3353  ;;  %v841_v0 = vsel %vm632_vm1, %v3947_v59, -inf }
 0x249   : > { %827 = vmax.xlane.f32.xlu1 %v826_v63  ;;  %v3356_v48 = vpop.eup %3355  ;;  %v3954_v3 = vmul.f32 %v3354_v61, %v3876_v1  ;;  %842 = vmax.xlane.f32.xlu0 %v841_v0 }
 0x24a   : > { %v773_v7 = vpop.xlane.xlu0 %772  ;;  %v3957_v60 = vmul.f32 %v3356_v48, %v3874_v52  ;;  %v809_v48 = vlaneseq }
 0x24b   : > { %5573 = vst [vmem:[#allocation4_spill] sm:$0xff] %v3954_v3  ;;  %3365 = vrcp.f32 %v773_v7  ;;  %v850_v8 = vsel %vm632_vm1, %v3954_v3, -inf  ;;  %v1876_v53 = vsel %vm632_vm1, %v3954_v3, 0.0 }
 0x24c   : > { %v3358_v11 = vpop.eup %3357  ;;  %v1858_v14 = vsel %vm632_vm1, %v3957_v60, 0.0  ;;  %v823_v1 = vsel %vm632_vm1, %v3957_v60, -inf  ;;  %v4018_v2 = vand.u32 127, %v809_v48 }
 0x24d   : > { %851 = vmax.xlane.f32.xlu1 %v850_v8  ;;  %v3360_v15 = vpop.eup %3359  ;;  %v3968_v52 = vmul.f32 %v3358_v11, %v3884_v6  ;;  %824 = vmax.xlane.f32.xlu0 %v823_v1  ;;  %v1859_v18 = vadd.f32 %v1858_v14, %v1857_v16  ;;  %v1860_v6 = vsel %vm632_vm1, %v3940_v57, 0.0 }
 0x24e   : > { %v3971_v17 = vmul.f32 %v3360_v15, %v3882_v4  ;;  %5577 = vst [vmem:[#allocation8_spill] sm:$0xff] %v4018_v2 }
 0x24f   : > { %v832_v19 = vsel %vm632_vm1, %v3968_v52, -inf  ;;  %v1861_v26 = vadd.f32 %v1860_v6, %v1859_v18 }
 0x250   : > { %5574 = vst [vmem:[#allocation5_spill] sm:$0xff] %v3971_v17  ;;  %v3362_v20 = vpop.eup %3361  ;;  %v847_v23 = vsel %vm632_vm1, %v3971_v17, -inf  ;;  %v1874_v38 = vsel %vm632_vm1, %v3971_v17, 0.0 }
 0x251   : > { %833 = vmax.xlane.f32.xlu1 %v832_v19  ;;  %v3364_v24 = vpop.eup %3363  ;;  %v3978_v25 = vmul.f32 %v3362_v20, %v3892_v10  ;;  %848 = vmax.xlane.f32.xlu0 %v847_v23 }
 0x252   : > { %v3983_v4 = vmul.f32 %v3364_v24, %v3890_v9  ;;  %v1864_v9 = vsel %vm632_vm1, %v3968_v52, 0.0 }
 0x253   : > { %5575 = vst [vmem:[#allocation6_spill] sm:$0xff] %v3978_v25  ;;  %v856_v27 = vsel %vm632_vm1, %v3978_v25, -inf  ;;  %v1880_v54 = vsel %vm632_vm1, %v3978_v25, 0.0 }
 0x254   : > { %v1862_v33 = vsel %vm632_vm1, %v3983_v4, 0.0  ;;  %v829_v10 = vsel %vm632_vm1, %v3983_v4, -inf }
 0x255   : > { %v3366_v32 = vpop.eup %3365  ;;  %857 = vmax.xlane.f32.xlu1 %v856_v27  ;;  %v1863_v21 = vadd.f32 %v1862_v33, %v1861_v26  ;;  %830 = vmax.xlane.f32.xlu0 %v829_v10 }
 0x256   : > { %v3992_v34 = vmul.f32 %v3366_v32, %v3898_v13  ;;  %v1870_v13 = vsel %vm632_vm1, %v3947_v59, 0.0 }
 0x257   : > { %v1865_v35 = vadd.f32 %v1864_v9, %v1863_v21 }
 0x258   : > { %5576 = vst [vmem:[#allocation7_spill] sm:$0xff] %v3992_v34  ;;  %v853_v36 = vsel %vm632_vm1, %v3992_v34, -inf  ;;  %v1878_v56 = vsel %vm632_vm1, %v3992_v34, 0.0 }
 0x259   : > { %v1867_v40 = vadd.f32 %v1866_v37, %v1865_v35  ;;  %854 = vmax.xlane.f32.xlu0 %v853_v36 }
 0x25b   : > { %v1869_v42 = vadd.f32 %v1868_v41, %v1867_v40 }
 0x25d   : > { %v1871_v44 = vadd.f32 %v1870_v13, %v1869_v42 }
 0x25f   : > { %v1873_v46 = vadd.f32 %v1872_v45, %v1871_v44 }
 0x261   : > { %v1875_v50 = vadd.f32 %v1874_v38, %v1873_v46 }
 0x263   : > { %v1877_v55 = vadd.f32 %v1876_v53, %v1875_v50 }
 0x265   : > { %v1879_v43 = vadd.f32 %v1878_v56, %v1877_v55 }
 0x267   : > { %v1881_v58 = vadd.f32 %v1880_v54, %v1879_v43 }
 0x269   : > { %v1882_v47 = vrot.slane %v1881_v58, 4 }
 0x26b   : > { %v1883_v51 = vadd.f32 %v1882_v47, %v1881_v58 }
 0x26d   : > { %v1884_v62 = vrot.slane %v1883_v51, 2 }
 0x26f   : > { %v1885_v63 = vadd.f32 %v1884_v62, %v1883_v51 }
 0x271   : > { %v1886_v61 = vrot.slane %v1885_v63, 1 }
 0x273   : > { %v1887_v0 = vadd.f32 %v1886_v61, %v1885_v63 }
 0x275   : > { %1889 = vst.msk [vmem:[%s5542_s7] sm:$0x1] %vm1888_vm2, %v1887_v0 }
 0x2c5   : > { %v816_v7 = vpop.xlane.xlu1 %815 }
 0x2c6   : > { %vm860_vm3 = vcmp.eq.f32.partialorder %v3903_v22, %v816_v7 }
 0x2c7   : > { %v876_v8 = vsel %vm860_vm3, %v4018_v2, 4 }
 0x2c8   : > { %v4023_v12 = vsel %vm632_vm1, %v876_v8, 2147483647 }
 0x2c9   : > { %v813_v11 = vpop.xlane.xlu0 %812  ;;  %v908_v1 = vshra.s32 %v4023_v12, 16 }
 0x2ca   : > { %v840_v14 = vpop.xlane.xlu1 %839  ;;  %vm859_vm4 = vcmp.eq.f32.partialorder %v3908_v30, %v813_v11 }
 0x2cb   : > { %vm868_vm5 = vcmp.eq.f32.partialorder %v3911_v31, %v840_v14  ;;  %v875_v15 = vsel %vm859_vm4, %v4018_v2, 4  ;;  %v4030_v18 = vcvt.s32.f32 %v908_v1 }
 0x2cc   : > { %v884_v16 = vsel %vm868_vm5, %v4018_v2, 4  ;;  %v4033_v19 = vsel %vm632_vm1, %v875_v15, 2147483647 }
 0x2cd   : > { %v837_v20 = vpop.xlane.xlu0 %836  ;;  %v4036_v23 = vsel %vm632_vm1, %v884_v16, 2147483647  ;;  %v893_v24 = vshra.s32 %v4033_v19, 16  ;;  %911 = vmin.xlane.f32.xlu1 %v4030_v18 }
 0x2ce   : > { %v822_v6 = vpop.xlane.xlu1 %821  ;;  %vm867_vm6 = vcmp.eq.f32.partialorder %v3918_v29, %v837_v20  ;;  %v1028_v26 = vshra.s32 %v4036_v23, 16 }
 0x2cf   : > { %vm862_vm7 = vcmp.eq.f32.partialorder %v3921_v28, %v822_v6  ;;  %v883_v27 = vsel %vm867_vm6, %v4018_v2, 4  ;;  %v4044_v32 = vcvt.s32.f32 %v893_v24 }
 0x2d0   : > { %v878_v33 = vsel %vm862_vm7, %v4018_v2, 4  ;;  %v4047_v10 = vcvt.s32.f32 %v1028_v26  ;;  %v4050_v21 = vsel %vm632_vm1, %v883_v27, 2147483647 }
 0x2d1   : > { %896 = vmin.xlane.f32.xlu0 %v4044_v32  ;;  %v4054_v9 = vsel %vm632_vm1, %v878_v33, 2147483647  ;;  %v1013_v35 = vshra.s32 %v4050_v21, 16 }
 0x2d2   : > { %1031 = vmin.xlane.f32.xlu1 %v4047_v10  ;;  %v846_v36 = vpop.xlane.xlu1 %845  ;;  %v938_v37 = vshra.s32 %v4054_v9, 16  ;;  %v819_v40 = vpop.xlane.xlu0 %818 }
 0x2d3   : > { %vm870_vm8 = vcmp.eq.f32.partialorder %v3928_v39, %v846_v36  ;;  %v4060_v41 = vcvt.s32.f32 %v1013_v35  ;;  %vm861_vm9 = vcmp.eq.f32.partialorder %v3931_v49, %v819_v40 }
 0x2d4   : > { %v886_v42 = vsel %vm870_vm8, %v4018_v2, 4  ;;  %v4064_v13 = vcvt.s32.f32 %v938_v37  ;;  %v877_v44 = vsel %vm861_vm9, %v4018_v2, 4 }
 0x2d5   : > { %1016 = vmin.xlane.f32.xlu0 %v4060_v41  ;;  %v4069_v45 = vsel %vm632_vm1, %v886_v42, 2147483647  ;;  %v4074_v50 = vsel %vm632_vm1, %v877_v44, 2147483647 }
 0x2d6   : > { %941 = vmin.xlane.f32.xlu1 %v4064_v13  ;;  %v828_v46 = vpop.xlane.xlu1 %827  ;;  %v1058_v38 = vshra.s32 %v4069_v45, 16  ;;  %v843_v53 = vpop.xlane.xlu0 %842  ;;  %v923_v55 = vshra.s32 %v4074_v50, 16 }
 0x2d7   : > { %vm864_vm10 = vcmp.eq.f32.partialorder %v3940_v57, %v828_v46  ;;  %vm869_vm11 = vcmp.eq.f32.partialorder %v3947_v59, %v843_v53 }
 0x2d8   : > { %v880_v56 = vsel %vm864_vm10, %v4018_v2, 4  ;;  %v4080_v43 = vcvt.s32.f32 %v1058_v38  ;;  %v885_v54 = vsel %vm869_vm11, %v4018_v2, 4  ;;  %v4083_v58 = vcvt.s32.f32 %v923_v55 }
 0x2d9   : > { %v4086_v47 = vsel %vm632_vm1, %v880_v56, 2147483647  ;;  %v4091_v63 = vsel %vm632_vm1, %v885_v54, 2147483647 }
 0x2da   : > { %1061 = vmin.xlane.f32.xlu1 %v4080_v43  ;;  %v852_v51 = vpop.xlane.xlu1 %851  ;;  %v968_v62 = vshra.s32 %v4086_v47, 16  ;;  %926 = vmin.xlane.f32.xlu0 %v4083_v58  ;;  %v825_v61 = vpop.xlane.xlu0 %824  ;;  %v1043_v0 = vshra.s32 %v4091_v63, 16 }
 0x2db   : > { %vm872_vm12 = vcmp.eq.f32.partialorder %v3954_v3, %v852_v51  ;;  %vm863_vm13 = vcmp.eq.f32.partialorder %v3957_v60, %v825_v61 }
 0x2dc   : > { %v888_v48 = vsel %vm872_vm12, %v4018_v2, 4  ;;  %v4098_v7 = vcvt.s32.f32 %v968_v62  ;;  %v879_v8 = vsel %vm863_vm13, %v4018_v2, 4  ;;  %v4101_v11 = vcvt.s32.f32 %v1043_v0 }
 0x2dd   : > { %v4104_v14 = vsel %vm632_vm1, %v888_v48, 2147483647  ;;  %v4109_v16 = vsel %vm632_vm1, %v879_v8, 2147483647 }
 0x2de   : > { %971 = vmin.xlane.f32.xlu1 %v4098_v7  ;;  %v834_v1 = vpop.xlane.xlu1 %833  ;;  %v1088_v15 = vshra.s32 %v4104_v14, 16  ;;  %1046 = vmin.xlane.f32.xlu0 %v4101_v11  ;;  %v849_v20 = vpop.xlane.xlu0 %848  ;;  %v953_v24 = vshra.s32 %v4109_v16, 16 }
 0x2df   : > { %vm866_vm14 = vcmp.eq.f32.partialorder %v3968_v52, %v834_v1  ;;  %vm871_vm15 = vcmp.eq.f32.partialorder %v3971_v17, %v849_v20 }
 0x2e0   : > { %v882_v6 = vsel %vm866_vm14, %v4018_v2, 4  ;;  %v4116_v26 = vcvt.s32.f32 %v1088_v15  ;;  %v887_v27 = vsel %vm871_vm15, %v4018_v2, 4  ;;  %v4119_v33 = vcvt.s32.f32 %v953_v24 }
 0x2e1   : > { %v4122_v35 = vsel %vm632_vm1, %v882_v6, 2147483647  ;;  %v4127_v40 = vsel %vm632_vm1, %v887_v27, 2147483647  ;;  %v907_v24 = vand.u32 65535, %v4023_v12  ;;  %v892_v6 = vand.u32 65535, %v4033_v19 }
 0x2e2   : > { %1091 = vmin.xlane.f32.xlu1 %v4116_v26  ;;  %v858_v36 = vpop.xlane.xlu1 %857  ;;  %v998_v37 = vshra.s32 %v4122_v35, 16  ;;  %956 = vmin.xlane.f32.xlu0 %v4119_v33  ;;  %v831_v42 = vpop.xlane.xlu0 %830  ;;  %v1073_v44 = vshra.s32 %v4127_v40, 16  ;;  %v937_v19 = vand.u32 65535, %v4054_v9 }
 0x2e3   : > { %vm874_vm0 = vcmp.eq.f32.partialorder %v3978_v25, %v858_v36  ;;  %vm865_vm3 = vcmp.eq.f32.partialorder %v3983_v4, %v831_v42  ;;  %v909_v36 = vcvt.s32.f32 %v907_v24 }
 0x2e4   : > { %v890_v46 = vsel %vm874_vm0, %v4018_v2, 4  ;;  %v4134_v38 = vcvt.s32.f32 %v998_v37  ;;  %v881_v53 = vsel %vm865_vm3, %v4018_v2, 4  ;;  %v4137_v55 = vcvt.s32.f32 %v1073_v44 }
 0x2e5   : > { %v4140_v56 = vsel %vm632_vm1, %v890_v46, 2147483647  ;;  %v4145_v51 = vsel %vm632_vm1, %v881_v53, 2147483647  ;;  %v1027_v37 = vand.u32 65535, %v4036_v23  ;;  %v894_v46 = vcvt.s32.f32 %v892_v6 }
 0x2e6   : > { %1001 = vmin.xlane.f32.xlu1 %v4134_v38  ;;  %v1118_v54 = vshra.s32 %v4140_v56, 16  ;;  %1076 = vmin.xlane.f32.xlu0 %v4137_v55  ;;  %v855_v62 = vpop.xlane.xlu0 %854  ;;  %v983_v61 = vshra.s32 %v4145_v51, 16  ;;  %v1012_v53 = vand.u32 65535, %v4050_v21  ;;  %v939_v21 = vcvt.s32.f32 %v937_v19 }
 0x2e7   : > { %vm873_vm4 = vcmp.eq.f32.partialorder %v3992_v34, %v855_v62  ;;  %v1029_v12 = vcvt.s32.f32 %v1027_v37 }
 0x2e8   : > { %v4150_v0 = vcvt.s32.f32 %v1118_v54  ;;  %v889_v48 = vsel %vm873_vm4, %v4018_v2, 4  ;;  %v4153_v8 = vcvt.s32.f32 %v983_v61  ;;  %v1014_v61 = vcvt.s32.f32 %v1012_v53 }
 0x2e9   : > { %v4157_v1 = vsel %vm632_vm1, %v889_v48, 2147483647 }
 0x2ea   : > { %1121 = vmin.xlane.f32.xlu1 %v4150_v0  ;;  %986 = vmin.xlane.f32.xlu0 %v4153_v8  ;;  %v1103_v15 = vshra.s32 %v4157_v1, 16 }
 0x2ec   : > { %v4161_v20 = vcvt.s32.f32 %v1103_v15 }
 0x2ee   : > { %1106 = vmin.xlane.f32.xlu0 %v4161_v20 }
 0x35a   : > { %v4166_v27 = vpop.xlane.xlu1 %911 }
 0x35b   : > { %vm913_vm5 = vcmp.eq.f32.partialorder %v4030_v18, %v4166_v27 }
 0x35c   : > { %v914_v42 = vsel %vm913_vm5, %v909_v36, inf  ;;  %v967_v36 = vand.u32 65535, %v4086_v47  ;;  %v1087_v47 = vand.u32 65535, %v4104_v14  ;;  %v997_v14 = vand.u32 65535, %v4122_v35 }
 0x35d   : > { %915 = vmin.xlane.f32.xlu1 %v914_v42  ;;  %v1117_v35 = vand.u32 65535, %v4140_v56 }
 0x35e   : > { %v4171_v44 = vpop.xlane.xlu0 %896 }
 0x35f   : > { %v4174_v54 = vpop.xlane.xlu1 %1031  ;;  %vm898_vm6 = vcmp.eq.f32.partialorder %v4044_v32, %v4171_v44  ;;  %v1057_v32 = vand.u32 65535, %v4069_v45  ;;  %v1042_v45 = vand.u32 65535, %v4091_v63  ;;  %v952_v63 = vand.u32 65535, %v4109_v16 }
 0x360   : > { %vm1033_vm7 = vcmp.eq.f32.partialorder %v4047_v10, %v4174_v54  ;;  %v899_v23 = vsel %vm898_vm6, %v894_v46, inf  ;;  %v922_v10 = vand.u32 65535, %v4074_v50  ;;  %v969_v46 = vcvt.s32.f32 %v967_v36 }
 0x361   : > { %v1034_v18 = vsel %vm1033_vm7, %v1029_v12, inf  ;;  %900 = vmin.xlane.f32.xlu0 %v899_v23  ;;  %v1059_v6 = vcvt.s32.f32 %v1057_v32  ;;  %v1089_v23 = vcvt.s32.f32 %v1087_v47  ;;  %v1072_v16 = vand.u32 65535, %v4127_v40 }
 0x362   : > { %1035 = vmin.xlane.f32.xlu1 %v1034_v18  ;;  %v4181_v62 = vpop.xlane.xlu0 %1016  ;;  %v999_v32 = vcvt.s32.f32 %v997_v14  ;;  %v982_v40 = vand.u32 65535, %v4145_v51 }
 0x363   : > { %v4183_v48 = vpop.xlane.xlu1 %941  ;;  %vm1018_vm8 = vcmp.eq.f32.partialorder %v4060_v41, %v4181_v62  ;;  %v924_v41 = vcvt.s32.f32 %v922_v10 }
 0x364   : > { %vm943_vm9 = vcmp.eq.f32.partialorder %v4064_v13, %v4183_v48  ;;  %v1019_v9 = vsel %vm1018_vm8, %v1014_v61, inf  ;;  %v984_v56 = vcvt.s32.f32 %v982_v40 }
 0x365   : > { %v944_v15 = vsel %vm943_vm9, %v939_v21, inf  ;;  %1020 = vmin.xlane.f32.xlu0 %v1019_v9 }
 0x366   : > { %945 = vmin.xlane.f32.xlu1 %v944_v15 }
 0x367   : > { %v4191_v24 = vpop.xlane.xlu1 %1061  ;;  %v4194_v37 = vpop.xlane.xlu0 %926 }
 0x368   : > { %vm1063_vm10 = vcmp.eq.f32.partialorder %v4080_v43, %v4191_v24  ;;  %vm928_vm11 = vcmp.eq.f32.partialorder %v4083_v58, %v4194_v37  ;;  %v1044_v43 = vcvt.s32.f32 %v1042_v45 }
 0x369   : > { %v1064_v13 = vsel %vm1063_vm10, %v1059_v6, inf  ;;  %v929_v50 = vsel %vm928_vm11, %v924_v41, inf  ;;  %v1119_v6 = vcvt.s32.f32 %v1117_v35 }
 0x36a   : > { %1065 = vmin.xlane.f32.xlu1 %v1064_v13  ;;  %930 = vmin.xlane.f32.xlu0 %v929_v50  ;;  %v903_v50 = vcvt.f32.s32 %v4171_v44 }
 0x36b   : > { %v4201_v42 = vpop.xlane.xlu1 %971  ;;  %v4204_v53 = vpop.xlane.xlu0 %1046 }
 0x36c   : > { %vm973_vm12 = vcmp.eq.f32.partialorder %v4098_v7, %v4201_v42  ;;  %vm1048_vm13 = vcmp.eq.f32.partialorder %v4101_v11, %v4204_v53  ;;  %v954_v7 = vcvt.s32.f32 %v952_v63  ;;  %v1068_v63 = vcvt.f32.s32 %v4191_v24 }
 0x36d   : > { %v974_v12 = vsel %vm973_vm12, %v969_v46, inf  ;;  %v1049_v58 = vsel %vm1048_vm13, %v1044_v43, inf  ;;  %v1023_v46 = vcvt.f32.s32 %v4181_v62  ;;  %v948_v43 = vcvt.f32.s32 %v4183_v48 }
 0x36e   : > { %975 = vmin.xlane.f32.xlu1 %v974_v12  ;;  %1050 = vmin.xlane.f32.xlu0 %v1049_v58  ;;  %v933_v58 = vcvt.f32.s32 %v4194_v37 }
 0x36f   : > { %v4211_v19 = vpop.xlane.xlu1 %1091  ;;  %v4214_v18 = vpop.xlane.xlu0 %956  ;;  %v1024_v44 = vshll.u32 %v1023_v46, 16 }
 0x370   : > { %vm1093_vm14 = vcmp.eq.f32.partialorder %v4116_v26, %v4211_v19  ;;  %vm958_vm15 = vcmp.eq.f32.partialorder %v4119_v33, %v4214_v18  ;;  %v1074_v26 = vcvt.s32.f32 %v1072_v16  ;;  %v934_v24 = vshll.u32 %v933_v58, 16 }
 0x371   : > { %v1094_v61 = vsel %vm1093_vm14, %v1089_v23, inf  ;;  %v959_v11 = vsel %vm958_vm15, %v954_v7, inf  ;;  %v904_v23 = vshll.u32 %v903_v50, 16  ;;  %v1098_v35 = vcvt.f32.s32 %v4211_v19 }
 0x372   : > { %1095 = vmin.xlane.f32.xlu1 %v1094_v61  ;;  %960 = vmin.xlane.f32.xlu0 %v959_v11  ;;  %v949_v61 = vshll.u32 %v948_v43, 16  ;;  %v1069_v11 = vshll.u32 %v1068_v63, 16 }
 0x373   : > { %v4221_v21 = vpop.xlane.xlu1 %1001  ;;  %v4224_v9 = vpop.xlane.xlu0 %1076 }
 0x374   : > { %vm1003_vm0 = vcmp.eq.f32.partialorder %v4134_v38, %v4221_v21  ;;  %vm1078_vm3 = vcmp.eq.f32.partialorder %v4137_v55, %v4224_v9  ;;  %v1102_v38 = vand.u32 65535, %v4157_v1  ;;  %v1038_v1 = vcvt.f32.s32 %v4174_v54 }
 0x375   : > { %v1004_v10 = vsel %vm1003_vm0, %v999_v32, inf  ;;  %v1079_v33 = vsel %vm1078_vm3, %v1074_v26, inf  ;;  %v1053_v54 = vcvt.f32.s32 %v4204_v53  ;;  %v963_v26 = vcvt.f32.s32 %v4214_v18 }
 0x376   : > { %1005 = vmin.xlane.f32.xlu1 %v1004_v10  ;;  %1080 = vmin.xlane.f32.xlu0 %v1079_v33  ;;  %v1104_v45 = vcvt.s32.f32 %v1102_v38  ;;  %v1039_v7 = vshll.u32 %v1038_v1, 16  ;;  %v1083_v18 = vcvt.f32.s32 %v4224_v9 }
 0x377   : > { %v4231_v15 = vpop.xlane.xlu1 %1121  ;;  %v4233_v36 = vpop.xlane.xlu0 %986  ;;  %v1054_v33 = vshll.u32 %v1053_v54, 16  ;;  %v4274_v50 = vshll.u32 %v963_v26, 16 }
 0x378   : > { %vm1123_vm4 = vcmp.eq.f32.partialorder %v4150_v0, %v4231_v15  ;;  %vm988_vm5 = vcmp.eq.f32.partialorder %v4153_v8, %v4233_v36  ;;  %v918_v0 = vcvt.f32.s32 %v4166_v27 }
 0x379   : > { %v1124_v41 = vsel %vm1123_vm4, %v1119_v6, inf  ;;  %v989_v55 = vsel %vm988_vm5, %v984_v56, inf  ;;  %v1008_v6 = vcvt.f32.s32 %v4221_v21 }
 0x37a   : > { %1125 = vmin.xlane.f32.xlu1 %v1124_v41  ;;  %990 = vmin.xlane.f32.xlu0 %v989_v55  ;;  %v919_v47 = vshll.u32 %v918_v0, 16  ;;  %v1099_v0 = vshll.u32 %v1098_v35, 16 }
 0x37b   : > { %v4240_v51 = vpop.xlane.xlu0 %1106  ;;  %v4284_v63 = vshll.u32 %v1008_v6, 16 }
 0x37c   : > { %vm1108_vm6 = vcmp.eq.f32.partialorder %v4161_v20, %v4240_v51  ;;  %v978_v20 = vcvt.f32.s32 %v4201_v42 }
 0x37d   : > { %v1109_v13 = vsel %vm1108_vm6, %v1104_v45, inf }
 0x37e   : > { %1110 = vmin.xlane.f32.xlu0 %v1109_v13  ;;  %v979_v32 = vshll.u32 %v978_v20, 16 }
 0x3ea   : > { %v916_v8 = vpop.xlane.xlu1 %915 }
 0x3eb   : > { %v917_v12 = vcvt.f32.s32 %v916_v8  ;;  %v1128_v8 = vcvt.f32.s32 %v4231_v15 }
 0x3ed   : > { %v920_v14 = vadd.s32 %v919_v47, %v917_v12 }
 0x3ee   : > { %v901_v27 = vpop.xlane.xlu0 %900 }
 0x3ef   : > { %v1036_v16 = vpop.xlane.xlu1 %1035  ;;  %v902_v62 = vcvt.f32.s32 %v901_v27  ;;  %vm1132_vm7 = vcmp.eq.s32.totalorder %v4018_v2, %v920_v14 }
 0x3f0   : > { %v1037_v48 = vcvt.f32.s32 %v1036_v16  ;;  %v4255_v37 = vsel %vm1132_vm7, 1.0, %v5544_v5 }
 0x3f1   : > { %v905_v42 = vadd.s32 %v904_v23, %v902_v62  ;;  %v1180_v53 = vsub.f32 1.0, %v4255_v37  ;;  %v4290_v23 = vshll.u32 %v1083_v18, 16  ;;  %v4302_v62 = vshll.u32 %v1128_v8, 16 }
 0x3f2   : > { %v1040_v40 = vadd.s32 %v1039_v7, %v1037_v48  ;;  %v1021_v10 = vpop.xlane.xlu0 %1020  ;;  %v993_v7 = vcvt.f32.s32 %v4233_v36  ;;  %v1891_v6 = vsel %vm632_vm1, %v4255_v37, 0.0 }
 0x3f3   : > { %vm1131_vm8 = vcmp.eq.s32.totalorder %v4018_v2, %v905_v42  ;;  %v946_v56 = vpop.xlane.xlu1 %945  ;;  %v1022_v38 = vcvt.f32.s32 %v1021_v10  ;;  %v4267_v19 = vmul.f32 %v1180_v53, %v3903_v22 }
 0x3f4   : > { %vm1140_vm9 = vcmp.eq.s32.totalorder %v4018_v2, %v1040_v40  ;;  %v4264_v41 = vsel %vm1131_vm8, 1.0, %v5544_v5  ;;  %v947_v55 = vcvt.f32.s32 %v946_v56 }
 0x3f5   : > { %v4271_v45 = vsel %vm1140_vm9, 1.0, %v5544_v5  ;;  %v1025_v13 = vadd.s32 %v1024_v44, %v1022_v38  ;;  %v1179_v21 = vsub.f32 1.0, %v4264_v41  ;;  %v1214_v46 = vsel %vm632_vm1, %v4267_v19, -inf }
 0x3f6   : > { %v950_v1 = vadd.s32 %v949_v61, %v947_v55  ;;  %1215 = vmax.xlane.f32.xlu1 %v1214_v46  ;;  %v1188_v9 = vsub.f32 1.0, %v4271_v45  ;;  %v1890_v26 = vsel %vm632_vm1, %v4264_v41, 0.0 }
 0x3f7   : > { %vm1139_vm10 = vcmp.eq.s32.totalorder %v4018_v2, %v1025_v13  ;;  %v1066_v47 = vpop.xlane.xlu1 %1065  ;;  %v4282_v43 = vmul.f32 %v1179_v21, %v3908_v30  ;;  %v931_v20 = vpop.xlane.xlu0 %930  ;;  %v1892_v18 = vadd.f32 %v1891_v6, %v1890_v26 }
 0x3f8   : > { %vm1134_vm11 = vcmp.eq.s32.totalorder %v4018_v2, %v950_v1  ;;  %v4288_v12 = vsel %vm1139_vm10, 1.0, %v5544_v5  ;;  %v1067_v58 = vcvt.f32.s32 %v1066_v47  ;;  %v932_v14 = vcvt.f32.s32 %v931_v20 }
 0x3f9   : > { %v4293_v15 = vsel %vm1134_vm11, 1.0, %v5544_v5  ;;  %v4296_v27 = vmul.f32 %v1188_v9, %v3911_v31  ;;  %v1211_v54 = vsel %vm632_vm1, %v4282_v43, -inf  ;;  %v1187_v35 = vsub.f32 1.0, %v4288_v12 }
 0x3fa   : > { %v1070_v44 = vadd.s32 %v1069_v11, %v1067_v58  ;;  %v1182_v16 = vsub.f32 1.0, %v4293_v15  ;;  %v935_v61 = vadd.s32 %v934_v24, %v932_v14  ;;  %1212 = vmax.xlane.f32.xlu0 %v1211_v54  ;;  %v994_v14 = vshll.u32 %v993_v7, 16 }
 0x3fb   : > { %v1238_v48 = vsel %vm632_vm1, %v4296_v27, -inf  ;;  %v976_v42 = vpop.xlane.xlu1 %975  ;;  %v1051_v11 = vpop.xlane.xlu0 %1050  ;;  %v4318_v53 = vmul.f32 %v1187_v35, %v3918_v29  ;;  %v1895_v6 = vsel %vm632_vm1, %v4293_v15, 0.0 }
 0x3fc   : > { %vm1142_vm12 = vcmp.eq.s32.totalorder %v4018_v2, %v1070_v44  ;;  %1239 = vmax.xlane.f32.xlu1 %v1238_v48  ;;  %v977_v36 = vcvt.f32.s32 %v976_v42  ;;  %v4311_v40 = vmul.f32 %v1182_v16, %v3921_v28  ;;  %vm1133_vm13 = vcmp.eq.s32.totalorder %v4018_v2, %v935_v61 }
 0x3fd   : > { %v4314_v24 = vsel %vm1142_vm12, 1.0, %v5544_v5  ;;  %v1052_v10 = vcvt.f32.s32 %v1051_v11  ;;  %v4323_v56 = vsel %vm1133_vm13, 1.0, %v5544_v5  ;;  %v1235_v1 = vsel %vm632_vm1, %v4318_v53, -inf }
 0x3fe   : > { %v980_v38 = vadd.s32 %v979_v32, %v977_v36  ;;  %v1220_v55 = vsel %vm632_vm1, %v4311_v40, -inf  ;;  %v1190_v46 = vsub.f32 1.0, %v4314_v24  ;;  %v1893_v8 = vsel %vm632_vm1, %v4323_v56, 0.0  ;;  %1236 = vmax.xlane.f32.xlu0 %v1235_v1 }
 0x3ff   : > { %v1055_v13 = vadd.s32 %v1054_v33, %v1052_v10  ;;  %v1096_v21 = vpop.xlane.xlu1 %1095  ;;  %v961_v32 = vpop.xlane.xlu0 %960  ;;  %v1181_v9 = vsub.f32 1.0, %v4323_v56  ;;  %v1113_v44 = vcvt.f32.s32 %v4240_v51  ;;  %v1894_v61 = vadd.f32 %v1893_v8, %v1892_v18 }
 0x400   : > { %vm1136_vm14 = vcmp.eq.s32.totalorder %v4018_v2, %v980_v38  ;;  %1221 = vmax.xlane.f32.xlu1 %v1220_v55  ;;  %v1097_v47 = vcvt.f32.s32 %v1096_v21  ;;  %v962_v33 = vcvt.f32.s32 %v961_v32  ;;  %v4339_v20 = vmul.f32 %v1190_v46, %v3928_v39 }
 0x401   : > { %v4335_v58 = vsel %vm1136_vm14, 1.0, %v5544_v5  ;;  %vm1141_vm15 = vcmp.eq.s32.totalorder %v4018_v2, %v1055_v13  ;;  %v4349_v26 = vmul.f32 %v1181_v9, %v3931_v49 }
 0x402   : > { %v4343_v54 = vsel %vm1141_vm15, 1.0, %v5544_v5  ;;  %v1100_v16 = vadd.s32 %v1099_v0, %v1097_v47  ;;  %v965_v48 = vadd.s32 %v4274_v50, %v962_v33  ;;  %v1244_v42 = vsel %vm632_vm1, %v4339_v20, -inf }
 0x403   : > { %5578 = vst [vmem:[#allocation9_spill] sm:$0xff] %v4343_v54  ;;  %v1006_v35 = vpop.xlane.xlu1 %1005  ;;  %v1081_v36 = vpop.xlane.xlu0 %1080  ;;  %v1184_v51 = vsub.f32 1.0, %v4335_v58  ;;  %v1189_v11 = vsub.f32 1.0, %v4343_v54  ;;  %v1217_v50 = vsel %vm632_vm1, %v4349_v26, -inf  ;;  %v1896_v47 = vadd.f32 %v1895_v6, %v1894_v61 }
 0x404   : > { %vm1144_vm0 = vcmp.eq.s32.totalorder %v4018_v2, %v1100_v16  ;;  %1245 = vmax.xlane.f32.xlu1 %v1244_v42  ;;  %v1007_v7 = vcvt.f32.s32 %v1006_v35  ;;  %vm1135_vm3 = vcmp.eq.s32.totalorder %v4018_v2, %v965_v48  ;;  %v1082_v10 = vcvt.f32.s32 %v1081_v36  ;;  %1218 = vmax.xlane.f32.xlu0 %v1217_v50 }
 0x405   : > { %v4355_v0 = vsel %vm1144_vm0, 1.0, %v5544_v5  ;;  %v4363_v38 = vsel %vm1135_vm3, 1.0, %v5544_v5  ;;  %v4367_v18 = vmul.f32 %v1184_v51, %v3940_v57  ;;  %v4373_v46 = vmul.f32 %v1189_v11, %v3947_v59 }
 0x406   : > { %5579 = vst [vmem:[#allocation10_spill] sm:$0xff] %v4355_v0  ;;  %v1010_v55 = vadd.s32 %v4284_v63, %v1007_v7  ;;  %v1897_v13 = vsel %vm632_vm1, %v4363_v38, 0.0  ;;  %v1085_v21 = vadd.s32 %v4290_v23, %v1082_v10  ;;  %v1192_v8 = vsub.f32 1.0, %v4355_v0 }
 0x407   : > { %v1126_v1 = vpop.xlane.xlu1 %1125  ;;  %v1226_v63 = vsel %vm632_vm1, %v4367_v18, -inf  ;;  %v991_v9 = vpop.xlane.xlu0 %990  ;;  %v1241_v23 = vsel %vm632_vm1, %v4373_v46, -inf  ;;  %v1898_v48 = vadd.f32 %v1897_v13, %v1896_v47  ;;  %v1114_v35 = vshll.u32 %v1113_v44, 16 }
 0x408   : > { %vm1138_vm4 = vcmp.eq.s32.totalorder %v4018_v2, %v1010_v55  ;;  %v1127_v32 = vcvt.f32.s32 %v1126_v1  ;;  %vm1143_vm5 = vcmp.eq.s32.totalorder %v4018_v2, %v1085_v21  ;;  %1227 = vmax.xlane.f32.xlu1 %v1226_v63  ;;  %v992_v16 = vcvt.f32.s32 %v991_v9  ;;  %1242 = vmax.xlane.f32.xlu0 %v1241_v23 }
 0x409   : > { %v4380_v33 = vsel %vm1138_vm4, 1.0, %v5544_v5  ;;  %v4386_v61 = vsel %vm1143_vm5, 1.0, %v5544_v5  ;;  %v4390_v36 = vmul.f32 %v1192_v8, %v3954_v3  ;;  %v1183_v51 = vsub.f32 1.0, %v4363_v38 }
 0x40a   : > { %5580 = vst [vmem:[#allocation11_spill] sm:$0xff] %v4386_v61  ;;  %v1130_v42 = vadd.s32 %v4302_v62, %v1127_v32  ;;  %v995_v7 = vadd.s32 %v994_v14, %v992_v16  ;;  %v1899_v11 = vsel %vm632_vm1, %v4335_v58, 0.0  ;;  %v1186_v10 = vsub.f32 1.0, %v4380_v33 }
 0x40b   : > { %v1111_v50 = vpop.xlane.xlu0 %1110  ;;  %v1191_v6 = vsub.f32 1.0, %v4386_v61  ;;  %v1250_v14 = vsel %vm632_vm1, %v4390_v36, -inf  ;;  %v4405_v44 = vmul.f32 %v1183_v51, %v3957_v60  ;;  %v1900_v55 = vadd.f32 %v1899_v11, %v1898_v48 }
 0x40c   : > { %vm1146_vm6 = vcmp.eq.s32.totalorder %v4018_v2, %v1130_v42  ;;  %vm1137_vm7 = vcmp.eq.s32.totalorder %v4018_v2, %v995_v7  ;;  %1251 = vmax.xlane.f32.xlu1 %v1250_v14  ;;  %v1112_v21 = vcvt.f32.s32 %v1111_v50  ;;  %v4411_v1 = vmul.f32 %v1186_v10, %v3968_v52 }
 0x40d   : > { %v4399_v62 = vsel %vm1146_vm6, 1.0, %v5544_v5  ;;  %v4408_v13 = vsel %vm1137_vm7, 1.0, %v5544_v5  ;;  %v1223_v47 = vsel %vm632_vm1, %v4405_v44, -inf  ;;  %v4418_v63 = vmul.f32 %v1191_v6, %v3971_v17 }
 0x40e   : > { %5581 = vst [vmem:[#allocation12_spill] sm:$0xff] %v4399_v62  ;;  %5582 = vst [vmem:[#allocation13_spill] sm:$0xff] %v4408_v13  ;;  %v1901_v8 = vsel %vm632_vm1, %v4408_v13, 0.0  ;;  %v1194_v32 = vsub.f32 1.0, %v4399_v62  ;;  %1224 = vmax.xlane.f32.xlu0 %v1223_v47  ;;  %v1115_v23 = vadd.s32 %v1114_v35, %v1112_v21  ;;  %v1232_v16 = vsel %vm632_vm1, %v4411_v1, -inf }
 0x40f   : > { %v1902_v9 = vadd.f32 %v1901_v8, %v1900_v55  ;;  %v1185_v48 = vsub.f32 1.0, %v4408_v13  ;;  %v1903_v42 = vsel %vm632_vm1, %v4380_v33, 0.0  ;;  %v1247_v7 = vsel %vm632_vm1, %v4418_v63, -inf }
 0x410   : > { %v4429_v51 = vmul.f32 %v1194_v32, %v3978_v25  ;;  %vm1145_vm8 = vcmp.eq.s32.totalorder %v4018_v2, %v1115_v23  ;;  %1233 = vmax.xlane.f32.xlu1 %v1232_v16  ;;  %v1905_v50 = vsel %vm632_vm1, %v4288_v12, 0.0  ;;  %v1907_v21 = vsel %vm632_vm1, %v4271_v45, 0.0 }
 0x411   : > { %v1904_v11 = vadd.f32 %v1903_v42, %v1902_v9  ;;  %v4433_v35 = vmul.f32 %v1185_v48, %v3983_v4  ;;  %v4438_v10 = vsel %vm1145_vm8, 1.0, %v5544_v5  ;;  %v1909_v9 = vsel %vm632_vm1, %v4343_v54, 0.0 }
 0x412   : > { %5583 = vst [vmem:[#allocation14_spill] sm:$0xff] %v4438_v10  ;;  %v1256_v6 = vsel %vm632_vm1, %v4429_v51, -inf  ;;  %1248 = vmax.xlane.f32.xlu0 %v1247_v7  ;;  %v1193_v55 = vsub.f32 1.0, %v4438_v10  ;;  %v1911_v16 = vsel %vm632_vm1, %v4314_v24, 0.0  ;;  %v1913_v7 = vsel %vm632_vm1, %v4386_v61, 0.0 }
 0x413   : > { %v1906_v14 = vadd.f32 %v1905_v50, %v1904_v11  ;;  %v1229_v8 = vsel %vm632_vm1, %v4433_v35, -inf  ;;  %v1915_v50 = vsel %vm632_vm1, %v4355_v0, 0.0 }
 0x414   : > { %1257 = vmax.xlane.f32.xlu1 %v1256_v6  ;;  %v4448_v32 = vmul.f32 %v1193_v55, %v3992_v34 }
 0x415   : > { %v1908_v47 = vadd.f32 %v1907_v21, %v1906_v14  ;;  %v1917_v14 = vsel %vm632_vm1, %v4438_v10, 0.0  ;;  %v1919_v21 = vsel %vm632_vm1, %v4399_v62, 0.0 }
 0x416   : > { %1230 = vmax.xlane.f32.xlu0 %v1229_v8  ;;  %v1253_v48 = vsel %vm632_vm1, %v4448_v32, -inf }
 0x417   : > { %v1910_v23 = vadd.f32 %v1909_v9, %v1908_v47 }
 0x419   : > { %v1912_v42 = vadd.f32 %v1911_v16, %v1910_v23 }
 0x41a   : > { %1254 = vmax.xlane.f32.xlu0 %v1253_v48 }
 0x41b   : > { %v1914_v11 = vadd.f32 %v1913_v7, %v1912_v42 }
 0x41d   : > { %v1916_v6 = vadd.f32 %v1915_v50, %v1914_v11 }
 0x41f   : > { %v1918_v55 = vadd.f32 %v1917_v14, %v1916_v6 }
 0x421   : > { %v1920_v8 = vadd.f32 %v1919_v21, %v1918_v55 }
 0x423   : > { %v1921_v47 = vrot.slane %v1920_v8, 4 }
 0x425   : > { %v1922_v9 = vadd.f32 %v1921_v47, %v1920_v8 }
 0x427   : > { %v1923_v23 = vrot.slane %v1922_v9, 2 }
 0x429   : > { %v1924_v16 = vadd.f32 %v1923_v23, %v1922_v9 }
 0x42b   : > { %v1925_v5 = vrot.slane %v1924_v16, 1 }
 0x42d   : > { %v1926_v34 = vadd.f32 %v1925_v5, %v1924_v16 }
 0x42f   : > { %1927 = vst.msk [vmem:[%s5543_s8] sm:$0x1] %vm1888_vm2, %v1926_v34 }
 0x483   : > { %v1216_v48 = vpop.xlane.xlu1 %1215 }
 0x484   : > { %vm1260_vm9 = vcmp.eq.f32.partialorder %v4267_v19, %v1216_v48 }
 0x485   : > { %v1276_v42 = vsel %vm1260_vm9, %v4018_v2, 4 }
 0x486   : > { %v4471_v7 = vsel %vm632_vm1, %v1276_v42, 2147483647 }
 0x487   : > { %v1213_v11 = vpop.xlane.xlu0 %1212  ;;  %v1308_v50 = vshra.s32 %v4471_v7, 16 }
 0x488   : > { %vm1259_vm10 = vcmp.eq.f32.partialorder %v4282_v43, %v1213_v11 }
 0x489   : > { %v1240_v6 = vpop.xlane.xlu1 %1239  ;;  %v1275_v5 = vsel %vm1259_vm10, %v4018_v2, 4  ;;  %v4477_v14 = vcvt.s32.f32 %v1308_v50 }
 0x48a   : > { %vm1268_vm11 = vcmp.eq.f32.partialorder %v4296_v27, %v1240_v6  ;;  %v4481_v19 = vsel %vm632_vm1, %v1275_v5, 2147483647 }
 0x48b   : > { %v1284_v34 = vsel %vm1268_vm11, %v4018_v2, 4  ;;  %1311 = vmin.xlane.f32.xlu1 %v4477_v14  ;;  %v1293_v21 = vshra.s32 %v4481_v19, 16  ;;  %v1237_v27 = vpop.xlane.xlu0 %1236 }
 0x48c   : > { %v4484_v55 = vsel %vm632_vm1, %v1284_v34, 2147483647  ;;  %vm1267_vm12 = vcmp.eq.f32.partialorder %v4318_v53, %v1237_v27 }
 0x48d   : > { %v1428_v43 = vshra.s32 %v4484_v55, 16  ;;  %v1222_v8 = vpop.xlane.xlu1 %1221  ;;  %v4491_v47 = vcvt.s32.f32 %v1293_v21  ;;  %v1283_v23 = vsel %vm1267_vm12, %v4018_v2, 4 }
 0x48e   : > { %vm1262_vm2 = vcmp.eq.f32.partialorder %v4311_v40, %v1222_v8  ;;  %v4501_v42 = vsel %vm632_vm1, %v1283_v23, 2147483647 }
 0x48f   : > { %v1278_v9 = vsel %vm1262_vm2, %v4018_v2, 4  ;;  %v4495_v16 = vcvt.s32.f32 %v1428_v43  ;;  %1296 = vmin.xlane.f32.xlu0 %v4491_v47  ;;  %v1413_v53 = vshra.s32 %v4501_v42, 16  ;;  %v1412_v3 = vand.u32 65535, %v4501_v42 }
 0x490   : > { %v4498_v48 = vsel %vm632_vm1, %v1278_v9, 2147483647 }
 0x491   : > { %v1338_v40 = vshra.s32 %v4498_v48, 16  ;;  %1431 = vmin.xlane.f32.xlu1 %v4495_v16  ;;  %v1246_v11 = vpop.xlane.xlu1 %1245  ;;  %v1219_v6 = vpop.xlane.xlu0 %1218  ;;  %v4511_v34 = vcvt.s32.f32 %v1413_v53  ;;  %v1337_v0 = vand.u32 65535, %v4498_v48 }
 0x492   : > { %vm1270_vm13 = vcmp.eq.f32.partialorder %v4339_v20, %v1246_v11  ;;  %vm1261_vm14 = vcmp.eq.f32.partialorder %v4349_v26, %v1219_v6 }
 0x493   : > { %v1286_v50 = vsel %vm1270_vm13, %v4018_v2, 4  ;;  %v4509_v5 = vcvt.s32.f32 %v1338_v40  ;;  %v1277_v8 = vsel %vm1261_vm14, %v4018_v2, 4  ;;  %1416 = vmin.xlane.f32.xlu0 %v4511_v34  ;;  %v1339_v42 = vcvt.s32.f32 %v1337_v0 }
 0x494   : > { %v4514_v21 = vsel %vm632_vm1, %v1286_v50, 2147483647  ;;  %v4522_v20 = vsel %vm632_vm1, %v1277_v8, 2147483647 }
 0x495   : > { %v1458_v43 = vshra.s32 %v4514_v21, 16  ;;  %1341 = vmin.xlane.f32.xlu1 %v4509_v5  ;;  %v1228_v27 = vpop.xlane.xlu1 %1227  ;;  %v1323_v9 = vshra.s32 %v4522_v20, 16  ;;  %v1243_v23 = vpop.xlane.xlu0 %1242 }
 0x496   : > { %vm1264_vm15 = vcmp.eq.f32.partialorder %v4367_v18, %v1228_v27  ;;  %vm1269_vm0 = vcmp.eq.f32.partialorder %v4373_v46, %v1243_v23 }
 0x497   : > { %v4526_v40 = vcvt.s32.f32 %v1458_v43  ;;  %v1280_v26 = vsel %vm1264_vm15, %v4018_v2, 4  ;;  %v1285_v11 = vsel %vm1269_vm0, %v4018_v2, 4  ;;  %v4535_v50 = vcvt.s32.f32 %v1323_v9 }
 0x498   : > { %v4531_v53 = vsel %vm632_vm1, %v1280_v26, 2147483647  ;;  %v4539_v18 = vsel %vm632_vm1, %v1285_v11, 2147483647 }
 0x499   : > { %1461 = vmin.xlane.f32.xlu1 %v4526_v40  ;;  %v1368_v6 = vshra.s32 %v4531_v53, 16  ;;  %v1443_v43 = vshra.s32 %v4539_v18, 16  ;;  %v1252_v8 = vpop.xlane.xlu1 %1251  ;;  %1326 = vmin.xlane.f32.xlu0 %v4535_v50 }
 0x49a   : > { %vm1272_vm3 = vcmp.eq.f32.partialorder %v4390_v36, %v1252_v8 }
 0x49b   : > { %v4544_v46 = vcvt.s32.f32 %v1368_v6  ;;  %v1288_v27 = vsel %vm1272_vm3, %v4018_v2, 4  ;;  %v1225_v23 = vpop.xlane.xlu0 %1224  ;;  %v4547_v26 = vcvt.s32.f32 %v1443_v43 }
 0x49c   : > { %v4550_v9 = vsel %vm632_vm1, %v1288_v27, 2147483647  ;;  %vm1263_vm4 = vcmp.eq.f32.partialorder %v4405_v44, %v1225_v23 }
 0x49d   : > { %1371 = vmin.xlane.f32.xlu1 %v4544_v46  ;;  %v1488_v11 = vshra.s32 %v4550_v9, 16  ;;  %v1279_v10 = vsel %vm1263_vm4, %v4018_v2, 4  ;;  %v1234_v61 = vpop.xlane.xlu1 %1233  ;;  %1446 = vmin.xlane.f32.xlu0 %v4547_v26 }
 0x49e   : > { %v4558_v36 = vsel %vm632_vm1, %v1279_v10, 2147483647  ;;  %vm1266_vm5 = vcmp.eq.f32.partialorder %v4411_v1, %v1234_v61 }
 0x49f   : > { %v1353_v6 = vshra.s32 %v4558_v36, 16  ;;  %v1282_v43 = vsel %vm1266_vm5, %v4018_v2, 4  ;;  %v1249_v8 = vpop.xlane.xlu0 %1248  ;;  %v4563_v44 = vcvt.s32.f32 %v1488_v11 }
 0x4a0   : > { %v4566_v27 = vsel %vm632_vm1, %v1282_v43, 2147483647  ;;  %vm1271_vm6 = vcmp.eq.f32.partialorder %v4418_v63, %v1249_v8 }
 0x4a1   : > { %v1398_v23 = vshra.s32 %v4566_v27, 16  ;;  %v1287_v17 = vsel %vm1271_vm6, %v4018_v2, 4  ;;  %1491 = vmin.xlane.f32.xlu1 %v4563_v44  ;;  %v1258_v10 = vpop.xlane.xlu1 %1257  ;;  %v4572_v61 = vcvt.s32.f32 %v1353_v6 }
 0x4a2   : > { %v4575_v1 = vsel %vm632_vm1, %v1287_v17, 2147483647  ;;  %vm1274_vm7 = vcmp.eq.f32.partialorder %v4429_v51, %v1258_v10 }
 0x4a3   : > { %v1473_v11 = vshra.s32 %v4575_v1, 16  ;;  %v1290_v43 = vsel %vm1274_vm7, %v4018_v2, 4  ;;  %1356 = vmin.xlane.f32.xlu0 %v4572_v61  ;;  %v1231_v63 = vpop.xlane.xlu0 %1230  ;;  %v4581_v8 = vcvt.s32.f32 %v1398_v23 }
 0x4a4   : > { %v4584_v62 = vsel %vm632_vm1, %v1290_v43, 2147483647  ;;  %vm1265_vm8 = vcmp.eq.f32.partialorder %v4433_v35, %v1231_v63 }
 0x4a5   : > { %v1518_v6 = vshra.s32 %v4584_v62, 16  ;;  %v1281_v17 = vsel %vm1265_vm8, %v4018_v2, 4  ;;  %1401 = vmin.xlane.f32.xlu1 %v4581_v8  ;;  %v4590_v51 = vcvt.s32.f32 %v1473_v11 }
 0x4a6   : > { %v4593_v10 = vsel %vm632_vm1, %v1281_v17, 2147483647 }
 0x4a7   : > { %v1383_v25 = vshra.s32 %v4593_v10, 16  ;;  %1476 = vmin.xlane.f32.xlu0 %v4590_v51  ;;  %v1255_v23 = vpop.xlane.xlu0 %1254  ;;  %v4597_v43 = vcvt.s32.f32 %v1518_v6  ;;  %v1307_v6 = vand.u32 65535, %v4471_v7 }
 0x4a8   : > { %vm1273_vm9 = vcmp.eq.f32.partialorder %v4448_v32, %v1255_v23  ;;  %v1292_v32 = vand.u32 65535, %v4481_v19 }
 0x4a9   : > { %v1289_v35 = vsel %vm1273_vm9, %v4018_v2, 4  ;;  %1521 = vmin.xlane.f32.xlu1 %v4597_v43  ;;  %v4602_v63 = vcvt.s32.f32 %v1383_v25  ;;  %v1309_v2 = vcvt.s32.f32 %v1307_v6  ;;  %v1427_v25 = vand.u32 65535, %v4484_v55 }
 0x4aa   : > { %v4605_v11 = vsel %vm632_vm1, %v1289_v35, 2147483647 }
 0x4ab   : > { %v1503_v17 = vshra.s32 %v4605_v11, 16  ;;  %1386 = vmin.xlane.f32.xlu0 %v4602_v63  ;;  %v1429_v19 = vcvt.s32.f32 %v1427_v25 }
 0x4ad   : > { %v4609_v54 = vcvt.s32.f32 %v1503_v17  ;;  %v1294_v17 = vcvt.s32.f32 %v1292_v32  ;;  %v1414_v32 = vcvt.s32.f32 %v1412_v3  ;;  %v1442_v3 = vand.u32 65535, %v4539_v18 }
 0x4af   : > { %1506 = vmin.xlane.f32.xlu0 %v4609_v54  ;;  %v1444_v18 = vcvt.s32.f32 %v1442_v3 }
 0x518   : > { %v4614_v23 = vpop.xlane.xlu1 %1311 }
 0x519   : > { %vm1313_vm10 = vcmp.eq.f32.partialorder %v4477_v14, %v4614_v23 }
 0x51a   : > { %v1314_v35 = vsel %vm1313_vm10, %v1309_v2, inf  ;;  %v1457_v2 = vand.u32 65535, %v4514_v21 }
 0x51b   : > { %1315 = vmin.xlane.f32.xlu1 %v1314_v35 }
 0x51c   : > { %v4619_v59 = vpop.xlane.xlu0 %1296  ;;  %v1459_v21 = vcvt.s32.f32 %v1457_v2 }
 0x51d   : > { %vm1298_vm11 = vcmp.eq.f32.partialorder %v4491_v47, %v4619_v59  ;;  %v1322_v47 = vand.u32 65535, %v4522_v20 }
 0x51e   : > { %v4623_v7 = vpop.xlane.xlu1 %1431  ;;  %v1299_v55 = vsel %vm1298_vm11, %v1294_v17, inf  ;;  %v1367_v17 = vand.u32 65535, %v4531_v53  ;;  %v1487_v53 = vand.u32 65535, %v4550_v9 }
 0x51f   : > { %vm1433_vm2 = vcmp.eq.f32.partialorder %v4495_v16, %v4623_v7  ;;  %1300 = vmin.xlane.f32.xlu0 %v1299_v55 }
 0x520   : > { %v1434_v14 = vsel %vm1433_vm2, %v1429_v19, inf  ;;  %v4632_v48 = vpop.xlane.xlu0 %1416  ;;  %v1369_v55 = vcvt.s32.f32 %v1367_v17  ;;  %v1489_v9 = vcvt.s32.f32 %v1487_v53 }
 0x521   : > { %1435 = vmin.xlane.f32.xlu1 %v1434_v14  ;;  %vm1418_vm13 = vcmp.eq.f32.partialorder %v4511_v34, %v4632_v48  ;;  %v1324_v34 = vcvt.s32.f32 %v1322_v47 }
 0x522   : > { %v4630_v6 = vpop.xlane.xlu1 %1341  ;;  %v1419_v25 = vsel %vm1418_vm13, %v1414_v32, inf }
 0x523   : > { %vm1343_vm12 = vcmp.eq.f32.partialorder %v4509_v5, %v4630_v6  ;;  %1420 = vmin.xlane.f32.xlu0 %v1419_v25 }
 0x524   : > { %v1344_v16 = vsel %vm1343_vm12, %v1339_v42, inf  ;;  %v1397_v42 = vand.u32 65535, %v4566_v27 }
 0x525   : > { %1345 = vmin.xlane.f32.xlu1 %v1344_v16 }
 0x526   : > { %v4639_v35 = vpop.xlane.xlu1 %1461  ;;  %v4645_v0 = vpop.xlane.xlu0 %1326 }
 0x527   : > { %vm1463_vm14 = vcmp.eq.f32.partialorder %v4526_v40, %v4639_v35  ;;  %vm1328_vm15 = vcmp.eq.f32.partialorder %v4535_v50, %v4645_v0  ;;  %v1352_v50 = vand.u32 65535, %v4558_v36  ;;  %v1517_v36 = vand.u32 65535, %v4584_v62 }
 0x528   : > { %v1464_v5 = vsel %vm1463_vm14, %v1459_v21, inf  ;;  %v1329_v20 = vsel %vm1328_vm15, %v1324_v34, inf  ;;  %v1399_v21 = vcvt.s32.f32 %v1397_v42 }
 0x529   : > { %1465 = vmin.xlane.f32.xlu1 %v1464_v5  ;;  %1330 = vmin.xlane.f32.xlu0 %v1329_v20  ;;  %v1519_v5 = vcvt.s32.f32 %v1517_v36 }
 0x52a   : > { %v4649_v19 = vpop.xlane.xlu1 %1371  ;;  %v4654_v40 = vpop.xlane.xlu0 %1446 }
 0x52b   : > { %vm1373_vm0 = vcmp.eq.f32.partialorder %v4544_v46, %v4649_v19  ;;  %vm1448_vm3 = vcmp.eq.f32.partialorder %v4547_v26, %v4654_v40  ;;  %v1472_v46 = vand.u32 65535, %v4575_v1  ;;  %v1354_v26 = vcvt.s32.f32 %v1352_v50 }
 0x52c   : > { %v1374_v14 = vsel %vm1373_vm0, %v1369_v55, inf  ;;  %v1449_v2 = vsel %vm1448_vm3, %v1444_v18, inf  ;;  %v1580_v55 = vmul.f32 %v4255_v37, %v3903_v22  ;;  %v1579_v50 = vmul.f32 %v4264_v41, %v3908_v30 }
 0x52d   : > { %1375 = vmin.xlane.f32.xlu1 %v1374_v14  ;;  %1450 = vmin.xlane.f32.xlu0 %v1449_v2  ;;  %v1474_v3 = vcvt.s32.f32 %v1472_v46  ;;  %v1584_v2 = vmul.f32 %v4335_v58, %v3940_v57  ;;  %v1586_v46 = vmul.f32 %v4380_v33, %v3968_v52 }
 0x52e   : > { %v4660_v32 = vpop.xlane.xlu1 %1491  ;;  %v1598_v18 = vsel %vm632_vm1, %v1580_v55, 0.0  ;;  %v1595_v42 = vsel %vm632_vm1, %v1579_v50, 0.0  ;;  %v5588_v50 = vld [vmem:[#allocation6_spill] sm:$0xff] }
 0x52f   : > { %vm1493_vm4 = vcmp.eq.f32.partialorder %v4563_v44, %v4660_v32  ;;  %v1382_v44 = vand.u32 65535, %v4593_v10  ;;  %v1616_v36 = vsel %vm632_vm1, %v1586_v46, 0.0 }
 0x530   : > { %v4665_v47 = vpop.xlane.xlu0 %1356  ;;  %v1494_v16 = vsel %vm1493_vm4, %v1489_v9, inf  ;;  %v1581_v9 = vmul.f32 %v4323_v56, %v3931_v49 }
 0x531   : > { %vm1358_vm5 = vcmp.eq.f32.partialorder %v4572_v61, %v4665_v47  ;;  %1495 = vmin.xlane.f32.xlu1 %v1494_v16  ;;  %v1384_v20 = vcvt.s32.f32 %v1382_v44  ;;  %v1585_v44 = vmul.f32 %v4408_v13, %v3983_v4 }
 0x532   : > { %v1359_v25 = vsel %vm1358_vm5, %v1354_v26, inf  ;;  %v4670_v27 = vpop.xlane.xlu1 %1401  ;;  %v1601_v16 = vsel %vm632_vm1, %v1581_v9, 0.0  ;;  %v1583_v26 = vmul.f32 %v4363_v38, %v3957_v60  ;;  %v5590_v9 = vld [vmem:[#allocation5_spill] sm:$0xff] }
 0x533   : > { %1360 = vmin.xlane.f32.xlu0 %v1359_v25  ;;  %vm1403_vm6 = vcmp.eq.f32.partialorder %v4581_v8, %v4670_v27  ;;  %v1502_v8 = vand.u32 65535, %v4605_v11  ;;  %v1582_v11 = vmul.f32 %v4293_v15, %v3921_v28  ;;  %v1588_v25 = vmul.f32 %v4271_v45, %v3911_v31 }
 0x534   : > { %v4675_v1 = vpop.xlane.xlu0 %1476  ;;  %v1404_v17 = vsel %vm1403_vm6, %v1399_v21, inf  ;;  %v1607_v21 = vsel %vm632_vm1, %v1583_v26, 0.0 }
 0x535   : > { %vm1478_vm7 = vcmp.eq.f32.partialorder %v4590_v51, %v4675_v1  ;;  %1405 = vmin.xlane.f32.xlu1 %v1404_v17  ;;  %v1622_v17 = vsel %vm632_vm1, %v1588_v25, 0.0  ;;  %v5593_v25 = vld [vmem:[#allocation14_spill] sm:$0xff] }
 0x536   : > { %v1479_v61 = vsel %vm1478_vm7, %v1474_v3, inf  ;;  %v4679_v62 = vpop.xlane.xlu1 %1521  ;;  %v1590_v3 = vmul.f32 %v4314_v24, %v3928_v39 }
 0x537   : > { %1480 = vmin.xlane.f32.xlu0 %v1479_v61  ;;  %vm1523_vm8 = vcmp.eq.f32.partialorder %v4597_v43, %v4679_v62  ;;  %v1504_v43 = vcvt.s32.f32 %v1502_v8  ;;  %v1613_v61 = vsel %vm632_vm1, %v1585_v44, 0.0 }
 0x538   : > { %v4684_v34 = vpop.xlane.xlu0 %1386  ;;  %v1524_v10 = vsel %vm1523_vm8, %v1519_v5, inf  ;;  %v1587_v5 = vmul.f32 %v4288_v12, %v3918_v29  ;;  %v1628_v8 = vsel %vm632_vm1, %v1590_v3, 0.0 }
 0x539   : > { %vm1388_vm9 = vcmp.eq.f32.partialorder %v4602_v63, %v4684_v34  ;;  %1525 = vmin.xlane.f32.xlu1 %v1524_v10  ;;  %v1604_v63 = vsel %vm632_vm1, %v1582_v11, 0.0  ;;  %v5584_v10 = vld [vmem:[#allocation4_spill] sm:$0xff] }
 0x53a   : > { %v1389_v51 = vsel %vm1388_vm9, %v1384_v20, inf  ;;  %v5585_v20 = vld [vmem:[#allocation10_spill] sm:$0xff] }
 0x53b   : > { %1390 = vmin.xlane.f32.xlu0 %v1389_v51  ;;  %v1592_v55 = vmul.f32 %v5585_v20, %v5584_v10  ;;  %v1619_v51 = vsel %vm632_vm1, %v1587_v5, 0.0  ;;  %v1303_v5 = vcvt.f32.s32 %v4619_v59 }
 0x53c   : > { %v4690_v53 = vpop.xlane.xlu0 %1506 }
 0x53d   : > { %vm1508_vm10 = vcmp.eq.f32.partialorder %v4609_v54, %v4690_v53  ;;  %1599 = vadd.xlane.f32.xlu1 %v1598_v18  ;;  %v1610_v54 = vsel %vm632_vm1, %v1584_v2, 0.0  ;;  %v5586_v18 = vld [vmem:[#allocation3_spill] sm:$0xff] }
 0x53e   : > { %v1509_v14 = vsel %vm1508_vm10, %v1504_v43, inf  ;;  %v5587_v43 = vld [vmem:[#allocation9_spill] sm:$0xff] }
 0x53f   : > { %1510 = vmin.xlane.f32.xlu0 %v1509_v14  ;;  %v1589_v11 = vmul.f32 %v5587_v43, %v5586_v18  ;;  %v1634_v14 = vsel %vm632_vm1, %v1592_v55, 0.0  ;;  %v1438_v55 = vcvt.f32.s32 %v4623_v7 }
 0x541   : > { %1605 = vadd.xlane.f32.xlu1 %v1604_v63  ;;  %v5589_v63 = vld [vmem:[#allocation12_spill] sm:$0xff] }
 0x542   : > { %v1594_v2 = vmul.f32 %v5589_v63, %v5588_v50 }
 0x543   : > { %1596 = vadd.xlane.f32.xlu0 %v1595_v42  ;;  %v1625_v42 = vsel %vm632_vm1, %v1589_v11, 0.0  ;;  %v1348_v11 = vcvt.f32.s32 %v4630_v6 }
 0x545   : > { %1611 = vadd.xlane.f32.xlu1 %v1610_v54  ;;  %v5591_v54 = vld [vmem:[#allocation11_spill] sm:$0xff] }
 0x546   : > { %v1591_v46 = vmul.f32 %v5591_v54, %v5590_v9 }
 0x547   : > { %1602 = vadd.xlane.f32.xlu0 %v1601_v16  ;;  %v1640_v16 = vsel %vm632_vm1, %v1594_v2, 0.0 }
 0x548   : > { %v1631_v26 = vsel %vm632_vm1, %v1591_v46, 0.0  ;;  %v5594_v46 = vld [vmem:[#allocation8_spill] sm:$0xff] }
 0x549   : > { %1617 = vadd.xlane.f32.xlu1 %v1616_v36  ;;  %v5592_v36 = vld [vmem:[#allocation7_spill] sm:$0xff] }
 0x54b   : > { %1608 = vadd.xlane.f32.xlu0 %v1607_v21  ;;  %v1593_v21 = vmul.f32 %v5593_v25, %v5592_v36 }
 0x54d   : > { %1623 = vadd.xlane.f32.xlu1 %v1622_v17  ;;  %v1637_v44 = vsel %vm632_vm1, %v1593_v21, 0.0  ;;  %v1318_v17 = vcvt.f32.s32 %v4614_v23  ;;  %v1439_v21 = vshll.u32 %v1438_v55, 16 }
 0x54f   : > { %1614 = vadd.xlane.f32.xlu0 %v1613_v61  ;;  %v1319_v61 = vshll.u32 %v1318_v17, 16 }
 0x551   : > { %1629 = vadd.xlane.f32.xlu1 %v1628_v8 }
 0x553   : > { %1620 = vadd.xlane.f32.xlu0 %v1619_v51 }
 0x555   : > { %1635 = vadd.xlane.f32.xlu1 %v1634_v14  ;;  %v1423_v14 = vcvt.f32.s32 %v4632_v48  ;;  %v1468_v48 = vcvt.f32.s32 %v4639_v35 }
 0x557   : > { %1626 = vadd.xlane.f32.xlu0 %v1625_v42  ;;  %v1304_v42 = vshll.u32 %v1303_v5, 16  ;;  %v1333_v5 = vcvt.f32.s32 %v4645_v0 }
 0x559   : > { %1641 = vadd.xlane.f32.xlu1 %v1640_v16 }
 0x55b   : > { %1632 = vadd.xlane.f32.xlu0 %v1631_v26 }
 0x55f   : > { %1638 = vadd.xlane.f32.xlu0 %v1637_v44  ;;  %v5595_v44 = vmov 0.0  }
 0x5a8   : > { %v1316_v3 = vpop.xlane.xlu1 %1315 }
 0x5a9   : > { %v1317_v8 = vcvt.f32.s32 %v1316_v3  ;;  %v1349_v3 = vshll.u32 %v1348_v11, 16 }
 0x5ab   : > { %v1320_v51 = vadd.s32 %v1319_v61, %v1317_v8  ;;  %v1424_v61 = vshll.u32 %v1423_v14, 16 }
 0x5ac   : > { %v1301_v2 = vpop.xlane.xlu0 %1300 }
 0x5ad   : > { %vm1532_vm11 = vcmp.eq.s32.totalorder %v5594_v46, %v1320_v51  ;;  %v1302_v26 = vcvt.f32.s32 %v1301_v2 }
 0x5ae   : > { %v1436_v16 = vpop.xlane.xlu1 %1435  ;;  %v4747_v17 = vsel %vm1532_vm11, 1.0, %v5595_v44 }
 0x5af   : > { %v1437_v23 = vcvt.f32.s32 %v1436_v16  ;;  %v1305_v59 = vadd.s32 %v1304_v42, %v1302_v26  ;;  %v1644_v7 = vmul.f32 %v4747_v17, %v3903_v22  ;;  %v1469_v26 = vshll.u32 %v1468_v48, 16 }
 0x5b0   : > { %v1421_v51 = vpop.xlane.xlu0 %1420 }
 0x5b1   : > { %v1440_v6 = vadd.s32 %v1439_v21, %v1437_v23  ;;  %vm1531_vm2 = vcmp.eq.s32.totalorder %v5594_v46, %v1305_v59  ;;  %v1662_v55 = vsel %vm632_vm1, %v1644_v7, 0.0  ;;  %v1422_v42 = vcvt.f32.s32 %v1421_v51 }
 0x5b2   : > { %v1346_v8 = vpop.xlane.xlu1 %1345  ;;  %1663 = vadd.xlane.f32.xlu1 %v1662_v55  ;;  %v4757_v22 = vsel %vm1531_vm2, 1.0, %v5595_v44  ;;  %v1334_v21 = vshll.u32 %v1333_v5, 16 }
 0x5b3   : > { %vm1540_vm12 = vcmp.eq.s32.totalorder %v5594_v46, %v1440_v6  ;;  %v1347_v2 = vcvt.f32.s32 %v1346_v8  ;;  %v1643_v35 = vmul.f32 %v4757_v22, %v3908_v30  ;;  %v1425_v14 = vadd.s32 %v1424_v61, %v1422_v42 }
 0x5b4   : > { %v4760_v11 = vsel %vm1540_vm12, 1.0, %v5595_v44  ;;  %v1378_v30 = vcvt.f32.s32 %v4649_v19 }
 0x5b5   : > { %v1350_v0 = vadd.s32 %v1349_v3, %v1347_v2  ;;  %v1652_v16 = vmul.f32 %v4760_v11, %v3911_v31  ;;  %v1659_v59 = vsel %vm632_vm1, %v1643_v35, 0.0  ;;  %vm1539_vm14 = vcmp.eq.s32.totalorder %v5594_v46, %v1425_v14 }
 0x5b6   : > { %v1466_v23 = vpop.xlane.xlu1 %1465  ;;  %1660 = vadd.xlane.f32.xlu0 %v1659_v59  ;;  %v1453_v3 = vcvt.f32.s32 %v4654_v40  ;;  %v1331_v61 = vpop.xlane.xlu0 %1330  ;;  %v4776_v48 = vsel %vm1539_vm14, 1.0, %v5595_v44  ;;  %v1379_v35 = vshll.u32 %v1378_v30, 16 }
 0x5b7   : > { %vm1534_vm13 = vcmp.eq.s32.totalorder %v5594_v46, %v1350_v0  ;;  %v1467_v7 = vcvt.f32.s32 %v1466_v23  ;;  %v1686_v6 = vsel %vm632_vm1, %v1652_v16, 0.0  ;;  %v1332_v8 = vcvt.f32.s32 %v1331_v61 }
 0x5b8   : > { %1687 = vadd.xlane.f32.xlu1 %v1686_v6  ;;  %v4773_v31 = vsel %vm1534_vm13, 1.0, %v5595_v44  ;;  %v1651_v55 = vmul.f32 %v4776_v48, %v3918_v29  ;;  %v1498_v0 = vcvt.f32.s32 %v4660_v32  ;;  %v1363_v32 = vcvt.f32.s32 %v4665_v47 }
 0x5b9   : > { %v1470_v5 = vadd.s32 %v1469_v26, %v1467_v7  ;;  %v1646_v51 = vmul.f32 %v4773_v31, %v3921_v28  ;;  %v1335_v19 = vadd.s32 %v1334_v21, %v1332_v8  ;;  %v1454_v26 = vshll.u32 %v1453_v3, 16 }
 0x5ba   : > { %v1376_v40 = vpop.xlane.xlu1 %1375  ;;  %v1683_v42 = vsel %vm632_vm1, %v1651_v55, 0.0  ;;  %v1451_v16 = vpop.xlane.xlu0 %1450  ;;  %v1499_v61 = vshll.u32 %v1498_v0, 16  ;;  %v1408_v3 = vcvt.f32.s32 %v4670_v27  ;;  %v1528_v0 = vcvt.f32.s32 %v4679_v62 }
 0x5bb   : > { %vm1542_vm15 = vcmp.eq.s32.totalorder %v5594_v46, %v1470_v5  ;;  %v1668_v2 = vsel %vm632_vm1, %v1646_v51, 0.0  ;;  %v1377_v14 = vcvt.f32.s32 %v1376_v40  ;;  %1684 = vadd.xlane.f32.xlu0 %v1683_v42  ;;  %vm1533_vm0 = vcmp.eq.s32.totalorder %v5594_v46, %v1335_v19 }
 0x5bc   : > { %1669 = vadd.xlane.f32.xlu1 %v1668_v2  ;;  %v4787_v28 = vsel %vm1542_vm15, 1.0, %v5595_v44  ;;  %v1452_v29 = vcvt.f32.s32 %v1451_v16  ;;  %v4793_v59 = vsel %vm1533_vm0, 1.0, %v5595_v44  ;;  %v1483_v51 = vcvt.f32.s32 %v4675_v1 }
 0x5bd   : > { %v1654_v21 = vmul.f32 %v4787_v28, %v3928_v39  ;;  %v1380_v23 = vadd.s32 %v1379_v35, %v1377_v14  ;;  %v1645_v30 = vmul.f32 %v4793_v59, %v3931_v49  ;;  %v1364_v19 = vshll.u32 %v1363_v32, 16 }
 0x5be   : > { %v1455_v7 = vadd.s32 %v1454_v26, %v1452_v29  ;;  %v1496_v5 = vpop.xlane.xlu1 %1495  ;;  %v1409_v35 = vshll.u32 %v1408_v3, 16  ;;  %v1484_v29 = vshll.u32 %v1483_v51, 16 }
 0x5bf   : > { %v1692_v6 = vsel %vm632_vm1, %v1654_v21, 0.0  ;;  %vm1536_vm3 = vcmp.eq.s32.totalorder %v5594_v46, %v1380_v23  ;;  %v1497_v39 = vcvt.f32.s32 %v1496_v5  ;;  %v1665_v8 = vsel %vm632_vm1, %v1645_v30, 0.0 }
 0x5c0   : > { %1693 = vadd.xlane.f32.xlu1 %v1692_v6  ;;  %vm1541_vm4 = vcmp.eq.s32.totalorder %v5594_v46, %v1455_v7  ;;  %v4804_v47 = vsel %vm1536_vm3, 1.0, %v5595_v44  ;;  %v1361_v55 = vpop.xlane.xlu0 %1360  ;;  %1666 = vadd.xlane.f32.xlu0 %v1665_v8  ;;  %v1393_v21 = vcvt.f32.s32 %v4684_v34  ;;  %v1529_v6 = vshll.u32 %v1528_v0, 16 }
 0x5c1   : > { %v1648_v49 = vmul.f32 %v4804_v47, %v3940_v57  ;;  %v4810_v27 = vsel %vm1541_vm4, 1.0, %v5595_v44  ;;  %v1500_v40 = vadd.s32 %v1499_v61, %v1497_v39  ;;  %v1362_v2 = vcvt.f32.s32 %v1361_v55 }
 0x5c2   : > { %v1653_v42 = vmul.f32 %v4810_v27, %v5586_v18  ;;  %v1406_v14 = vpop.xlane.xlu1 %1405  ;;  %v1394_v39 = vshll.u32 %v1393_v21, 16  ;;  %v1513_v8 = vcvt.f32.s32 %v4690_v53 }
 0x5c3   : > { %v1674_v1 = vsel %vm632_vm1, %v1648_v49, 0.0  ;;  %vm1544_vm5 = vcmp.eq.s32.totalorder %v5594_v46, %v1500_v40  ;;  %v1365_v16 = vadd.s32 %v1364_v19, %v1362_v2  ;;  %v1407_v26 = vcvt.f32.s32 %v1406_v14 }
 0x5c4   : > { %1675 = vadd.xlane.f32.xlu1 %v1674_v1  ;;  %v1689_v57 = vsel %vm632_vm1, %v1653_v42, 0.0  ;;  %v1481_v23 = vpop.xlane.xlu0 %1480  ;;  %v4820_v18 = vsel %vm1544_vm5, 1.0, %v5595_v44  ;;  %v1514_v0 = vshll.u32 %v1513_v8, 16 }
 0x5c5   : > { %1690 = vadd.xlane.f32.xlu0 %v1689_v57  ;;  %vm1535_vm6 = vcmp.eq.s32.totalorder %v5594_v46, %v1365_v16  ;;  %v1410_v62 = vadd.s32 %v1409_v35, %v1407_v26  ;;  %v1482_v32 = vcvt.f32.s32 %v1481_v23  ;;  %v1656_v7 = vmul.f32 %v4820_v18, %v5584_v10 }
 0x5c6   : > { %v1526_v30 = vpop.xlane.xlu1 %1525  ;;  %v4826_v61 = vsel %vm1535_vm6, 1.0, %v5595_v44 }
 0x5c7   : > { %vm1538_vm7 = vcmp.eq.s32.totalorder %v5594_v46, %v1410_v62  ;;  %v1485_v34 = vadd.s32 %v1484_v29, %v1482_v32  ;;  %v1527_v3 = vcvt.f32.s32 %v1526_v30  ;;  %v1698_v5 = vsel %vm632_vm1, %v1656_v7, 0.0 }
 0x5c8   : > { %v1391_v51 = vpop.xlane.xlu0 %1390  ;;  %1699 = vadd.xlane.f32.xlu1 %v1698_v5  ;;  %v1647_v55 = vmul.f32 %v4826_v61, %v3957_v60  ;;  %v4834_v10 = vsel %vm1538_vm7, 1.0, %v5595_v44 }
 0x5c9   : > { %vm1543_vm8 = vcmp.eq.s32.totalorder %v5594_v46, %v1485_v34  ;;  %v1530_v49 = vadd.s32 %v1529_v6, %v1527_v3  ;;  %v1392_v19 = vcvt.f32.s32 %v1391_v51  ;;  %v1650_v40 = vmul.f32 %v4834_v10, %v3968_v52 }
 0x5ca   : > { %v1671_v2 = vsel %vm632_vm1, %v1647_v55, 0.0  ;;  %v4841_v42 = vsel %vm1543_vm8, 1.0, %v5595_v44  ;;  %v1600_v7 = vpop.xlane.xlu1 %1599 }
 0x5cb   : > { %vm1546_vm9 = vcmp.eq.s32.totalorder %v5594_v46, %v1530_v49  ;;  %v1395_v53 = vadd.s32 %v1394_v39, %v1392_v19  ;;  %1672 = vadd.xlane.f32.xlu0 %v1671_v2  ;;  %v1680_v60 = vsel %vm632_vm1, %v1650_v40, 0.0  ;;  %v1655_v35 = vmul.f32 %v4841_v42, %v5590_v9 }
 0x5cc   : > { %v1511_v14 = vpop.xlane.xlu0 %1510  ;;  %1681 = vadd.xlane.f32.xlu1 %v1680_v60  ;;  %v4848_v1 = vsel %vm1546_vm9, 1.0, %v5595_v44 }
 0x5cd   : > { %5596 = vst [vmem:[#allocation4_spill] sm:$0xff] %v4848_v1  ;;  %vm1537_vm10 = vcmp.eq.s32.totalorder %v5594_v46, %v1395_v53  ;;  %v1512_v52 = vcvt.f32.s32 %v1511_v14  ;;  %v1695_v16 = vsel %vm632_vm1, %v1655_v35, 0.0  ;;  %v1658_v26 = vmul.f32 %v4848_v1, %v5588_v50 }
 0x5ce   : > { %v4855_v57 = vsel %vm1537_vm10, 1.0, %v5595_v44  ;;  %v4868_v30 = vpop.xlane.xlu1 %1605 }
 0x5cf   : > { %5597 = vst [vmem:[#allocation10_spill] sm:$0xff] %v4855_v57  ;;  %v1515_v29 = vadd.s32 %v1514_v0, %v1512_v52  ;;  %1696 = vadd.xlane.f32.xlu0 %v1695_v16  ;;  %v1704_v9 = vsel %vm632_vm1, %v1658_v26, 0.0  ;;  %v1649_v21 = vmul.f32 %v4855_v57, %v3983_v4 }
 0x5d0   : > { %1705 = vadd.xlane.f32.xlu1 %v1704_v9  ;;  %v1597_v6 = vpop.xlane.xlu0 %1596 }
 0x5d1   : > { %vm1545_vm11 = vcmp.eq.s32.totalorder %v5594_v46, %v1515_v29  ;;  %v1677_v23 = vsel %vm632_vm1, %v1649_v21, 0.0 }
 0x5d2   : > { %v4863_v62 = vsel %vm1545_vm11, 1.0, %v5595_v44  ;;  %v4872_v34 = vpop.xlane.xlu1 %1611 }
 0x5d3   : > { %5598 = vst [vmem:[#allocation3_spill] sm:$0xff] %v4863_v62  ;;  %1678 = vadd.xlane.f32.xlu0 %v1677_v23  ;;  %v1657_v50 = vmul.f32 %v4863_v62, %v5592_v36 }
 0x5d4   : > { %v4870_v4 = vpop.xlane.xlu0 %1602 }
 0x5d5   : > { %v1701_v32 = vsel %vm632_vm1, %v1657_v50, 0.0 }
 0x5d6   : > { %v4876_v3 = vpop.xlane.xlu1 %1617 }
 0x5d7   : > { %1702 = vadd.xlane.f32.xlu0 %v1701_v32 }
 0x5d8   : > { %v4874_v46 = vpop.xlane.xlu0 %1608 }
 0x5da   : > { %v1624_v5 = vpop.xlane.xlu1 %1623 }
 0x5dc   : > { %v4878_v44 = vpop.xlane.xlu0 %1614 }
 0x5de   : > { %v4882_v36 = vpop.xlane.xlu1 %1629 }
 0x5e0   : > { %v4880_v39 = vpop.xlane.xlu0 %1620 }
 0x5e2   : > { %v4886_v51 = vpop.xlane.xlu1 %1635 }
 0x5e4   : > { %v4884_v8 = vpop.xlane.xlu0 %1626 }
 0x5e6   : > { %v4890_v49 = vpop.xlane.xlu1 %1641 }
 0x5e8   : > { %v4888_v55 = vpop.xlane.xlu0 %1632 }
 0x5ec   : > { %v4892_v19 = vpop.xlane.xlu0 %1638 }
 0x63f   : > { %v1664_v40 = vpop.xlane.xlu1 %1663 }
 0x640   : > { %v1708_v2 = vadd.f32 %v1664_v40, %v1600_v7 }
 0x642   : > { %v1724_v53 = vmax.f32 %v1708_v2, 1e-09 }
 0x643   : > { %v1661_v60 = vpop.xlane.xlu0 %1660 }
 0x644   : > { %3367 = vrcp.f32 %v1724_v53  ;;  %v1707_v0 = vadd.f32 %v1661_v60, %v1597_v6 }
 0x645   : > { %v1688_v35 = vpop.xlane.xlu1 %1687 }
 0x646   : > { %v1716_v14 = vadd.f32 %v1688_v35, %v1624_v5  ;;  %v1723_v52 = vmax.f32 %v1707_v0, 1e-09 }
 0x648   : > { %v1732_v16 = vmax.f32 %v1716_v14, 1e-09  ;;  %3369 = vrcp.f32 %v1723_v52  ;;  %v1685_v29 = vpop.xlane.xlu0 %1684 }
 0x649   : > { %v1670_v26 = vpop.xlane.xlu1 %1669  ;;  %v1715_v21 = vadd.f32 %v1685_v29, %v4880_v39 }
 0x64a   : > { %3371 = vrcp.f32 %v1732_v16  ;;  %v1710_v9 = vadd.f32 %v1670_v26, %v4868_v30 }
 0x64b   : > { %v1731_v50 = vmax.f32 %v1715_v21, 1e-09 }
 0x64c   : > { %v1726_v23 = vmax.f32 %v1710_v9, 1e-09 }
 0x64d   : > { %v1694_v32 = vpop.xlane.xlu1 %1693  ;;  %v4897_v62 = vpop.xlane.xlu0 %1666 }
 0x64e   : > { %3373 = vrcp.f32 %v1726_v23  ;;  %v1718_v2 = vadd.f32 %v1694_v32, %v4882_v36  ;;  %v3368_v53 = vpop.eup %3367  ;;  %v1709_v16 = vadd.f32 %v4897_v62, %v4870_v4 }
 0x64f   : > { %3375 = vrcp.f32 %v1731_v50  ;;  %v1742_v0 = vmul.f32 %v3368_v53, %v1600_v7  ;;  %v1788_v14 = vmul.f32 %v3368_v53, %v1664_v40 }
 0x650   : > { %v1734_v52 = vmax.f32 %v1718_v2, 1e-09  ;;  %v1725_v9 = vmax.f32 %v1709_v16, 1e-09 }
 0x651   : > { %v1772_v25 = vmul.f32 %v4255_v37, %v1742_v0  ;;  %v1804_v57 = vmul.f32 %v4747_v17, %v1788_v14  ;;  %v4903_v21 = vpop.xlane.xlu1 %1675 }
 0x652   : > { %3377 = vrcp.f32 %v1734_v52  ;;  %v3370_v23 = vpop.eup %3369  ;;  %v1712_v50 = vadd.f32 %v4903_v21, %v4872_v34  ;;  %v4907_v13 = vpop.xlane.xlu0 %1690 }
 0x653   : > { %v1820_v40 = vadd.f32 %v1804_v57, %v1772_v25  ;;  %v1740_v2 = vmul.f32 %v3370_v23, %v1597_v6  ;;  %v1787_v53 = vmul.f32 %v3370_v23, %v1661_v60  ;;  %3379 = vrcp.f32 %v1725_v9 }
 0x654   : > { %v3372_v7 = vpop.eup %3371  ;;  %v1728_v37 = vmax.f32 %v1712_v50, 1e-09  ;;  %v1717_v17 = vadd.f32 %v4907_v13, %v4884_v8 }
 0x655   : > { %v1758_v1 = vmul.f32 %v3372_v7, %v1624_v5  ;;  %v1796_v63 = vmul.f32 %v3372_v7, %v1688_v35  ;;  %1836 = vst.msk [vmem:[#allocation2 + $0x8] sm:$0xff] %vm632_vm1, %v1820_v40  ;;  %v1771_v0 = vmul.f32 %v4264_v41, %v1740_v2  ;;  %v1803_v14 = vmul.f32 %v4757_v22, %v1787_v53  ;;  %v4916_v57 = vpop.xlane.xlu1 %1699 }
 0x656   : > { %3381 = vrcp.f32 %v1728_v37  ;;  %v1733_v25 = vmax.f32 %v1717_v17, 1e-09  ;;  %v1720_v60 = vadd.f32 %v4916_v57, %v4886_v51 }
 0x657   : > { %v1780_v52 = vmul.f32 %v4271_v45, %v1758_v1  ;;  %v1812_v16 = vmul.f32 %v4760_v11, %v1796_v63  ;;  %v1819_v5 = vadd.f32 %v1803_v14, %v1771_v0 }
 0x658   : > { %v3374_v6 = vpop.eup %3373  ;;  %3383 = vrcp.f32 %v1733_v25  ;;  %v1736_v22 = vmax.f32 %v1720_v60, 1e-09  ;;  %v4923_v11 = vpop.xlane.xlu0 %1672 }
 0x659   : > { %v3376_v35 = vpop.eup %3375  ;;  %v1828_v9 = vadd.f32 %v1812_v16, %v1780_v52  ;;  %v1746_v23 = vmul.f32 %v3374_v6, %v4868_v30  ;;  %v1790_v41 = vmul.f32 %v3374_v6, %v1670_v26  ;;  %1835 = vst.msk [vmem:[#allocation2] sm:$0xff] %vm632_vm1, %v1819_v5  ;;  %v1711_v7 = vadd.f32 %v4923_v11, %v4874_v46  ;;  %v4930_v30 = vpop.xlane.xlu1 %1681 }
 0x65a   : > { %v1756_v45 = vmul.f32 %v3376_v35, %v4880_v39  ;;  %v1795_v63 = vmul.f32 %v3376_v35, %v1685_v29  ;;  %3385 = vrcp.f32 %v1736_v22  ;;  %v1714_v29 = vadd.f32 %v4930_v30, %v4876_v3 }
 0x65b   : > { %1844 = vst.msk [vmem:[#allocation2 + $0x48] sm:$0xff] %vm632_vm1, %v1828_v9  ;;  %v1774_v1 = vmul.f32 %v4293_v15, %v1746_v23  ;;  %v1806_v50 = vmul.f32 %v4773_v31, %v1790_v41  ;;  %v1727_v37 = vmax.f32 %v1711_v7, 1e-09 }
 0x65c   : > { %v3378_v26 = vpop.eup %3377  ;;  %v1779_v40 = vmul.f32 %v4288_v12, %v1756_v45  ;;  %v1811_v39 = vmul.f32 %v4776_v48, %v1795_v63  ;;  %v1730_v0 = vmax.f32 %v1714_v29, 1e-09  ;;  %v4937_v14 = vpop.xlane.xlu0 %1696 }
 0x65d   : > { %v1822_v2 = vadd.f32 %v1806_v50, %v1774_v1  ;;  %v1762_v53 = vmul.f32 %v3378_v26, %v4882_v36  ;;  %v1798_v15 = vmul.f32 %v3378_v26, %v1694_v32  ;;  %v3380_v31 = vpop.eup %3379  ;;  %v4944_v25 = vpop.xlane.xlu1 %1705  ;;  %3387 = vrcp.f32 %v1727_v37 }
 0x65e   : > { %v1827_v17 = vadd.f32 %v1811_v39, %v1779_v40  ;;  %v1744_v52 = vmul.f32 %v3380_v31, %v4870_v4  ;;  %v1789_v16 = vmul.f32 %v3380_v31, %v4897_v62  ;;  %v1719_v36 = vadd.f32 %v4937_v14, %v4888_v55 }
 0x65f   : > { %1838 = vst.msk [vmem:[#allocation2 + $0x18] sm:$0xff] %vm632_vm1, %v1822_v2  ;;  %v1782_v12 = vmul.f32 %v4314_v24, %v1762_v53  ;;  %v1814_v48 = vmul.f32 %v4787_v28, %v1798_v15  ;;  %v1722_v32 = vadd.f32 %v4944_v25, %v4890_v49  ;;  %3389 = vrcp.f32 %v1730_v0 }
 0x660   : > { %1843 = vst.msk [vmem:[#allocation2 + $0x40] sm:$0xff] %vm632_vm1, %v1827_v17  ;;  %v3382_v6 = vpop.eup %3381  ;;  %v1773_v24 = vmul.f32 %v4323_v56, %v1744_v52  ;;  %v1805_v28 = vmul.f32 %v4793_v59, %v1789_v16  ;;  %v1735_v60 = vmax.f32 %v1719_v36, 1e-09  ;;  %v1679_v9 = vpop.xlane.xlu0 %1678  ;;  %v5599_v16 = vld [vmem:[#allocation12_spill] sm:$0xff] }
 0x661   : > { %v1830_v5 = vadd.f32 %v1814_v48, %v1782_v12  ;;  %v1750_v62 = vmul.f32 %v3382_v6, %v4872_v34  ;;  %v1792_v4 = vmul.f32 %v3382_v6, %v4903_v21  ;;  %v1738_v35 = vmax.f32 %v1722_v32, 1e-09  ;;  %v5600_v36 = vld [vmem:[#allocation4_spill] sm:$0xff]  ;;  %v5601_v6 = vld [vmem:[#allocation13_spill] sm:$0xff] }
 0x662   : > { %v3384_v23 = vpop.eup %3383  ;;  %v1821_v41 = vadd.f32 %v1805_v28, %v1773_v24  ;;  %v1713_v45 = vadd.f32 %v1679_v9, %v4878_v44  ;;  %3391 = vrcp.f32 %v1735_v60  ;;  %v5602_v24 = vld [vmem:[#allocation10_spill] sm:$0xff]  ;;  %v5604_v60 = vld [vmem:[#allocation3_spill] sm:$0xff] }
 0x663   : > { %1846 = vst.msk [vmem:[#allocation2 + $0x58] sm:$0xff] %vm632_vm1, %v1830_v5  ;;  %v1776_v63 = vmul.f32 %v4335_v58, %v1750_v62  ;;  %v1808_v56 = vmul.f32 %v4804_v47, %v1792_v4  ;;  %v1760_v59 = vmul.f32 %v3384_v23, %v4884_v8  ;;  %v1797_v22 = vmul.f32 %v3384_v23, %v4907_v13 }
 0x664   : > { %1837 = vst.msk [vmem:[#allocation2 + $0x10] sm:$0xff] %vm632_vm1, %v1821_v41  ;;  %v1729_v34 = vmax.f32 %v1713_v45, 1e-09  ;;  %v3386_v21 = vpop.eup %3385  ;;  %3393 = vrcp.f32 %v1738_v35  ;;  %v1703_v26 = vpop.xlane.xlu0 %1702 }
 0x665   : > { %v1824_v1 = vadd.f32 %v1808_v56, %v1776_v63  ;;  %v1781_v50 = vmul.f32 %v5587_v43, %v1760_v59  ;;  %v1813_v7 = vmul.f32 %v4810_v27, %v1797_v22  ;;  %v1766_v58 = vmul.f32 %v3386_v21, %v4886_v51 }
 0x666   : > { %v1800_v47 = vmul.f32 %v3386_v21, %v4916_v57  ;;  %3395 = vrcp.f32 %v1729_v34  ;;  %v1721_v8 = vadd.f32 %v1703_v26, %v4892_v19 }
 0x667   : > { %1840 = vst.msk [vmem:[#allocation2 + $0x28] sm:$0xff] %vm632_vm1, %v1824_v1  ;;  %v1829_v13 = vadd.f32 %v1813_v7, %v1781_v50  ;;  %v1784_v40 = vmul.f32 %v5585_v20, %v1766_v58  ;;  %v3388_v43 = vpop.eup %3387 }
 0x668   : > { %v1816_v39 = vmul.f32 %v4820_v18, %v1800_v47  ;;  %v1737_v29 = vmax.f32 %v1721_v8, 1e-09  ;;  %v1748_v51 = vmul.f32 %v3388_v43, %v4874_v46  ;;  %v1791_v57 = vmul.f32 %v3388_v43, %v4923_v11 }
 0x669   : > { %1845 = vst.msk [vmem:[#allocation2 + $0x50] sm:$0xff] %vm632_vm1, %v1829_v13  ;;  %v3390_v27 = vpop.eup %3389 }
 0x66a   : > { %v1832_v2 = vadd.f32 %v1816_v39, %v1784_v40  ;;  %3397 = vrcp.f32 %v1737_v29  ;;  %v1754_v53 = vmul.f32 %v3390_v27, %v4876_v3  ;;  %v1794_v15 = vmul.f32 %v3390_v27, %v4930_v30 }
 0x66b   : > { %v1775_v20 = vmul.f32 %v4363_v38, %v1748_v51  ;;  %v1807_v18 = vmul.f32 %v4826_v61, %v1791_v57 }
 0x66c   : > { %1848 = vst.msk [vmem:[#allocation2 + $0x68] sm:$0xff] %vm632_vm1, %v1832_v2  ;;  %v1778_v37 = vmul.f32 %v4380_v33, %v1754_v53  ;;  %v1810_v31 = vmul.f32 %v4834_v10, %v1794_v15  ;;  %v3392_v17 = vpop.eup %3391 }
 0x66d   : > { %v1823_v0 = vadd.f32 %v1807_v18, %v1775_v20  ;;  %v1764_v11 = vmul.f32 %v3392_v17, %v4888_v55  ;;  %v1799_v3 = vmul.f32 %v3392_v17, %v4937_v14 }
 0x66e   : > { %v3394_v46 = vpop.eup %3393  ;;  %v1826_v12 = vadd.f32 %v1810_v31, %v1778_v37 }
 0x66f   : > { %1839 = vst.msk [vmem:[#allocation2 + $0x20] sm:$0xff] %vm632_vm1, %v1823_v0  ;;  %v1770_v30 = vmul.f32 %v3394_v46, %v4890_v49  ;;  %v1802_v38 = vmul.f32 %v3394_v46, %v4944_v25  ;;  %v1783_v33 = vmul.f32 %v5591_v54, %v1764_v11  ;;  %v1815_v61 = vmul.f32 %v4841_v42, %v1799_v3 }
 0x670   : > { %v3396_v48 = vpop.eup %3395  ;;  %1842 = vst.msk [vmem:[#allocation2 + $0x38] sm:$0xff] %vm632_vm1, %v1826_v12 }
 0x671   : > { %v1752_v10 = vmul.f32 %v3396_v48, %v4878_v44  ;;  %v1793_v52 = vmul.f32 %v3396_v48, %v1679_v9  ;;  %v1786_v55 = vmul.f32 %v5599_v16, %v1770_v30  ;;  %v1818_v14 = vmul.f32 %v5600_v36, %v1802_v38  ;;  %v5603_v44 = vld [vmem:[#allocation14_spill] sm:$0xff] }
 0x672   : > { %v1831_v32 = vadd.f32 %v1815_v61, %v1783_v33 }
 0x673   : > { %v1777_v5 = vmul.f32 %v5601_v6, %v1752_v10  ;;  %v1809_v49 = vmul.f32 %v5602_v24, %v1793_v52  ;;  %v1834_v25 = vadd.f32 %v1818_v14, %v1786_v55 }
 0x674   : > { %v3398_v28 = vpop.eup %3397  ;;  %1847 = vst.msk [vmem:[#allocation2 + $0x60] sm:$0xff] %vm632_vm1, %v1831_v32 }
 0x675   : > { %v1825_v62 = vadd.f32 %v1809_v49, %v1777_v5  ;;  %v1768_v54 = vmul.f32 %v3398_v28, %v4892_v19  ;;  %v1801_v42 = vmul.f32 %v3398_v28, %v1703_v26  ;;  %1850 = vst.msk [vmem:[#allocation2 + $0x78] sm:$0xff] %vm632_vm1, %v1834_v25 }
 0x677   : > { %1841 = vst.msk [vmem:[#allocation2 + $0x30] sm:$0xff] %vm632_vm1, %v1825_v62  ;;  %v1785_v4 = vmul.f32 %v5603_v44, %v1768_v54  ;;  %v1817_v35 = vmul.f32 %v5604_v60, %v1801_v42 }
 0x679   : > { %v1833_v9 = vadd.f32 %v1817_v35, %v1785_v4 }
 0x67b   : > { %1849 = vst.msk [vmem:[#allocation2 + $0x70] sm:$0xff] %vm632_vm1, %v1833_v9 }
 0x67c PF: > { %v3399_v19 = vld [vmem:[%s3592_s14 + $0x4] ss:$8 sps:$4 sm:$0xff]   ;;  %v3401_v23 = vld [vmem:[%s3592_s14] ss:$8 sps:$4 sm:$0xff]   ;;  %v3516_v41 = vmov 0   ;;  %vm2028_vm1 = vcmask 523264   ;;  %v1978_v32 = vlaneseq  ;;  %v2704_v5 = vstv %s3505_s27 }
 0x67d   : > { %2085 = vmatprep.mubr.bf16.mxu0 %v3516_v41  ;;  %2053 = vmatprep.subr.bf16.mxu0 %v3399_v19  ;;  %v3402_v45 = vld [vmem:[%s3592_s14 + $0x14] ss:$8 sps:$4 sm:$0xff]   ;;  %v3404_v63 = vld [vmem:[%s3592_s14 + $0x10] ss:$8 sps:$4 sm:$0xff]   ;;  %v3405_v56 = vld [vmem:[%s3592_s14 + $0x24] ss:$8 sps:$4 sm:$0xff]  }
 0x67e   : > { %2054 = vmatpush1.bf16.msra.mxu0 %v3401_v23  ;;  %v3407_v59 = vld [vmem:[%s3592_s14 + $0x20] ss:$8 sps:$4 sm:$0xff]   ;;  %v3408_v22 = vld [vmem:[%s3592_s14 + $0x34] ss:$8 sps:$4 sm:$0xff]   ;;  %v3410_v34 = vld [vmem:[%s3592_s14 + $0x30] ss:$8 sps:$4 sm:$0xff]  }
 0x67f   : > { %2055 = vmatprep.subr.bf16.mxu0 %v3402_v45  ;;  %v1944_v21 = vld [vmem:[%s5535_s0] sm:$0xff]  ;;  %v1945_v1 = vld [vmem:[%s5535_s0 + $0x8] sm:$0xff]  ;;  %v1946_v7 = vld [vmem:[%s5535_s0 + $0x10] sm:$0xff]  ;;  %v2703_v6 = vand.u32 127, %v1978_v32  ;;  %v3517_v62 = vmov 0.0   ;;  %vm2740_vm12 = vcmask 31744  }
 0x680   : > { %v1960_v50 = vpack.c.bf16 %v1945_v1, %v1944_v21  ;;  %v1947_v26 = vld [vmem:[%s5535_s0 + $0x18] sm:$0xff]  ;;  %v1948_v47 = vld [vmem:[%s5535_s0 + $0x20] sm:$0xff]  ;;  %v1949_v8 = vld [vmem:[%s5535_s0 + $0x28] sm:$0xff] }
 0x681   : > { %v1961_v58 = vpack.c.bf16 %v1947_v26, %v1946_v7  ;;  %v1962_v13 = vpack.c.bf16 %v1949_v8, %v1948_v47  ;;  %v1950_v40 = vld [vmem:[%s5535_s0 + $0x30] sm:$0xff]  ;;  %v1951_v39 = vld [vmem:[%s5535_s0 + $0x38] sm:$0xff]  ;;  %v1952_v43 = vld [vmem:[%s5535_s0 + $0x40] sm:$0xff]  ;;  %vm2705_vm2 = vcmp.eq.s32.totalorder %v2703_v6, %v2704_v5 }
 0x682   : > { %2056 = vmatpush1.bf16.msra.mxu0 %v3404_v63  ;;  %v1963_v29 = vpack.c.bf16 %v1951_v39, %v1950_v40  ;;  %v1953_v27 = vld [vmem:[%s5535_s0 + $0x48] sm:$0xff]  ;;  %v1954_v51 = vld [vmem:[%s5535_s0 + $0x50] sm:$0xff]  ;;  %v1955_v57 = vld [vmem:[%s5535_s0 + $0x58] sm:$0xff]  ;;  %v5081_v54 = vsel %vm2705_vm2, 1.0, %v3517_v62 }
 0x683   : > { %2057 = vmatprep.subr.bf16.mxu0 %v3405_v56  ;;  %v1964_v2 = vpack.c.bf16 %v1953_v27, %v1952_v43  ;;  %v1965_v53 = vpack.c.bf16 %v1955_v57, %v1954_v51  ;;  %v1956_v15 = vld [vmem:[%s5535_s0 + $0x60] sm:$0xff]  ;;  %v1957_v20 = vld [vmem:[%s5535_s0 + $0x68] sm:$0xff]  ;;  %v1958_v37 = vld [vmem:[%s5535_s0 + $0x70] sm:$0xff] }
 0x684   : > { %v1966_v18 = vpack.c.bf16 %v1957_v20, %v1956_v15  ;;  %v1959_v31 = vld [vmem:[%s5535_s0 + $0x78] sm:$0xff]  ;;  %v3411_v0 = vld [vmem:[%s3607_s24 + $0x40] sm:$0xff]   ;;  %v3413_v12 = vld [vmem:[%s3607_s24 + $0x48] sm:$0xff]  }
 0x685   : > { %v1967_v17 = vpack.c.bf16 %v1959_v31, %v1958_v37  ;;  %v3412_v46 = vld [vmem:[%s3607_s24] sm:$0xff]   ;;  %3260 = vmatprep.subr.bf16.mxu1 %v3411_v0  ;;  %v3414_v11 = vld [vmem:[%s3607_s24 + $0x8] sm:$0xff]   ;;  %v3415_v3 = vld [vmem:[%s3607_s24 + $0x50] sm:$0xff]  }
 0x686   : > { %2058 = vmatpush1.bf16.msra.mxu0 %v3407_v59  ;;  %3268 = vmatpush3.bf16.msra.mxu1 %v3412_v46  ;;  %v3416_v48 = vld [vmem:[%s3607_s24 + $0x10] sm:$0xff]   ;;  %v3417_v30 = vld [vmem:[%s3607_s24 + $0x58] sm:$0xff]   ;;  %v3419_v33 = vld [vmem:[%s3607_s24 + $0x60] sm:$0xff]   ;;  %v1979_v59 = vshrl.u32 %v1978_v32, 7 }
 0x687   : > { %2059 = vmatprep.subr.bf16.mxu0 %v3408_v22  ;;  %3261 = vmatprep.subr.bf16.mxu1 %v3413_v12  ;;  %v3418_v38 = vld [vmem:[%s3607_s24 + $0x18] sm:$0xff]   ;;  %v3420_v61 = vld [vmem:[%s3607_s24 + $0x20] sm:$0xff]   ;;  %v3421_v10 = vld [vmem:[%s3607_s24 + $0x68] sm:$0xff]  }
 0x688   : > { %v3422_v52 = vld [vmem:[%s3607_s24 + $0x28] sm:$0xff]   ;;  %v3423_v16 = vld [vmem:[%s3607_s24 + $0x70] sm:$0xff]   ;;  %v3425_v36 = vld [vmem:[%s3607_s24 + $0x78] sm:$0xff]   ;;  %v1980_v26 = vsub.s32 0, %v1979_v59 }
 0x689   : > { %v3424_v55 = vld [vmem:[%s3607_s24 + $0x30] sm:$0xff]   ;;  %v3426_v14 = vld [vmem:[%s3607_s24 + $0x38] sm:$0xff]   ;;  %v2708_v24 = vld [vmem:[#allocation2] sm:$0xff] }
 0x68a   : > { %2060 = vmatpush1.bf16.msra.mxu0 %v3410_v34  ;;  %3269 = vmatpush3.bf16.msra.mxu1 %v3414_v11  ;;  %v2709_v49 = vld [vmem:[#allocation2 + $0x8] sm:$0xff]  ;;  %v2710_v28 = vld [vmem:[#allocation2 + $0x10] sm:$0xff]  ;;  %v2711_v25 = vld [vmem:[#allocation2 + $0x18] sm:$0xff]  ;;  %v2724_v42 = vmul.f32 %v5081_v54, %v2708_v24 }
 0x68b   : > { %3132 = vmatprep.subr.bf16.mxu0 %v3411_v0  ;;  %3262 = vmatprep.subr.bf16.mxu1 %v3415_v3  ;;  %v2725_v44 = vmul.f32 %v5081_v54, %v2709_v49  ;;  %v2726_v4 = vmul.f32 %v5081_v54, %v2710_v28  ;;  %v2727_v60 = vmul.f32 %v5081_v54, %v2711_v25  ;;  %v2712_v35 = vld [vmem:[#allocation2 + $0x20] sm:$0xff]  ;;  %v2713_v9 = vld [vmem:[#allocation2 + $0x28] sm:$0xff]  ;;  %v2714_v22 = vld [vmem:[#allocation2 + $0x30] sm:$0xff] }
 0x68c   : > { %v2741_v19 = vsel %vm2740_vm12, %v2724_v42, 0.0  ;;  %v2728_v63 = vmul.f32 %v5081_v54, %v2712_v35  ;;  %v2729_v56 = vmul.f32 %v5081_v54, %v2713_v9  ;;  %v2715_v34 = vld [vmem:[#allocation2 + $0x38] sm:$0xff]  ;;  %v2717_v47 = vld [vmem:[#allocation2 + $0x48] sm:$0xff]  ;;  %v1976_v8 = vld [vmem:[%s3597_s17] sm:$0x3] }
 0x68d   : > { %3074 = vmatmul.mubr.msk.bf16.vlgmr.msra.gmra.mrb[0].mxu0 %vm2028_vm1, %v1960_v50  ;;  %v2747_v23 = vsel %vm2740_vm12, %v2726_v4, 0.0  ;;  %2742 = vadd.xlane.f32.xlu0 %v2741_v19  ;;  %v2750_v45 = vsel %vm2740_vm12, %v2727_v60, 0.0  ;;  %v2730_v50 = vmul.f32 %v5081_v54, %v2714_v22  ;;  %v2731_v7 = vmul.f32 %v5081_v54, %v2715_v34  ;;  %v2719_v51 = vld [vmem:[#allocation2 + $0x58] sm:$0xff]  ;;  %v2720_v31 = vld [vmem:[#allocation2 + $0x60] sm:$0xff] }
 0x68e   : > { %2095 = vmatprep.mubr.bf16.mxu0 %v3516_v41  ;;  %3133 = vmatpush3.bf16.msra.mxu0 %v3412_v46  ;;  %v2753_v21 = vsel %vm2740_vm12, %v2728_v63, 0.0  ;;  %v2756_v1 = vsel %vm2740_vm12, %v2729_v56, 0.0  ;;  %v2733_v43 = vmul.f32 %v5081_v54, %v2717_v47  ;;  %v5102_v27 = vrot.slane %v1976_v8, %v1980_v26 }
 0x68f   : > { %3134 = vmatprep.subr.bf16.mxu0 %v3413_v12  ;;  %3270 = vmatpush3.bf16.msra.mxu1 %v3416_v48  ;;  %v2759_v40 = vsel %vm2740_vm12, %v2730_v50, 0.0  ;;  %v2762_v39 = vsel %vm2740_vm12, %v2731_v7, 0.0  ;;  %v2735_v37 = vmul.f32 %v5081_v54, %v2719_v51 }
 0x690   : > { %3263 = vmatprep.subr.bf16.mxu1 %v3417_v30  ;;  %2748 = vadd.xlane.f32.xlu1 %v2747_v23  ;;  %v2768_v20 = vsel %vm2740_vm12, %v2733_v43, 0.0 }
 0x692   : > { %3135 = vmatpush3.bf16.msra.mxu0 %v3414_v11 }
 0x693   : > { %3136 = vmatprep.subr.bf16.mxu0 %v3415_v3  ;;  %3271 = vmatpush3.bf16.msra.mxu1 %v3418_v38  ;;  %v2722_v3 = vld [vmem:[#allocation2 + $0x70] sm:$0xff] }
 0x694   : > { %3264 = vmatprep.subr.bf16.mxu1 %v3419_v33  ;;  %2751 = vadd.xlane.f32.xlu1 %v2750_v45  ;;  %v2738_v6 = vmul.f32 %v5081_v54, %v2722_v3 }
 0x695   : > { %3075 = vmatmul.mubr.msk.bf16.gmra.mrb[4].mxu0 %vm2028_vm1, %v1961_v58  ;;  %v2716_v58 = vld [vmem:[#allocation2 + $0x40] sm:$0xff] }
 0x696   : > { %2105 = vmatprep.mubr.bf16.mxu0 %v3516_v41  ;;  %3137 = vmatpush3.bf16.msra.mxu0 %v3416_v48  ;;  %v2783_v23 = vsel %vm2740_vm12, %v2738_v6, 0.0 }
 0x697   : > { %3138 = vmatprep.subr.bf16.mxu0 %v3417_v30  ;;  %3272 = vmatpush3.bf16.msra.mxu1 %v3420_v61 }
 0x698   : > { %3265 = vmatprep.subr.bf16.mxu1 %v3421_v10  ;;  %2757 = vadd.xlane.f32.xlu1 %v2756_v1 }
 0x69a   : > { %3139 = vmatpush3.bf16.msra.mxu0 %v3418_v38 }
 0x69b   : > { %3140 = vmatprep.subr.bf16.mxu0 %v3419_v33  ;;  %3273 = vmatpush3.bf16.msra.mxu1 %v3422_v52  ;;  %v2736_v33 = vmul.f32 %v5081_v54, %v2720_v31 }
 0x69c   : > { %3266 = vmatprep.subr.bf16.mxu1 %v3423_v16  ;;  %2763 = vadd.xlane.f32.xlu1 %v2762_v39 }
 0x69d   : > { %3076 = vmatmul.mubr.msk.bf16.gmra.mrb[8].mxu0 %vm2028_vm1, %v1962_v13  ;;  %v1984_v13 = vsub.s32 1, %v1979_v59  ;;  %v2777_v4 = vsel %vm2740_vm12, %v2736_v33, 0.0 }
 0x69e   : > { %2115 = vmatprep.mubr.bf16.mxu0 %v3516_v41  ;;  %3141 = vmatpush3.bf16.msra.mxu0 %v3420_v61 }
 0x69f   : > { %3142 = vmatprep.subr.bf16.mxu0 %v3421_v10  ;;  %3274 = vmatpush3.bf16.msra.mxu1 %v3424_v55  ;;  %v5104_v57 = vrot.slane %v1976_v8, %v1984_v13  ;;  %v2723_v10 = vld [vmem:[#allocation2 + $0x78] sm:$0xff] }
 0x6a0   : > { %3267 = vmatprep.subr.bf16.mxu1 %v3425_v36  ;;  %2769 = vadd.xlane.f32.xlu1 %v2768_v20  ;;  %v2739_v49 = vmul.f32 %v5081_v54, %v2723_v10 }
 0x6a2   : > { %3143 = vmatpush3.bf16.msra.mxu0 %v3422_v52  ;;  %v2786_v59 = vsel %vm2740_vm12, %v2739_v49, 0.0 }
 0x6a3   : > { %3144 = vmatprep.subr.bf16.mxu0 %v3423_v16  ;;  %3275 = vmatpush3.bf16.msra.mxu1 %v3426_v14 }
 0x6a5   : > { %3077 = vmatmul.mubr.msk.bf16.gmra.mrb[12].mxu0 %vm2028_vm1, %v1963_v29  ;;  %v2732_v29 = vmul.f32 %v5081_v54, %v2716_v58 }
 0x6a6   : > { %2125 = vmatprep.mubr.bf16.mxu0 %v3516_v41  ;;  %3145 = vmatpush3.bf16.msra.mxu0 %v3424_v55 }
 0x6a7   : > { %3146 = vmatprep.subr.bf16.mxu0 %v3425_v36  ;;  %v2765_v15 = vsel %vm2740_vm12, %v2732_v29, 0.0  ;;  %v2774_v36 = vsel %vm2740_vm12, %v2735_v37, 0.0 }
 0x6a8   : > { %2775 = vadd.xlane.f32.xlu1 %v2774_v36 }
 0x6aa   : > { %3147 = vmatpush3.bf16.msra.mxu0 %v3426_v14 }
 0x6ad   : > { %3078 = vmatmul.mubr.msk.bf16.gmra.mrb[16].mxu0 %vm2028_vm1, %v1964_v2  ;;  %v2718_v2 = vld [vmem:[#allocation2 + $0x50] sm:$0xff] }
 0x6ae   : > { %2135 = vmatprep.mubr.bf16.mxu0 %v3516_v41 }
 0x6b5   : > { %3079 = vmatmul.mubr.msk.bf16.gmra.mrb[20].mxu0 %vm2028_vm1, %v1965_v53 }
 0x6b6   : > { %2145 = vmatprep.mubr.bf16.mxu0 %v3516_v41 }
 0x6bd   : > { %3080 = vmatmul.mubr.msk.bf16.gmra.mrb[24].mxu0 %vm2028_vm1, %v1966_v18  ;;  %v2734_v18 = vmul.f32 %v5081_v54, %v2718_v2 }
 0x6be   : > { %2155 = vmatprep.mubr.bf16.mxu0 %v3516_v41  ;;  %v2744_v41 = vsel %vm2740_vm12, %v2725_v44, 0.0 }
 0x6bf   : > { %2745 = vadd.xlane.f32.xlu0 %v2744_v41  ;;  %v2771_v55 = vsel %vm2740_vm12, %v2734_v18, 0.0 }
 0x6c3   : > { %2754 = vadd.xlane.f32.xlu0 %v2753_v21 }
 0x6c5   : > { %3081 = vmatmul.mubr.msk.bf16.gmra.mrb[28].mxu0 %vm2028_vm1, %v1967_v17  ;;  %v2721_v17 = vld [vmem:[#allocation2 + $0x68] sm:$0xff] }
 0x6c6   : > { %v2737_v61 = vmul.f32 %v5081_v54, %v2721_v17 }
 0x6c7   : > { %2760 = vadd.xlane.f32.xlu0 %v2759_v40 }
 0x6c8   : > { %v2780_v60 = vsel %vm2740_vm12, %v2737_v61, 0.0 }
 0x6c9   : > { %2781 = vadd.xlane.f32.xlu1 %v2780_v60 }
 0x6cb   : > { %2766 = vadd.xlane.f32.xlu0 %v2765_v15 }
 0x6cd   : > { %2787 = vadd.xlane.f32.xlu1 %v2786_v59 }
 0x6cf   : > { %2772 = vadd.xlane.f32.xlu0 %v2771_v55 }
 0x6d3   : > { %2778 = vadd.xlane.f32.xlu0 %v2777_v4 }
 0x6d7   : > { %2784 = vadd.xlane.f32.xlu0 %v2783_v23 }
 0x760   : > { %v2087_v53 = vpop.f32.mrb[0].mxu0 }
 0x761   : > { %v5111_v0 = vadd.f32 %v2087_v53, %v5102_v27  ;;  %v2089_v46 = vpop.f32.mrb[1].mxu0 }
 0x762   : > { %v5114_v12 = vadd.f32 %v2089_v46, %v5104_v57  ;;  %v2091_v11 = vpop.f32.mrb[2].mxu0 }
 0x763   : > { %v2198_v48 = vmul.f32 0.044715, %v5111_v0  ;;  %v5118_v30 = vadd.f32 %v2091_v11, %v5102_v27  ;;  %v2093_v38 = vpop.f32.mrb[3].mxu0 }
 0x764   : > { %v2199_v52 = vmul.f32 0.044715, %v5114_v12  ;;  %v5124_v16 = vadd.f32 %v2093_v38, %v5104_v57 }
 0x765   : > { %v2230_v14 = vmul.f32 %v2198_v48, %v5111_v0  ;;  %v2200_v32 = vmul.f32 0.044715, %v5118_v30 }
 0x766   : > { %v2231_v5 = vmul.f32 %v2199_v52, %v5114_v12  ;;  %v2201_v24 = vmul.f32 0.044715, %v5124_v16 }
 0x767   : > { %v2262_v28 = vmul.f32 %v2230_v14, %v5111_v0  ;;  %v2232_v25 = vmul.f32 %v2200_v32, %v5118_v30 }
 0x768   : > { %v2263_v62 = vmul.f32 %v2231_v5, %v5114_v12  ;;  %v2233_v42 = vmul.f32 %v2201_v24, %v5124_v16  ;;  %v2097_v44 = vpop.f32.mrb[4].mxu0 }
 0x769   : > { %v2294_v35 = vadd.f32 %v2262_v28, %v5111_v0  ;;  %v2264_v9 = vmul.f32 %v2232_v25, %v5118_v30  ;;  %v5143_v54 = vadd.f32 %v2097_v44, %v5102_v27  ;;  %v2099_v19 = vpop.f32.mrb[5].mxu0  ;;  %v2166_v28 = vmul.f32 0.5, %v5111_v0 }
 0x76a   : > { %v2265_v41 = vmul.f32 %v2233_v42, %v5124_v16  ;;  %v5148_v45 = vadd.f32 %v2099_v19, %v5104_v57  ;;  %v2101_v63 = vpop.f32.mrb[6].mxu0  ;;  %v2295_v56 = vadd.f32 %v2263_v62, %v5114_v12  ;;  %v2167_v25 = vmul.f32 0.5, %v5114_v12 }
 0x76b   : > { %v2326_v22 = vmul.f32 0.7978846, %v2294_v35  ;;  %v2296_v34 = vadd.f32 %v2264_v9, %v5118_v30  ;;  %v2202_v21 = vmul.f32 0.044715, %v5143_v54  ;;  %v5155_v1 = vadd.f32 %v2101_v63, %v5102_v27  ;;  %v2103_v50 = vpop.f32.mrb[7].mxu0 }
 0x76c   : > { %v2203_v7 = vmul.f32 0.044715, %v5148_v45  ;;  %v5159_v26 = vadd.f32 %v2103_v50, %v5104_v57  ;;  %v2297_v58 = vadd.f32 %v2265_v41, %v5124_v16  ;;  %v2327_v47 = vmul.f32 0.7978846, %v2295_v56 }
 0x76d   : > { %3427 = vtanh.f32 %v2326_v22  ;;  %v2328_v8 = vmul.f32 0.7978846, %v2296_v34  ;;  %v2234_v13 = vmul.f32 %v2202_v21, %v5143_v54  ;;  %v2204_v40 = vmul.f32 0.044715, %v5155_v1 }
 0x76e   : > { %v2205_v39 = vmul.f32 0.044715, %v5159_v26  ;;  %v2329_v29 = vmul.f32 0.7978846, %v2297_v58  ;;  %3429 = vtanh.f32 %v2327_v47  ;;  %v2235_v53 = vmul.f32 %v2203_v7, %v5148_v45 }
 0x76f   : > { %3431 = vtanh.f32 %v2328_v8  ;;  %v2266_v43 = vmul.f32 %v2234_v13, %v5143_v54  ;;  %v2236_v2 = vmul.f32 %v2204_v40, %v5155_v1  ;;  %v2168_v9 = vmul.f32 0.5, %v5118_v30 }
 0x770   : > { %v2107_v51 = vpop.f32.mrb[8].mxu0  ;;  %3433 = vtanh.f32 %v2329_v29  ;;  %v2237_v15 = vmul.f32 %v2205_v39, %v5159_v26  ;;  %v2267_v46 = vmul.f32 %v2235_v53, %v5148_v45  ;;  %v2169_v30 = vmul.f32 0.5, %v5124_v16 }
 0x771   : > { %v2268_v20 = vmul.f32 %v2236_v2, %v5155_v1  ;;  %v2109_v18 = vpop.f32.mrb[9].mxu0  ;;  %v2298_v37 = vadd.f32 %v2266_v43, %v5143_v54  ;;  %v5177_v3 = vadd.f32 %v2107_v51, %v5102_v27  ;;  %v2171_v7 = vmul.f32 0.5, %v5148_v45 }
 0x772   : > { %v5172_v31 = vadd.f32 %v2109_v18, %v5104_v57  ;;  %v2111_v17 = vpop.f32.mrb[10].mxu0  ;;  %v2269_v11 = vmul.f32 %v2237_v15, %v5159_v26  ;;  %v2299_v52 = vadd.f32 %v2267_v46, %v5148_v45  ;;  %v2173_v18 = vmul.f32 0.5, %v5159_v26 }
 0x773   : > { %v2113_v48 = vpop.f32.mrb[11].mxu0  ;;  %v2300_v38 = vadd.f32 %v2268_v20, %v5155_v1  ;;  %v2330_v33 = vmul.f32 0.7978846, %v2298_v37  ;;  %v5187_v36 = vadd.f32 %v2111_v17, %v5102_v27  ;;  %v2206_v42 = vmul.f32 0.044715, %v5177_v3 }
 0x774   : > { %v2207_v61 = vmul.f32 0.044715, %v5172_v31  ;;  %v5182_v10 = vadd.f32 %v2113_v48, %v5104_v57  ;;  %v2301_v55 = vadd.f32 %v2269_v11, %v5159_v26  ;;  %v2331_v5 = vmul.f32 0.7978846, %v2299_v52 }
 0x775   : > { %v2332_v14 = vmul.f32 0.7978846, %v2300_v38  ;;  %3435 = vtanh.f32 %v2330_v33  ;;  %v2208_v12 = vmul.f32 0.044715, %v5187_v36  ;;  %v2238_v58 = vmul.f32 %v2206_v42, %v5177_v3 }
 0x776   : > { %v2239_v32 = vmul.f32 %v2207_v61, %v5172_v31  ;;  %v2209_v6 = vmul.f32 0.044715, %v5182_v10  ;;  %v2333_v24 = vmul.f32 0.7978846, %v2301_v55  ;;  %v2170_v11 = vmul.f32 0.5, %v5143_v54 }
 0x777   : > { %v3428_v49 = vpop.eup %3427  ;;  %3437 = vtanh.f32 %v2332_v14  ;;  %v2240_v2 = vmul.f32 %v2208_v12, %v5187_v36  ;;  %v2172_v54 = vmul.f32 0.5, %v5155_v1 }
 0x778   : > { %v3430_v62 = vpop.eup %3429  ;;  %v2241_v44 = vmul.f32 %v2209_v6, %v5182_v10  ;;  %v2117_v4 = vpop.f32.mrb[12].mxu0  ;;  %v2390_v60 = vadd.f32 1.0, %v3428_v49  ;;  %3439 = vtanh.f32 %v2331_v5  ;;  %v2271_v19 = vmul.f32 %v2239_v32, %v5172_v31 }
 0x779   : > { %v3432_v35 = vpop.eup %3431  ;;  %v2119_v23 = vpop.f32.mrb[13].mxu0  ;;  %v2391_v41 = vadd.f32 1.0, %v3430_v62  ;;  %3441 = vtanh.f32 %v2333_v24  ;;  %v5203_v34 = vadd.f32 %v2117_v4, %v5102_v27  ;;  %v2270_v32 = vmul.f32 %v2238_v58, %v5177_v3 }
 0x77a   : > { %v3434_v0 = vpop.eup %3433  ;;  %v2273_v63 = vmul.f32 %v2241_v44, %v5182_v10  ;;  %v5200_v56 = vadd.f32 %v2119_v23, %v5104_v57  ;;  %v2121_v59 = vpop.f32.mrb[14].mxu0  ;;  %v2392_v22 = vadd.f32 1.0, %v3432_v35  ;;  %v2422_v8 = vmul.f32 %v2390_v60, %v2166_v28 }
 0x77b   : > { %v2123_v21 = vpop.f32.mrb[15].mxu0  ;;  %v2393_v50 = vadd.f32 1.0, %v3434_v0  ;;  %v2423_v39 = vmul.f32 %v2391_v41, %v2167_v25  ;;  %v2303_v43 = vadd.f32 %v2271_v19, %v5172_v31  ;;  %v2210_v15 = vmul.f32 0.044715, %v5203_v34 }
 0x77c   : > { %v5209_v47 = vadd.f32 %v2123_v21, %v5104_v57  ;;  %v2424_v13 = vmul.f32 %v2392_v22, %v2168_v9  ;;  %v2211_v40 = vmul.f32 0.044715, %v5200_v56  ;;  %v2305_v45 = vadd.f32 %v2273_v63, %v5182_v10 }
 0x77d   : > { %v2425_v29 = vmul.f32 %v2393_v50, %v2169_v30  ;;  %v2335_v37 = vmul.f32 0.7978846, %v2303_v43  ;;  %v5219_v17 = vadd.f32 %v2121_v59, %v5102_v27  ;;  %v2272_v6 = vmul.f32 %v2240_v2, %v5187_v36 }
 0x77e   : > { %v2213_v16 = vmul.f32 0.044715, %v5209_v47  ;;  %v2454_v51 = vpack.c.bf16 %v2424_v13, %v2422_v8  ;;  %v2337_v38 = vmul.f32 0.7978846, %v2305_v45  ;;  %v2243_v61 = vmul.f32 %v2211_v40, %v5200_v56 }
 0x77f   : > { %v3436_v53 = vpop.eup %3435  ;;  %v2455_v20 = vpack.c.bf16 %v2425_v29, %v2423_v39  ;;  %3443 = vtanh.f32 %v2335_v37  ;;  %v2242_v28 = vmul.f32 %v2210_v15, %v5203_v34  ;;  %v2212_v44 = vmul.f32 0.044715, %v5219_v17 }
 0x780   : > { %v2127_v46 = vpop.f32.mrb[16].mxu0  ;;  %v2394_v48 = vadd.f32 1.0, %v3436_v53  ;;  %v2245_v52 = vmul.f32 %v2213_v16, %v5209_v47  ;;  %3445 = vtanh.f32 %v2337_v38  ;;  %v2275_v9 = vmul.f32 %v2243_v61, %v5200_v56 }
 0x781   : > { %v3438_v33 = vpop.eup %3437  ;;  %v5225_v55 = vadd.f32 %v2127_v46, %v5102_v27  ;;  %v2129_v14 = vpop.f32.mrb[17].mxu0  ;;  %2637 = vmatprep.mubr.bf16.mxu0 %v2455_v20  ;;  %v2175_v23 = vmul.f32 0.5, %v5172_v31  ;;  %v2302_v21 = vadd.f32 %v2270_v32, %v5177_v3  ;;  %v2304_v30 = vadd.f32 %v2272_v6, %v5187_v36 }
 0x782   : > { %v3440_v26 = vpop.eup %3439  ;;  %v2131_v5 = vpop.f32.mrb[18].mxu0  ;;  %2638 = vmatmul.mubr.bf16.vlgmr.msra.gmra.mrb[32].mxu0 %v2454_v51  ;;  %v2396_v24 = vadd.f32 1.0, %v3438_v33  ;;  %v5232_v25 = vadd.f32 %v2129_v14, %v5104_v57  ;;  %v2426_v60 = vmul.f32 %v2394_v48, %v2170_v11  ;;  %v2277_v19 = vmul.f32 %v2245_v52, %v5209_v47 }
 0x783   : > { %v3442_v49 = vpop.eup %3441  ;;  %v2133_v62 = vpop.f32.mrb[19].mxu0  ;;  %v2395_v42 = vadd.f32 1.0, %v3440_v26  ;;  %v2214_v1 = vmul.f32 0.044715, %v5225_v55  ;;  %v5244_v22 = vadd.f32 %v2131_v5, %v5102_v27  ;;  %v2274_v50 = vmul.f32 %v2242_v28, %v5203_v34 }
 0x784   : > { %v2397_v4 = vadd.f32 1.0, %v3442_v49  ;;  %v2428_v35 = vmul.f32 %v2396_v24, %v2172_v54  ;;  %v5240_v41 = vadd.f32 %v2133_v62, %v5104_v57  ;;  %v2215_v59 = vmul.f32 0.044715, %v5232_v25 }
 0x785   : > { %v2427_v0 = vmul.f32 %v2395_v42, %v2171_v7  ;;  %v2244_v58 = vmul.f32 %v2212_v44, %v5219_v17  ;;  %v2177_v13 = vmul.f32 0.5, %v5182_v10  ;;  %v5255_v39 = vmul.f32 0.5, %v5177_v3 }
 0x786   : > { %v2429_v12 = vmul.f32 %v2397_v4, %v2173_v18  ;;  %v2456_v63 = vpack.c.bf16 %v2428_v35, %v2426_v60  ;;  %v2334_v29 = vmul.f32 0.7978846, %v2302_v21  ;;  %v2336_v43 = vmul.f32 0.7978846, %v2304_v30 }
 0x787   : > { %v2246_v2 = vmul.f32 %v2214_v1, %v5225_v55  ;;  %v2217_v16 = vmul.f32 0.044715, %v5240_v41  ;;  %v2307_v10 = vadd.f32 %v2275_v9, %v5200_v56  ;;  %v2247_v15 = vmul.f32 %v2215_v59, %v5232_v25 }
 0x788   : > { %v2137_v31 = vpop.f32.mrb[20].mxu0  ;;  %v2457_v8 = vpack.c.bf16 %v2429_v12, %v2427_v0  ;;  %v2216_v20 = vmul.f32 0.044715, %v5244_v22  ;;  %3447 = vtanh.f32 %v2334_v29  ;;  %v2309_v18 = vadd.f32 %v2277_v19, %v5209_v47 }
 0x789   : > { %v5252_v7 = vadd.f32 %v2137_v31, %v5102_v27  ;;  %v2139_v40 = vpop.f32.mrb[21].mxu0  ;;  %v3444_v53 = vpop.eup %3443  ;;  %v2176_v11 = vmul.f32 0.5, %v5187_v36  ;;  %3449 = vtanh.f32 %v2336_v43  ;;  %v2276_v38 = vmul.f32 %v2244_v58, %v5219_v17 }
 0x78a   : > { %v5260_v51 = vadd.f32 %v2139_v40, %v5104_v57  ;;  %2645 = vmatprep.mubr.bf16.mxu1 %v2457_v8  ;;  %v2141_v45 = vpop.f32.mrb[22].mxu0  ;;  %v2399_v46 = vadd.f32 1.0, %v3444_v53  ;;  %v3446_v48 = vpop.eup %3445  ;;  %v2339_v61 = vmul.f32 0.7978846, %v2307_v10  ;;  %v2341_v52 = vmul.f32 0.7978846, %v2309_v18 }
 0x78b   : > { %2646 = vmatmul.mubr.bf16.vlgmr.msra.gmra.mrb[0].mxu1 %v2456_v63  ;;  %v2143_v3 = vpop.f32.mrb[23].mxu0  ;;  %v5267_v37 = vadd.f32 %v2141_v45, %v5102_v27  ;;  %v2218_v33 = vmul.f32 0.044715, %v5252_v7  ;;  %v5273_v14 = vmul.f32 %v2246_v2, %v5225_v55  ;;  %v2249_v26 = vmul.f32 %v2217_v16, %v5240_v41 }
 0x78c   : > { %v2219_v32 = vmul.f32 0.044715, %v5260_v51  ;;  %v2401_v6 = vadd.f32 1.0, %v3446_v48  ;;  %v2279_v5 = vmul.f32 %v2247_v15, %v5232_v25  ;;  %v2248_v36 = vmul.f32 %v2216_v20, %v5244_v22 }
 0x78d   : > { %v5280_v54 = vadd.f32 %v2143_v3, %v5104_v57  ;;  %3451 = vtanh.f32 %v2339_v61  ;;  %v2220_v24 = vmul.f32 0.044715, %v5267_v37  ;;  %v2431_v28 = vmul.f32 %v2399_v46, %v2175_v23 }
 0x78e   : > { %v2433_v62 = vmul.f32 %v2401_v6, %v2177_v13  ;;  %3453 = vtanh.f32 %v2341_v52  ;;  %v2250_v42 = vmul.f32 %v2218_v33, %v5252_v7  ;;  %v2179_v60 = vmul.f32 0.5, %v5200_v56 }
 0x78f   : > { %v2306_v35 = vadd.f32 %v2274_v50, %v5203_v34  ;;  %v2281_v9 = vmul.f32 %v2249_v26, %v5240_v41  ;;  %v2251_v19 = vmul.f32 %v2219_v32, %v5260_v51  ;;  %v2308_v23 = vadd.f32 %v2276_v38, %v5219_v17 }
 0x790   : > { %v2147_v49 = vpop.f32.mrb[24].mxu0  ;;  %v2459_v1 = vpack.c.bf16 %v2433_v62, %v2431_v28  ;;  %v2221_v12 = vmul.f32 0.044715, %v5280_v54  ;;  %v2280_v30 = vmul.f32 %v2248_v36, %v5244_v22  ;;  %v2252_v50 = vmul.f32 %v2220_v24, %v5267_v37 }
 0x791   : > { %v5285_v44 = vadd.f32 %v2147_v49, %v5102_v27  ;;  %v2149_v4 = vpop.f32.mrb[25].mxu0  ;;  %v2338_v56 = vmul.f32 0.7978846, %v2306_v35  ;;  %v2181_v58 = vmul.f32 0.5, %v5209_v47  ;;  %v2340_v31 = vmul.f32 0.7978846, %v2308_v23 }
 0x792   : > { %v2151_v0 = vpop.f32.mrb[26].mxu0  ;;  %v5294_v63 = vadd.f32 %v2149_v4, %v5104_v57  ;;  %2653 = vmatprep.mubr.bf16.mxu1 %v2459_v1  ;;  %v3448_v8 = vpop.eup %3447  ;;  %v5303_v13 = vmul.f32 %v2250_v42, %v5252_v7  ;;  %v5306_v40 = vmul.f32 0.5, %v5203_v34  ;;  %v2311_v29 = vadd.f32 %v2279_v5, %v5232_v25 }
 0x793   : > { %v5297_v59 = vadd.f32 %v2151_v0, %v5102_v27  ;;  %v2153_v21 = vpop.f32.mrb[27].mxu0  ;;  %3455 = vtanh.f32 %v2338_v56  ;;  %v3450_v43 = vpop.eup %3449  ;;  %v5310_v2 = vmul.f32 %v2251_v19, %v5260_v51  ;;  %v2222_v16 = vmul.f32 0.044715, %v5285_v44 }
 0x794   : > { %v2398_v45 = vadd.f32 1.0, %v3448_v8  ;;  %3457 = vtanh.f32 %v2340_v31  ;;  %v2253_v47 = vmul.f32 %v2221_v12, %v5280_v54  ;;  %v2223_v10 = vmul.f32 0.044715, %v5294_v63 }
 0x795   : > { %v2400_v53 = vadd.f32 1.0, %v3450_v43  ;;  %v2313_v15 = vadd.f32 %v2281_v9, %v5240_v41  ;;  %v2284_v34 = vmul.f32 %v2252_v50, %v5267_v37  ;;  %v2224_v20 = vmul.f32 0.044715, %v5297_v59 }
 0x796   : > { %v5319_v3 = vadd.f32 %v2153_v21, %v5104_v57  ;;  %v2343_v46 = vmul.f32 0.7978846, %v2311_v29  ;;  %v2430_v38 = vmul.f32 %v2398_v45, %v5255_v39  ;;  %v2254_v6 = vmul.f32 %v2222_v16, %v5285_v44 }
 0x797   : > { %v3452_v48 = vpop.eup %3451  ;;  %v2432_v33 = vmul.f32 %v2400_v53, %v2176_v11  ;;  %v2345_v26 = vmul.f32 0.7978846, %v2313_v15  ;;  %v2255_v49 = vmul.f32 %v2223_v10, %v5294_v63  ;;  %v2180_v4 = vmul.f32 0.5, %v5219_v17 }
 0x798   : > { %v2157_v18 = vpop.f32.mrb[28].mxu0  ;;  %v3454_v32 = vpop.eup %3453  ;;  %v2403_v36 = vadd.f32 1.0, %v3452_v48  ;;  %3459 = vtanh.f32 %v2343_v46  ;;  %v2225_v42 = vmul.f32 0.044715, %v5319_v3  ;;  %v2285_v9 = vmul.f32 %v2253_v47, %v5280_v54 }
 0x799   : > { %v5323_v61 = vadd.f32 %v2157_v18, %v5102_v27  ;;  %v2159_v52 = vpop.f32.mrb[29].mxu0  ;;  %v2458_v28 = vpack.c.bf16 %v2432_v33, %v2430_v38  ;;  %v2405_v62 = vadd.f32 1.0, %v3454_v32  ;;  %3461 = vtanh.f32 %v2345_v26 }
 0x79a   : > { %v5327_v5 = vadd.f32 %v2159_v52, %v5104_v57  ;;  %v2161_v24 = vpop.f32.mrb[30].mxu0  ;;  %v2256_v19 = vmul.f32 %v2224_v20, %v5297_v59  ;;  %v2435_v1 = vmul.f32 %v2403_v36, %v2179_v60  ;;  %v2185_v12 = vmul.f32 0.5, %v5240_v41 }
 0x79b   : > { %v5331_v39 = vadd.f32 %v2161_v24, %v5102_v27  ;;  %v2163_v11 = vpop.f32.mrb[31].mxu0  ;;  %2654 = vmatmul.mubr.bf16.gmra.mrb[4].mxu1 %v2458_v28  ;;  %v2437_v0 = vmul.f32 %v2405_v62, %v2181_v58  ;;  %v2183_v27 = vmul.f32 0.5, %v5232_v25  ;;  %v2310_v17 = vadd.f32 %v5273_v14, %v5225_v55 }
 0x79c   : > { %v5336_v35 = vadd.f32 %v2163_v11, %v5104_v57  ;;  %v2227_v23 = vmul.f32 0.044715, %v5327_v5  ;;  %v2286_v57 = vmul.f32 %v2254_v6, %v5285_v44  ;;  %v2287_v56 = vmul.f32 %v2255_v49, %v5294_v63 }
 0x79d   : > { %v3456_v21 = vpop.eup %3455  ;;  %v2461_v50 = vpack.c.bf16 %v2437_v0, %v2435_v1  ;;  %v2312_v31 = vadd.f32 %v2280_v30, %v5244_v22  ;;  %v2257_v60 = vmul.f32 %v2225_v42, %v5319_v3  ;;  %v2342_v25 = vmul.f32 0.7978846, %v2310_v17 }
 0x79e   : > { %v3458_v8 = vpop.eup %3457  ;;  %v2402_v58 = vadd.f32 1.0, %v3456_v21  ;;  %v2229_v29 = vmul.f32 0.044715, %v5336_v35  ;;  %v2288_v41 = vmul.f32 %v2256_v19, %v5297_v59  ;;  %v2226_v43 = vmul.f32 0.044715, %v5323_v61 }
 0x79f   : > { %2661 = vmatprep.mubr.bf16.mxu1 %v2461_v50  ;;  %v2404_v14 = vadd.f32 1.0, %v3458_v8  ;;  %v2344_v16 = vmul.f32 0.7978846, %v2312_v31  ;;  %v2259_v45 = vmul.f32 %v2227_v23, %v5327_v5  ;;  %v2228_v47 = vmul.f32 0.044715, %v5331_v39 }
 0x7a0   : > { %v2434_v30 = vmul.f32 %v2402_v58, %v5306_v40  ;;  %3463 = vtanh.f32 %v2342_v25  ;;  %v2315_v53 = vadd.f32 %v5310_v2, %v5260_v51  ;;  %v2317_v15 = vadd.f32 %v2285_v9, %v5280_v54 }
 0x7a1   : > { %v2436_v10 = vmul.f32 %v2404_v14, %v2180_v4  ;;  %3465 = vtanh.f32 %v2344_v16  ;;  %v2289_v18 = vmul.f32 %v2257_v60, %v5319_v3  ;;  %v2261_v46 = vmul.f32 %v2229_v29, %v5336_v35 }
 0x7a2   : > { %v3460_v20 = vpop.eup %3459  ;;  %v2314_v48 = vadd.f32 %v5303_v13, %v5252_v7  ;;  %v2316_v38 = vadd.f32 %v2284_v34, %v5267_v37  ;;  %v2347_v52 = vmul.f32 0.7978846, %v2315_v53  ;;  %v2349_v26 = vmul.f32 0.7978846, %v2317_v15 }
 0x7a3   : > { %v2460_v33 = vpack.c.bf16 %v2436_v10, %v2434_v30  ;;  %v2407_v40 = vadd.f32 1.0, %v3460_v20  ;;  %v3462_v32 = vpop.eup %3461  ;;  %v2258_v6 = vmul.f32 %v2226_v43, %v5323_v61  ;;  %v2260_v2 = vmul.f32 %v2228_v47, %v5331_v39 }
 0x7a4   : > { %v2346_v36 = vmul.f32 0.7978846, %v2314_v48  ;;  %v2348_v24 = vmul.f32 0.7978846, %v2316_v38  ;;  %v2291_v49 = vmul.f32 %v2259_v45, %v5327_v5  ;;  %v2409_v28 = vadd.f32 1.0, %v3462_v32 }
 0x7a5   : > { %2662 = vmatmul.mubr.bf16.gmra.mrb[8].mxu1 %v2460_v33  ;;  %3467 = vtanh.f32 %v2347_v52  ;;  %v2319_v13 = vadd.f32 %v2287_v56, %v5294_v63  ;;  %v2293_v34 = vmul.f32 %v2261_v46, %v5336_v35  ;;  %v2439_v62 = vmul.f32 %v2407_v40, %v2183_v27 }
 0x7a6   : > { %3469 = vtanh.f32 %v2349_v26  ;;  %v2321_v11 = vadd.f32 %v2289_v18, %v5319_v3  ;;  %v2441_v42 = vmul.f32 %v2409_v28, %v2185_v12  ;;  %v2318_v9 = vadd.f32 %v2286_v57, %v5285_v44 }
 0x7a7   : > { %3471 = vtanh.f32 %v2346_v36  ;;  %v2351_v4 = vmul.f32 0.7978846, %v2319_v13  ;;  %v2290_v19 = vmul.f32 %v2258_v6, %v5323_v61  ;;  %v2320_v0 = vadd.f32 %v2288_v41, %v5297_v59 }
 0x7a8   : > { %3473 = vtanh.f32 %v2348_v24  ;;  %v2353_v1 = vmul.f32 0.7978846, %v2321_v11  ;;  %v2292_v23 = vmul.f32 %v2260_v2, %v5331_v39  ;;  %v2463_v17 = vpack.c.bf16 %v2441_v42, %v2439_v62 }
 0x7a9   : > { %3475 = vtanh.f32 %v2351_v4  ;;  %v2350_v21 = vmul.f32 0.7978846, %v2318_v9  ;;  %v2352_v56 = vmul.f32 0.7978846, %v2320_v0  ;;  %v2323_v12 = vadd.f32 %v2291_v49, %v5327_v5 }
 0x7aa   : > { %v3464_v27 = vpop.eup %3463  ;;  %3477 = vtanh.f32 %v2353_v1  ;;  %v2325_v50 = vadd.f32 %v2293_v34, %v5336_v35  ;;  %2669 = vmatprep.mubr.bf16.mxu1 %v2463_v17  ;;  %v2182_v57 = vmul.f32 0.5, %v5225_v55  ;;  %v2184_v8 = vmul.f32 0.5, %v5244_v22 }
 0x7ab   : > { %v3466_v31 = vpop.eup %3465  ;;  %v2406_v60 = vadd.f32 1.0, %v3464_v27  ;;  %3479 = vtanh.f32 %v2350_v21  ;;  %v2355_v29 = vmul.f32 0.7978846, %v2323_v12  ;;  %v2322_v41 = vadd.f32 %v2290_v19, %v5323_v61 }
 0x7ac   : > { %v2408_v58 = vadd.f32 1.0, %v3466_v31  ;;  %3481 = vtanh.f32 %v2352_v56  ;;  %v2357_v25 = vmul.f32 0.7978846, %v2325_v50  ;;  %v2324_v43 = vadd.f32 %v2292_v23, %v5331_v39 }
 0x7ad   : > { %v2438_v14 = vmul.f32 %v2406_v60, %v2182_v57  ;;  %3483 = vtanh.f32 %v2355_v29  ;;  %v2354_v47 = vmul.f32 0.7978846, %v2322_v41  ;;  %v2187_v15 = vmul.f32 0.5, %v5260_v51 }
 0x7ae   : > { %v2440_v16 = vmul.f32 %v2408_v58, %v2184_v8  ;;  %3485 = vtanh.f32 %v2357_v25  ;;  %v2356_v30 = vmul.f32 0.7978846, %v2324_v43  ;;  %v2189_v20 = vmul.f32 0.5, %v5280_v54 }
 0x7af   : > { %v3468_v45 = vpop.eup %3467  ;;  %3487 = vtanh.f32 %v2354_v47  ;;  %v2186_v48 = vmul.f32 0.5, %v5252_v7  ;;  %v2188_v26 = vmul.f32 0.5, %v5267_v37  ;;  %v2191_v2 = vmul.f32 0.5, %v5294_v63 }
 0x7b0   : > { %v3470_v55 = vpop.eup %3469  ;;  %v2462_v10 = vpack.c.bf16 %v2440_v16, %v2438_v14  ;;  %v2411_v22 = vadd.f32 1.0, %v3468_v45  ;;  %3489 = vtanh.f32 %v2356_v30  ;;  %v2193_v51 = vmul.f32 0.5, %v5319_v3  ;;  %v5396_v14 = vld [vmem:[%s396_s21] ss:$0 sm:$0xff] }
 0x7b1   : > { %v3472_v53 = vpop.eup %3471  ;;  %v2413_v18 = vadd.f32 1.0, %v3470_v55  ;;  %v2190_v34 = vmul.f32 0.5, %v5285_v44  ;;  %v2192_v62 = vmul.f32 0.5, %v5297_v59  ;;  %v2195_v17 = vmul.f32 0.5, %v5327_v5  ;;  %v2789_v30 = vld [vmem:[%s5541_s6] sm:$0xff] }
 0x7b2   : > { %v3474_v46 = vpop.eup %3473  ;;  %2670 = vmatmul.mubr.bf16.gmra.mrb[12].mxu1 %v2462_v10  ;;  %v2410_v38 = vadd.f32 1.0, %v3472_v53  ;;  %v2443_v40 = vmul.f32 %v2411_v22, %v2187_v15  ;;  %v2197_v21 = vmul.f32 0.5, %v5336_v35  ;;  %v2194_v57 = vmul.f32 0.5, %v5323_v61  ;;  %v2743_v35 = vpop.xlane.xlu0 %2742  ;;  %v2790_v53 = vld [vmem:[%s5541_s6 + $0x8] sm:$0xff] }
 0x7b3   : > { %v3476_v33 = vpop.eup %3475  ;;  %v2445_v52 = vmul.f32 %v2413_v18, %v2189_v20  ;;  %v2412_v32 = vadd.f32 1.0, %v3474_v46  ;;  %v2196_v8 = vmul.f32 0.5, %v5331_v39  ;;  %v2749_v18 = vpop.xlane.xlu1 %2748 }
 0x7b4   : > { %v3478_v6 = vpop.eup %3477  ;;  %v2415_v54 = vadd.f32 1.0, %v3476_v33  ;;  %v2442_v49 = vmul.f32 %v2410_v38, %v2186_v48 }
 0x7b5   : > { %v3480_v36 = vpop.eup %3479  ;;  %v2465_v24 = vpack.c.bf16 %v2445_v52, %v2443_v40  ;;  %v2444_v28 = vmul.f32 %v2412_v32, %v2188_v26  ;;  %v2417_v13 = vadd.f32 1.0, %v3478_v6  ;;  %v2791_v6 = vld [vmem:[%s5541_s6 + $0x10] sm:$0xff] }
 0x7b6   : > { %v3482_v7 = vpop.eup %3481  ;;  %v2414_v11 = vadd.f32 1.0, %v3480_v36  ;;  %v2447_v42 = vmul.f32 %v2415_v54, %v2191_v2  ;;  %v2746_v55 = vpop.xlane.xlu0 %2745  ;;  %v2792_v36 = vld [vmem:[%s5541_s6 + $0x18] sm:$0xff] }
 0x7b7   : > { %2677 = vmatprep.mubr.bf16.mxu1 %v2465_v24  ;;  %v2464_v37 = vpack.c.bf16 %v2444_v28, %v2442_v49  ;;  %v2449_v4 = vmul.f32 %v2417_v13, %v2193_v51  ;;  %v2416_v9 = vadd.f32 1.0, %v3482_v7  ;;  %v3484_v63 = vpop.eup %3483  ;;  %v2752_v2 = vpop.xlane.xlu1 %2751 }
 0x7b8   : > { %v3486_v19 = vpop.eup %3485  ;;  %v2446_v1 = vmul.f32 %v2414_v11, %v2190_v34  ;;  %v2419_v23 = vadd.f32 1.0, %v3484_v63 }
 0x7b9   : > { %v2467_v3 = vpack.c.bf16 %v2449_v4, %v2447_v42  ;;  %v2448_v0 = vmul.f32 %v2416_v9, %v2192_v62  ;;  %v2421_v44 = vadd.f32 1.0, %v3486_v19  ;;  %v3488_v27 = vpop.eup %3487  ;;  %v2793_v9 = vld [vmem:[%s5541_s6 + $0x20] sm:$0xff] }
 0x7ba   : > { %2678 = vmatmul.mubr.bf16.gmra.mrb[16].mxu1 %v2464_v37  ;;  %v3490_v56 = vpop.eup %3489  ;;  %v2451_v12 = vmul.f32 %v2419_v23, %v2195_v17  ;;  %v2418_v31 = vadd.f32 1.0, %v3488_v27  ;;  %v2755_v37 = vpop.xlane.xlu0 %2754 }
 0x7bb   : > { %2685 = vmatprep.mubr.bf16.mxu1 %v2467_v3  ;;  %v2466_v59 = vpack.c.bf16 %v2448_v0, %v2446_v1  ;;  %v2453_v50 = vmul.f32 %v2421_v44, %v2197_v21  ;;  %v2420_v60 = vadd.f32 1.0, %v3490_v56  ;;  %v2758_v63 = vpop.xlane.xlu1 %2757  ;;  %v2794_v1 = vld [vmem:[%s5541_s6 + $0x28] sm:$0xff] }
 0x7bc   : > { %v2450_v29 = vmul.f32 %v2418_v31, %v2194_v57  ;;  %v2795_v57 = vld [vmem:[%s5541_s6 + $0x30] sm:$0xff] }
 0x7bd   : > { %v2469_v58 = vpack.c.bf16 %v2453_v50, %v2451_v12  ;;  %v2452_v25 = vmul.f32 %v2420_v60, %v2196_v8 }
 0x7be   : > { %v2761_v12 = vpop.xlane.xlu0 %2760 }
 0x7bf   : > { %v2468_v5 = vpack.c.bf16 %v2452_v25, %v2450_v29  ;;  %v2764_v8 = vpop.xlane.xlu1 %2763  ;;  %v2796_v29 = vld [vmem:[%s5541_s6 + $0x38] sm:$0xff] }
 0x7c2   : > { %2686 = vmatmul.mubr.bf16.gmra.mrb[20].mxu1 %v2466_v59 }
 0x7c3   : > { %2693 = vmatprep.mubr.bf16.mxu1 %v2469_v58 }
 0x7ca   : > { %2694 = vmatmul.mubr.bf16.gmra.mrb[24].mxu1 %v2468_v5 }
 0x855   : > { %v3148_v41 = vpop.f32.mrb[32].mxu0 }
 0x856   : > { %v3149_v43 = vpop.f32.mrb[33].mxu0 }
 0x857   : > { %v3150_v61 = vadd.f32 %v3149_v43, %v3148_v41  ;;  %v3151_v16 = vpop.f32.mrb[34].mxu0 }
 0x858   : > { %v3152_v39 = vpop.f32.mrb[35].mxu0 }
 0x859   : > { %v2640_v45 = vadd.f32 %v3150_v61, %v5396_v14  ;;  %v3153_v47 = vadd.f32 %v3152_v39, %v3151_v16 }
 0x85b   : > { %v2805_v10 = vmul.f32 %v2743_v35, %v2640_v45  ;;  %v2643_v22 = vadd.f32 %v3153_v47, %v5396_v14  ;;  %v2767_v45 = vpop.xlane.xlu0 %2766 }
 0x85d   : > { %v2821_v15 = vadd.f32 %v2805_v10, %v2789_v30  ;;  %v2806_v20 = vmul.f32 %v2746_v55, %v2643_v22  ;;  %v2797_v55 = vld [vmem:[%s5541_s6 + $0x40] sm:$0xff]  ;;  %v2770_v10 = vpop.xlane.xlu1 %2769 }
 0x85e   : > { %v3154_v46 = vpop.f32.mrb[0].mxu1 }
 0x85f   : > { %2837 = vst.msk [vmem:[%s5541_s6] sm:$0xff] %vm2028_vm1, %v2821_v15  ;;  %v2822_v48 = vadd.f32 %v2806_v20, %v2790_v53  ;;  %v3155_v38 = vpop.f32.mrb[1].mxu1  ;;  %v2798_v15 = vld [vmem:[%s5541_s6 + $0x48] sm:$0xff] }
 0x860   : > { %v3156_v33 = vadd.f32 %v3155_v38, %v3154_v46  ;;  %v3157_v40 = vpop.f32.mrb[2].mxu1 }
 0x861   : > { %2838 = vst.msk [vmem:[%s5541_s6 + $0x8] sm:$0xff] %vm2028_vm1, %v2822_v48  ;;  %v3158_v52 = vpop.f32.mrb[3].mxu1 }
 0x862   : > { %v2648_v26 = vadd.f32 %v3156_v33, %v5396_v14  ;;  %v3159_v32 = vadd.f32 %v3158_v52, %v3157_v40 }
 0x864   : > { %v2807_v51 = vmul.f32 %v2749_v18, %v2648_v26  ;;  %v2651_v54 = vadd.f32 %v3159_v32, %v5396_v14  ;;  %v2773_v26 = vpop.xlane.xlu0 %2772 }
 0x866   : > { %v2823_v24 = vadd.f32 %v2807_v51, %v2791_v6  ;;  %v2808_v49 = vmul.f32 %v2752_v2, %v2651_v54  ;;  %v2799_v2 = vld [vmem:[%s5541_s6 + $0x50] sm:$0xff]  ;;  %v2776_v51 = vpop.xlane.xlu1 %2775 }
 0x868   : > { %2839 = vst.msk [vmem:[%s5541_s6 + $0x10] sm:$0xff] %vm2028_vm1, %v2823_v24  ;;  %v2824_v28 = vadd.f32 %v2808_v49, %v2792_v36  ;;  %v2800_v24 = vld [vmem:[%s5541_s6 + $0x58] sm:$0xff] }
 0x86a   : > { %2840 = vst.msk [vmem:[%s5541_s6 + $0x18] sm:$0xff] %vm2028_vm1, %v2824_v28 }
 0x86e   : > { %v3160_v13 = vpop.f32.mrb[4].mxu1 }
 0x86f   : > { %v3161_v7 = vpop.f32.mrb[5].mxu1 }
 0x870   : > { %v3162_v34 = vadd.f32 %v3161_v7, %v3160_v13  ;;  %v3163_v62 = vpop.f32.mrb[6].mxu1 }
 0x871   : > { %v3164_v11 = vpop.f32.mrb[7].mxu1 }
 0x872   : > { %v3165_v42 = vadd.f32 %v3164_v11, %v3163_v62  ;;  %v2656_v4 = vadd.f32 %v3162_v34, %v5396_v14 }
 0x874   : > { %v2809_v19 = vmul.f32 %v2755_v37, %v2656_v4  ;;  %v2659_v3 = vadd.f32 %v3165_v42, %v5396_v14  ;;  %v2779_v42 = vpop.xlane.xlu0 %2778 }
 0x876   : > { %v2825_v0 = vadd.f32 %v2809_v19, %v2793_v9  ;;  %v2810_v23 = vmul.f32 %v2758_v63, %v2659_v3  ;;  %v2801_v63 = vld [vmem:[%s5541_s6 + $0x60] sm:$0xff]  ;;  %v2782_v19 = vpop.xlane.xlu1 %2781 }
 0x878   : > { %2841 = vst.msk [vmem:[%s5541_s6 + $0x20] sm:$0xff] %vm2028_vm1, %v2825_v0  ;;  %v2826_v17 = vadd.f32 %v2810_v23, %v2794_v1  ;;  %v3166_v21 = vpop.f32.mrb[8].mxu1  ;;  %v2802_v0 = vld [vmem:[%s5541_s6 + $0x68] sm:$0xff] }
 0x879   : > { %v3167_v44 = vpop.f32.mrb[9].mxu1 }
 0x87a   : > { %2842 = vst.msk [vmem:[%s5541_s6 + $0x28] sm:$0xff] %vm2028_vm1, %v2826_v17  ;;  %v3168_v27 = vadd.f32 %v3167_v44, %v3166_v21  ;;  %v3169_v59 = vpop.f32.mrb[10].mxu1 }
 0x87b   : > { %v3170_v56 = vpop.f32.mrb[11].mxu1 }
 0x87c   : > { %v3171_v50 = vadd.f32 %v3170_v56, %v3169_v59  ;;  %v2664_v31 = vadd.f32 %v3168_v27, %v5396_v14 }
 0x87e   : > { %v2811_v60 = vmul.f32 %v2761_v12, %v2664_v31  ;;  %v2667_v58 = vadd.f32 %v3171_v50, %v5396_v14  ;;  %v2785_v50 = vpop.xlane.xlu0 %2784 }
 0x880   : > { %v2827_v25 = vadd.f32 %v2811_v60, %v2795_v57  ;;  %v2812_v5 = vmul.f32 %v2764_v8, %v2667_v58  ;;  %v2803_v8 = vld [vmem:[%s5541_s6 + $0x70] sm:$0xff]  ;;  %v2788_v60 = vpop.xlane.xlu1 %2787 }
 0x882   : > { %2843 = vst.msk [vmem:[%s5541_s6 + $0x30] sm:$0xff] %vm2028_vm1, %v2827_v25  ;;  %v2828_v35 = vadd.f32 %v2812_v5, %v2796_v29  ;;  %v2804_v25 = vld [vmem:[%s5541_s6 + $0x78] sm:$0xff] }
 0x884   : > { %2844 = vst.msk [vmem:[%s5541_s6 + $0x38] sm:$0xff] %vm2028_vm1, %v2828_v35 }
 0x885   : > { %v3172_v41 = vpop.f32.mrb[12].mxu1 }
 0x886   : > { %v3173_v43 = vpop.f32.mrb[13].mxu1 }
 0x887   : > { %v3174_v61 = vadd.f32 %v3173_v43, %v3172_v41  ;;  %v3175_v16 = vpop.f32.mrb[14].mxu1 }
 0x888   : > { %v3176_v39 = vpop.f32.mrb[15].mxu1 }
 0x889   : > { %v3177_v47 = vadd.f32 %v3176_v39, %v3175_v16  ;;  %v2672_v30 = vadd.f32 %v3174_v61, %v5396_v14 }
 0x88b   : > { %v2813_v22 = vmul.f32 %v2767_v45, %v2672_v30  ;;  %v2675_v53 = vadd.f32 %v3177_v47, %v5396_v14 }
 0x88d   : > { %v2829_v20 = vadd.f32 %v2813_v22, %v2797_v55  ;;  %v2814_v18 = vmul.f32 %v2770_v10, %v2675_v53  ;;  %v3178_v46 = vpop.f32.mrb[16].mxu1 }
 0x88e   : > { %v3179_v48 = vpop.f32.mrb[17].mxu1 }
 0x88f   : > { %2845 = vst.msk [vmem:[%s5541_s6 + $0x40] sm:$0xff] %vm2028_vm1, %v2829_v20  ;;  %v2830_v38 = vadd.f32 %v2814_v18, %v2798_v15  ;;  %v3180_v33 = vadd.f32 %v3179_v48, %v3178_v46  ;;  %v3181_v40 = vpop.f32.mrb[18].mxu1 }
 0x890   : > { %v3182_v52 = vpop.f32.mrb[19].mxu1 }
 0x891   : > { %2846 = vst.msk [vmem:[%s5541_s6 + $0x48] sm:$0xff] %vm2028_vm1, %v2830_v38  ;;  %v3183_v32 = vadd.f32 %v3182_v52, %v3181_v40  ;;  %v2680_v6 = vadd.f32 %v3180_v33, %v5396_v14 }
 0x893   : > { %v2815_v54 = vmul.f32 %v2773_v26, %v2680_v6  ;;  %v2683_v36 = vadd.f32 %v3183_v32, %v5396_v14 }
 0x895   : > { %v2831_v49 = vadd.f32 %v2815_v54, %v2799_v2  ;;  %v2816_v28 = vmul.f32 %v2776_v51, %v2683_v36  ;;  %v3184_v13 = vpop.f32.mrb[20].mxu1 }
 0x896   : > { %v3185_v7 = vpop.f32.mrb[21].mxu1 }
 0x897   : > { %2847 = vst.msk [vmem:[%s5541_s6 + $0x50] sm:$0xff] %vm2028_vm1, %v2831_v49  ;;  %v2832_v34 = vadd.f32 %v2816_v28, %v2800_v24  ;;  %v3186_v62 = vadd.f32 %v3185_v7, %v3184_v13  ;;  %v3187_v11 = vpop.f32.mrb[22].mxu1 }
 0x898   : > { %v3188_v37 = vpop.f32.mrb[23].mxu1 }
 0x899   : > { %2848 = vst.msk [vmem:[%s5541_s6 + $0x58] sm:$0xff] %vm2028_vm1, %v2832_v34  ;;  %v3189_v4 = vadd.f32 %v3188_v37, %v3187_v11  ;;  %v2688_v9 = vadd.f32 %v3186_v62, %v5396_v14 }
 0x89b   : > { %v2817_v3 = vmul.f32 %v2779_v42, %v2688_v9  ;;  %v2691_v1 = vadd.f32 %v3189_v4, %v5396_v14 }
 0x89d   : > { %v2833_v23 = vadd.f32 %v2817_v3, %v2801_v63  ;;  %v2818_v17 = vmul.f32 %v2782_v19, %v2691_v1  ;;  %v3190_v21 = vpop.f32.mrb[24].mxu1 }
 0x89e   : > { %v3191_v44 = vpop.f32.mrb[25].mxu1 }
 0x89f   : > { %2849 = vst.msk [vmem:[%s5541_s6 + $0x60] sm:$0xff] %vm2028_vm1, %v2833_v23  ;;  %v2834_v27 = vadd.f32 %v2818_v17, %v2802_v0  ;;  %v3192_v59 = vadd.f32 %v3191_v44, %v3190_v21  ;;  %v3193_v56 = vpop.f32.mrb[26].mxu1 }
 0x8a0   : > { %v3194_v12 = vpop.f32.mrb[27].mxu1 }
 0x8a1   : > { %2850 = vst.msk [vmem:[%s5541_s6 + $0x68] sm:$0xff] %vm2028_vm1, %v2834_v27  ;;  %v3195_v31 = vadd.f32 %v3194_v12, %v3193_v56  ;;  %v2696_v57 = vadd.f32 %v3192_v59, %v5396_v14 }
 0x8a3   : > { %v2819_v58 = vmul.f32 %v2785_v50, %v2696_v57  ;;  %v2699_v29 = vadd.f32 %v3195_v31, %v5396_v14 }
 0x8a5   : > { %v2835_v5 = vadd.f32 %v2819_v58, %v2803_v8  ;;  %v2820_v35 = vmul.f32 %v2788_v60, %v2699_v29 }
 0x8a7   : > { %2851 = vst.msk [vmem:[%s5541_s6 + $0x70] sm:$0xff] %vm2028_vm1, %v2835_v5  ;;  %v2836_v41 = vadd.f32 %v2820_v35, %v2804_v25 }
 0x8a9   : > { %2852 = vst.msk [vmem:[%s5541_s6 + $0x78] sm:$0xff] %vm2028_vm1, %v2836_v41 }
 0x8aa PF: > { %s19_s29 = sadd.s32 1, %s3513_s29   ;;  %s5605_s27 = smov %s3509_s28 }
 0x8ab   : > { %p16_p6 = scmp.ge.s32.totalorder %s19_s29, 6   ;;  %s5606_s28 = smov %s5608_s30 }
 0x8ad   :  { %18 = sbr.rel (!%p16_p6) target bundleno = 2 (0x2), region = 114 }

// kernel: model_forward.4
= control target key start
LH: loop header
LB: loop body
LE: loop exit
PB: predicated region body
PF: predicated region fallthrough
CT: control target
= control target key end

     0   :  { %s3414_s18 = smov 0   ;;  %s6103_s0 = inlined_call_operand.vmem [shape: f32[2,64,64], index: 0, kind: input, shape index: {}]   ;;  %s6104_s1 = inlined_call_operand.vmem [shape: f32[1,64,64], index: 1, kind: input, shape index: {}]   ;;  %s6105_s2 = inlined_call_operand.vmem [shape: f32[64,64], index: 2, kind: input, shape index: {}]   ;;  %s6106_s3 = inlined_call_operand.vmem [shape: bf16[64,192], index: 3, kind: input, shape index: {}]   ;;  %s6107_s4 = inlined_call_operand.vmem [shape: f32[1,192], index: 4, kind: input, shape index: {}]   ;;  %s6108_s5 = inlined_call_operand.vmem [shape: f32[2,64,64], index: 5, kind: output, shape index: {}]  }
   0x1 LB: > { %s3033_s19 = sadd.s32 4294967295, %s3379_s18   ;;  %p3037_p0 = scmp.ge.s32.totalorder %s3379_s18, 1  ;;  %s3379_s18 = sphi %s3414_s18, %s15_s18  }
   0x2   : > { %p187_p1 = scmp.lt.s32.totalorder %s3379_s18, 3 }
   0x4   : > { %p188_p2 = pnand %p3037_p0, %p187_p1 }
   0x6   : > { %191 = sbr.rel (%p188_p2) target bundleno = 2712 (0xa98), region = 40 }
   0xd   : > { %v3329_v0 = vld [vmem:[%s6106_s3 + $0x4] ss:$8 sps:$4 sm:$0xff]   ;;  %p215_p3 = scmp.lt.s32.totalorder %s3033_s19, 1  ;;  %v3331_v1 = vld [vmem:[%s6106_s3] ss:$8 sps:$4 sm:$0xff]   ;;  %v3381_v2 = vmov 0   ;;  %v264_v45 = vlaneseq }
   0xe   : > { %359 = vmatprep.mubr.bf16.mxu0 %v3381_v2  ;;  %327 = vmatprep.subr.bf16.mxu0 %v3329_v0  ;;  %v3332_v3 = vld [vmem:[%s6106_s3 + $0x14] ss:$8 sps:$4 sm:$0xff]   ;;  %v3334_v4 = vld [vmem:[%s6106_s3 + $0x10] ss:$8 sps:$4 sm:$0xff]   ;;  %v3335_v5 = vld [vmem:[%s6106_s3 + $0x24] ss:$8 sps:$4 sm:$0xff]  }
   0xf   : > { %s6117_s19 = smov (!%p215_p3, %s3033_s19), 1  ;;  %328 = vmatpush1.bf16.msra.mxu0 %v3331_v1  ;;  %v3337_v6 = vld [vmem:[%s6106_s3 + $0x20] ss:$8 sps:$4 sm:$0xff]   ;;  %v3338_v11 = vld [vmem:[%s6106_s3 + $0x34] ss:$8 sps:$4 sm:$0xff]   ;;  %s3382_s23 = smov 64  }
  0x10   : > { %329 = vmatprep.subr.bf16.mxu0 %v3332_v3  ;;  %s3256_s30 = sshll.u32 %s6117_s19, 6  ;;  %v234_v7 = vld [vmem:[%s6104_s1] sm:$0xff]  ;;  %v235_v10 = vld [vmem:[%s6104_s1 + $0x8] sm:$0xff]  ;;  %v3340_v15 = vld [vmem:[%s6106_s3 + $0x30] ss:$8 sps:$4 sm:$0xff]   ;;  %vm314_vm0 = vcmask 523264  }
  0x11   : > { %s3446_s8 = scalar_lea.vmem %s6103_s0, %s3256_s30  ;;  %v3465_v14 = vld [vmem:[%s6105_s2] sm:$0xff]  ;;  %v3475_v16 = vld [vmem:[%s6105_s2 + $0x10] sm:$0xff]  ;;  %v3480_v17 = vld [vmem:[%s6105_s2 + $0x8] sm:$0xff]  ;;  %v265_v46 = vshrl.u32 %v264_v45, 7  ;;  %s224_s9 = scalar_lea.vmem %s6108_s5, %s3256_s30 }
  0x12   : > { %v226_v8 = vld [vmem:[%s3446_s8] sm:$0xff]  ;;  %v227_v9 = vld [vmem:[%s3446_s8 + $0x8] sm:$0xff]  ;;  %428 = vrot.lane.b32.xlu0 %v3465_v14, %s3382_s23  ;;  %432 = vrot.lane.b32.xlu1 %v3475_v16, %s3382_s23 }
  0x13   : > { %330 = vmatpush1.bf16.msra.mxu0 %v3334_v4  ;;  %v242_v12 = vadd.f32 %v234_v7, %v226_v8  ;;  %v243_v13 = vadd.f32 %v235_v10, %v227_v9  ;;  %v3487_v18 = vld [vmem:[%s6105_s2 + $0x18] sm:$0xff]  ;;  %v228_v20 = vld [vmem:[%s3446_s8 + $0x10] sm:$0xff]  ;;  %v3504_v24 = vld [vmem:[%s6105_s2 + $0x20] sm:$0xff]  ;;  %v266_v47 = vsub.s32 0, %v265_v46  ;;  %v270_v50 = vsub.s32 1, %v265_v46 }
  0x14   : > { %331 = vmatprep.subr.bf16.mxu0 %v3335_v5  ;;  %v229_v21 = vld [vmem:[%s3446_s8 + $0x18] sm:$0xff]  ;;  %v236_v22 = vld [vmem:[%s6104_s1 + $0x10] sm:$0xff]  ;;  %v3509_v25 = vld [vmem:[%s6105_s2 + $0x28] sm:$0xff] }
  0x15   : > { %v250_v19 = vpack.c.bf16 %v243_v13, %v242_v12  ;;  %v237_v23 = vld [vmem:[%s6104_s1 + $0x18] sm:$0xff]  ;;  %v244_v26 = vadd.f32 %v236_v22, %v228_v20  ;;  %v3520_v28 = vld [vmem:[%s6105_s2 + $0x30] sm:$0xff]  ;;  %v230_v31 = vld [vmem:[%s3446_s8 + $0x20] sm:$0xff] }
  0x16   : > { %430 = vrot.lane.b32.xlu0 %v3480_v17, %s3382_s23  ;;  %434 = vrot.lane.b32.xlu1 %v3487_v18, %s3382_s23  ;;  %v245_v27 = vadd.f32 %v237_v23, %v229_v21  ;;  %v3525_v29 = vld [vmem:[%s6105_s2 + $0x38] sm:$0xff]  ;;  %v231_v32 = vld [vmem:[%s3446_s8 + $0x28] sm:$0xff] }
  0x17   : > { %332 = vmatpush1.bf16.msra.mxu0 %v3337_v6  ;;  %v238_v33 = vld [vmem:[%s6104_s1 + $0x20] sm:$0xff]  ;;  %v239_v34 = vld [vmem:[%s6104_s1 + $0x28] sm:$0xff]  ;;  %v232_v38 = vld [vmem:[%s3446_s8 + $0x30] sm:$0xff] }
  0x18   : > { %333 = vmatprep.subr.bf16.mxu0 %v3338_v11  ;;  %v251_v30 = vpack.c.bf16 %v245_v27, %v244_v26  ;;  %v246_v35 = vadd.f32 %v238_v33, %v230_v31  ;;  %v247_v36 = vadd.f32 %v239_v34, %v231_v32  ;;  %v233_v39 = vld [vmem:[%s3446_s8 + $0x38] sm:$0xff]  ;;  %v240_v40 = vld [vmem:[%s6104_s1 + $0x30] sm:$0xff]  ;;  %v262_v48 = vld [vmem:[%s6107_s4] sm:$0x3] }
  0x19   : > { %v241_v41 = vld [vmem:[%s6104_s1 + $0x38] sm:$0xff]  ;;  %v248_v42 = vadd.f32 %v240_v40, %v232_v38  ;;  %v3555_v51 = vrot.slane %v262_v48, %v266_v47  ;;  %v3557_v53 = vrot.slane %v262_v48, %v270_v50 }
  0x1a   : > { %436 = vrot.lane.b32.xlu0 %v3504_v24, %s3382_s23  ;;  %438 = vrot.lane.b32.xlu1 %v3509_v25, %s3382_s23  ;;  %v252_v37 = vpack.c.bf16 %v247_v36, %v246_v35  ;;  %v249_v43 = vadd.f32 %v241_v41, %v233_v39 }
  0x1b   : > { %334 = vmatpush1.bf16.msra.mxu0 %v3340_v15 }
  0x1c   : > { %v253_v44 = vpack.c.bf16 %v249_v43, %v248_v42 }
  0x1e   : > { %3050 = vmatmul.mubr.msk.bf16.vlgmr.msra.gmra.mrb[0].mxu0 %vm314_vm0, %v250_v19  ;;  %440 = vrot.lane.b32.xlu0 %v3520_v28, %s3382_s23 }
  0x1f   : > { %369 = vmatprep.mubr.bf16.mxu0 %v3381_v2  ;;  %442 = vrot.lane.b32.xlu1 %v3525_v29, %s3382_s23 }
  0x26   : > { %3051 = vmatmul.mubr.msk.bf16.gmra.mrb[4].mxu0 %vm314_vm0, %v251_v30 }
  0x27   : > { %379 = vmatprep.mubr.bf16.mxu0 %v3381_v2 }
  0x2e   : > { %3052 = vmatmul.mubr.msk.bf16.gmra.mrb[8].mxu0 %vm314_vm0, %v252_v37 }
  0x2f   : > { %389 = vmatprep.mubr.bf16.mxu0 %v3381_v2 }
  0x36   : > { %3053 = vmatmul.mubr.msk.bf16.gmra.mrb[12].mxu0 %vm314_vm0, %v253_v44 }
  0x84   : > { %v429_v49 = vpop.permute.xlu0 %428  ;;  %v433_v62 = vpop.permute.xlu1 %432 }
  0x88   : > { %v431_v57 = vpop.permute.xlu0 %430  ;;  %v435_v10 = vpop.permute.xlu1 %434 }
  0x8c   : > { %v439_v31 = vpop.permute.xlu1 %438 }
  0x91   : > { %v443_v48 = vpop.permute.xlu1 %442 }
  0xf1   : > { %v361_v52 = vpop.f32.mrb[0].mxu0 }
  0xf2   : > { %v362_v54 = vadd.f32 %v361_v52, %v3555_v51  ;;  %v363_v55 = vpop.f32.mrb[1].mxu0 }
  0xf3   : > { %v365_v56 = vpop.f32.mrb[2].mxu0  ;;  %v364_v60 = vadd.f32 %v363_v55, %v3557_v53 }
  0xf4   : > { %v366_v58 = vadd.f32 %v365_v56, %v3555_v51  ;;  %v367_v59 = vpop.f32.mrb[3].mxu0  ;;  %v408_v63 = vmul.f32 %v3465_v14, %v362_v54  ;;  %v452_v0 = vmul.f32 %v429_v49, %v362_v54 }
  0xf5   : > { %v368_v61 = vadd.f32 %v367_v59, %v3557_v53 }
  0xf6   : > { %v409_v1 = vmul.f32 %v3480_v17, %v366_v58  ;;  %v453_v2 = vmul.f32 %v431_v57, %v366_v58 }
  0xf7   : > { %v3565_v3 = vpack.c.bf16 %v368_v61, %v364_v60 }
  0xf8   : > { %v460_v4 = vpack.c.bf16 %v453_v2, %v452_v0  ;;  %v416_v5 = vpack.c.bf16 %v409_v1, %v408_v63 }
  0xf9   : > { %v371_v6 = vpop.f32.mrb[4].mxu0  ;;  %3290 = vmatprep.subr.bf16.mxu0 %v3565_v3 }
  0xfa   : > { %v372_v7 = vadd.f32 %v371_v6, %v3555_v51  ;;  %v373_v8 = vpop.f32.mrb[5].mxu0  ;;  %3291 = vmatpush3.bf16.msra.mxu0 %v3565_v3  ;;  %472 = vrot.lane.b32.xlu0 %v460_v4, %s3382_s23 }
  0xfb   : > { %3282 = vmatprep.mubr.msk.bf16.mxu1 %vm314_vm0, %v416_v5  ;;  %v375_v9 = vpop.f32.mrb[6].mxu0  ;;  %v374_v13 = vadd.f32 %v373_v8, %v3557_v53 }
  0xfc   : > { %v376_v11 = vadd.f32 %v375_v9, %v3555_v51  ;;  %v377_v12 = vpop.f32.mrb[7].mxu0  ;;  %v3576_v15 = vmul.f32 %v3475_v16, %v372_v7  ;;  %v454_v17 = vmul.f32 %v433_v62, %v372_v7  ;;  %v437_v16 = vpop.permute.xlu0 %436 }
  0xfd   : > { %v378_v14 = vadd.f32 %v377_v12, %v3557_v53 }
  0xfe   : > { %v3579_v19 = vmul.f32 %v3487_v18, %v376_v11  ;;  %v455_v20 = vmul.f32 %v435_v10, %v376_v11 }
  0xff   : > { %v3581_v21 = vpack.c.bf16 %v378_v14, %v374_v13 }
 0x100   : > { %v417_v22 = vpack.c.bf16 %v3579_v19, %v3576_v15  ;;  %v461_v23 = vpack.c.bf16 %v455_v20, %v454_v17  ;;  %v441_v46 = vpop.permute.xlu0 %440 }
 0x101   : > { %v381_v26 = vpop.f32.mrb[8].mxu0  ;;  %3292 = vmatprep.subr.bf16.mxu0 %v3581_v21 }
 0x102   : > { %v382_v27 = vadd.f32 %v381_v26, %v3555_v51  ;;  %v383_v30 = vpop.f32.mrb[9].mxu0  ;;  %474 = vrot.lane.b32.xlu1 %v461_v23, %s3382_s23  ;;  %3293 = vmatpush3.bf16.msra.mxu0 %v3581_v21 }
 0x103   : > { %v385_v18 = vpop.f32.mrb[10].mxu0  ;;  %v384_v34 = vadd.f32 %v383_v30, %v3557_v53 }
 0x104   : > { %v386_v32 = vadd.f32 %v385_v18, %v3555_v51  ;;  %v387_v33 = vpop.f32.mrb[11].mxu0  ;;  %v412_v36 = vmul.f32 %v3504_v24, %v382_v27  ;;  %v456_v37 = vmul.f32 %v437_v16, %v382_v27 }
 0x105   : > { %v388_v35 = vadd.f32 %v387_v33, %v3557_v53 }
 0x106   : > { %v413_v38 = vmul.f32 %v3509_v25, %v386_v32  ;;  %v457_v39 = vmul.f32 %v439_v31, %v386_v32 }
 0x107   : > { %v466_v40 = vpack.c.bf16 %v388_v35, %v384_v34 }
 0x108   : > { %v418_v41 = vpack.c.bf16 %v413_v38, %v412_v36  ;;  %v462_v42 = vpack.c.bf16 %v457_v39, %v456_v37 }
 0x109   : > { %v391_v43 = vpop.f32.mrb[12].mxu0  ;;  %3294 = vmatprep.subr.bf16.mxu0 %v466_v40 }
 0x10a   : > { %v392_v44 = vadd.f32 %v391_v43, %v3555_v51  ;;  %v393_v45 = vpop.f32.mrb[13].mxu0  ;;  %3295 = vmatpush3.bf16.msra.mxu0 %v466_v40  ;;  %476 = vrot.lane.b32.xlu0 %v462_v42, %s3382_s23 }
 0x10b   : > { %v395_v47 = vpop.f32.mrb[14].mxu0  ;;  %v394_v25 = vadd.f32 %v393_v45, %v3557_v53 }
 0x10c   : > { %v396_v24 = vadd.f32 %v395_v47, %v3555_v51  ;;  %v397_v49 = vpop.f32.mrb[15].mxu0  ;;  %v414_v52 = vmul.f32 %v3520_v28, %v392_v44  ;;  %v458_v54 = vmul.f32 %v441_v46, %v392_v44 }
 0x10d   : > { %v398_v50 = vadd.f32 %v397_v49, %v3557_v53 }
 0x10e   : > { %v415_v55 = vmul.f32 %v3525_v29, %v396_v24  ;;  %v459_v56 = vmul.f32 %v443_v48, %v396_v24 }
 0x10f   : > { %v467_v57 = vpack.c.bf16 %v398_v50, %v394_v25 }
 0x110   : > { %v419_v58 = vpack.c.bf16 %v415_v55, %v414_v52  ;;  %v463_v59 = vpack.c.bf16 %v459_v56, %v458_v54  ;;  %v6109_v56 = vmov 0.0  }
 0x111   : > { %3296 = vmatprep.subr.bf16.mxu0 %v467_v57 }
 0x112   : > { %478 = vrot.lane.b32.xlu1 %v463_v59, %s3382_s23  ;;  %3297 = vmatpush3.bf16.msra.mxu0 %v467_v57 }
 0x16c   : > { %v473_v60 = vpop.permute.xlu0 %472 }
 0x16d   : > { %3314 = vmatprep.subr.msk.bf16.mxu1 %vm314_vm0, %v473_v60  ;;  %v493_v51 = vsel %vm314_vm0, %v473_v60, 0 }
 0x16e   : > { %3275 = vmatpush3.bf16.xpose.msra.mxu1 %v493_v51 }
 0x174   : > { %v475_v53 = vpop.permute.xlu1 %474 }
 0x175   : > { %3315 = vmatprep.subr.msk.bf16.mxu1 %vm314_vm0, %v475_v53  ;;  %v496_v28 = vsel %vm314_vm0, %v475_v53, 0 }
 0x176   : > { %3277 = vmatpush3.bf16.xpose.msra.mxu1 %v496_v28 }
 0x17c   : > { %v477_v29 = vpop.permute.xlu0 %476 }
 0x17d   : > { %3316 = vmatprep.subr.msk.bf16.mxu1 %vm314_vm0, %v477_v29  ;;  %v499_v61 = vsel %vm314_vm0, %v477_v29, 0 }
 0x17e   : > { %3279 = vmatpush3.bf16.xpose.msra.mxu1 %v499_v61 }
 0x184   : > { %v479_v62 = vpop.permute.xlu1 %478 }
 0x185   : > { %3317 = vmatprep.subr.msk.bf16.mxu1 %vm314_vm0, %v479_v62  ;;  %v502_v63 = vsel %vm314_vm0, %v479_v62, 0 }
 0x186   : > { %3281 = vmatpush3.bf16.xpose.msra.mxu1 %v502_v63 }
 0x187   : > { %3306 = vmatprep.subr.bf16.mxu1 %v3565_v3 }
 0x18d   : > { %3283 = vmatmul.mubr.msk.bf16.vlgmr.msra.gmra.mrb[0].mxu1 %vm314_vm0, %v417_v22 }
 0x18e   : > { %3286 = vmatprep.mubr.msk.bf16.mxu1 %vm314_vm0, %v418_v41  ;;  %3310 = vmatpush3.bf16.msra.mxu1 %v3565_v3 }
 0x18f   : > { %3307 = vmatprep.subr.bf16.mxu1 %v3581_v21 }
 0x192   : > { %3311 = vmatpush3.bf16.msra.mxu1 %v3581_v21 }
 0x193   : > { %3308 = vmatprep.subr.bf16.mxu1 %v466_v40 }
 0x195   : > { %3287 = vmatmul.mubr.msk.bf16.gmra.mrb[4].mxu1 %vm314_vm0, %v419_v58 }
 0x196   : > { %3312 = vmatpush3.bf16.msra.mxu1 %v466_v40 }
 0x197   : > { %3309 = vmatprep.subr.bf16.mxu1 %v467_v57 }
 0x19a   : > { %3313 = vmatpush3.bf16.msra.mxu1 %v467_v57 }
 0x260   : > { %v3284_v0 = vpop.f32.mrb[0].mxu1 }
 0x261   : > { %v3617_v1 = vmul.f32 0.125, %v3284_v0  ;;  %v538_v2 = vpop.f32.mrb[1].mxu1 }
 0x262   : > { %v3619_v4 = vmul.f32 0.125, %v538_v2  ;;  %v3285_v5 = vpop.f32.mrb[2].mxu1 }
 0x263   : > { %v541_v6 = vpop.f32.mrb[3].mxu1  ;;  %v583_v3 = vsel %vm314_vm0, %v3617_v1, -inf  ;;  %v3623_v7 = vmul.f32 0.125, %v3285_v5  ;;  %v607_v9 = vsel %vm314_vm0, %v3617_v1, inf }
 0x264   : > { %6113 = vst [vmem:[#allocation2_spill] sm:$0xff] %v3619_v4  ;;  %584 = vmax.xlane.f32.xlu1 %v583_v3  ;;  %v577_v8 = vsel %vm314_vm0, %v3619_v4, -inf  ;;  %v3631_v14 = vmul.f32 0.125, %v541_v6  ;;  %v601_v17 = vsel %vm314_vm0, %v3619_v4, inf }
 0x265   : > { %578 = vmax.xlane.f32.xlu0 %v577_v8  ;;  %v586_v11 = vsel %vm314_vm0, %v3623_v7, -inf  ;;  %v610_v19 = vsel %vm314_vm0, %v3623_v7, inf }
 0x266   : > { %v580_v21 = vsel %vm314_vm0, %v3631_v14, -inf  ;;  %v604_v23 = vsel %vm314_vm0, %v3631_v14, inf }
 0x268   : > { %608 = vmin.xlane.f32.xlu1 %v607_v9  ;;  %v3288_v10 = vpop.f32.mrb[4].mxu1 }
 0x269   : > { %587 = vmax.xlane.f32.xlu0 %v586_v11  ;;  %v554_v12 = vpop.f32.mrb[5].mxu1  ;;  %v3637_v20 = vmul.f32 0.125, %v3288_v10 }
 0x26a   : > { %v3289_v13 = vpop.f32.mrb[6].mxu1  ;;  %v3641_v22 = vmul.f32 0.125, %v554_v12 }
 0x26b   : > { %v557_v15 = vpop.f32.mrb[7].mxu1  ;;  %v595_v26 = vsel %vm314_vm0, %v3637_v20, -inf  ;;  %v3647_v27 = vmul.f32 0.125, %v3289_v13  ;;  %v619_v32 = vsel %vm314_vm0, %v3637_v20, inf }
 0x26c   : > { %602 = vmin.xlane.f32.xlu1 %v601_v17  ;;  %v589_v30 = vsel %vm314_vm0, %v3641_v22, -inf  ;;  %v613_v16 = vsel %vm314_vm0, %v3641_v22, inf  ;;  %v3653_v18 = vmul.f32 0.125, %v557_v15 }
 0x26d   : > { %611 = vmin.xlane.f32.xlu0 %v610_v19  ;;  %v598_v31 = vsel %vm314_vm0, %v3647_v27, -inf  ;;  %v622_v35 = vsel %vm314_vm0, %v3647_v27, inf }
 0x26e   : > { %v592_v33 = vsel %vm314_vm0, %v3653_v18, -inf  ;;  %v616_v34 = vsel %vm314_vm0, %v3653_v18, inf }
 0x270   : > { %581 = vmax.xlane.f32.xlu1 %v580_v21 }
 0x271   : > { %605 = vmin.xlane.f32.xlu0 %v604_v23 }
 0x274   : > { %596 = vmax.xlane.f32.xlu1 %v595_v26 }
 0x275   : > { %590 = vmax.xlane.f32.xlu0 %v589_v30 }
 0x278   : > { %614 = vmin.xlane.f32.xlu1 %v613_v16 }
 0x279   : > { %599 = vmax.xlane.f32.xlu0 %v598_v31 }
 0x27c   : > { %620 = vmin.xlane.f32.xlu1 %v619_v32 }
 0x27d   : > { %593 = vmax.xlane.f32.xlu0 %v592_v33 }
 0x281   : > { %617 = vmin.xlane.f32.xlu0 %v616_v34 }
 0x285   : > { %623 = vmin.xlane.f32.xlu0 %v622_v35 }
 0x2f1   : > { %v585_v36 = vpop.xlane.xlu1 %584 }
 0x2f2   : > { %v579_v37 = vpop.xlane.xlu0 %578  ;;  %v3665_v38 = vadd.f32 1.0, %v585_v36 }
 0x2f3   : > { %v3671_v42 = vadd.f32 1.0, %v579_v37 }
 0x2f5   : > { %v3667_v39 = vpop.xlane.xlu1 %608 }
 0x2f6   : > { %v635_v40 = vsub.f32 %v3665_v38, %v3667_v39  ;;  %v588_v41 = vpop.xlane.xlu0 %587 }
 0x2f7   : > { %v3673_v46 = vadd.f32 1.0, %v588_v41 }
 0x2f8   : > { %v643_v43 = vmul.f32 0.25, %v635_v40  ;;  %v675_v44 = vmul.f32 0.75, %v635_v40  ;;  %v659_v45 = vmul.f32 0.5, %v635_v40 }
 0x2f9   : > { %v3675_v47 = vpop.xlane.xlu1 %602 }
 0x2fa   : > { %v633_v48 = vsub.f32 %v3671_v42, %v3675_v47  ;;  %v3679_v24 = vpop.xlane.xlu0 %611  ;;  %v3682_v49 = vadd.f32 %v643_v43, %v3667_v39  ;;  %v3685_v25 = vadd.f32 %v675_v44, %v3667_v39  ;;  %v3694_v52 = vadd.f32 %v659_v45, %v3667_v39 }
 0x2fb   : > { %v636_v50 = vsub.f32 %v3673_v46, %v3679_v24 }
 0x2fc   : > { %vm691_vm1 = vcmp.ge.f32.partialorder %v3617_v1, %v3682_v49  ;;  %vm803_vm2 = vcmp.ge.f32.partialorder %v3617_v1, %v3685_v25  ;;  %v641_v54 = vmul.f32 0.25, %v633_v48  ;;  %vm747_vm3 = vcmp.ge.f32.partialorder %v3617_v1, %v3694_v52 }
 0x2fd   : > { %v582_v55 = vpop.xlane.xlu1 %581  ;;  %v3060_v57 = vsel %vm691_vm1, 1.0, %v6109_v56  ;;  %v644_v58 = vmul.f32 0.25, %v636_v50  ;;  %v3076_v53 = vsel %vm803_vm2, 1.0, %v6109_v56  ;;  %v676_v29 = vmul.f32 0.75, %v636_v50 }
 0x2fe   : > { %v3697_v59 = vadd.f32 1.0, %v582_v55  ;;  %v3699_v60 = vpop.xlane.xlu0 %605  ;;  %v719_v51 = vsel %vm314_vm0, %v3060_v57, 0.0  ;;  %v660_v61 = vmul.f32 0.5, %v636_v50  ;;  %v3711_v63 = vadd.f32 %v641_v54, %v3675_v47 }
 0x2ff   : > { %720 = vadd.xlane.f32.xlu1 %v719_v51  ;;  %v3704_v28 = vadd.f32 %v644_v58, %v3679_v24  ;;  %v673_v0 = vmul.f32 0.75, %v633_v48  ;;  %v3716_v5 = vadd.f32 %v676_v29, %v3679_v24  ;;  %v831_v8 = vsel %vm314_vm0, %v3076_v53, 0.0 }
 0x300   : > { %v634_v62 = vsub.f32 %v3697_v59, %v3699_v60  ;;  %v3719_v6 = vadd.f32 %v660_v61, %v3679_v24  ;;  %v3068_v11 = vsel %vm747_vm3, 1.0, %v6109_v56  ;;  %v657_v12 = vmul.f32 0.5, %v633_v48 }
 0x301   : > { %v597_v2 = vpop.xlane.xlu1 %596  ;;  %vm692_vm4 = vcmp.ge.f32.partialorder %v3623_v7, %v3704_v28  ;;  %vm804_vm5 = vcmp.ge.f32.partialorder %v3623_v7, %v3716_v5  ;;  %vm689_vm6 = vcmp.ge.f32.partialorder %v3619_v4, %v3711_v63  ;;  %v3731_v15 = vadd.f32 %v673_v0, %v3675_v47 }
 0x302   : > { %v591_v3 = vpop.xlane.xlu0 %590  ;;  %v3061_v9 = vsel %vm692_vm4, 1.0, %v6109_v56  ;;  %v3077_v13 = vsel %vm804_vm5, 1.0, %v6109_v56  ;;  %v642_v17 = vmul.f32 0.25, %v634_v62  ;;  %vm748_vm7 = vcmp.ge.f32.partialorder %v3623_v7, %v3719_v6 }
 0x303   : > { %832 = vadd.xlane.f32.xlu1 %v831_v8  ;;  %v722_v10 = vsel %vm314_vm0, %v3061_v9, 0.0  ;;  %v775_v23 = vsel %vm314_vm0, %v3068_v11, 0.0  ;;  %v3741_v30 = vadd.f32 1.0, %v591_v3  ;;  %v834_v16 = vsel %vm314_vm0, %v3077_v13, 0.0 }
 0x304   : > { %723 = vadd.xlane.f32.xlu0 %v722_v10  ;;  %v3739_v26 = vadd.f32 %v642_v17, %v3699_v60  ;;  %v3058_v31 = vsel %vm689_vm6, 1.0, %v6109_v56  ;;  %v674_v32 = vmul.f32 0.75, %v634_v62  ;;  %v3745_v33 = vadd.f32 1.0, %v597_v2 }
 0x305   : > { %v3733_v19 = vpop.xlane.xlu1 %614  ;;  %v3069_v34 = vsel %vm748_vm7, 1.0, %v6109_v56  ;;  %vm801_vm8 = vcmp.ge.f32.partialorder %v3619_v4, %v3731_v15  ;;  %v3751_v35 = vadd.f32 %v657_v12, %v3675_v47  ;;  %v658_v40 = vmul.f32 0.5, %v634_v62 }
 0x306   : > { %v600_v21 = vpop.xlane.xlu0 %599  ;;  %vm690_vm9 = vcmp.ge.f32.partialorder %v3631_v14, %v3739_v26  ;;  %v3758_v37 = vadd.f32 %v674_v32, %v3699_v60  ;;  %v713_v44 = vsel %vm314_vm0, %v3058_v31, 0.0  ;;  %v637_v45 = vsub.f32 %v3741_v30, %v3733_v19 }
 0x307   : > { %776 = vadd.xlane.f32.xlu1 %v775_v23  ;;  %v778_v48 = vsel %vm314_vm0, %v3069_v34, 0.0  ;;  %v3074_v50 = vsel %vm801_vm8, 1.0, %v6109_v56  ;;  %v3059_v54 = vsel %vm690_vm9, 1.0, %v6109_v56  ;;  %vm745_vm10 = vcmp.ge.f32.partialorder %v3619_v4, %v3751_v35 }
 0x308   : > { %835 = vadd.xlane.f32.xlu0 %v834_v16  ;;  %vm802_vm11 = vcmp.ge.f32.partialorder %v3631_v14, %v3758_v37  ;;  %v3777_v58 = vadd.f32 %v658_v40, %v3699_v60  ;;  %v825_v53 = vsel %vm314_vm0, %v3074_v50, 0.0  ;;  %v716_v62 = vsel %vm314_vm0, %v3059_v54, 0.0 }
 0x309   : > { %v3753_v36 = vpop.xlane.xlu1 %620  ;;  %v3066_v0 = vsel %vm745_vm10, 1.0, %v6109_v56  ;;  %v3075_v2 = vsel %vm802_vm11, 1.0, %v6109_v56  ;;  %v645_v8 = vmul.f32 0.25, %v637_v45  ;;  %v3795_v9 = vadd.f32 1.0, %v600_v21 }
 0x30a   : > { %v3762_v41 = vsub.f32 %v3745_v33, %v3753_v36  ;;  %v594_v43 = vpop.xlane.xlu0 %593  ;;  %vm746_vm13 = vcmp.ge.f32.partialorder %v3631_v14, %v3777_v58  ;;  %v769_v12 = vsel %vm314_vm0, %v3066_v0, 0.0  ;;  %v828_v17 = vsel %vm314_vm0, %v3075_v2, 0.0 }
 0x30b   : > { %714 = vadd.xlane.f32.xlu1 %v713_v44  ;;  %v3785_v61 = vadd.f32 1.0, %v594_v43  ;;  %v3067_v21 = vsel %vm746_vm13, 1.0, %v6109_v56  ;;  %v3812_v16 = vadd.f32 %v645_v8, %v3733_v19  ;;  %v677_v31 = vmul.f32 0.75, %v637_v45 }
 0x30c   : > { %779 = vadd.xlane.f32.xlu0 %v778_v48  ;;  %v647_v55 = vmul.f32 0.25, %v3762_v41  ;;  %v679_v57 = vmul.f32 0.75, %v3762_v41  ;;  %v772_v44 = vsel %vm314_vm0, %v3067_v21, 0.0 }
 0x30d   : > { %vm693_vm15 = vcmp.ge.f32.partialorder %v3641_v22, %v3812_v16 }
 0x30e   : > { %v3779_v51 = vpop.xlane.xlu0 %617  ;;  %v3783_v29 = vadd.f32 %v647_v55, %v3753_v36  ;;  %v3793_v3 = vadd.f32 %v679_v57, %v3753_v36  ;;  %v3826_v55 = vadd.f32 %v677_v31, %v3733_v19  ;;  %v661_v57 = vmul.f32 0.5, %v637_v45 }
 0x30f   : > { %826 = vadd.xlane.f32.xlu1 %v825_v53  ;;  %v638_v10 = vsub.f32 %v3785_v61, %v3779_v51 }
 0x310   : > { %717 = vadd.xlane.f32.xlu0 %v716_v62  ;;  %vm695_vm12 = vcmp.ge.f32.partialorder %v3637_v20, %v3783_v29  ;;  %vm807_vm14 = vcmp.ge.f32.partialorder %v3637_v20, %v3793_v3  ;;  %vm805_vm3 = vcmp.ge.f32.partialorder %v3641_v22, %v3826_v55 }
 0x311   : > { %v3064_v23 = vsel %vm695_vm12, 1.0, %v6109_v56  ;;  %v646_v40 = vmul.f32 0.25, %v638_v10  ;;  %v3080_v48 = vsel %vm807_vm14, 1.0, %v6109_v56  ;;  %v678_v62 = vmul.f32 0.75, %v638_v10 }
 0x312   : > { %v3801_v11 = vpop.xlane.xlu0 %623  ;;  %v731_v43 = vsel %vm314_vm0, %v3064_v23, 0.0  ;;  %v843_v0 = vsel %vm314_vm0, %v3080_v48, 0.0  ;;  %v663_v23 = vmul.f32 0.5, %v3762_v41  ;;  %v662_v31 = vmul.f32 0.5, %v638_v10 }
 0x313   : > { %v640_v13 = vsub.f32 %v3795_v9, %v3801_v11  ;;  %770 = vadd.xlane.f32.xlu1 %v769_v12  ;;  %v3833_v53 = vadd.f32 %v646_v40, %v3779_v51  ;;  %v3062_v12 = vsel %vm693_vm15, 1.0, %v6109_v56  ;;  %v3849_v21 = vadd.f32 %v678_v62, %v3779_v51 }
 0x314   : > { %829 = vadd.xlane.f32.xlu0 %v828_v17  ;;  %v3843_v17 = vadd.f32 %v661_v57, %v3733_v19  ;;  %v3078_v40 = vsel %vm805_vm3, 1.0, %v6109_v56  ;;  %v3858_v41 = vadd.f32 %v663_v23, %v3753_v36  ;;  %v3863_v10 = vadd.f32 %v662_v31, %v3779_v51 }
 0x315   : > { %v648_v32 = vmul.f32 0.25, %v640_v13  ;;  %v680_v34 = vmul.f32 0.75, %v640_v13  ;;  %vm694_vm4 = vcmp.ge.f32.partialorder %v3653_v18, %v3833_v53  ;;  %vm806_vm6 = vcmp.ge.f32.partialorder %v3653_v18, %v3849_v21 }
 0x316   : > { %vm749_vm5 = vcmp.ge.f32.partialorder %v3641_v22, %v3843_v17  ;;  %v837_v48 = vsel %vm314_vm0, %v3078_v40, 0.0  ;;  %vm751_vm7 = vcmp.ge.f32.partialorder %v3637_v20, %v3858_v41  ;;  %vm750_vm8 = vcmp.ge.f32.partialorder %v3653_v18, %v3863_v10 }
 0x317   : > { %732 = vadd.xlane.f32.xlu1 %v731_v43  ;;  %v3818_v50 = vadd.f32 %v648_v32, %v3801_v11  ;;  %v3821_v54 = vadd.f32 %v680_v34, %v3801_v11  ;;  %v725_v32 = vsel %vm314_vm0, %v3062_v12, 0.0  ;;  %v3063_v43 = vsel %vm694_vm4, 1.0, %v6109_v56 }
 0x318   : > { %773 = vadd.xlane.f32.xlu0 %v772_v44  ;;  %v664_v44 = vmul.f32 0.5, %v640_v13  ;;  %v728_v57 = vsel %vm314_vm0, %v3063_v43, 0.0  ;;  %v3070_v62 = vsel %vm749_vm5, 1.0, %v6109_v56  ;;  %v3072_v12 = vsel %vm751_vm7, 1.0, %v6109_v56 }
 0x319   : > { %vm696_vm1 = vcmp.ge.f32.partialorder %v3647_v27, %v3818_v50  ;;  %vm808_vm2 = vcmp.ge.f32.partialorder %v3647_v27, %v3821_v54  ;;  %v781_v13 = vsel %vm314_vm0, %v3070_v62, 0.0  ;;  %v787_v23 = vsel %vm314_vm0, %v3072_v12, 0.0 }
 0x31a   : > { %v3065_v2 = vsel %vm696_vm1, 1.0, %v6109_v56  ;;  %v3081_v45 = vsel %vm808_vm2, 1.0, %v6109_v56 }
 0x31b   : > { %844 = vadd.xlane.f32.xlu1 %v843_v0  ;;  %v734_v8 = vsel %vm314_vm0, %v3065_v2, 0.0  ;;  %v846_v34 = vsel %vm314_vm0, %v3081_v45, 0.0  ;;  %v3079_v0 = vsel %vm806_vm6, 1.0, %v6109_v56  ;;  %v3874_v2 = vadd.f32 %v664_v44, %v3801_v11 }
 0x31c   : > { %735 = vadd.xlane.f32.xlu0 %v734_v8  ;;  %v840_v8 = vsel %vm314_vm0, %v3079_v0, 0.0  ;;  %v3071_v45 = vsel %vm750_vm8, 1.0, %v6109_v56 }
 0x31d   : > { %vm752_vm9 = vcmp.ge.f32.partialorder %v3647_v27, %v3874_v2  ;;  %v784_v31 = vsel %vm314_vm0, %v3071_v45, 0.0 }
 0x31f   : > { %726 = vadd.xlane.f32.xlu1 %v725_v32  ;;  %v3073_v32 = vsel %vm752_vm9, 1.0, %v6109_v56 }
 0x320   : > { %847 = vadd.xlane.f32.xlu0 %v846_v34  ;;  %v790_v34 = vsel %vm314_vm0, %v3073_v32, 0.0 }
 0x323   : > { %838 = vadd.xlane.f32.xlu1 %v837_v48 }
 0x324   : > { %729 = vadd.xlane.f32.xlu0 %v728_v57 }
 0x327   : > { %782 = vadd.xlane.f32.xlu1 %v781_v13 }
 0x328   : > { %841 = vadd.xlane.f32.xlu0 %v840_v8 }
 0x32b   : > { %788 = vadd.xlane.f32.xlu1 %v787_v23 }
 0x32c   : > { %785 = vadd.xlane.f32.xlu0 %v784_v31 }
 0x330   : > { %791 = vadd.xlane.f32.xlu0 %v790_v34 }
 0x38c   : > { %v721_v40 = vpop.xlane.xlu1 %720 }
 0x38d   : > { %vm739_vm10 = vcmp.ge.f32.partialorder %v721_v40, 32.0 }
 0x38e   : > { %v859_v57 = vsel %vm739_vm10, %v3682_v49, %v3667_v39 }
 0x390   : > { %v833_v43 = vpop.xlane.xlu1 %832 }
 0x391   : > { %v724_v44 = vpop.xlane.xlu0 %723  ;;  %vm851_vm11 = vcmp.ge.f32.partialorder %v833_v43, 32.0 }
 0x392   : > { %v883_v62 = vsel %vm851_vm11, %v3665_v38, %v3685_v25  ;;  %vm740_vm13 = vcmp.ge.f32.partialorder %v724_v44, 32.0 }
 0x393   : > { %v860_v38 = vsel %vm740_vm13, %v3704_v28, %v3679_v24 }
 0x394   : > { %v777_v48 = vpop.xlane.xlu1 %776 }
 0x395   : > { %vm795_vm12 = vcmp.ge.f32.partialorder %v777_v48, 32.0  ;;  %v836_v0 = vpop.xlane.xlu0 %835 }
 0x396   : > { %v867_v13 = vsel %vm795_vm12, %v3694_v52, %v859_v57  ;;  %v891_v8 = vsel %vm795_vm12, %v883_v62, %v3694_v52  ;;  %vm852_vm14 = vcmp.ge.f32.partialorder %v836_v0, 32.0 }
 0x397   : > { %v3893_v12 = vsel %vm851_vm11, %v3685_v25, %v867_v13  ;;  %v3896_v45 = vsel %vm739_vm10, %v891_v8, %v3682_v49  ;;  %v884_v32 = vsel %vm852_vm14, %v3673_v46, %v3716_v5 }
 0x398   : > { %v907_v39 = vsub.f32 %v3896_v45, %v3893_v12  ;;  %v715_v23 = vpop.xlane.xlu1 %714 }
 0x399   : > { %v780_v31 = vpop.xlane.xlu0 %779  ;;  %vm737_vm1 = vcmp.ge.f32.partialorder %v715_v23, 32.0 }
 0x39a   : > { %vm796_vm15 = vcmp.ge.f32.partialorder %v780_v31, 32.0  ;;  %v915_v52 = vmul.f32 0.25, %v907_v39  ;;  %v947_v25 = vmul.f32 0.75, %v907_v39  ;;  %v931_v40 = vmul.f32 0.5, %v907_v39 }
 0x39b   : > { %v868_v34 = vsel %vm796_vm15, %v3719_v6, %v860_v38  ;;  %v892_v49 = vsel %vm796_vm15, %v884_v32, %v3719_v6  ;;  %v857_v13 = vsel %vm737_vm1, %v3711_v63, %v3675_v47 }
 0x39c   : > { %v3908_v43 = vsel %vm852_vm14, %v3716_v5, %v868_v34  ;;  %v3912_v48 = vsel %vm740_vm13, %v892_v49, %v3704_v28  ;;  %v827_v24 = vpop.xlane.xlu1 %826  ;;  %v3915_v57 = vadd.f32 %v915_v52, %v3893_v12  ;;  %v3918_v46 = vadd.f32 %v947_v25, %v3893_v12 }
 0x39d   : > { %v908_v62 = vsub.f32 %v3912_v48, %v3908_v43  ;;  %vm849_vm2 = vcmp.ge.f32.partialorder %v827_v24, 32.0  ;;  %v718_v6 = vpop.xlane.xlu0 %717  ;;  %v3927_v28 = vadd.f32 %v931_v40, %v3893_v12 }
 0x39e   : > { %vm963_vm3 = vcmp.ge.f32.partialorder %v3617_v1, %v3915_v57  ;;  %vm1075_vm4 = vcmp.ge.f32.partialorder %v3617_v1, %v3918_v46  ;;  %v881_v8 = vsel %vm849_vm2, %v3671_v42, %v3731_v15  ;;  %vm738_vm5 = vcmp.ge.f32.partialorder %v718_v6, 32.0 }
 0x39f   : > { %v3084_v5 = vsel %vm963_vm3, 1.0, %v6109_v56  ;;  %v3100_v44 = vsel %vm1075_vm4, 1.0, %v6109_v56  ;;  %v916_v0 = vmul.f32 0.25, %v908_v62  ;;  %v948_v31 = vmul.f32 0.75, %v908_v62 }
 0x3a0   : > { %v771_v39 = vpop.xlane.xlu1 %770  ;;  %v991_v38 = vsel %vm314_vm0, %v3084_v5, 0.0  ;;  %v932_v25 = vmul.f32 0.5, %v908_v62  ;;  %v1103_v49 = vsel %vm314_vm0, %v3100_v44, 0.0  ;;  %vm1019_vm7 = vcmp.ge.f32.partialorder %v3617_v1, %v3927_v28 }
 0x3a1   : > { %vm793_vm6 = vcmp.ge.f32.partialorder %v771_v39, 32.0  ;;  %992 = vadd.xlane.f32.xlu1 %v991_v38  ;;  %v830_v32 = vpop.xlane.xlu0 %829  ;;  %v3939_v52 = vadd.f32 %v916_v0, %v3908_v43  ;;  %v3962_v44 = vadd.f32 %v948_v31, %v3908_v43  ;;  %v3092_v0 = vsel %vm1019_vm7, 1.0, %v6109_v56 }
 0x3a2   : > { %v865_v34 = vsel %vm793_vm6, %v3751_v35, %v857_v13  ;;  %v889_v47 = vsel %vm793_vm6, %v881_v8, %v3751_v35  ;;  %vm850_vm8 = vcmp.ge.f32.partialorder %v830_v32, 32.0 }
 0x3a3   : > { %v3948_v42 = vsel %vm849_vm2, %v3731_v15, %v865_v34  ;;  %v3952_v40 = vsel %vm737_vm1, %v889_v47, %v3711_v63  ;;  %vm964_vm9 = vcmp.ge.f32.partialorder %v3623_v7, %v3939_v52  ;;  %v3965_v15 = vadd.f32 %v932_v25, %v3908_v43 }
 0x3a4   : > { %v905_v35 = vsub.f32 %v3952_v40, %v3948_v42  ;;  %v3958_v62 = vpop.xlane.xlu1 %732  ;;  %v3085_v5 = vsel %vm964_vm9, 1.0, %v6109_v56  ;;  %v858_v63 = vsel %vm738_vm5, %v3739_v26, %v3699_v60  ;;  %v882_v13 = vsel %vm850_vm8, %v3697_v59, %v3758_v37 }
 0x3a5   : > { %1104 = vadd.xlane.f32.xlu1 %v1103_v49  ;;  %v774_v23 = vpop.xlane.xlu0 %773  ;;  %v994_v24 = vsel %vm314_vm0, %v3085_v5, 0.0  ;;  %vm1076_vm11 = vcmp.ge.f32.partialorder %v3623_v7, %v3962_v44  ;;  %vm1020_vm12 = vcmp.ge.f32.partialorder %v3623_v7, %v3965_v15  ;;  %v1047_v34 = vsel %vm314_vm0, %v3092_v0, 0.0 }
 0x3a6   : > { %vm794_vm10 = vcmp.ge.f32.partialorder %v774_v23, 32.0  ;;  %995 = vadd.xlane.f32.xlu0 %v994_v24  ;;  %v913_v8 = vmul.f32 0.25, %v905_v35  ;;  %v3101_v38 = vsel %vm1076_vm11, 1.0, %v6109_v56  ;;  %v945_v32 = vmul.f32 0.75, %v905_v35 }
 0x3a7   : > { %v866_v39 = vsel %vm794_vm10, %v3777_v58, %v858_v63  ;;  %v890_v60 = vsel %vm794_vm10, %v882_v13, %v3777_v58  ;;  %v929_v0 = vmul.f32 0.5, %v905_v35  ;;  %vm743_vm6 = vcmp.ge.f32.partialorder %v3958_v62, 32.0 }
 0x3a8   : > { %v3984_v31 = vsel %vm850_vm8, %v3758_v37, %v866_v39  ;;  %v3988_v59 = vsel %vm738_vm5, %v890_v60, %v3739_v26  ;;  %v3990_v25 = vpop.xlane.xlu1 %844  ;;  %v3994_v47 = vadd.f32 %v913_v8, %v3948_v42  ;;  %v1106_v37 = vsel %vm314_vm0, %v3101_v38, 0.0 }
 0x3a9   : > { %v906_v58 = vsub.f32 %v3988_v59, %v3984_v31  ;;  %1048 = vadd.xlane.f32.xlu1 %v1047_v34  ;;  %v3998_v49 = vpop.xlane.xlu0 %735  ;;  %v3093_v26 = vsel %vm1020_vm12, 1.0, %v6109_v56  ;;  %v4006_v5 = vadd.f32 %v945_v32, %v3948_v42  ;;  %vm855_vm7 = vcmp.ge.f32.partialorder %v3990_v25, 32.0 }
 0x3aa   : > { %1107 = vadd.xlane.f32.xlu0 %v1106_v37  ;;  %vm961_vm13 = vcmp.ge.f32.partialorder %v3619_v4, %v3994_v47  ;;  %v1050_v60 = vsel %vm314_vm0, %v3093_v26, 0.0  ;;  %v4019_v37 = vadd.f32 %v929_v0, %v3948_v42  ;;  %vm744_vm11 = vcmp.ge.f32.partialorder %v3998_v49, 32.0 }
 0x3ab   : > { %v3082_v6 = vsel %vm961_vm13, 1.0, %v6109_v56  ;;  %v914_v63 = vmul.f32 0.25, %v906_v58  ;;  %v946_v13 = vmul.f32 0.75, %v906_v58  ;;  %v930_v8 = vmul.f32 0.5, %v906_v58 }
 0x3ac   : > { %v727_v23 = vpop.xlane.xlu1 %726  ;;  %v985_v24 = vsel %vm314_vm0, %v3082_v6, 0.0  ;;  %vm1073_vm14 = vcmp.ge.f32.partialorder %v3619_v4, %v4006_v5  ;;  %vm1017_vm1 = vcmp.ge.f32.partialorder %v3619_v4, %v4019_v37 }
 0x3ad   : > { %986 = vadd.xlane.f32.xlu1 %v985_v24  ;;  %v4009_v39 = vpop.xlane.xlu0 %847  ;;  %v4015_v38 = vadd.f32 %v914_v63, %v3984_v31  ;;  %v3098_v34 = vsel %vm1073_vm14, 1.0, %v6109_v56  ;;  %v4024_v35 = vadd.f32 %v946_v13, %v3984_v31  ;;  %v4031_v6 = vadd.f32 %v930_v8, %v3984_v31 }
 0x3ae   : > { %1051 = vadd.xlane.f32.xlu0 %v1050_v60  ;;  %v1097_v32 = vsel %vm314_vm0, %v3098_v34, 0.0  ;;  %vm741_vm2 = vcmp.ge.f32.partialorder %v727_v23, 32.0  ;;  %v3090_v0 = vsel %vm1017_vm1, 1.0, %v6109_v56  ;;  %vm856_vm12 = vcmp.ge.f32.partialorder %v4009_v39, 32.0 }
 0x3af   : > { %vm962_vm15 = vcmp.ge.f32.partialorder %v3631_v14, %v4015_v38  ;;  %vm1074_vm3 = vcmp.ge.f32.partialorder %v3631_v14, %v4024_v35  ;;  %vm1018_vm5 = vcmp.ge.f32.partialorder %v3631_v14, %v4031_v6  ;;  %v861_v8 = vsel %vm741_vm2, %v3812_v16, %v3733_v19 }
 0x3b0   : > { %v839_v58 = vpop.xlane.xlu1 %838  ;;  %v3083_v26 = vsel %vm962_vm15, 1.0, %v6109_v56  ;;  %v3099_v13 = vsel %vm1074_vm3, 1.0, %v6109_v56  ;;  %v1041_v34 = vsel %vm314_vm0, %v3090_v0, 0.0  ;;  %v6114_v19 = vmov 0.0  }
 0x3b1   : > { %1098 = vadd.xlane.f32.xlu1 %v1097_v32  ;;  %v730_v63 = vpop.xlane.xlu0 %729  ;;  %v988_v24 = vsel %vm314_vm0, %v3083_v26, 0.0  ;;  %vm853_vm4 = vcmp.ge.f32.partialorder %v839_v58, 32.0  ;;  %v3091_v0 = vsel %vm1018_vm5, 1.0, %v6114_v19 }
 0x3b2   : > { %989 = vadd.xlane.f32.xlu0 %v988_v24  ;;  %v885_v32 = vsel %vm853_vm4, %v3741_v30, %v3826_v55  ;;  %vm742_vm8 = vcmp.ge.f32.partialorder %v730_v63, 32.0  ;;  %v1100_v24 = vsel %vm314_vm0, %v3099_v13, 0.0  ;;  %v887_v13 = vsel %vm855_vm7, %v3745_v33, %v3793_v3 }
 0x3b4   : > { %v783_v60 = vpop.xlane.xlu1 %782 }
 0x3b5   : > { %vm797_vm9 = vcmp.ge.f32.partialorder %v783_v60, 32.0  ;;  %1042 = vadd.xlane.f32.xlu1 %v1041_v34  ;;  %v842_v26 = vpop.xlane.xlu0 %841 }
 0x3b6   : > { %v869_v56 = vsel %vm797_vm9, %v3843_v17, %v861_v8  ;;  %v893_v4 = vsel %vm797_vm9, %v885_v32, %v3843_v17  ;;  %vm854_vm10 = vcmp.ge.f32.partialorder %v842_v26, 32.0  ;;  %1101 = vadd.xlane.f32.xlu0 %v1100_v24  ;;  %v863_v17 = vsel %vm743_vm6, %v3783_v29, %v3753_v36 }
 0x3b7   : > { %v4058_v30 = vsel %vm853_vm4, %v3826_v55, %v869_v56  ;;  %v4062_v60 = vsel %vm741_vm2, %v893_v4, %v3812_v16  ;;  %v862_v4 = vsel %vm742_vm8, %v3833_v53, %v3779_v51  ;;  %v886_v16 = vsel %vm854_vm10, %v3785_v61, %v3849_v21 }
 0x3b8   : > { %v789_v56 = vpop.xlane.xlu1 %788  ;;  %v1044_v55 = vsel %vm314_vm0, %v3091_v0, 0.0  ;;  %v909_v33 = vsub.f32 %v4062_v60, %v4058_v30 }
 0x3b9   : > { %vm799_vm13 = vcmp.ge.f32.partialorder %v789_v56, 32.0  ;;  %v786_v36 = vpop.xlane.xlu0 %785 }
 0x3ba   : > { %v871_v23 = vsel %vm799_vm13, %v3858_v41, %v863_v17  ;;  %v895_v58 = vsel %vm799_vm13, %v887_v13, %v3858_v41  ;;  %vm798_vm14 = vcmp.ge.f32.partialorder %v786_v36, 32.0  ;;  %1045 = vadd.xlane.f32.xlu0 %v1044_v55 }
 0x3bb   : > { %v4088_v51 = vsel %vm855_vm7, %v3793_v3, %v871_v23  ;;  %v4093_v61 = vsel %vm743_vm6, %v895_v58, %v3783_v29  ;;  %v870_v8 = vsel %vm798_vm14, %v3863_v10, %v862_v4  ;;  %v894_v34 = vsel %vm798_vm14, %v886_v16, %v3863_v10 }
 0x3bc   : > { %v911_v32 = vsub.f32 %v4093_v61, %v4088_v51  ;;  %v4101_v41 = vsel %vm854_vm10, %v3849_v21, %v870_v8  ;;  %v4105_v3 = vsel %vm742_vm8, %v894_v34, %v3833_v53  ;;  %v864_v29 = vsel %vm744_vm11, %v3818_v50, %v3801_v11 }
 0x3bd   : > { %v888_v10 = vsel %vm856_vm12, %v3795_v9, %v3821_v54  ;;  %v792_v62 = vpop.xlane.xlu0 %791  ;;  %v917_v21 = vmul.f32 0.25, %v909_v33  ;;  %v910_v63 = vsub.f32 %v4105_v3, %v4101_v41  ;;  %v933_v58 = vmul.f32 0.5, %v909_v33 }
 0x3be   : > { %vm800_vm15 = vcmp.ge.f32.partialorder %v792_v62, 32.0  ;;  %v919_v25 = vmul.f32 0.25, %v911_v32  ;;  %v951_v26 = vmul.f32 0.75, %v911_v32 }
 0x3bf   : > { %v872_v53 = vsel %vm800_vm15, %v3874_v2, %v864_v29  ;;  %v896_v24 = vsel %vm800_vm15, %v888_v10, %v3874_v2  ;;  %v918_v56 = vmul.f32 0.25, %v910_v63  ;;  %v950_v34 = vmul.f32 0.75, %v910_v63 }
 0x3c0   : > { %v4122_v11 = vsel %vm856_vm12, %v3821_v54, %v872_v53  ;;  %v4127_v9 = vsel %vm744_vm11, %v896_v24, %v3818_v50  ;;  %v4130_v0 = vadd.f32 %v919_v25, %v4088_v51  ;;  %v4133_v17 = vadd.f32 %v951_v26, %v4088_v51 }
 0x3c1   : > { %v912_v13 = vsub.f32 %v4127_v9, %v4122_v11  ;;  %v4142_v54 = vadd.f32 %v917_v21, %v4058_v30  ;;  %v949_v50 = vmul.f32 0.75, %v909_v33  ;;  %v4163_v8 = vadd.f32 %v918_v56, %v4101_v41 }
 0x3c2   : > { %vm967_vm1 = vcmp.ge.f32.partialorder %v3637_v20, %v4130_v0  ;;  %vm1079_vm2 = vcmp.ge.f32.partialorder %v3637_v20, %v4133_v17  ;;  %v4173_v26 = vadd.f32 %v933_v58, %v4058_v30  ;;  %v935_v21 = vmul.f32 0.5, %v911_v32 }
 0x3c3   : > { %v3088_v2 = vsel %vm967_vm1, 1.0, %v6114_v19  ;;  %v920_v49 = vmul.f32 0.25, %v912_v13  ;;  %v952_v39 = vmul.f32 0.75, %v912_v13  ;;  %v3104_v16 = vsel %vm1079_vm2, 1.0, %v6114_v19 }
 0x3c4   : > { %v1003_v4 = vsel %vm314_vm0, %v3088_v2, 0.0  ;;  %vm965_vm3 = vcmp.ge.f32.partialorder %v3641_v22, %v4142_v54  ;;  %v4156_v23 = vadd.f32 %v949_v50, %v4058_v30  ;;  %v1115_v29 = vsel %vm314_vm0, %v3104_v16, 0.0 }
 0x3c5   : > { %1004 = vadd.xlane.f32.xlu1 %v1003_v4  ;;  %v4148_v36 = vadd.f32 %v920_v49, %v4122_v11  ;;  %v4151_v55 = vadd.f32 %v952_v39, %v4122_v11  ;;  %v3086_v25 = vsel %vm965_vm3, 1.0, %v6114_v19  ;;  %vm966_vm7 = vcmp.ge.f32.partialorder %v3653_v18, %v4163_v8 }
 0x3c6   : > { %vm1077_vm6 = vcmp.ge.f32.partialorder %v3641_v22, %v4156_v23  ;;  %v4178_v53 = vadd.f32 %v950_v34, %v4101_v41  ;;  %v934_v24 = vmul.f32 0.5, %v910_v63  ;;  %v997_v50 = vsel %vm314_vm0, %v3086_v25, 0.0 }
 0x3c7   : > { %vm968_vm4 = vcmp.ge.f32.partialorder %v3647_v27, %v4148_v36  ;;  %vm1080_vm5 = vcmp.ge.f32.partialorder %v3647_v27, %v4151_v55  ;;  %v3102_v49 = vsel %vm1077_vm6, 1.0, %v6114_v19  ;;  %v3087_v39 = vsel %vm966_vm7, 1.0, %v6114_v19 }
 0x3c8   : > { %v3089_v10 = vsel %vm968_vm4, 1.0, %v6114_v19  ;;  %v3105_v33 = vsel %vm1080_vm5, 1.0, %v6114_v19  ;;  %vm1021_vm8 = vcmp.ge.f32.partialorder %v3641_v22, %v4173_v26  ;;  %v4187_v32 = vadd.f32 %v935_v21, %v4088_v51 }
 0x3c9   : > { %1116 = vadd.xlane.f32.xlu1 %v1115_v29  ;;  %v1006_v62 = vsel %vm314_vm0, %v3089_v10, 0.0  ;;  %v1118_v2 = vsel %vm314_vm0, %v3105_v33, 0.0  ;;  %vm1078_vm9 = vcmp.ge.f32.partialorder %v3653_v18, %v4178_v53  ;;  %v4192_v63 = vadd.f32 %v934_v24, %v4101_v41 }
 0x3ca   : > { %1007 = vadd.xlane.f32.xlu0 %v1006_v62  ;;  %v936_v56 = vmul.f32 0.5, %v912_v13  ;;  %v1109_v4 = vsel %vm314_vm0, %v3102_v49, 0.0  ;;  %v1000_v16 = vsel %vm314_vm0, %v3087_v39, 0.0  ;;  %v3094_v58 = vsel %vm1021_vm8, 1.0, %v6114_v19 }
 0x3cb   : > { %v3103_v34 = vsel %vm1078_vm9, 1.0, %v6114_v19  ;;  %vm1023_vm10 = vcmp.ge.f32.partialorder %v3637_v20, %v4187_v32  ;;  %vm1022_vm11 = vcmp.ge.f32.partialorder %v3653_v18, %v4192_v63  ;;  %v1053_v13 = vsel %vm314_vm0, %v3094_v58, 0.0 }
 0x3cc   : > { %v4203_v29 = vadd.f32 %v936_v56, %v4122_v11  ;;  %v1112_v10 = vsel %vm314_vm0, %v3103_v34, 0.0  ;;  %v3096_v62 = vsel %vm1023_vm10, 1.0, %v6114_v19  ;;  %v3095_v25 = vsel %vm1022_vm11, 1.0, %v6114_v19 }
 0x3cd   : > { %998 = vadd.xlane.f32.xlu1 %v997_v50  ;;  %v1059_v33 = vsel %vm314_vm0, %v3096_v62, 0.0  ;;  %v1056_v21 = vsel %vm314_vm0, %v3095_v25, 0.0 }
 0x3ce   : > { %1119 = vadd.xlane.f32.xlu0 %v1118_v2  ;;  %vm1024_vm12 = vcmp.ge.f32.partialorder %v3647_v27, %v4203_v29 }
 0x3cf   : > { %v3097_v24 = vsel %vm1024_vm12, 1.0, %v6114_v19 }
 0x3d0   : > { %v1062_v50 = vsel %vm314_vm0, %v3097_v24, 0.0 }
 0x3d1   : > { %1110 = vadd.xlane.f32.xlu1 %v1109_v4 }
 0x3d2   : > { %1001 = vadd.xlane.f32.xlu0 %v1000_v16 }
 0x3d5   : > { %1054 = vadd.xlane.f32.xlu1 %v1053_v13 }
 0x3d6   : > { %1113 = vadd.xlane.f32.xlu0 %v1112_v10 }
 0x3d9   : > { %1060 = vadd.xlane.f32.xlu1 %v1059_v33 }
 0x3da   : > { %1057 = vadd.xlane.f32.xlu0 %v1056_v21 }
 0x3de   : > { %1063 = vadd.xlane.f32.xlu0 %v1062_v50 }
 0x42e   : > { %v993_v2 = vpop.xlane.xlu1 %992 }
 0x42f   : > { %vm1011_vm13 = vcmp.ge.f32.partialorder %v993_v2, 32.0 }
 0x430   : > { %v1131_v4 = vsel %vm1011_vm13, %v3915_v57, %v3893_v12 }
 0x432   : > { %v1105_v49 = vpop.xlane.xlu1 %1104 }
 0x433   : > { %v996_v39 = vpop.xlane.xlu0 %995  ;;  %vm1123_vm14 = vcmp.ge.f32.partialorder %v1105_v49, 32.0 }
 0x434   : > { %v1155_v16 = vsel %vm1123_vm14, %v3896_v45, %v3918_v46  ;;  %vm1012_vm1 = vcmp.ge.f32.partialorder %v996_v39, 32.0 }
 0x435   : > { %v1132_v45 = vsel %vm1012_vm1, %v3939_v52, %v3908_v43 }
 0x436   : > { %v1049_v56 = vpop.xlane.xlu1 %1048 }
 0x437   : > { %vm1067_vm15 = vcmp.ge.f32.partialorder %v1049_v56, 32.0  ;;  %v1108_v58 = vpop.xlane.xlu0 %1107 }
 0x438   : > { %v1139_v34 = vsel %vm1067_vm15, %v3927_v28, %v1131_v4  ;;  %v1163_v13 = vsel %vm1067_vm15, %v1155_v16, %v3927_v28  ;;  %vm1124_vm2 = vcmp.ge.f32.partialorder %v1108_v58, 32.0 }
 0x439   : > { %v4222_v10 = vsel %vm1123_vm14, %v3918_v46, %v1139_v34  ;;  %v4225_v62 = vsel %vm1011_vm13, %v1163_v13, %v3915_v57  ;;  %v1156_v21 = vsel %vm1124_vm2, %v3912_v48, %v3962_v44 }
 0x43a   : > { %v1179_v12 = vsub.f32 %v4225_v62, %v4222_v10  ;;  %v987_v25 = vpop.xlane.xlu1 %986 }
 0x43b   : > { %v1052_v33 = vpop.xlane.xlu0 %1051  ;;  %vm1009_vm4 = vcmp.ge.f32.partialorder %v987_v25, 32.0 }
 0x43c   : > { %vm1068_vm3 = vcmp.ge.f32.partialorder %v1052_v33, 32.0  ;;  %v1187_v28 = vmul.f32 0.25, %v1179_v12  ;;  %v1219_v46 = vmul.f32 0.75, %v1179_v12  ;;  %v1203_v50 = vmul.f32 0.5, %v1179_v12 }
 0x43d   : > { %v1140_v24 = vsel %vm1068_vm3, %v3965_v15, %v1132_v45  ;;  %v1164_v57 = vsel %vm1068_vm3, %v1156_v21, %v3965_v15  ;;  %v1129_v58 = vsel %vm1009_vm4, %v3994_v47, %v3948_v42 }
 0x43e   : > { %v4237_v2 = vsel %vm1124_vm2, %v3962_v44, %v1140_v24  ;;  %v4241_v49 = vsel %vm1012_vm1, %v1164_v57, %v3939_v52  ;;  %v1099_v43 = vpop.xlane.xlu1 %1098  ;;  %v4244_v56 = vadd.f32 %v1187_v28, %v4222_v10  ;;  %v4247_v48 = vadd.f32 %v1219_v46, %v4222_v10 }
 0x43f   : > { %v1180_v4 = vsub.f32 %v4241_v49, %v4237_v2  ;;  %vm1121_vm5 = vcmp.ge.f32.partialorder %v1099_v43, 32.0  ;;  %v990_v15 = vpop.xlane.xlu0 %989  ;;  %v4256_v52 = vadd.f32 %v1203_v50, %v4222_v10 }
 0x440   : > { %vm1235_vm6 = vcmp.ge.f32.partialorder %v3617_v1, %v4244_v56  ;;  %vm1347_vm7 = vcmp.ge.f32.partialorder %v3617_v1, %v4247_v48  ;;  %v1153_v34 = vsel %vm1121_vm5, %v3952_v40, %v4006_v5  ;;  %vm1010_vm8 = vcmp.ge.f32.partialorder %v990_v15, 32.0 }
 0x441   : > { %v3108_v44 = vsel %vm1235_vm6, 1.0, %v6114_v19  ;;  %v3124_v39 = vsel %vm1347_vm7, 1.0, %v6114_v19  ;;  %v1188_v16 = vmul.f32 0.25, %v1180_v4  ;;  %v1220_v45 = vmul.f32 0.75, %v1180_v4 }
 0x442   : > { %v1043_v13 = vpop.xlane.xlu1 %1042  ;;  %v1263_v12 = vsel %vm314_vm0, %v3108_v44, 0.0  ;;  %v1204_v28 = vmul.f32 0.5, %v1180_v4  ;;  %v1375_v24 = vsel %vm314_vm0, %v3124_v39, 0.0  ;;  %vm1291_vm10 = vcmp.ge.f32.partialorder %v3617_v1, %v4256_v52 }
 0x443   : > { %vm1065_vm9 = vcmp.ge.f32.partialorder %v1043_v13, 32.0  ;;  %1264 = vadd.xlane.f32.xlu1 %v1263_v12  ;;  %v1102_v33 = vpop.xlane.xlu0 %1101  ;;  %v4268_v21 = vadd.f32 %v1188_v16, %v4237_v2  ;;  %v4289_v4 = vadd.f32 %v1220_v45, %v4237_v2  ;;  %v3116_v44 = vsel %vm1291_vm10, 1.0, %v6114_v19 }
 0x444   : > { %v1137_v46 = vsel %vm1065_vm9, %v4019_v37, %v1129_v58  ;;  %v1161_v42 = vsel %vm1065_vm9, %v1153_v34, %v4019_v37  ;;  %vm1122_vm11 = vcmp.ge.f32.partialorder %v1102_v33, 32.0  ;;  %v4292_v43 = vadd.f32 %v1204_v28, %v4237_v2 }
 0x445   : > { %v4277_v40 = vsel %vm1121_vm5, %v4006_v5, %v1137_v46  ;;  %v4281_v57 = vsel %vm1009_vm4, %v1161_v42, %v3994_v47  ;;  %vm1236_vm12 = vcmp.ge.f32.partialorder %v3623_v7, %v4268_v21  ;;  %v1130_v47 = vsel %vm1010_vm8, %v4015_v38, %v3984_v31 }
 0x446   : > { %v1177_v37 = vsub.f32 %v4281_v57, %v4277_v40  ;;  %v3109_v50 = vsel %vm1236_vm12, 1.0, %v6114_v19  ;;  %v1154_v39 = vsel %vm1122_vm11, %v3988_v59, %v4024_v35  ;;  %vm1348_vm14 = vcmp.ge.f32.partialorder %v3623_v7, %v4289_v4 }
 0x447   : > { %1376 = vadd.xlane.f32.xlu1 %v1375_v24  ;;  %v1046_v5 = vpop.xlane.xlu0 %1045  ;;  %v1266_v25 = vsel %vm314_vm0, %v3109_v50, 0.0  ;;  %v3125_v34 = vsel %vm1348_vm14, 1.0, %v6114_v19  ;;  %vm1292_vm15 = vcmp.ge.f32.partialorder %v3623_v7, %v4292_v43  ;;  %v1319_v12 = vsel %vm314_vm0, %v3116_v44, 0.0 }
 0x448   : > { %vm1066_vm13 = vcmp.ge.f32.partialorder %v1046_v5, 32.0  ;;  %1267 = vadd.xlane.f32.xlu0 %v1266_v25  ;;  %v1185_v16 = vmul.f32 0.25, %v1177_v37  ;;  %v1378_v28 = vsel %vm314_vm0, %v3125_v34, 0.0  ;;  %v1217_v46 = vmul.f32 0.75, %v1177_v37 }
 0x449   : > { %v1138_v58 = vsel %vm1066_vm13, %v4031_v6, %v1130_v47  ;;  %v1162_v31 = vsel %vm1066_vm13, %v1154_v39, %v4031_v6  ;;  %v1201_v42 = vmul.f32 0.5, %v1177_v37 }
 0x44a   : > { %v4311_v13 = vsel %vm1122_vm11, %v4024_v35, %v1138_v58  ;;  %v4315_v59 = vsel %vm1010_vm8, %v1162_v31, %v4015_v38  ;;  %v4319_v45 = vadd.f32 %v1185_v16, %v4277_v40  ;;  %v6115_v35 = vld [vmem:[#allocation2_spill] sm:$0xff]  ;;  %v3117_v38 = vsel %vm1292_vm15, 1.0, %v6114_v19 }
 0x44b   : > { %v1178_v6 = vsub.f32 %v4315_v59, %v4311_v13  ;;  %1320 = vadd.xlane.f32.xlu1 %v1319_v12  ;;  %v4329_v33 = vadd.f32 %v1217_v46, %v4277_v40  ;;  %v4332_v50 = vadd.f32 %v1201_v42, %v4277_v40  ;;  %v1322_v37 = vsel %vm314_vm0, %v3117_v38, 0.0 }
 0x44c   : > { %1379 = vadd.xlane.f32.xlu0 %v1378_v28  ;;  %vm1233_vm1 = vcmp.ge.f32.partialorder %v6115_v35, %v4319_v45 }
 0x44d   : > { %v3106_v15 = vsel %vm1233_vm1, 1.0, %v6114_v19  ;;  %v1186_v24 = vmul.f32 0.25, %v1178_v6  ;;  %v1218_v5 = vmul.f32 0.75, %v1178_v6  ;;  %v1202_v25 = vmul.f32 0.5, %v1178_v6 }
 0x44e   : > { %v1257_v47 = vsel %vm314_vm0, %v3106_v15, 0.0  ;;  %vm1345_vm2 = vcmp.ge.f32.partialorder %v6115_v35, %v4329_v33  ;;  %vm1289_vm3 = vcmp.ge.f32.partialorder %v6115_v35, %v4332_v50 }
 0x44f   : > { %1258 = vadd.xlane.f32.xlu1 %v1257_v47  ;;  %v4339_v44 = vadd.f32 %v1186_v24, %v4311_v13  ;;  %v3122_v39 = vsel %vm1345_vm2, 1.0, %v6114_v19  ;;  %v4345_v16 = vadd.f32 %v1218_v5, %v4311_v13  ;;  %v4350_v58 = vadd.f32 %v1202_v25, %v4311_v13 }
 0x450   : > { %1323 = vadd.xlane.f32.xlu0 %v1322_v37  ;;  %v1369_v34 = vsel %vm314_vm0, %v3122_v39, 0.0  ;;  %v3114_v28 = vsel %vm1289_vm3, 1.0, %v6114_v19 }
 0x451   : > { %vm1234_vm4 = vcmp.ge.f32.partialorder %v3631_v14, %v4339_v44  ;;  %vm1346_vm5 = vcmp.ge.f32.partialorder %v3631_v14, %v4345_v16  ;;  %vm1290_vm6 = vcmp.ge.f32.partialorder %v3631_v14, %v4350_v58  ;;  %v1313_v38 = vsel %vm314_vm0, %v3114_v28, 0.0 }
 0x452   : > { %v1005_v31 = vpop.xlane.xlu1 %1004  ;;  %v3107_v12 = vsel %vm1234_vm4, 1.0, %v6114_v19  ;;  %v3123_v46 = vsel %vm1346_vm5, 1.0, %v6114_v19  ;;  %v3115_v47 = vsel %vm1290_vm6, 1.0, %v6114_v19 }
 0x453   : > { %1370 = vadd.xlane.f32.xlu1 %v1369_v34  ;;  %v1260_v6 = vsel %vm314_vm0, %v3107_v12, 0.0  ;;  %v1372_v24 = vsel %vm314_vm0, %v3123_v46, 0.0  ;;  %v1316_v37 = vsel %vm314_vm0, %v3115_v47, 0.0  ;;  %vm1015_vm9 = vcmp.ge.f32.partialorder %v1005_v31, 32.0 }
 0x454   : > { %1261 = vadd.xlane.f32.xlu0 %v1260_v6 }
 0x456   : > { %v1117_v42 = vpop.xlane.xlu1 %1116 }
 0x457   : > { %1314 = vadd.xlane.f32.xlu1 %v1313_v38  ;;  %v1008_v15 = vpop.xlane.xlu0 %1007  ;;  %vm1127_vm10 = vcmp.ge.f32.partialorder %v1117_v42, 32.0 }
 0x458   : > { %1373 = vadd.xlane.f32.xlu0 %v1372_v24  ;;  %vm1016_vm14 = vcmp.ge.f32.partialorder %v1008_v15, 32.0 }
 0x45a   : > { %v999_v5 = vpop.xlane.xlu1 %998 }
 0x45b   : > { %v1120_v25 = vpop.xlane.xlu0 %1119  ;;  %vm1013_vm7 = vcmp.ge.f32.partialorder %v999_v5, 32.0 }
 0x45c   : > { %1317 = vadd.xlane.f32.xlu0 %v1316_v37  ;;  %v1133_v6 = vsel %vm1013_vm7, %v4142_v54, %v4058_v30  ;;  %v1135_v30 = vsel %vm1015_vm9, %v4130_v0, %v4088_v51  ;;  %vm1128_vm15 = vcmp.ge.f32.partialorder %v1120_v25, 32.0 }
 0x45e   : > { %v1111_v39 = vpop.xlane.xlu1 %1110 }
 0x45f   : > { %v1002_v34 = vpop.xlane.xlu0 %1001  ;;  %vm1125_vm8 = vcmp.ge.f32.partialorder %v1111_v39, 32.0 }
 0x460   : > { %v1157_v28 = vsel %vm1125_vm8, %v4062_v60, %v4156_v23  ;;  %vm1014_vm12 = vcmp.ge.f32.partialorder %v1002_v34, 32.0  ;;  %v1159_v60 = vsel %vm1127_vm10, %v4093_v61, %v4133_v17 }
 0x462   : > { %v1055_v12 = vpop.xlane.xlu1 %1054 }
 0x463   : > { %vm1069_vm11 = vcmp.ge.f32.partialorder %v1055_v12, 32.0  ;;  %v1114_v46 = vpop.xlane.xlu0 %1113 }
 0x464   : > { %v1141_v38 = vsel %vm1069_vm11, %v4173_v26, %v1133_v6  ;;  %v1165_v24 = vsel %vm1069_vm11, %v1157_v28, %v4173_v26  ;;  %vm1126_vm13 = vcmp.ge.f32.partialorder %v1114_v46, 32.0  ;;  %v1134_v26 = vsel %vm1014_vm12, %v4163_v8, %v4101_v41 }
 0x465   : > { %v4372_v47 = vsel %vm1125_vm8, %v4156_v23, %v1141_v38  ;;  %v4375_v5 = vsel %vm1013_vm7, %v1165_v24, %v4142_v54  ;;  %v1158_v54 = vsel %vm1126_vm13, %v4105_v3, %v4178_v53 }
 0x466   : > { %v1061_v37 = vpop.xlane.xlu1 %1060  ;;  %v1181_v51 = vsub.f32 %v4375_v5, %v4372_v47 }
 0x467   : > { %vm1071_vm1 = vcmp.ge.f32.partialorder %v1061_v37, 32.0  ;;  %v1058_v23 = vpop.xlane.xlu0 %1057 }
 0x468   : > { %v1143_v39 = vsel %vm1071_vm1, %v4187_v32, %v1135_v30  ;;  %v1167_v61 = vsel %vm1071_vm1, %v1159_v60, %v4187_v32  ;;  %vm1070_vm2 = vcmp.ge.f32.partialorder %v1058_v23, 32.0  ;;  %v1189_v24 = vmul.f32 0.25, %v1181_v51 }
 0x469   : > { %v4395_v12 = vsel %vm1127_vm10, %v4133_v17, %v1143_v39  ;;  %v4399_v41 = vsel %vm1015_vm9, %v1167_v61, %v4130_v0  ;;  %v1142_v3 = vsel %vm1070_vm2, %v4192_v63, %v1134_v26  ;;  %v1166_v6 = vsel %vm1070_vm2, %v1158_v54, %v4192_v63 }
 0x46a   : > { %v1183_v28 = vsub.f32 %v4399_v41, %v4395_v12  ;;  %v4407_v38 = vsel %vm1126_vm13, %v4178_v53, %v1142_v3  ;;  %v4411_v32 = vsel %vm1014_vm12, %v1166_v6, %v4163_v8  ;;  %v1136_v0 = vsel %vm1016_vm14, %v4148_v36, %v4122_v11 }
 0x46b   : > { %v1160_v17 = vsel %vm1128_vm15, %v4127_v9, %v4151_v55  ;;  %v1064_v63 = vpop.xlane.xlu0 %1063  ;;  %v1182_v53 = vsub.f32 %v4411_v32, %v4407_v38  ;;  %v1205_v3 = vmul.f32 0.5, %v1181_v51 }
 0x46c   : > { %vm1072_vm3 = vcmp.ge.f32.partialorder %v1064_v63, 32.0  ;;  %v1191_v31 = vmul.f32 0.25, %v1183_v28  ;;  %v1223_v42 = vmul.f32 0.75, %v1183_v28 }
 0x46d   : > { %v1144_v34 = vsel %vm1072_vm3, %v4203_v29, %v1136_v0  ;;  %v1168_v8 = vsel %vm1072_vm3, %v1160_v17, %v4203_v29  ;;  %v1190_v37 = vmul.f32 0.25, %v1182_v53  ;;  %v1222_v0 = vmul.f32 0.75, %v1182_v53 }
 0x46e   : > { %v4425_v46 = vsel %vm1128_vm15, %v4151_v55, %v1144_v34  ;;  %v4429_v11 = vsel %vm1016_vm14, %v1168_v8, %v4148_v36  ;;  %v4432_v9 = vadd.f32 %v1191_v31, %v4395_v12  ;;  %v4435_v30 = vadd.f32 %v1223_v42, %v4395_v12 }
 0x46f   : > { %v1184_v60 = vsub.f32 %v4429_v11, %v4425_v46  ;;  %v4444_v55 = vadd.f32 %v1189_v24, %v4372_v47  ;;  %v1221_v36 = vmul.f32 0.75, %v1181_v51  ;;  %v4465_v6 = vadd.f32 %v1190_v37, %v4407_v38 }
 0x470   : > { %vm1239_vm4 = vcmp.ge.f32.partialorder %v3637_v20, %v4432_v9  ;;  %vm1351_vm5 = vcmp.ge.f32.partialorder %v3637_v20, %v4435_v30  ;;  %v4475_v24 = vadd.f32 %v1205_v3, %v4372_v47  ;;  %v1207_v34 = vmul.f32 0.5, %v1183_v28 }
 0x471   : > { %v3112_v29 = vsel %vm1239_vm4, 1.0, %v6114_v19  ;;  %v1192_v15 = vmul.f32 0.25, %v1184_v60  ;;  %v1224_v25 = vmul.f32 0.75, %v1184_v60  ;;  %v3128_v54 = vsel %vm1351_vm5, 1.0, %v6114_v19 }
 0x472   : > { %v1275_v26 = vsel %vm314_vm0, %v3112_v29, 0.0  ;;  %vm1237_vm6 = vcmp.ge.f32.partialorder %v3641_v22, %v4444_v55  ;;  %v4458_v61 = vadd.f32 %v1221_v36, %v4372_v47  ;;  %v1387_v17 = vsel %vm314_vm0, %v3128_v54, 0.0 }
 0x473   : > { %1276 = vadd.xlane.f32.xlu1 %v1275_v26  ;;  %v4450_v23 = vadd.f32 %v1192_v15, %v4425_v46  ;;  %v4453_v39 = vadd.f32 %v1224_v25, %v4425_v46  ;;  %v3110_v42 = vsel %vm1237_vm6, 1.0, %v6114_v19  ;;  %vm1238_vm10 = vcmp.ge.f32.partialorder %v3653_v18, %v4465_v6 }
 0x474   : > { %vm1349_vm9 = vcmp.ge.f32.partialorder %v3641_v22, %v4458_v61  ;;  %v4480_v8 = vadd.f32 %v1222_v0, %v4407_v38  ;;  %v1206_v36 = vmul.f32 0.5, %v1182_v53  ;;  %v1269_v29 = vsel %vm314_vm0, %v3110_v42, 0.0 }
 0x475   : > { %vm1240_vm7 = vcmp.ge.f32.partialorder %v3647_v27, %v4450_v23  ;;  %vm1352_vm8 = vcmp.ge.f32.partialorder %v3647_v27, %v4453_v39  ;;  %v3126_v25 = vsel %vm1349_vm9, 1.0, %v6114_v19  ;;  %v3111_v37 = vsel %vm1238_vm10, 1.0, %v6114_v19 }
 0x476   : > { %v3113_v63 = vsel %vm1240_vm7, 1.0, %v6114_v19  ;;  %v3129_v51 = vsel %vm1352_vm8, 1.0, %v6114_v19  ;;  %vm1293_vm11 = vcmp.ge.f32.partialorder %v3641_v22, %v4475_v24  ;;  %v4489_v28 = vadd.f32 %v1207_v34, %v4395_v12 }
 0x477   : > { %1388 = vadd.xlane.f32.xlu1 %v1387_v17  ;;  %v1278_v31 = vsel %vm314_vm0, %v3113_v63, 0.0  ;;  %v1390_v15 = vsel %vm314_vm0, %v3129_v51, 0.0  ;;  %vm1350_vm12 = vcmp.ge.f32.partialorder %v3653_v18, %v4480_v8  ;;  %v4494_v53 = vadd.f32 %v1206_v36, %v4407_v38 }
 0x478   : > { %1279 = vadd.xlane.f32.xlu0 %v1278_v31  ;;  %v1208_v26 = vmul.f32 0.5, %v1184_v60  ;;  %v1381_v54 = vsel %vm314_vm0, %v3126_v25, 0.0  ;;  %v1272_v3 = vsel %vm314_vm0, %v3111_v37, 0.0  ;;  %v3118_v0 = vsel %vm1293_vm11, 1.0, %v6114_v19 }
 0x479   : > { %v3127_v17 = vsel %vm1350_vm12, 1.0, %v6114_v19  ;;  %vm1295_vm13 = vcmp.ge.f32.partialorder %v3637_v20, %v4489_v28  ;;  %vm1294_vm14 = vcmp.ge.f32.partialorder %v3653_v18, %v4494_v53  ;;  %v1325_v60 = vsel %vm314_vm0, %v3118_v0, 0.0 }
 0x47a   : > { %v4505_v63 = vadd.f32 %v1208_v26, %v4425_v46  ;;  %v1384_v31 = vsel %vm314_vm0, %v3127_v17, 0.0  ;;  %v3120_v42 = vsel %vm1295_vm13, 1.0, %v6114_v19  ;;  %v3119_v51 = vsel %vm1294_vm14, 1.0, %v6114_v19 }
 0x47b   : > { %1270 = vadd.xlane.f32.xlu1 %v1269_v29  ;;  %v1331_v34 = vsel %vm314_vm0, %v3120_v42, 0.0  ;;  %v1328_v36 = vsel %vm314_vm0, %v3119_v51, 0.0 }
 0x47c   : > { %1391 = vadd.xlane.f32.xlu0 %v1390_v15  ;;  %vm1296_vm15 = vcmp.ge.f32.partialorder %v3647_v27, %v4505_v63 }
 0x47d   : > { %v3121_v29 = vsel %vm1296_vm15, 1.0, %v6114_v19 }
 0x47e   : > { %v1334_v15 = vsel %vm314_vm0, %v3121_v29, 0.0 }
 0x47f   : > { %1382 = vadd.xlane.f32.xlu1 %v1381_v54 }
 0x480   : > { %1273 = vadd.xlane.f32.xlu0 %v1272_v3 }
 0x483   : > { %1326 = vadd.xlane.f32.xlu1 %v1325_v60 }
 0x484   : > { %1385 = vadd.xlane.f32.xlu0 %v1384_v31 }
 0x487   : > { %1332 = vadd.xlane.f32.xlu1 %v1331_v34 }
 0x488   : > { %1329 = vadd.xlane.f32.xlu0 %v1328_v36 }
 0x48c   : > { %1335 = vadd.xlane.f32.xlu0 %v1334_v15 }
 0x4d0   : > { %v1265_v25 = vpop.xlane.xlu1 %1264 }
 0x4d1   : > { %vm1283_vm1 = vcmp.ge.f32.partialorder %v1265_v25, 32.0 }
 0x4d2   : > { %v1403_v3 = vsel %vm1283_vm1, %v4244_v56, %v4222_v10 }
 0x4d4   : > { %v1377_v37 = vpop.xlane.xlu1 %1376 }
 0x4d5   : > { %v1268_v26 = vpop.xlane.xlu0 %1267  ;;  %vm1395_vm2 = vcmp.ge.f32.partialorder %v1377_v37, 32.0 }
 0x4d6   : > { %v1427_v0 = vsel %vm1395_vm2, %v4225_v62, %v4247_v48  ;;  %vm1284_vm4 = vcmp.ge.f32.partialorder %v1268_v26, 32.0 }
 0x4d7   : > { %v1404_v62 = vsel %vm1284_vm4, %v4268_v21, %v4237_v2 }
 0x4d8   : > { %v1321_v54 = vpop.xlane.xlu1 %1320 }
 0x4d9   : > { %vm1339_vm3 = vcmp.ge.f32.partialorder %v1321_v54, 32.0  ;;  %v1380_v17 = vpop.xlane.xlu0 %1379 }
 0x4da   : > { %v1411_v60 = vsel %vm1339_vm3, %v4256_v52, %v1403_v3  ;;  %v1435_v31 = vsel %vm1339_vm3, %v1427_v0, %v4256_v52  ;;  %vm1396_vm5 = vcmp.ge.f32.partialorder %v1380_v17, 32.0 }
 0x4db   : > { %v4524_v42 = vsel %vm1395_vm2, %v4247_v48, %v1411_v60  ;;  %v4527_v51 = vsel %vm1283_vm1, %v1435_v31, %v4244_v56  ;;  %v1428_v29 = vsel %vm1396_vm5, %v4241_v49, %v4289_v4 }
 0x4dc   : > { %v1451_v10 = vsub.f32 %v4527_v51, %v4524_v42  ;;  %v1259_v34 = vpop.xlane.xlu1 %1258 }
 0x4dd   : > { %v1324_v36 = vpop.xlane.xlu0 %1323  ;;  %vm1281_vm7 = vcmp.ge.f32.partialorder %v1259_v34, 32.0 }
 0x4de   : > { %vm1340_vm6 = vcmp.ge.f32.partialorder %v1324_v36, 32.0  ;;  %v1459_v52 = vmul.f32 0.25, %v1451_v10  ;;  %v1491_v48 = vmul.f32 0.75, %v1451_v10  ;;  %v1475_v25 = vmul.f32 0.5, %v1451_v10 }
 0x4df   : > { %v1412_v15 = vsel %vm1340_vm6, %v4292_v43, %v1404_v62  ;;  %v1436_v56 = vsel %vm1340_vm6, %v1428_v29, %v4292_v43  ;;  %v1401_v60 = vsel %vm1281_vm7, %v4319_v45, %v4277_v40 }
 0x4e0   : > { %v4539_v37 = vsel %vm1396_vm5, %v4289_v4, %v1412_v15  ;;  %v4543_v54 = vsel %vm1284_vm4, %v1436_v56, %v4268_v21  ;;  %v1371_v2 = vpop.xlane.xlu1 %1370  ;;  %v4546_v3 = vadd.f32 %v1459_v52, %v4524_v42  ;;  %v4549_v49 = vadd.f32 %v1491_v48, %v4524_v42 }
 0x4e1   : > { %v1452_v0 = vsub.f32 %v4543_v54, %v4539_v37  ;;  %vm1393_vm8 = vcmp.ge.f32.partialorder %v1371_v2, 32.0  ;;  %v1262_v43 = vpop.xlane.xlu0 %1261  ;;  %v4558_v21 = vadd.f32 %v1475_v25, %v4524_v42 }
 0x4e2   : > { %vm1507_vm9 = vcmp.ge.f32.partialorder %v3617_v1, %v4546_v3  ;;  %vm1619_vm10 = vcmp.ge.f32.partialorder %v3617_v1, %v4549_v49  ;;  %v1425_v31 = vsel %vm1393_vm8, %v4281_v57, %v4329_v33  ;;  %vm1282_vm11 = vcmp.ge.f32.partialorder %v1262_v43, 32.0 }
 0x4e3   : > { %v3132_v4 = vsel %vm1507_vm9, 1.0, %v6114_v19  ;;  %v3148_v26 = vsel %vm1619_vm10, 1.0, %v6114_v19  ;;  %v1460_v17 = vmul.f32 0.25, %v1452_v0  ;;  %v1492_v36 = vmul.f32 0.75, %v1452_v0 }
 0x4e4   : > { %v1315_v10 = vpop.xlane.xlu1 %1314  ;;  %v1535_v62 = vsel %vm314_vm0, %v3132_v4, 0.0  ;;  %v1476_v48 = vmul.f32 0.5, %v1452_v0  ;;  %v1647_v56 = vsel %vm314_vm0, %v3148_v26, 0.0  ;;  %vm1563_vm13 = vcmp.ge.f32.partialorder %v3617_v1, %v4558_v21 }
 0x4e5   : > { %vm1337_vm12 = vcmp.ge.f32.partialorder %v1315_v10, 32.0  ;;  %1536 = vadd.xlane.f32.xlu1 %v1535_v62  ;;  %v1374_v29 = vpop.xlane.xlu0 %1373  ;;  %v4570_v52 = vadd.f32 %v1460_v17, %v4539_v37  ;;  %v4591_v4 = vadd.f32 %v1492_v36, %v4539_v37  ;;  %v3140_v26 = vsel %vm1563_vm13, 1.0, %v6114_v19 }
 0x4e6   : > { %v1409_v15 = vsel %vm1337_vm12, %v4332_v50, %v1401_v60  ;;  %v1433_v40 = vsel %vm1337_vm12, %v1425_v31, %v4332_v50  ;;  %vm1394_vm14 = vcmp.ge.f32.partialorder %v1374_v29, 32.0  ;;  %v4594_v2 = vadd.f32 %v1476_v48, %v4539_v37 }
 0x4e7   : > { %v4579_v57 = vsel %vm1393_vm8, %v4329_v33, %v1409_v15  ;;  %v4583_v25 = vsel %vm1281_vm7, %v1433_v40, %v4319_v45  ;;  %vm1508_vm15 = vcmp.ge.f32.partialorder %v3623_v7, %v4570_v52  ;;  %v1402_v45 = vsel %vm1282_vm11, %v4339_v44, %v4311_v13 }
 0x4e8   : > { %v1449_v50 = vsub.f32 %v4583_v25, %v4579_v57  ;;  %v3133_v0 = vsel %vm1508_vm15, 1.0, %v6114_v19  ;;  %v1426_v17 = vsel %vm1394_vm14, %v4315_v59, %v4345_v16  ;;  %vm1620_vm2 = vcmp.ge.f32.partialorder %v3623_v7, %v4591_v4 }
 0x4e9   : > { %1648 = vadd.xlane.f32.xlu1 %v1647_v56  ;;  %v1318_v33 = vpop.xlane.xlu0 %1317  ;;  %v1538_v34 = vsel %vm314_vm0, %v3133_v0, 0.0  ;;  %v3149_v10 = vsel %vm1620_vm2, 1.0, %v6114_v19  ;;  %vm1564_vm3 = vcmp.ge.f32.partialorder %v3623_v7, %v4594_v2  ;;  %v1591_v36 = vsel %vm314_vm0, %v3140_v26, 0.0 }
 0x4ea   : > { %vm1338_vm1 = vcmp.ge.f32.partialorder %v1318_v33, 32.0  ;;  %1539 = vadd.xlane.f32.xlu0 %v1538_v34  ;;  %v1457_v60 = vmul.f32 0.25, %v1449_v50  ;;  %v1650_v15 = vsel %vm314_vm0, %v3149_v10, 0.0  ;;  %v1489_v40 = vmul.f32 0.75, %v1449_v50 }
 0x4eb   : > { %v1410_v31 = vsel %vm1338_vm1, %v4350_v58, %v1402_v45  ;;  %v1434_v13 = vsel %vm1338_vm1, %v1426_v17, %v4350_v58  ;;  %v1473_v56 = vmul.f32 0.5, %v1449_v50 }
 0x4ec   : > { %v4613_v62 = vsel %vm1394_vm14, %v4345_v16, %v1410_v31  ;;  %v4617_v59 = vsel %vm1282_vm11, %v1434_v13, %v4339_v44  ;;  %v4621_v48 = vadd.f32 %v1457_v60, %v4579_v57  ;;  %v3141_v44 = vsel %vm1564_vm3, 1.0, %v6114_v19 }
 0x4ed   : > { %v1450_v58 = vsub.f32 %v4617_v59, %v4613_v62  ;;  %1592 = vadd.xlane.f32.xlu1 %v1591_v36  ;;  %v4631_v43 = vadd.f32 %v1489_v40, %v4579_v57  ;;  %v4634_v0 = vadd.f32 %v1473_v56, %v4579_v57  ;;  %v1594_v50 = vsel %vm314_vm0, %v3141_v44, 0.0 }
 0x4ee   : > { %1651 = vadd.xlane.f32.xlu0 %v1650_v15  ;;  %vm1505_vm4 = vcmp.ge.f32.partialorder %v6115_v35, %v4621_v48 }
 0x4ef   : > { %v3130_v16 = vsel %vm1505_vm4, 1.0, %v6114_v19  ;;  %v1458_v29 = vmul.f32 0.25, %v1450_v58  ;;  %v1490_v33 = vmul.f32 0.75, %v1450_v58  ;;  %v1474_v34 = vmul.f32 0.5, %v1450_v58 }
 0x4f0   : > { %v1529_v45 = vsel %vm314_vm0, %v3130_v16, 0.0  ;;  %vm1617_vm5 = vcmp.ge.f32.partialorder %v6115_v35, %v4631_v43  ;;  %vm1561_vm6 = vcmp.ge.f32.partialorder %v6115_v35, %v4634_v0 }
 0x4f1   : > { %1530 = vadd.xlane.f32.xlu1 %v1529_v45  ;;  %v4641_v26 = vadd.f32 %v1458_v29, %v4613_v62  ;;  %v3146_v17 = vsel %vm1617_vm5, 1.0, %v6114_v19  ;;  %v4647_v60 = vadd.f32 %v1490_v33, %v4613_v62  ;;  %v4652_v31 = vadd.f32 %v1474_v34, %v4613_v62 }
 0x4f2   : > { %1595 = vadd.xlane.f32.xlu0 %v1594_v50  ;;  %v1641_v13 = vsel %vm314_vm0, %v3146_v17, 0.0  ;;  %v3138_v58 = vsel %vm1561_vm6, 1.0, %v6114_v19 }
 0x4f3   : > { %vm1506_vm7 = vcmp.ge.f32.partialorder %v3631_v14, %v4641_v26  ;;  %vm1618_vm8 = vcmp.ge.f32.partialorder %v3631_v14, %v4647_v60  ;;  %vm1562_vm9 = vcmp.ge.f32.partialorder %v3631_v14, %v4652_v31  ;;  %v1585_v40 = vsel %vm314_vm0, %v3138_v58, 0.0 }
 0x4f4   : > { %v3131_v10 = vsel %vm1506_vm7, 1.0, %v6114_v19  ;;  %v3147_v15 = vsel %vm1618_vm8, 1.0, %v6114_v19  ;;  %v3139_v44 = vsel %vm1562_vm9, 1.0, %v6114_v19 }
 0x4f5   : > { %1642 = vadd.xlane.f32.xlu1 %v1641_v13  ;;  %v1532_v36 = vsel %vm314_vm0, %v3131_v10, 0.0  ;;  %v1644_v56 = vsel %vm314_vm0, %v3147_v15, 0.0  ;;  %v1588_v16 = vsel %vm314_vm0, %v3139_v44, 0.0 }
 0x4f6   : > { %1533 = vadd.xlane.f32.xlu0 %v1532_v36 }
 0x4f9   : > { %1586 = vadd.xlane.f32.xlu1 %v1585_v40 }
 0x4fa   : > { %1645 = vadd.xlane.f32.xlu0 %v1644_v56 }
 0x4fe   : > { %1589 = vadd.xlane.f32.xlu0 %v1588_v16 }
 0x500   : > { %v1277_v29 = vpop.xlane.xlu1 %1276 }
 0x501   : > { %vm1287_vm12 = vcmp.ge.f32.partialorder %v1277_v29, 32.0 }
 0x504   : > { %v1389_v45 = vpop.xlane.xlu1 %1388 }
 0x505   : > { %v1280_v33 = vpop.xlane.xlu0 %1279  ;;  %vm1399_vm13 = vcmp.ge.f32.partialorder %v1389_v45, 32.0 }
 0x506   : > { %vm1288_vm2 = vcmp.ge.f32.partialorder %v1280_v33, 32.0 }
 0x508   : > { %v1271_v34 = vpop.xlane.xlu1 %1270 }
 0x509   : > { %v1392_v50 = vpop.xlane.xlu0 %1391  ;;  %vm1285_vm10 = vcmp.ge.f32.partialorder %v1271_v34, 32.0 }
 0x50a   : > { %v1405_v36 = vsel %vm1285_vm10, %v4444_v55, %v4372_v47  ;;  %v1407_v47 = vsel %vm1287_vm12, %v4432_v9, %v4395_v12  ;;  %vm1400_vm3 = vcmp.ge.f32.partialorder %v1392_v50, 32.0 }
 0x50c   : > { %v1383_v17 = vpop.xlane.xlu1 %1382 }
 0x50d   : > { %v1274_v13 = vpop.xlane.xlu0 %1273  ;;  %vm1397_vm11 = vcmp.ge.f32.partialorder %v1383_v17, 32.0 }
 0x50e   : > { %v1429_v58 = vsel %vm1397_vm11, %v4375_v5, %v4458_v61  ;;  %vm1286_vm15 = vcmp.ge.f32.partialorder %v1274_v13, 32.0  ;;  %v1431_v5 = vsel %vm1399_vm13, %v4399_v41, %v4435_v30 }
 0x510   : > { %v1327_v10 = vpop.xlane.xlu1 %1326 }
 0x511   : > { %vm1341_vm14 = vcmp.ge.f32.partialorder %v1327_v10, 32.0  ;;  %v1386_v15 = vpop.xlane.xlu0 %1385 }
 0x512   : > { %v1413_v40 = vsel %vm1341_vm14, %v4475_v24, %v1405_v36  ;;  %v1437_v56 = vsel %vm1341_vm14, %v1429_v58, %v4475_v24  ;;  %vm1398_vm1 = vcmp.ge.f32.partialorder %v1386_v15, 32.0  ;;  %v1406_v24 = vsel %vm1286_vm15, %v4465_v6, %v4407_v38 }
 0x513   : > { %v4674_v44 = vsel %vm1397_vm11, %v4458_v61, %v1413_v40  ;;  %v4677_v16 = vsel %vm1285_vm10, %v1437_v56, %v4444_v55  ;;  %v1430_v55 = vsel %vm1398_vm1, %v4411_v32, %v4480_v8 }
 0x514   : > { %v1333_v34 = vpop.xlane.xlu1 %1332  ;;  %v1453_v12 = vsub.f32 %v4677_v16, %v4674_v44 }
 0x515   : > { %vm1343_vm4 = vcmp.ge.f32.partialorder %v1333_v34, 32.0  ;;  %v1330_v61 = vpop.xlane.xlu0 %1329 }
 0x516   : > { %v1415_v17 = vsel %vm1343_vm4, %v4489_v28, %v1407_v47  ;;  %v1439_v41 = vsel %vm1343_vm4, %v1431_v5, %v4489_v28  ;;  %vm1342_vm5 = vcmp.ge.f32.partialorder %v1330_v61, 32.0  ;;  %v1461_v56 = vmul.f32 0.25, %v1453_v12 }
 0x517   : > { %v4697_v10 = vsel %vm1399_vm13, %v4435_v30, %v1415_v17  ;;  %v4701_v38 = vsel %vm1287_vm12, %v1439_v41, %v4432_v9  ;;  %v1414_v32 = vsel %vm1342_vm5, %v4494_v53, %v1406_v24  ;;  %v1438_v36 = vsel %vm1342_vm5, %v1430_v55, %v4494_v53 }
 0x518   : > { %v1455_v58 = vsub.f32 %v4701_v38, %v4697_v10  ;;  %v4709_v40 = vsel %vm1398_vm1, %v4480_v8, %v1414_v32  ;;  %v4713_v28 = vsel %vm1286_vm15, %v1438_v36, %v4465_v6  ;;  %v1408_v9 = vsel %vm1288_vm2, %v4450_v23, %v4425_v46 }
 0x519   : > { %v1432_v30 = vsel %vm1400_vm3, %v4429_v11, %v4453_v39  ;;  %v1336_v53 = vpop.xlane.xlu0 %1335  ;;  %v1454_v8 = vsub.f32 %v4713_v28, %v4709_v40  ;;  %v1477_v32 = vmul.f32 0.5, %v1453_v12 }
 0x51a   : > { %vm1344_vm6 = vcmp.ge.f32.partialorder %v1336_v53, 32.0  ;;  %v1463_v29 = vmul.f32 0.25, %v1455_v58  ;;  %v1495_v45 = vmul.f32 0.75, %v1455_v58 }
 0x51b   : > { %v1416_v13 = vsel %vm1344_vm6, %v4505_v63, %v1408_v9  ;;  %v1440_v6 = vsel %vm1344_vm6, %v1432_v30, %v4505_v63  ;;  %v1462_v34 = vmul.f32 0.25, %v1454_v8  ;;  %v1494_v9 = vmul.f32 0.75, %v1454_v8 }
 0x51c   : > { %v4727_v15 = vsel %vm1400_vm3, %v4453_v39, %v1416_v13  ;;  %v4731_v46 = vsel %vm1288_vm2, %v1440_v6, %v4450_v23  ;;  %v4734_v11 = vadd.f32 %v1463_v29, %v4697_v10  ;;  %v4737_v47 = vadd.f32 %v1495_v45, %v4697_v10 }
 0x51d   : > { %v1456_v5 = vsub.f32 %v4731_v46, %v4727_v15  ;;  %v4746_v39 = vadd.f32 %v1461_v56, %v4674_v44  ;;  %v1493_v23 = vmul.f32 0.75, %v1453_v12  ;;  %v4767_v36 = vadd.f32 %v1462_v34, %v4709_v40 }
 0x51e   : > { %vm1511_vm7 = vcmp.ge.f32.partialorder %v3637_v20, %v4734_v11  ;;  %vm1623_vm8 = vcmp.ge.f32.partialorder %v3637_v20, %v4737_v47  ;;  %v4777_v56 = vadd.f32 %v1477_v32, %v4674_v44  ;;  %v1479_v13 = vmul.f32 0.5, %v1455_v58 }
 0x51f   : > { %v3136_v63 = vsel %vm1511_vm7, 1.0, %v6114_v19  ;;  %v1464_v33 = vmul.f32 0.25, %v1456_v5  ;;  %v1496_v50 = vmul.f32 0.75, %v1456_v5  ;;  %v3152_v55 = vsel %vm1623_vm8, 1.0, %v6114_v19 }
 0x520   : > { %v1547_v24 = vsel %vm314_vm0, %v3136_v63, 0.0  ;;  %vm1509_vm9 = vcmp.ge.f32.partialorder %v3641_v22, %v4746_v39  ;;  %v4760_v41 = vadd.f32 %v1493_v23, %v4674_v44  ;;  %v1659_v30 = vsel %vm314_vm0, %v3152_v55, 0.0 }
 0x521   : > { %1548 = vadd.xlane.f32.xlu1 %v1547_v24  ;;  %v4752_v61 = vadd.f32 %v1464_v33, %v4727_v15  ;;  %v4755_v17 = vadd.f32 %v1496_v50, %v4727_v15  ;;  %v3134_v45 = vsel %vm1509_vm9, 1.0, %v6114_v19  ;;  %vm1510_vm13 = vcmp.ge.f32.partialorder %v3653_v18, %v4767_v36 }
 0x522   : > { %vm1621_vm12 = vcmp.ge.f32.partialorder %v3641_v22, %v4760_v41  ;;  %v4782_v6 = vadd.f32 %v1494_v9, %v4709_v40  ;;  %v1478_v23 = vmul.f32 0.5, %v1454_v8  ;;  %v1541_v63 = vsel %vm314_vm0, %v3134_v45, 0.0 }
 0x523   : > { %vm1512_vm10 = vcmp.ge.f32.partialorder %v3647_v27, %v4752_v61  ;;  %vm1624_vm11 = vcmp.ge.f32.partialorder %v3647_v27, %v4755_v17  ;;  %v3150_v50 = vsel %vm1621_vm12, 1.0, %v6114_v19  ;;  %v3135_v34 = vsel %vm1510_vm13, 1.0, %v6114_v19 }
 0x524   : > { %v3137_v53 = vsel %vm1512_vm10, 1.0, %v6114_v19  ;;  %v3153_v12 = vsel %vm1624_vm11, 1.0, %v6114_v19  ;;  %vm1565_vm14 = vcmp.ge.f32.partialorder %v3641_v22, %v4777_v56  ;;  %v4791_v58 = vadd.f32 %v1479_v13, %v4697_v10 }
 0x525   : > { %1660 = vadd.xlane.f32.xlu1 %v1659_v30  ;;  %v1550_v29 = vsel %vm314_vm0, %v3137_v53, 0.0  ;;  %v1662_v33 = vsel %vm314_vm0, %v3153_v12, 0.0  ;;  %vm1622_vm15 = vcmp.ge.f32.partialorder %v3653_v18, %v4782_v6  ;;  %v4796_v8 = vadd.f32 %v1478_v23, %v4709_v40 }
 0x526   : > { %1551 = vadd.xlane.f32.xlu0 %v1550_v29  ;;  %v1480_v24 = vmul.f32 0.5, %v1456_v5  ;;  %v1653_v55 = vsel %vm314_vm0, %v3150_v50, 0.0  ;;  %v1544_v32 = vsel %vm314_vm0, %v3135_v34, 0.0  ;;  %v3142_v9 = vsel %vm1565_vm14, 1.0, %v6114_v19 }
 0x527   : > { %v3151_v30 = vsel %vm1622_vm15, 1.0, %v6114_v19  ;;  %vm1567_vm1 = vcmp.ge.f32.partialorder %v3637_v20, %v4791_v58  ;;  %vm1566_vm2 = vcmp.ge.f32.partialorder %v3653_v18, %v4796_v8  ;;  %v1597_v5 = vsel %vm314_vm0, %v3142_v9, 0.0 }
 0x528   : > { %v4807_v53 = vadd.f32 %v1480_v24, %v4727_v15  ;;  %v1656_v29 = vsel %vm314_vm0, %v3151_v30, 0.0  ;;  %v3144_v45 = vsel %vm1567_vm1, 1.0, %v6114_v19  ;;  %v3143_v12 = vsel %vm1566_vm2, 1.0, %v6114_v19 }
 0x529   : > { %1542 = vadd.xlane.f32.xlu1 %v1541_v63  ;;  %v1603_v13 = vsel %vm314_vm0, %v3144_v45, 0.0  ;;  %v1600_v23 = vsel %vm314_vm0, %v3143_v12, 0.0 }
 0x52a   : > { %1663 = vadd.xlane.f32.xlu0 %v1662_v33  ;;  %vm1568_vm3 = vcmp.ge.f32.partialorder %v3647_v27, %v4807_v53 }
 0x52b   : > { %v3145_v63 = vsel %vm1568_vm3, 1.0, %v6114_v19 }
 0x52c   : > { %v1606_v33 = vsel %vm314_vm0, %v3145_v63, 0.0 }
 0x52d   : > { %1654 = vadd.xlane.f32.xlu1 %v1653_v55 }
 0x52e   : > { %1545 = vadd.xlane.f32.xlu0 %v1544_v32 }
 0x531   : > { %1598 = vadd.xlane.f32.xlu1 %v1597_v5 }
 0x532   : > { %1657 = vadd.xlane.f32.xlu0 %v1656_v29 }
 0x535   : > { %1604 = vadd.xlane.f32.xlu1 %v1603_v13 }
 0x536   : > { %1601 = vadd.xlane.f32.xlu0 %v1600_v23 }
 0x53a   : > { %1607 = vadd.xlane.f32.xlu0 %v1606_v33 }
 0x572   : > { %v1537_v50 = vpop.xlane.xlu1 %1536 }
 0x573   : > { %vm1555_vm4 = vcmp.ge.f32.partialorder %v1537_v50, 32.0 }
 0x574   : > { %v1675_v32 = vsel %vm1555_vm4, %v4546_v3, %v4524_v42 }
 0x576   : > { %v1649_v34 = vpop.xlane.xlu1 %1648 }
 0x577   : > { %v1540_v24 = vpop.xlane.xlu0 %1539  ;;  %vm1667_vm5 = vcmp.ge.f32.partialorder %v1649_v34, 32.0 }
 0x578   : > { %v1699_v9 = vsel %vm1667_vm5, %v4527_v51, %v4549_v49  ;;  %vm1556_vm7 = vcmp.ge.f32.partialorder %v1540_v24, 32.0 }
 0x579   : > { %v1676_v51 = vsel %vm1556_vm7, %v4570_v52, %v4539_v37 }
 0x57a   : > { %v1593_v55 = vpop.xlane.xlu1 %1592 }
 0x57b   : > { %vm1611_vm6 = vcmp.ge.f32.partialorder %v1593_v55, 32.0  ;;  %v1652_v30 = vpop.xlane.xlu0 %1651 }
 0x57c   : > { %v1683_v5 = vsel %vm1611_vm6, %v4558_v21, %v1675_v32  ;;  %v1707_v29 = vsel %vm1611_vm6, %v1699_v9, %v4558_v21  ;;  %vm1668_vm8 = vcmp.ge.f32.partialorder %v1652_v30, 32.0 }
 0x57d   : > { %v4826_v45 = vsel %vm1667_vm5, %v4549_v49, %v1683_v5  ;;  %v4829_v12 = vsel %vm1555_vm4, %v1707_v29, %v4546_v3  ;;  %v1700_v63 = vsel %vm1668_vm8, %v4543_v54, %v4591_v4 }
 0x57e   : > { %v1723_v42 = vsub.f32 %v4829_v12, %v4826_v45  ;;  %v1531_v13 = vpop.xlane.xlu1 %1530 }
 0x57f   : > { %v1596_v23 = vpop.xlane.xlu0 %1595  ;;  %vm1553_vm10 = vcmp.ge.f32.partialorder %v1531_v13, 32.0 }
 0x580   : > { %vm1612_vm9 = vcmp.ge.f32.partialorder %v1596_v23, 32.0  ;;  %v1731_v21 = vmul.f32 0.25, %v1723_v42  ;;  %v1763_v49 = vmul.f32 0.75, %v1723_v42  ;;  %v1747_v50 = vmul.f32 0.5, %v1723_v42 }
 0x581   : > { %v1684_v33 = vsel %vm1612_vm9, %v4594_v2, %v1676_v51  ;;  %v1708_v3 = vsel %vm1612_vm9, %v1700_v63, %v4594_v2  ;;  %v1673_v5 = vsel %vm1553_vm10, %v4621_v48, %v4579_v57 }
 0x582   : > { %v4841_v34 = vsel %vm1668_vm8, %v4591_v4, %v1684_v33  ;;  %v4845_v55 = vsel %vm1556_vm7, %v1708_v3, %v4570_v52  ;;  %v1643_v37 = vpop.xlane.xlu1 %1642  ;;  %v4848_v32 = vadd.f32 %v1731_v21, %v4826_v45  ;;  %v4851_v54 = vadd.f32 %v1763_v49, %v4826_v45 }
 0x583   : > { %v1724_v9 = vsub.f32 %v4845_v55, %v4841_v34  ;;  %vm1665_vm11 = vcmp.ge.f32.partialorder %v1643_v37, 32.0  ;;  %v1534_v2 = vpop.xlane.xlu0 %1533  ;;  %v4860_v52 = vadd.f32 %v1747_v50, %v4826_v45 }
 0x584   : > { %vm1779_vm12 = vcmp.ge.f32.partialorder %v3617_v1, %v4848_v32  ;;  %vm1891_vm13 = vcmp.ge.f32.partialorder %v3617_v1, %v4851_v54  ;;  %v1697_v29 = vsel %vm1665_vm11, %v4583_v25, %v4631_v43  ;;  %vm1554_vm14 = vcmp.ge.f32.partialorder %v1534_v2, 32.0 }
 0x585   : > { %v3156_v4 = vsel %vm1779_vm12, 1.0, %v6114_v19  ;;  %v3172_v24 = vsel %vm1891_vm13, 1.0, %v6114_v19  ;;  %v1732_v30 = vmul.f32 0.25, %v1724_v9  ;;  %v1764_v23 = vmul.f32 0.75, %v1724_v9 }
 0x586   : > { %v1587_v42 = vpop.xlane.xlu1 %1586  ;;  %v1807_v51 = vsel %vm314_vm0, %v3156_v4, 0.0  ;;  %v1748_v49 = vmul.f32 0.5, %v1724_v9  ;;  %v1919_v3 = vsel %vm314_vm0, %v3172_v24, 0.0  ;;  %vm1835_vm1 = vcmp.ge.f32.partialorder %v3617_v1, %v4860_v52 }
 0x587   : > { %vm1609_vm15 = vcmp.ge.f32.partialorder %v1587_v42, 32.0  ;;  %1808 = vadd.xlane.f32.xlu1 %v1807_v51  ;;  %v1646_v63 = vpop.xlane.xlu0 %1645  ;;  %v4872_v21 = vadd.f32 %v1732_v30, %v4841_v34  ;;  %v4893_v4 = vadd.f32 %v1764_v23, %v4841_v34  ;;  %v3164_v24 = vsel %vm1835_vm1, 1.0, %v6114_v19 }
 0x588   : > { %v1681_v33 = vsel %vm1609_vm15, %v4634_v0, %v1673_v5  ;;  %v1705_v57 = vsel %vm1609_vm15, %v1697_v29, %v4634_v0  ;;  %vm1666_vm2 = vcmp.ge.f32.partialorder %v1646_v63, 32.0  ;;  %v4896_v37 = vadd.f32 %v1748_v49, %v4841_v34 }
 0x589   : > { %v4881_v25 = vsel %vm1665_vm11, %v4631_v43, %v1681_v33  ;;  %v4885_v50 = vsel %vm1553_vm10, %v1705_v57, %v4621_v48  ;;  %vm1780_vm3 = vcmp.ge.f32.partialorder %v3623_v7, %v4872_v21  ;;  %v1674_v48 = vsel %vm1554_vm14, %v4641_v26, %v4613_v62 }
 0x58a   : > { %v1721_v0 = vsub.f32 %v4885_v50, %v4881_v25  ;;  %v3157_v9 = vsel %vm1780_vm3, 1.0, %v6114_v19  ;;  %v1698_v30 = vsel %vm1666_vm2, %v4617_v59, %v4647_v60  ;;  %vm1892_vm5 = vcmp.ge.f32.partialorder %v3623_v7, %v4893_v4 }
 0x58b   : > { %1920 = vadd.xlane.f32.xlu1 %v1919_v3  ;;  %v1590_v43 = vpop.xlane.xlu0 %1589  ;;  %v1810_v13 = vsel %vm314_vm0, %v3157_v9, 0.0  ;;  %v3173_v42 = vsel %vm1892_vm5, 1.0, %v6114_v19  ;;  %vm1836_vm6 = vcmp.ge.f32.partialorder %v3623_v7, %v4896_v37  ;;  %v1863_v23 = vsel %vm314_vm0, %v3164_v24, 0.0 }
 0x58c   : > { %vm1610_vm4 = vcmp.ge.f32.partialorder %v1590_v43, 32.0  ;;  %1811 = vadd.xlane.f32.xlu0 %v1810_v13  ;;  %v1729_v5 = vmul.f32 0.25, %v1721_v0  ;;  %v1922_v33 = vsel %vm314_vm0, %v3173_v42, 0.0  ;;  %v1761_v57 = vmul.f32 0.75, %v1721_v0 }
 0x58d   : > { %v1682_v29 = vsel %vm1610_vm4, %v4652_v31, %v1674_v48  ;;  %v1706_v62 = vsel %vm1610_vm4, %v1698_v30, %v4652_v31  ;;  %v1745_v3 = vmul.f32 0.5, %v1721_v0 }
 0x58e   : > { %v4915_v51 = vsel %vm1666_vm2, %v4647_v60, %v1682_v29  ;;  %v4919_v59 = vsel %vm1554_vm14, %v1706_v62, %v4641_v26  ;;  %v4923_v49 = vadd.f32 %v1729_v5, %v4881_v25  ;;  %v3165_v26 = vsel %vm1836_vm6, 1.0, %v6114_v19 }
 0x58f   : > { %v1722_v31 = vsub.f32 %v4919_v59, %v4915_v51  ;;  %1864 = vadd.xlane.f32.xlu1 %v1863_v23  ;;  %v4933_v2 = vadd.f32 %v1761_v57, %v4881_v25  ;;  %v4936_v9 = vadd.f32 %v1745_v3, %v4881_v25  ;;  %v1866_v0 = vsel %vm314_vm0, %v3165_v26, 0.0 }
 0x590   : > { %1923 = vadd.xlane.f32.xlu0 %v1922_v33  ;;  %vm1777_vm7 = vcmp.ge.f32.partialorder %v6115_v35, %v4923_v49 }
 0x591   : > { %v3154_v60 = vsel %vm1777_vm7, 1.0, %v6114_v19  ;;  %v1730_v63 = vmul.f32 0.25, %v1722_v31  ;;  %v1762_v43 = vmul.f32 0.75, %v1722_v31  ;;  %v1746_v13 = vmul.f32 0.5, %v1722_v31 }
 0x592   : > { %v1801_v48 = vsel %vm314_vm0, %v3154_v60, 0.0  ;;  %vm1889_vm8 = vcmp.ge.f32.partialorder %v6115_v35, %v4933_v2  ;;  %vm1833_vm9 = vcmp.ge.f32.partialorder %v6115_v35, %v4936_v9 }
 0x593   : > { %1802 = vadd.xlane.f32.xlu1 %v1801_v48  ;;  %v4943_v24 = vadd.f32 %v1730_v63, %v4915_v51  ;;  %v3170_v30 = vsel %vm1889_vm8, 1.0, %v6114_v19  ;;  %v4949_v5 = vadd.f32 %v1762_v43, %v4915_v51  ;;  %v4954_v29 = vadd.f32 %v1746_v13, %v4915_v51 }
 0x594   : > { %1867 = vadd.xlane.f32.xlu0 %v1866_v0  ;;  %v1913_v62 = vsel %vm314_vm0, %v3170_v30, 0.0  ;;  %v3162_v31 = vsel %vm1833_vm9, 1.0, %v6114_v19 }
 0x595   : > { %vm1778_vm10 = vcmp.ge.f32.partialorder %v3631_v14, %v4943_v24  ;;  %vm1890_vm11 = vcmp.ge.f32.partialorder %v3631_v14, %v4949_v5  ;;  %vm1834_vm12 = vcmp.ge.f32.partialorder %v3631_v14, %v4954_v29  ;;  %v1857_v57 = vsel %vm314_vm0, %v3162_v31, 0.0 }
 0x596   : > { %v3155_v42 = vsel %vm1778_vm10, 1.0, %v6114_v19  ;;  %v3171_v33 = vsel %vm1890_vm11, 1.0, %v6114_v19  ;;  %v3163_v26 = vsel %vm1834_vm12, 1.0, %v6114_v19 }
 0x597   : > { %1914 = vadd.xlane.f32.xlu1 %v1913_v62  ;;  %v1804_v23 = vsel %vm314_vm0, %v3155_v42, 0.0  ;;  %v1916_v3 = vsel %vm314_vm0, %v3171_v33, 0.0  ;;  %v1860_v60 = vsel %vm314_vm0, %v3163_v26, 0.0 }
 0x598   : > { %1805 = vadd.xlane.f32.xlu0 %v1804_v23 }
 0x59b   : > { %1858 = vadd.xlane.f32.xlu1 %v1857_v57 }
 0x59c   : > { %1917 = vadd.xlane.f32.xlu0 %v1916_v3 }
 0x5a0   : > { %1861 = vadd.xlane.f32.xlu0 %v1860_v60 }
 0x5ae   : > { %v1549_v63 = vpop.xlane.xlu1 %1548 }
 0x5af   : > { %vm1559_vm15 = vcmp.ge.f32.partialorder %v1549_v63, 32.0 }
 0x5b2   : > { %v1661_v48 = vpop.xlane.xlu1 %1660 }
 0x5b3   : > { %v1552_v43 = vpop.xlane.xlu0 %1551  ;;  %vm1671_vm1 = vcmp.ge.f32.partialorder %v1661_v48, 32.0 }
 0x5b4   : > { %vm1560_vm5 = vcmp.ge.f32.partialorder %v1552_v43, 32.0 }
 0x5b6   : > { %v1543_v13 = vpop.xlane.xlu1 %1542 }
 0x5b7   : > { %v1664_v0 = vpop.xlane.xlu0 %1663  ;;  %vm1557_vm13 = vcmp.ge.f32.partialorder %v1543_v13, 32.0 }
 0x5b8   : > { %v1677_v23 = vsel %vm1557_vm13, %v4746_v39, %v4674_v44  ;;  %v1679_v44 = vsel %vm1559_vm15, %v4734_v11, %v4697_v10  ;;  %vm1672_vm6 = vcmp.ge.f32.partialorder %v1664_v0, 32.0 }
 0x5ba   : > { %v1655_v30 = vpop.xlane.xlu1 %1654 }
 0x5bb   : > { %v1546_v62 = vpop.xlane.xlu0 %1545  ;;  %vm1669_vm14 = vcmp.ge.f32.partialorder %v1655_v30, 32.0 }
 0x5bc   : > { %v1701_v31 = vsel %vm1669_vm14, %v4677_v16, %v4760_v41  ;;  %vm1558_vm3 = vcmp.ge.f32.partialorder %v1546_v62, 32.0  ;;  %v1703_v16 = vsel %vm1671_vm1, %v4701_v38, %v4737_v47 }
 0x5be   : > { %v1599_v42 = vpop.xlane.xlu1 %1598 }
 0x5bf   : > { %vm1613_vm2 = vcmp.ge.f32.partialorder %v1599_v42, 32.0  ;;  %v1658_v33 = vpop.xlane.xlu0 %1657 }
 0x5c0   : > { %v1685_v57 = vsel %vm1613_vm2, %v4777_v56, %v1677_v23  ;;  %v1709_v3 = vsel %vm1613_vm2, %v1701_v31, %v4777_v56  ;;  %vm1670_vm4 = vcmp.ge.f32.partialorder %v1658_v33, 32.0  ;;  %v1678_v56 = vsel %vm1558_vm3, %v4767_v36, %v4709_v40 }
 0x5c1   : > { %v4976_v26 = vsel %vm1669_vm14, %v4760_v41, %v1685_v57  ;;  %v4979_v60 = vsel %vm1557_vm13, %v1709_v3, %v4746_v39  ;;  %v1702_v39 = vsel %vm1670_vm4, %v4713_v28, %v4782_v6 }
 0x5c2   : > { %v1605_v13 = vpop.xlane.xlu1 %1604  ;;  %v1725_v10 = vsub.f32 %v4979_v60, %v4976_v26 }
 0x5c3   : > { %vm1615_vm7 = vcmp.ge.f32.partialorder %v1605_v13, 32.0  ;;  %v1602_v41 = vpop.xlane.xlu0 %1601 }
 0x5c4   : > { %v1687_v30 = vsel %vm1615_vm7, %v4791_v58, %v1679_v44  ;;  %v1711_v38 = vsel %vm1615_vm7, %v1703_v16, %v4791_v58  ;;  %vm1614_vm8 = vcmp.ge.f32.partialorder %v1602_v41, 32.0  ;;  %v1733_v3 = vmul.f32 0.25, %v1725_v10 }
 0x5c5   : > { %v4999_v42 = vsel %vm1671_vm1, %v4737_v47, %v1687_v30  ;;  %v5003_v40 = vsel %vm1559_vm15, %v1711_v38, %v4734_v11  ;;  %v1686_v28 = vsel %vm1614_vm8, %v4796_v8, %v1678_v56  ;;  %v1710_v23 = vsel %vm1614_vm8, %v1702_v39, %v4796_v8 }
 0x5c6   : > { %v1727_v31 = vsub.f32 %v5003_v40, %v4999_v42  ;;  %v5011_v57 = vsel %vm1670_vm4, %v4782_v6, %v1686_v28  ;;  %v5015_v58 = vsel %vm1558_vm3, %v1710_v23, %v4767_v36  ;;  %v1680_v11 = vsel %vm1560_vm5, %v4752_v61, %v4727_v15 }
 0x5c7   : > { %v1704_v47 = vsel %vm1672_vm6, %v4731_v46, %v4755_v17  ;;  %v1608_v8 = vpop.xlane.xlu0 %1607  ;;  %v1726_v6 = vsub.f32 %v5015_v58, %v5011_v57  ;;  %v1749_v28 = vmul.f32 0.5, %v1725_v10 }
 0x5c8   : > { %vm1616_vm9 = vcmp.ge.f32.partialorder %v1608_v8, 32.0  ;;  %v1735_v63 = vmul.f32 0.25, %v1727_v31  ;;  %v1767_v48 = vmul.f32 0.75, %v1727_v31 }
 0x5c9   : > { %v1688_v62 = vsel %vm1616_vm9, %v4807_v53, %v1680_v11  ;;  %v1712_v36 = vsel %vm1616_vm9, %v1704_v47, %v4807_v53  ;;  %v1734_v13 = vmul.f32 0.25, %v1726_v6  ;;  %v1766_v11 = vmul.f32 0.75, %v1726_v6 }
 0x5ca   : > { %v5029_v33 = vsel %vm1672_vm6, %v4755_v17, %v1688_v62  ;;  %v5033_v15 = vsel %vm1560_vm5, %v1712_v36, %v4752_v61  ;;  %v5036_v46 = vadd.f32 %v1735_v63, %v4999_v42  ;;  %v5039_v44 = vadd.f32 %v1767_v48, %v4999_v42 }
 0x5cb   : > { %v1728_v16 = vsub.f32 %v5033_v15, %v5029_v33  ;;  %v5048_v17 = vadd.f32 %v1733_v3, %v4976_v26  ;;  %v1765_v61 = vmul.f32 0.75, %v1725_v10  ;;  %v5069_v23 = vadd.f32 %v1734_v13, %v5011_v57 }
 0x5cc   : > { %vm1783_vm10 = vcmp.ge.f32.partialorder %v3637_v20, %v5036_v46  ;;  %vm1895_vm11 = vcmp.ge.f32.partialorder %v3637_v20, %v5039_v44  ;;  %v5079_v3 = vadd.f32 %v1749_v28, %v4976_v26  ;;  %v1751_v62 = vmul.f32 0.5, %v1727_v31 }
 0x5cd   : > { %v3160_v53 = vsel %vm1783_vm10, 1.0, %v6114_v19  ;;  %v1736_v43 = vmul.f32 0.25, %v1728_v16  ;;  %v1768_v0 = vmul.f32 0.75, %v1728_v16  ;;  %v3176_v39 = vsel %vm1895_vm11, 1.0, %v6114_v19 }
 0x5ce   : > { %v1819_v56 = vsel %vm314_vm0, %v3160_v53, 0.0  ;;  %vm1781_vm12 = vcmp.ge.f32.partialorder %v3641_v22, %v5048_v17  ;;  %v5062_v38 = vadd.f32 %v1765_v61, %v4976_v26  ;;  %v1931_v47 = vsel %vm314_vm0, %v3176_v39, 0.0 }
 0x5cf   : > { %1820 = vadd.xlane.f32.xlu1 %v1819_v56  ;;  %v5054_v41 = vadd.f32 %v1736_v43, %v5029_v33  ;;  %v5057_v30 = vadd.f32 %v1768_v0, %v5029_v33  ;;  %v3158_v48 = vsel %vm1781_vm12, 1.0, %v6114_v19  ;;  %vm1782_vm1 = vcmp.ge.f32.partialorder %v3653_v18, %v5069_v23 }
 0x5d0   : > { %vm1893_vm15 = vcmp.ge.f32.partialorder %v3641_v22, %v5062_v38  ;;  %v5084_v36 = vadd.f32 %v1766_v11, %v5011_v57  ;;  %v1750_v61 = vmul.f32 0.5, %v1726_v6  ;;  %v1813_v53 = vsel %vm314_vm0, %v3158_v48, 0.0 }
 0x5d1   : > { %vm1784_vm13 = vcmp.ge.f32.partialorder %v3647_v27, %v5054_v41  ;;  %vm1896_vm14 = vcmp.ge.f32.partialorder %v3647_v27, %v5057_v30  ;;  %v3174_v0 = vsel %vm1893_vm15, 1.0, %v6114_v19  ;;  %v3159_v13 = vsel %vm1782_vm1, 1.0, %v6114_v19 }
 0x5d2   : > { %v3161_v8 = vsel %vm1784_vm13, 1.0, %v6114_v19  ;;  %v3177_v10 = vsel %vm1896_vm14, 1.0, %v6114_v19  ;;  %vm1837_vm2 = vcmp.ge.f32.partialorder %v3641_v22, %v5079_v3  ;;  %v5093_v31 = vadd.f32 %v1751_v62, %v4999_v42 }
 0x5d3   : > { %1932 = vadd.xlane.f32.xlu1 %v1931_v47  ;;  %v1822_v63 = vsel %vm314_vm0, %v3161_v8, 0.0  ;;  %v1934_v43 = vsel %vm314_vm0, %v3177_v10, 0.0  ;;  %vm1894_vm3 = vcmp.ge.f32.partialorder %v3653_v18, %v5084_v36  ;;  %v5098_v6 = vadd.f32 %v1750_v61, %v5011_v57 }
 0x5d4   : > { %1823 = vadd.xlane.f32.xlu0 %v1822_v63  ;;  %v1752_v56 = vmul.f32 0.5, %v1728_v16  ;;  %v1925_v39 = vsel %vm314_vm0, %v3174_v0, 0.0  ;;  %v1816_v28 = vsel %vm314_vm0, %v3159_v13, 0.0  ;;  %v3166_v11 = vsel %vm1837_vm2, 1.0, %v6114_v19 }
 0x5d5   : > { %v3175_v47 = vsel %vm1894_vm3, 1.0, %v6114_v19  ;;  %vm1839_vm4 = vcmp.ge.f32.partialorder %v3637_v20, %v5093_v31  ;;  %vm1838_vm5 = vcmp.ge.f32.partialorder %v3653_v18, %v5098_v6  ;;  %v1869_v16 = vsel %vm314_vm0, %v3166_v11, 0.0 }
 0x5d6   : > { %v5109_v8 = vadd.f32 %v1752_v56, %v5029_v33  ;;  %v1928_v63 = vsel %vm314_vm0, %v3175_v47, 0.0  ;;  %v3168_v48 = vsel %vm1839_vm4, 1.0, %v6114_v19  ;;  %v3167_v10 = vsel %vm1838_vm5, 1.0, %v6114_v19 }
 0x5d7   : > { %1814 = vadd.xlane.f32.xlu1 %v1813_v53  ;;  %v1875_v62 = vsel %vm314_vm0, %v3168_v48, 0.0  ;;  %v1872_v61 = vsel %vm314_vm0, %v3167_v10, 0.0 }
 0x5d8   : > { %1935 = vadd.xlane.f32.xlu0 %v1934_v43  ;;  %vm1840_vm6 = vcmp.ge.f32.partialorder %v3647_v27, %v5109_v8 }
 0x5d9   : > { %v3169_v53 = vsel %vm1840_vm6, 1.0, %v6114_v19 }
 0x5da   : > { %v1878_v43 = vsel %vm314_vm0, %v3169_v53, 0.0 }
 0x5db   : > { %1926 = vadd.xlane.f32.xlu1 %v1925_v39 }
 0x5dc   : > { %1817 = vadd.xlane.f32.xlu0 %v1816_v28 }
 0x5df   : > { %1870 = vadd.xlane.f32.xlu1 %v1869_v16 }
 0x5e0   : > { %1929 = vadd.xlane.f32.xlu0 %v1928_v63 }
 0x5e3   : > { %1876 = vadd.xlane.f32.xlu1 %v1875_v62 }
 0x5e4   : > { %1873 = vadd.xlane.f32.xlu0 %v1872_v61 }
 0x5e8   : > { %1879 = vadd.xlane.f32.xlu0 %v1878_v43 }
 0x614   : > { %v1809_v0 = vpop.xlane.xlu1 %1808 }
 0x615   : > { %vm1827_vm7 = vcmp.ge.f32.partialorder %v1809_v0, 32.0 }
 0x616   : > { %v1947_v28 = vsel %vm1827_vm7, %v4848_v32, %v4826_v45 }
 0x618   : > { %v1921_v13 = vpop.xlane.xlu1 %1920 }
 0x619   : > { %v1812_v56 = vpop.xlane.xlu0 %1811  ;;  %vm1939_vm8 = vcmp.ge.f32.partialorder %v1921_v13, 32.0 }
 0x61a   : > { %v1971_v11 = vsel %vm1939_vm8, %v4829_v12, %v4851_v54  ;;  %vm1828_vm10 = vcmp.ge.f32.partialorder %v1812_v56, 32.0 }
 0x61b   : > { %v1948_v12 = vsel %vm1828_vm10, %v4872_v21, %v4841_v34 }
 0x61c   : > { %v1865_v39 = vpop.xlane.xlu1 %1864 }
 0x61d   : > { %vm1883_vm9 = vcmp.ge.f32.partialorder %v1865_v39, 32.0  ;;  %v1924_v47 = vpop.xlane.xlu0 %1923 }
 0x61e   : > { %v1955_v16 = vsel %vm1883_vm9, %v4860_v52, %v1947_v28  ;;  %v1979_v63 = vsel %vm1883_vm9, %v1971_v11, %v4860_v52  ;;  %vm1940_vm11 = vcmp.ge.f32.partialorder %v1924_v47, 32.0 }
 0x61f   : > { %v5128_v48 = vsel %vm1939_vm8, %v4851_v54, %v1955_v16  ;;  %v5131_v10 = vsel %vm1827_vm7, %v1979_v63, %v4848_v32  ;;  %v1972_v53 = vsel %vm1940_vm11, %v4845_v55, %v4893_v4 }
 0x620   : > { %v1995_v45 = vsub.f32 %v5131_v10, %v5128_v48  ;;  %v1803_v62 = vpop.xlane.xlu1 %1802 }
 0x621   : > { %v1868_v61 = vpop.xlane.xlu0 %1867  ;;  %vm1825_vm13 = vcmp.ge.f32.partialorder %v1803_v62, 32.0 }
 0x622   : > { %vm1884_vm12 = vcmp.ge.f32.partialorder %v1868_v61, 32.0  ;;  %v2003_v52 = vmul.f32 0.25, %v1995_v45  ;;  %v2035_v54 = vmul.f32 0.75, %v1995_v45  ;;  %v2019_v0 = vmul.f32 0.5, %v1995_v45 }
 0x623   : > { %v1956_v43 = vsel %vm1884_vm12, %v4896_v37, %v1948_v12  ;;  %v1980_v32 = vsel %vm1884_vm12, %v1972_v53, %v4896_v37  ;;  %v1945_v16 = vsel %vm1825_vm13, %v4923_v49, %v4881_v25 }
 0x624   : > { %v5143_v13 = vsel %vm1940_vm11, %v4893_v4, %v1956_v43  ;;  %v5147_v39 = vsel %vm1828_vm10, %v1980_v32, %v4872_v21  ;;  %v1915_v34 = vpop.xlane.xlu1 %1914  ;;  %v5150_v28 = vadd.f32 %v2003_v52, %v5128_v48  ;;  %v5153_v55 = vadd.f32 %v2035_v54, %v5128_v48 }
 0x625   : > { %v1996_v11 = vsub.f32 %v5147_v39, %v5143_v13  ;;  %vm1937_vm14 = vcmp.ge.f32.partialorder %v1915_v34, 32.0  ;;  %v1806_v37 = vpop.xlane.xlu0 %1805  ;;  %v5162_v21 = vadd.f32 %v2019_v0, %v5128_v48 }
 0x626   : > { %vm2051_vm15 = vcmp.ge.f32.partialorder %v3617_v1, %v5150_v28  ;;  %vm2163_vm1 = vcmp.ge.f32.partialorder %v3617_v1, %v5153_v55  ;;  %v1969_v63 = vsel %vm1937_vm14, %v4885_v50, %v4933_v2  ;;  %vm1826_vm2 = vcmp.ge.f32.partialorder %v1806_v37, 32.0 }
 0x627   : > { %v3180_v4 = vsel %vm2051_vm15, 1.0, %v6114_v19  ;;  %v3196_v56 = vsel %vm2163_vm1, 1.0, %v6114_v19  ;;  %v2004_v47 = vmul.f32 0.25, %v1996_v11  ;;  %v2036_v61 = vmul.f32 0.75, %v1996_v11 }
 0x628   : > { %v1859_v45 = vpop.xlane.xlu1 %1858  ;;  %v2079_v12 = vsel %vm314_vm0, %v3180_v4, 0.0  ;;  %v2020_v54 = vmul.f32 0.5, %v1996_v11  ;;  %v2191_v32 = vsel %vm314_vm0, %v3196_v56, 0.0  ;;  %vm2107_vm4 = vcmp.ge.f32.partialorder %v3617_v1, %v5162_v21 }
 0x629   : > { %vm1881_vm3 = vcmp.ge.f32.partialorder %v1859_v45, 32.0  ;;  %2080 = vadd.xlane.f32.xlu1 %v2079_v12  ;;  %v1918_v53 = vpop.xlane.xlu0 %1917  ;;  %v5174_v52 = vadd.f32 %v2004_v47, %v5143_v13  ;;  %v5195_v4 = vadd.f32 %v2036_v61, %v5143_v13  ;;  %v3188_v56 = vsel %vm2107_vm4, 1.0, %v6114_v19 }
 0x62a   : > { %v1953_v43 = vsel %vm1881_vm3, %v4936_v9, %v1945_v16  ;;  %v1977_v25 = vsel %vm1881_vm3, %v1969_v63, %v4936_v9  ;;  %vm1938_vm5 = vcmp.ge.f32.partialorder %v1918_v53, 32.0  ;;  %v5198_v34 = vadd.f32 %v2020_v54, %v5143_v13 }
 0x62b   : > { %v5183_v50 = vsel %vm1937_vm14, %v4933_v2, %v1953_v43  ;;  %v5187_v0 = vsel %vm1825_vm13, %v1977_v25, %v4923_v49  ;;  %vm2052_vm6 = vcmp.ge.f32.partialorder %v3623_v7, %v5174_v52  ;;  %v1946_v49 = vsel %vm1826_vm2, %v4943_v24, %v4915_v51 }
 0x62c   : > { %v1993_v9 = vsub.f32 %v5187_v0, %v5183_v50  ;;  %v3181_v11 = vsel %vm2052_vm6, 1.0, %v6114_v19  ;;  %v1970_v47 = vsel %vm1938_vm5, %v4919_v59, %v4949_v5  ;;  %vm2164_vm8 = vcmp.ge.f32.partialorder %v3623_v7, %v5195_v4 }
 0x62d   : > { %2192 = vadd.xlane.f32.xlu1 %v2191_v32  ;;  %v1862_v2 = vpop.xlane.xlu0 %1861  ;;  %v2082_v62 = vsel %vm314_vm0, %v3181_v11, 0.0  ;;  %v3197_v45 = vsel %vm2164_vm8, 1.0, %v6114_v19  ;;  %vm2108_vm9 = vcmp.ge.f32.partialorder %v3623_v7, %v5198_v34  ;;  %v2135_v61 = vsel %vm314_vm0, %v3188_v56, 0.0 }
 0x62e   : > { %vm1882_vm7 = vcmp.ge.f32.partialorder %v1862_v2, 32.0  ;;  %2083 = vadd.xlane.f32.xlu0 %v2082_v62  ;;  %v2001_v16 = vmul.f32 0.25, %v1993_v9  ;;  %v2194_v43 = vsel %vm314_vm0, %v3197_v45, 0.0  ;;  %v2033_v25 = vmul.f32 0.75, %v1993_v9 }
 0x62f   : > { %v1954_v63 = vsel %vm1882_vm7, %v4954_v29, %v1946_v49  ;;  %v1978_v51 = vsel %vm1882_vm7, %v1970_v47, %v4954_v29  ;;  %v2017_v32 = vmul.f32 0.5, %v1993_v9 }
 0x630   : > { %v5217_v12 = vsel %vm1938_vm5, %v4949_v5, %v1954_v63  ;;  %v5221_v59 = vsel %vm1826_vm2, %v1978_v51, %v4943_v24  ;;  %v5225_v54 = vadd.f32 %v2001_v16, %v5183_v50  ;;  %v3189_v24 = vsel %vm2108_vm9, 1.0, %v6114_v19 }
 0x631   : > { %v1994_v29 = vsub.f32 %v5221_v59, %v5217_v12  ;;  %2136 = vadd.xlane.f32.xlu1 %v2135_v61  ;;  %v5235_v37 = vadd.f32 %v2033_v25, %v5183_v50  ;;  %v5238_v11 = vadd.f32 %v2017_v32, %v5183_v50  ;;  %v2138_v9 = vsel %vm314_vm0, %v3189_v24, 0.0 }
 0x632   : > { %2195 = vadd.xlane.f32.xlu0 %v2194_v43  ;;  %vm2049_vm10 = vcmp.ge.f32.partialorder %v6115_v35, %v5225_v54 }
 0x633   : > { %v3178_v5 = vsel %vm2049_vm10, 1.0, %v6114_v19  ;;  %v2002_v53 = vmul.f32 0.25, %v1994_v29  ;;  %v2034_v2 = vmul.f32 0.75, %v1994_v29  ;;  %v2018_v62 = vmul.f32 0.5, %v1994_v29 }
 0x634   : > { %v2073_v49 = vsel %vm314_vm0, %v3178_v5, 0.0  ;;  %vm2161_vm11 = vcmp.ge.f32.partialorder %v6115_v35, %v5235_v37  ;;  %vm2105_vm12 = vcmp.ge.f32.partialorder %v6115_v35, %v5238_v11 }
 0x635   : > { %2074 = vadd.xlane.f32.xlu1 %v2073_v49  ;;  %v5245_v56 = vadd.f32 %v2002_v53, %v5217_v12  ;;  %v3194_v47 = vsel %vm2161_vm11, 1.0, %v6114_v19  ;;  %v5251_v16 = vadd.f32 %v2034_v2, %v5217_v12  ;;  %v5256_v63 = vadd.f32 %v2018_v62, %v5217_v12 }
 0x636   : > { %2139 = vadd.xlane.f32.xlu0 %v2138_v9  ;;  %v2185_v51 = vsel %vm314_vm0, %v3194_v47, 0.0  ;;  %v3186_v29 = vsel %vm2105_vm12, 1.0, %v6114_v19 }
 0x637   : > { %vm2050_vm13 = vcmp.ge.f32.partialorder %v3631_v14, %v5245_v56  ;;  %vm2162_vm14 = vcmp.ge.f32.partialorder %v3631_v14, %v5251_v16  ;;  %vm2106_vm15 = vcmp.ge.f32.partialorder %v3631_v14, %v5256_v63  ;;  %v2129_v25 = vsel %vm314_vm0, %v3186_v29, 0.0 }
 0x638   : > { %v3179_v45 = vsel %vm2050_vm13, 1.0, %v6114_v19  ;;  %v3195_v43 = vsel %vm2162_vm14, 1.0, %v6114_v19  ;;  %v3187_v24 = vsel %vm2106_vm15, 1.0, %v6114_v19 }
 0x639   : > { %2186 = vadd.xlane.f32.xlu1 %v2185_v51  ;;  %v2076_v61 = vsel %vm314_vm0, %v3179_v45, 0.0  ;;  %v2188_v32 = vsel %vm314_vm0, %v3195_v43, 0.0  ;;  %v2132_v5 = vsel %vm314_vm0, %v3187_v24, 0.0 }
 0x63a   : > { %2077 = vadd.xlane.f32.xlu0 %v2076_v61 }
 0x63d   : > { %2130 = vadd.xlane.f32.xlu1 %v2129_v25 }
 0x63e   : > { %2189 = vadd.xlane.f32.xlu0 %v2188_v32 }
 0x642   : > { %2133 = vadd.xlane.f32.xlu0 %v2132_v5 }
 0x65c   : > { %v1821_v53 = vpop.xlane.xlu1 %1820 }
 0x65d   : > { %vm1831_vm3 = vcmp.ge.f32.partialorder %v1821_v53, 32.0 }
 0x660   : > { %v1933_v49 = vpop.xlane.xlu1 %1932 }
 0x661   : > { %v1824_v2 = vpop.xlane.xlu0 %1823  ;;  %vm1943_vm4 = vcmp.ge.f32.partialorder %v1933_v49, 32.0 }
 0x662   : > { %vm1832_vm8 = vcmp.ge.f32.partialorder %v1824_v2, 32.0 }
 0x664   : > { %v1815_v62 = vpop.xlane.xlu1 %1814 }
 0x665   : > { %v1936_v9 = vpop.xlane.xlu0 %1935  ;;  %vm1829_vm1 = vcmp.ge.f32.partialorder %v1815_v62, 32.0 }
 0x666   : > { %v1949_v61 = vsel %vm1829_vm1, %v5048_v17, %v4976_v26  ;;  %v1951_v26 = vsel %vm1831_vm3, %v5036_v46, %v4999_v42  ;;  %vm1944_vm9 = vcmp.ge.f32.partialorder %v1936_v9, 32.0 }
 0x668   : > { %v1927_v47 = vpop.xlane.xlu1 %1926 }
 0x669   : > { %v1818_v51 = vpop.xlane.xlu0 %1817  ;;  %vm1941_vm2 = vcmp.ge.f32.partialorder %v1927_v47, 32.0 }
 0x66a   : > { %v1973_v29 = vsel %vm1941_vm2, %v4979_v60, %v5062_v38  ;;  %vm1830_vm6 = vcmp.ge.f32.partialorder %v1818_v51, 32.0  ;;  %v1975_v60 = vsel %vm1943_vm4, %v5003_v40, %v5039_v44 }
 0x66c   : > { %v1871_v45 = vpop.xlane.xlu1 %1870 }
 0x66d   : > { %vm1885_vm5 = vcmp.ge.f32.partialorder %v1871_v45, 32.0  ;;  %v1930_v43 = vpop.xlane.xlu0 %1929 }
 0x66e   : > { %v1957_v25 = vsel %vm1885_vm5, %v5079_v3, %v1949_v61  ;;  %v1981_v32 = vsel %vm1885_vm5, %v1973_v29, %v5079_v3  ;;  %vm1942_vm7 = vcmp.ge.f32.partialorder %v1930_v43, 32.0  ;;  %v1950_v3 = vsel %vm1830_vm6, %v5069_v23, %v5011_v57 }
 0x66f   : > { %v5278_v24 = vsel %vm1941_vm2, %v5062_v38, %v1957_v25  ;;  %v5281_v5 = vsel %vm1829_vm1, %v1981_v32, %v5048_v17  ;;  %v1974_v17 = vsel %vm1942_vm7, %v5015_v58, %v5084_v36 }
 0x670   : > { %v1877_v62 = vpop.xlane.xlu1 %1876  ;;  %v1997_v42 = vsub.f32 %v5281_v5, %v5278_v24 }
 0x671   : > { %vm1887_vm10 = vcmp.ge.f32.partialorder %v1877_v62, 32.0  ;;  %v1874_v38 = vpop.xlane.xlu0 %1873 }
 0x672   : > { %v1959_v47 = vsel %vm1887_vm10, %v5093_v31, %v1951_v26  ;;  %v1983_v40 = vsel %vm1887_vm10, %v1975_v60, %v5093_v31  ;;  %vm1886_vm11 = vcmp.ge.f32.partialorder %v1874_v38, 32.0  ;;  %v2005_v32 = vmul.f32 0.25, %v1997_v42 }
 0x673   : > { %v5301_v45 = vsel %vm1943_vm4, %v5039_v44, %v1959_v47  ;;  %v5305_v57 = vsel %vm1831_vm3, %v1983_v40, %v5036_v46  ;;  %v1958_v58 = vsel %vm1886_vm11, %v5098_v6, %v1950_v3  ;;  %v1982_v61 = vsel %vm1886_vm11, %v1974_v17, %v5098_v6 }
 0x674   : > { %v1999_v29 = vsub.f32 %v5305_v57, %v5301_v45  ;;  %v5313_v25 = vsel %vm1942_vm7, %v5084_v36, %v1958_v58  ;;  %v5317_v31 = vsel %vm1830_vm6, %v1982_v61, %v5069_v23  ;;  %v1952_v46 = vsel %vm1832_vm8, %v5054_v41, %v5029_v33 }
 0x675   : > { %v1976_v44 = vsel %vm1944_vm9, %v5033_v15, %v5057_v30  ;;  %v1880_v6 = vpop.xlane.xlu0 %1879  ;;  %v1998_v36 = vsub.f32 %v5317_v31, %v5313_v25  ;;  %v2021_v58 = vmul.f32 0.5, %v1997_v42 }
 0x676   : > { %vm1888_vm12 = vcmp.ge.f32.partialorder %v1880_v6, 32.0  ;;  %v2007_v53 = vmul.f32 0.25, %v1999_v29  ;;  %v2039_v49 = vmul.f32 0.75, %v1999_v29 }
 0x677   : > { %v1960_v51 = vsel %vm1888_vm12, %v5109_v8, %v1952_v46  ;;  %v1984_v23 = vsel %vm1888_vm12, %v1976_v44, %v5109_v8  ;;  %v2006_v62 = vmul.f32 0.25, %v1998_v36  ;;  %v2038_v46 = vmul.f32 0.75, %v1998_v36 }
 0x678   : > { %v5331_v43 = vsel %vm1944_vm9, %v5057_v30, %v1960_v51  ;;  %v5335_v33 = vsel %vm1832_vm8, %v1984_v23, %v5054_v41  ;;  %v5338_v15 = vadd.f32 %v2007_v53, %v5301_v45  ;;  %v5341_v26 = vadd.f32 %v2039_v49, %v5301_v45 }
 0x679   : > { %v2000_v60 = vsub.f32 %v5335_v33, %v5331_v43  ;;  %v5350_v30 = vadd.f32 %v2005_v32, %v5278_v24  ;;  %v2037_v41 = vmul.f32 0.75, %v1997_v42  ;;  %v5371_v61 = vadd.f32 %v2006_v62, %v5313_v25 }
 0x67a   : > { %vm2055_vm13 = vcmp.ge.f32.partialorder %v3637_v20, %v5338_v15  ;;  %vm2167_vm14 = vcmp.ge.f32.partialorder %v3637_v20, %v5341_v26  ;;  %v5381_v32 = vadd.f32 %v2021_v58, %v5278_v24  ;;  %v2023_v51 = vmul.f32 0.5, %v1999_v29 }
 0x67b   : > { %v3184_v8 = vsel %vm2055_vm13, 1.0, %v6114_v19  ;;  %v2008_v2 = vmul.f32 0.25, %v2000_v60  ;;  %v2040_v9 = vmul.f32 0.75, %v2000_v60  ;;  %v3200_v17 = vsel %vm2167_vm14, 1.0, %v6114_v19 }
 0x67c   : > { %v2091_v3 = vsel %vm314_vm0, %v3184_v8, 0.0  ;;  %vm2053_vm15 = vcmp.ge.f32.partialorder %v3641_v22, %v5350_v30  ;;  %v5364_v40 = vadd.f32 %v2037_v41, %v5278_v24  ;;  %v2203_v44 = vsel %vm314_vm0, %v3200_v17, 0.0 }
 0x67d   : > { %2092 = vadd.xlane.f32.xlu1 %v2091_v3  ;;  %v5356_v38 = vadd.f32 %v2008_v2, %v5331_v43  ;;  %v5359_v47 = vadd.f32 %v2040_v9, %v5331_v43  ;;  %v3182_v49 = vsel %vm2053_vm15, 1.0, %v6114_v19  ;;  %vm2054_vm4 = vcmp.ge.f32.partialorder %v3653_v18, %v5371_v61 }
 0x67e   : > { %vm2165_vm3 = vcmp.ge.f32.partialorder %v3641_v22, %v5364_v40  ;;  %v5386_v23 = vadd.f32 %v2038_v46, %v5313_v25  ;;  %v2022_v41 = vmul.f32 0.5, %v1998_v36  ;;  %v2085_v8 = vsel %vm314_vm0, %v3182_v49, 0.0 }
 0x67f   : > { %vm2056_vm1 = vcmp.ge.f32.partialorder %v3647_v27, %v5356_v38  ;;  %vm2168_vm2 = vcmp.ge.f32.partialorder %v3647_v27, %v5359_v47  ;;  %v3198_v9 = vsel %vm2165_vm3, 1.0, %v6114_v19  ;;  %v3183_v62 = vsel %vm2054_vm4, 1.0, %v6114_v19 }
 0x680   : > { %v3185_v6 = vsel %vm2056_vm1, 1.0, %v6114_v19  ;;  %v3201_v42 = vsel %vm2168_vm2, 1.0, %v6114_v19  ;;  %vm2109_vm5 = vcmp.ge.f32.partialorder %v3641_v22, %v5381_v32  ;;  %v5395_v29 = vadd.f32 %v2023_v51, %v5301_v45 }
 0x681   : > { %2204 = vadd.xlane.f32.xlu1 %v2203_v44  ;;  %v2094_v53 = vsel %vm314_vm0, %v3185_v6, 0.0  ;;  %v2206_v2 = vsel %vm314_vm0, %v3201_v42, 0.0  ;;  %vm2166_vm6 = vcmp.ge.f32.partialorder %v3653_v18, %v5386_v23  ;;  %v5400_v36 = vadd.f32 %v2022_v41, %v5313_v25 }
 0x682   : > { %2095 = vadd.xlane.f32.xlu0 %v2094_v53  ;;  %v2024_v3 = vmul.f32 0.5, %v2000_v60  ;;  %v2197_v17 = vsel %vm314_vm0, %v3198_v9, 0.0  ;;  %v2088_v58 = vsel %vm314_vm0, %v3183_v62, 0.0  ;;  %v3190_v46 = vsel %vm2109_vm5, 1.0, %v6114_v19 }
 0x683   : > { %v3199_v44 = vsel %vm2166_vm6, 1.0, %v6114_v19  ;;  %vm2111_vm7 = vcmp.ge.f32.partialorder %v3637_v20, %v5395_v29  ;;  %vm2110_vm8 = vcmp.ge.f32.partialorder %v3653_v18, %v5400_v36  ;;  %v2141_v60 = vsel %vm314_vm0, %v3190_v46, 0.0 }
 0x684   : > { %v5411_v6 = vadd.f32 %v2024_v3, %v5331_v43  ;;  %v2200_v53 = vsel %vm314_vm0, %v3199_v44, 0.0  ;;  %v3192_v49 = vsel %vm2111_vm7, 1.0, %v6114_v19  ;;  %v3191_v42 = vsel %vm2110_vm8, 1.0, %v6114_v19 }
 0x685   : > { %2086 = vadd.xlane.f32.xlu1 %v2085_v8  ;;  %v2147_v51 = vsel %vm314_vm0, %v3192_v49, 0.0  ;;  %v2144_v41 = vsel %vm314_vm0, %v3191_v42, 0.0 }
 0x686   : > { %2207 = vadd.xlane.f32.xlu0 %v2206_v2  ;;  %vm2112_vm9 = vcmp.ge.f32.partialorder %v3647_v27, %v5411_v6 }
 0x687   : > { %v3193_v8 = vsel %vm2112_vm9, 1.0, %v6114_v19 }
 0x688   : > { %v2150_v2 = vsel %vm314_vm0, %v3193_v8, 0.0 }
 0x689   : > { %2198 = vadd.xlane.f32.xlu1 %v2197_v17 }
 0x68a   : > { %2089 = vadd.xlane.f32.xlu0 %v2088_v58 }
 0x68d   : > { %2142 = vadd.xlane.f32.xlu1 %v2141_v60 }
 0x68e   : > { %2201 = vadd.xlane.f32.xlu0 %v2200_v53 }
 0x691   : > { %2148 = vadd.xlane.f32.xlu1 %v2147_v51 }
 0x692   : > { %2145 = vadd.xlane.f32.xlu0 %v2144_v41 }
 0x696   : > { %2151 = vadd.xlane.f32.xlu0 %v2150_v2 }
 0x6b6   : > { %v2081_v9 = vpop.xlane.xlu1 %2080 }
 0x6b7   : > { %vm2099_vm10 = vcmp.ge.f32.partialorder %v2081_v9, 32.0 }
 0x6b8   : > { %v2219_v58 = vsel %vm2099_vm10, %v5150_v28, %v5128_v48 }
 0x6ba   : > { %v2193_v62 = vpop.xlane.xlu1 %2192 }
 0x6bb   : > { %v2084_v3 = vpop.xlane.xlu0 %2083  ;;  %vm2211_vm11 = vcmp.ge.f32.partialorder %v2193_v62, 32.0 }
 0x6bc   : > { %v2243_v46 = vsel %vm2211_vm11, %v5131_v10, %v5153_v55  ;;  %vm2100_vm13 = vcmp.ge.f32.partialorder %v2084_v3, 32.0 }
 0x6bd   : > { %v2220_v10 = vsel %vm2100_vm13, %v5174_v52, %v5143_v13 }
 0x6be   : > { %v2137_v17 = vpop.xlane.xlu1 %2136 }
 0x6bf   : > { %vm2155_vm12 = vcmp.ge.f32.partialorder %v2137_v17, 32.0  ;;  %v2196_v44 = vpop.xlane.xlu0 %2195 }
 0x6c0   : > { %v2227_v60 = vsel %vm2155_vm12, %v5162_v21, %v2219_v58  ;;  %v2251_v53 = vsel %vm2155_vm12, %v2243_v46, %v5162_v21  ;;  %vm2212_vm14 = vcmp.ge.f32.partialorder %v2196_v44, 32.0 }
 0x6c1   : > { %v5430_v49 = vsel %vm2211_vm11, %v5153_v55, %v2227_v60  ;;  %v5433_v42 = vsel %vm2099_vm10, %v2251_v53, %v5150_v28  ;;  %v2244_v8 = vsel %vm2212_vm14, %v5147_v39, %v5195_v4 }
 0x6c2   : > { %v2267_v48 = vsub.f32 %v5433_v42, %v5430_v49  ;;  %v2075_v51 = vpop.xlane.xlu1 %2074 }
 0x6c3   : > { %v2140_v41 = vpop.xlane.xlu0 %2139  ;;  %vm2097_vm1 = vcmp.ge.f32.partialorder %v2075_v51, 32.0 }
 0x6c4   : > { %vm2156_vm15 = vcmp.ge.f32.partialorder %v2140_v41, 32.0  ;;  %v2275_v21 = vmul.f32 0.25, %v2267_v48  ;;  %v2307_v55 = vmul.f32 0.75, %v2267_v48  ;;  %v2291_v9 = vmul.f32 0.5, %v2267_v48 }
 0x6c5   : > { %v2228_v2 = vsel %vm2156_vm15, %v5198_v34, %v2220_v10  ;;  %v2252_v28 = vsel %vm2156_vm15, %v2244_v8, %v5198_v34  ;;  %v2217_v60 = vsel %vm2097_vm1, %v5225_v54, %v5183_v50 }
 0x6c6   : > { %v5445_v62 = vsel %vm2212_vm14, %v5195_v4, %v2228_v2  ;;  %v5449_v17 = vsel %vm2100_vm13, %v2252_v28, %v5174_v52  ;;  %v2187_v13 = vpop.xlane.xlu1 %2186  ;;  %v5452_v58 = vadd.f32 %v2275_v21, %v5430_v49  ;;  %v5455_v39 = vadd.f32 %v2307_v55, %v5430_v49 }
 0x6c7   : > { %v2268_v46 = vsub.f32 %v5449_v17, %v5445_v62  ;;  %vm2209_vm2 = vcmp.ge.f32.partialorder %v2187_v13, 32.0  ;;  %v2078_v34 = vpop.xlane.xlu0 %2077  ;;  %v5464_v52 = vadd.f32 %v2291_v9, %v5430_v49 }
 0x6c8   : > { %vm2323_vm3 = vcmp.ge.f32.partialorder %v3617_v1, %v5452_v58  ;;  %vm2435_vm4 = vcmp.ge.f32.partialorder %v3617_v1, %v5455_v39  ;;  %v2241_v53 = vsel %vm2209_vm2, %v5187_v0, %v5235_v37  ;;  %vm2098_vm5 = vcmp.ge.f32.partialorder %v2078_v34, 32.0 }
 0x6c9   : > { %v3204_v4 = vsel %vm2323_vm3, 1.0, %v6114_v19  ;;  %v3220_v3 = vsel %vm2435_vm4, 1.0, %v6114_v19  ;;  %v2276_v44 = vmul.f32 0.25, %v2268_v46  ;;  %v2308_v41 = vmul.f32 0.75, %v2268_v46 }
 0x6ca   : > { %v2131_v48 = vpop.xlane.xlu1 %2130  ;;  %v2351_v10 = vsel %vm314_vm0, %v3204_v4, 0.0  ;;  %v2292_v55 = vmul.f32 0.5, %v2268_v46  ;;  %v2463_v28 = vsel %vm314_vm0, %v3220_v3, 0.0  ;;  %vm2379_vm7 = vcmp.ge.f32.partialorder %v3617_v1, %v5464_v52 }
 0x6cb   : > { %vm2153_vm6 = vcmp.ge.f32.partialorder %v2131_v48, 32.0  ;;  %2352 = vadd.xlane.f32.xlu1 %v2351_v10  ;;  %v2190_v8 = vpop.xlane.xlu0 %2189  ;;  %v5476_v21 = vadd.f32 %v2276_v44, %v5445_v62  ;;  %v5497_v4 = vadd.f32 %v2308_v41, %v5445_v62  ;;  %v3212_v3 = vsel %vm2379_vm7, 1.0, %v6114_v19 }
 0x6cc   : > { %v2225_v2 = vsel %vm2153_vm6, %v5238_v11, %v2217_v60  ;;  %v2249_v50 = vsel %vm2153_vm6, %v2241_v53, %v5238_v11  ;;  %vm2210_vm8 = vcmp.ge.f32.partialorder %v2190_v8, 32.0  ;;  %v5500_v13 = vadd.f32 %v2292_v55, %v5445_v62 }
 0x6cd   : > { %v5485_v0 = vsel %vm2209_vm2, %v5235_v37, %v2225_v2  ;;  %v5489_v9 = vsel %vm2097_vm1, %v2249_v50, %v5225_v54  ;;  %vm2324_vm9 = vcmp.ge.f32.partialorder %v3623_v7, %v5476_v21  ;;  %v2218_v54 = vsel %vm2098_vm5, %v5245_v56, %v5217_v12 }
 0x6ce   : > { %v2265_v11 = vsub.f32 %v5489_v9, %v5485_v0  ;;  %v3205_v46 = vsel %vm2324_vm9, 1.0, %v6114_v19  ;;  %v2242_v44 = vsel %vm2210_vm8, %v5221_v59, %v5251_v16  ;;  %vm2436_vm11 = vcmp.ge.f32.partialorder %v3623_v7, %v5497_v4 }
 0x6cf   : > { %2464 = vadd.xlane.f32.xlu1 %v2463_v28  ;;  %v2134_v37 = vpop.xlane.xlu0 %2133  ;;  %v2354_v51 = vsel %vm314_vm0, %v3205_v46, 0.0  ;;  %v3221_v48 = vsel %vm2436_vm11, 1.0, %v6114_v19  ;;  %vm2380_vm12 = vcmp.ge.f32.partialorder %v3623_v7, %v5500_v13  ;;  %v2407_v41 = vsel %vm314_vm0, %v3212_v3, 0.0 }
 0x6d0   : > { %vm2154_vm10 = vcmp.ge.f32.partialorder %v2134_v37, 32.0  ;;  %2355 = vadd.xlane.f32.xlu0 %v2354_v51  ;;  %v2273_v60 = vmul.f32 0.25, %v2265_v11  ;;  %v2466_v2 = vsel %vm314_vm0, %v3221_v48, 0.0  ;;  %v2305_v50 = vmul.f32 0.75, %v2265_v11 }
 0x6d1   : > { %v2226_v53 = vsel %vm2154_vm10, %v5256_v63, %v2218_v54  ;;  %v2250_v12 = vsel %vm2154_vm10, %v2242_v44, %v5256_v63  ;;  %v2289_v28 = vmul.f32 0.5, %v2265_v11 }
 0x6d2   : > { %v5519_v10 = vsel %vm2210_vm8, %v5251_v16, %v2226_v53  ;;  %v5523_v59 = vsel %vm2098_vm5, %v2250_v12, %v5245_v56  ;;  %v5527_v55 = vadd.f32 %v2273_v60, %v5485_v0  ;;  %v3213_v56 = vsel %vm2380_vm12, 1.0, %v6114_v19 }
 0x6d3   : > { %v2266_v63 = vsub.f32 %v5523_v59, %v5519_v10  ;;  %2408 = vadd.xlane.f32.xlu1 %v2407_v41  ;;  %v5537_v34 = vadd.f32 %v2305_v50, %v5485_v0  ;;  %v5540_v46 = vadd.f32 %v2289_v28, %v5485_v0  ;;  %v2410_v11 = vsel %vm314_vm0, %v3213_v56, 0.0 }
 0x6d4   : > { %2467 = vadd.xlane.f32.xlu0 %v2466_v2  ;;  %vm2321_vm13 = vcmp.ge.f32.partialorder %v6115_v35, %v5527_v55 }
 0x6d5   : > { %v3202_v16 = vsel %vm2321_vm13, 1.0, %v6114_v19  ;;  %v2274_v8 = vmul.f32 0.25, %v2266_v63  ;;  %v2306_v37 = vmul.f32 0.75, %v2266_v63  ;;  %v2290_v51 = vmul.f32 0.5, %v2266_v63 }
 0x6d6   : > { %v2345_v54 = vsel %vm314_vm0, %v3202_v16, 0.0  ;;  %vm2433_vm14 = vcmp.ge.f32.partialorder %v6115_v35, %v5537_v34  ;;  %vm2377_vm15 = vcmp.ge.f32.partialorder %v6115_v35, %v5540_v46 }
 0x6d7   : > { %2346 = vadd.xlane.f32.xlu1 %v2345_v54  ;;  %v5547_v3 = vadd.f32 %v2274_v8, %v5519_v10  ;;  %v3218_v44 = vsel %vm2433_vm14, 1.0, %v6114_v19  ;;  %v5553_v60 = vadd.f32 %v2306_v37, %v5519_v10  ;;  %v5558_v53 = vadd.f32 %v2290_v51, %v5519_v10 }
 0x6d8   : > { %2411 = vadd.xlane.f32.xlu0 %v2410_v11  ;;  %v2457_v12 = vsel %vm314_vm0, %v3218_v44, 0.0  ;;  %v3210_v63 = vsel %vm2377_vm15, 1.0, %v6114_v19 }
 0x6d9   : > { %vm2322_vm1 = vcmp.ge.f32.partialorder %v3631_v14, %v5547_v3  ;;  %vm2434_vm2 = vcmp.ge.f32.partialorder %v3631_v14, %v5553_v60  ;;  %vm2378_vm3 = vcmp.ge.f32.partialorder %v3631_v14, %v5558_v53  ;;  %v2401_v50 = vsel %vm314_vm0, %v3210_v63, 0.0 }
 0x6da   : > { %v3203_v48 = vsel %vm2322_vm1, 1.0, %v6114_v19  ;;  %v3219_v2 = vsel %vm2434_vm2, 1.0, %v6114_v19  ;;  %v3211_v56 = vsel %vm2378_vm3, 1.0, %v6114_v19 }
 0x6db   : > { %2458 = vadd.xlane.f32.xlu1 %v2457_v12  ;;  %v2348_v41 = vsel %vm314_vm0, %v3203_v48, 0.0  ;;  %v2460_v28 = vsel %vm314_vm0, %v3219_v2, 0.0  ;;  %v2404_v16 = vsel %vm314_vm0, %v3211_v56, 0.0 }
 0x6dc   : > { %2349 = vadd.xlane.f32.xlu0 %v2348_v41 }
 0x6df   : > { %2402 = vadd.xlane.f32.xlu1 %v2401_v50 }
 0x6e0   : > { %2461 = vadd.xlane.f32.xlu0 %v2460_v28 }
 0x6e4   : > { %2405 = vadd.xlane.f32.xlu0 %v2404_v16 }
 0x70a   : > { %v2093_v8 = vpop.xlane.xlu1 %2092 }
 0x70b   : > { %vm2103_vm6 = vcmp.ge.f32.partialorder %v2093_v8, 32.0 }
 0x70e   : > { %v2205_v54 = vpop.xlane.xlu1 %2204 }
 0x70f   : > { %v2096_v37 = vpop.xlane.xlu0 %2095  ;;  %vm2215_vm7 = vcmp.ge.f32.partialorder %v2205_v54, 32.0 }
 0x710   : > { %vm2104_vm11 = vcmp.ge.f32.partialorder %v2096_v37, 32.0 }
 0x712   : > { %v2087_v51 = vpop.xlane.xlu1 %2086 }
 0x713   : > { %v2208_v11 = vpop.xlane.xlu0 %2207  ;;  %vm2101_vm4 = vcmp.ge.f32.partialorder %v2087_v51, 32.0 }
 0x714   : > { %v2221_v41 = vsel %vm2101_vm4, %v5350_v30, %v5278_v24  ;;  %v2223_v24 = vsel %vm2103_vm6, %v5338_v15, %v5301_v45  ;;  %vm2216_vm12 = vcmp.ge.f32.partialorder %v2208_v11, 32.0 }
 0x716   : > { %v2199_v44 = vpop.xlane.xlu1 %2198 }
 0x717   : > { %v2090_v12 = vpop.xlane.xlu0 %2089  ;;  %vm2213_vm5 = vcmp.ge.f32.partialorder %v2199_v44, 32.0 }
 0x718   : > { %v2245_v63 = vsel %vm2213_vm5, %v5281_v5, %v5364_v40  ;;  %vm2102_vm9 = vcmp.ge.f32.partialorder %v2090_v12, 32.0  ;;  %v2247_v5 = vsel %vm2215_vm7, %v5305_v57, %v5341_v26 }
 0x71a   : > { %v2143_v48 = vpop.xlane.xlu1 %2142 }
 0x71b   : > { %vm2157_vm8 = vcmp.ge.f32.partialorder %v2143_v48, 32.0  ;;  %v2202_v2 = vpop.xlane.xlu0 %2201 }
 0x71c   : > { %v2229_v50 = vsel %vm2157_vm8, %v5381_v32, %v2221_v41  ;;  %v2253_v28 = vsel %vm2157_vm8, %v2245_v63, %v5381_v32  ;;  %vm2214_vm10 = vcmp.ge.f32.partialorder %v2202_v2, 32.0  ;;  %v2222_v32 = vsel %vm2102_vm9, %v5371_v61, %v5313_v25 }
 0x71d   : > { %v5580_v56 = vsel %vm2213_vm5, %v5364_v40, %v2229_v50  ;;  %v5583_v16 = vsel %vm2101_vm4, %v2253_v28, %v5350_v30  ;;  %v2246_v30 = vsel %vm2214_vm10, %v5317_v31, %v5386_v23 }
 0x71e   : > { %v2149_v51 = vpop.xlane.xlu1 %2148  ;;  %v2269_v45 = vsub.f32 %v5583_v16, %v5580_v56 }
 0x71f   : > { %vm2159_vm13 = vcmp.ge.f32.partialorder %v2149_v51, 32.0  ;;  %v2146_v40 = vpop.xlane.xlu0 %2145 }
 0x720   : > { %v2231_v44 = vsel %vm2159_vm13, %v5395_v29, %v2223_v24  ;;  %v2255_v57 = vsel %vm2159_vm13, %v2247_v5, %v5395_v29  ;;  %vm2158_vm14 = vcmp.ge.f32.partialorder %v2146_v40, 32.0  ;;  %v2277_v28 = vmul.f32 0.25, %v2269_v45 }
 0x721   : > { %v5603_v48 = vsel %vm2215_vm7, %v5341_v26, %v2231_v44  ;;  %v5607_v25 = vsel %vm2103_vm6, %v2255_v57, %v5338_v15  ;;  %v2230_v31 = vsel %vm2158_vm14, %v5400_v36, %v2222_v32  ;;  %v2254_v41 = vsel %vm2158_vm14, %v2246_v30, %v5400_v36 }
 0x722   : > { %v2271_v63 = vsub.f32 %v5607_v25, %v5603_v48  ;;  %v5615_v50 = vsel %vm2214_vm10, %v5386_v23, %v2230_v31  ;;  %v5619_v29 = vsel %vm2102_vm9, %v2254_v41, %v5371_v61  ;;  %v2224_v15 = vsel %vm2104_vm11, %v5356_v38, %v5331_v43 }
 0x723   : > { %v2248_v26 = vsel %vm2216_vm12, %v5335_v33, %v5359_v47  ;;  %v2152_v36 = vpop.xlane.xlu0 %2151  ;;  %v2270_v23 = vsub.f32 %v5619_v29, %v5615_v50  ;;  %v2293_v31 = vmul.f32 0.5, %v2269_v45 }
 0x724   : > { %vm2160_vm15 = vcmp.ge.f32.partialorder %v2152_v36, 32.0  ;;  %v2279_v8 = vmul.f32 0.25, %v2271_v63  ;;  %v2311_v54 = vmul.f32 0.75, %v2271_v63 }
 0x725   : > { %v2232_v12 = vsel %vm2160_vm15, %v5411_v6, %v2224_v15  ;;  %v2256_v61 = vsel %vm2160_vm15, %v2248_v26, %v5411_v6  ;;  %v2278_v51 = vmul.f32 0.25, %v2270_v23  ;;  %v2310_v15 = vmul.f32 0.75, %v2270_v23 }
 0x726   : > { %v5633_v2 = vsel %vm2216_vm12, %v5359_v47, %v2232_v12  ;;  %v5637_v43 = vsel %vm2104_vm11, %v2256_v61, %v5356_v38  ;;  %v5640_v33 = vadd.f32 %v2279_v8, %v5603_v48  ;;  %v5643_v24 = vadd.f32 %v2311_v54, %v5603_v48 }
 0x727   : > { %v2272_v5 = vsub.f32 %v5637_v43, %v5633_v2  ;;  %v5652_v47 = vadd.f32 %v2277_v28, %v5580_v56  ;;  %v2309_v38 = vmul.f32 0.75, %v2269_v45  ;;  %v5673_v41 = vadd.f32 %v2278_v51, %v5615_v50 }
 0x728   : > { %vm2327_vm1 = vcmp.ge.f32.partialorder %v3637_v20, %v5640_v33  ;;  %vm2439_vm2 = vcmp.ge.f32.partialorder %v3637_v20, %v5643_v24  ;;  %v5683_v28 = vadd.f32 %v2293_v31, %v5580_v56  ;;  %v2295_v12 = vmul.f32 0.5, %v2271_v63 }
 0x729   : > { %v3208_v6 = vsel %vm2327_vm1, 1.0, %v6114_v19  ;;  %v2280_v37 = vmul.f32 0.25, %v2272_v5  ;;  %v2312_v11 = vmul.f32 0.75, %v2272_v5  ;;  %v3224_v30 = vsel %vm2439_vm2, 1.0, %v6114_v19 }
 0x72a   : > { %v2363_v32 = vsel %vm314_vm0, %v3208_v6, 0.0  ;;  %vm2325_vm3 = vcmp.ge.f32.partialorder %v3641_v22, %v5652_v47  ;;  %v5666_v57 = vadd.f32 %v2309_v38, %v5580_v56  ;;  %v2475_v26 = vsel %vm314_vm0, %v3224_v30, 0.0 }
 0x72b   : > { %2364 = vadd.xlane.f32.xlu1 %v2363_v32  ;;  %v5658_v40 = vadd.f32 %v2280_v37, %v5633_v2  ;;  %v5661_v44 = vadd.f32 %v2312_v11, %v5633_v2  ;;  %v3206_v54 = vsel %vm2325_vm3, 1.0, %v6114_v19  ;;  %vm2326_vm7 = vcmp.ge.f32.partialorder %v3653_v18, %v5673_v41 }
 0x72c   : > { %vm2437_vm6 = vcmp.ge.f32.partialorder %v3641_v22, %v5666_v57  ;;  %v5688_v61 = vadd.f32 %v2310_v15, %v5615_v50  ;;  %v2294_v38 = vmul.f32 0.5, %v2270_v23  ;;  %v2357_v6 = vsel %vm314_vm0, %v3206_v54, 0.0 }
 0x72d   : > { %vm2328_vm4 = vcmp.ge.f32.partialorder %v3647_v27, %v5658_v40  ;;  %vm2440_vm5 = vcmp.ge.f32.partialorder %v3647_v27, %v5661_v44  ;;  %v3222_v11 = vsel %vm2437_vm6, 1.0, %v6114_v19  ;;  %v3207_v51 = vsel %vm2326_vm7, 1.0, %v6114_v19 }
 0x72e   : > { %v3209_v36 = vsel %vm2328_vm4, 1.0, %v6114_v19  ;;  %v3225_v45 = vsel %vm2440_vm5, 1.0, %v6114_v19  ;;  %vm2381_vm8 = vcmp.ge.f32.partialorder %v3641_v22, %v5683_v28  ;;  %v5697_v63 = vadd.f32 %v2295_v12, %v5603_v48 }
 0x72f   : > { %2476 = vadd.xlane.f32.xlu1 %v2475_v26  ;;  %v2366_v8 = vsel %vm314_vm0, %v3209_v36, 0.0  ;;  %v2478_v37 = vsel %vm314_vm0, %v3225_v45, 0.0  ;;  %vm2438_vm9 = vcmp.ge.f32.partialorder %v3653_v18, %v5688_v61  ;;  %v5702_v23 = vadd.f32 %v2294_v38, %v5615_v50 }
 0x730   : > { %2367 = vadd.xlane.f32.xlu0 %v2366_v8  ;;  %v2296_v32 = vmul.f32 0.5, %v2272_v5  ;;  %v2469_v30 = vsel %vm314_vm0, %v3222_v11, 0.0  ;;  %v2360_v31 = vsel %vm314_vm0, %v3207_v51, 0.0  ;;  %v3214_v15 = vsel %vm2381_vm8, 1.0, %v6114_v19 }
 0x731   : > { %v3223_v26 = vsel %vm2438_vm9, 1.0, %v6114_v19  ;;  %vm2383_vm10 = vcmp.ge.f32.partialorder %v3637_v20, %v5697_v63  ;;  %vm2382_vm11 = vcmp.ge.f32.partialorder %v3653_v18, %v5702_v23  ;;  %v2413_v5 = vsel %vm314_vm0, %v3214_v15, 0.0 }
 0x732   : > { %v5713_v36 = vadd.f32 %v2296_v32, %v5633_v2  ;;  %v2472_v8 = vsel %vm314_vm0, %v3223_v26, 0.0  ;;  %v3216_v54 = vsel %vm2383_vm10, 1.0, %v6114_v19  ;;  %v3215_v45 = vsel %vm2382_vm11, 1.0, %v6114_v19 }
 0x733   : > { %2358 = vadd.xlane.f32.xlu1 %v2357_v6  ;;  %v2419_v12 = vsel %vm314_vm0, %v3216_v54, 0.0  ;;  %v2416_v38 = vsel %vm314_vm0, %v3215_v45, 0.0 }
 0x734   : > { %2479 = vadd.xlane.f32.xlu0 %v2478_v37  ;;  %vm2384_vm12 = vcmp.ge.f32.partialorder %v3647_v27, %v5713_v36 }
 0x735   : > { %v3217_v6 = vsel %vm2384_vm12, 1.0, %v6114_v19 }
 0x736   : > { %v2422_v37 = vsel %vm314_vm0, %v3217_v6, 0.0 }
 0x737   : > { %2470 = vadd.xlane.f32.xlu1 %v2469_v30 }
 0x738   : > { %2361 = vadd.xlane.f32.xlu0 %v2360_v31 }
 0x73b   : > { %2414 = vadd.xlane.f32.xlu1 %v2413_v5 }
 0x73c   : > { %2473 = vadd.xlane.f32.xlu0 %v2472_v8 }
 0x73f   : > { %2420 = vadd.xlane.f32.xlu1 %v2419_v12 }
 0x740   : > { %2417 = vadd.xlane.f32.xlu0 %v2416_v38 }
 0x744   : > { %2423 = vadd.xlane.f32.xlu0 %v2422_v37 }
 0x758   : > { %v2353_v11 = vpop.xlane.xlu1 %2352 }
 0x759   : > { %vm2371_vm13 = vcmp.ge.f32.partialorder %v2353_v11, 32.0 }
 0x75a   : > { %v2491_v31 = vsel %vm2371_vm13, %v5452_v58, %v5430_v49 }
 0x75c   : > { %v2465_v51 = vpop.xlane.xlu1 %2464 }
 0x75d   : > { %v2356_v32 = vpop.xlane.xlu0 %2355  ;;  %vm2483_vm14 = vcmp.ge.f32.partialorder %v2465_v51, 32.0 }
 0x75e   : > { %v2515_v15 = vsel %vm2483_vm14, %v5433_v42, %v5455_v39  ;;  %vm2372_vm1 = vcmp.ge.f32.partialorder %v2356_v32, 32.0 }
 0x75f   : > { %v2492_v49 = vsel %vm2372_vm1, %v5476_v21, %v5445_v62 }
 0x760   : > { %v2409_v30 = vpop.xlane.xlu1 %2408 }
 0x761   : > { %vm2427_vm15 = vcmp.ge.f32.partialorder %v2409_v30, 32.0  ;;  %v2468_v26 = vpop.xlane.xlu0 %2467 }
 0x762   : > { %v2499_v5 = vsel %vm2427_vm15, %v5464_v52, %v2491_v31  ;;  %v2523_v8 = vsel %vm2427_vm15, %v2515_v15, %v5464_v52  ;;  %vm2484_vm2 = vcmp.ge.f32.partialorder %v2468_v26, 32.0 }
 0x763   : > { %v5732_v54 = vsel %vm2483_vm14, %v5455_v39, %v2499_v5  ;;  %v2531_v45 = vsel %vm2371_vm13, %v2523_v8, %v5452_v58  ;;  %v2516_v6 = vsel %vm2484_vm2, %v5449_v17, %v5497_v4 }
 0x764   : > { %v2539_v12 = vsub.f32 %v2531_v45, %v5732_v54  ;;  %v2347_v38 = vpop.xlane.xlu1 %2346 }
 0x765   : > { %v2412_v42 = vpop.xlane.xlu0 %2411  ;;  %vm2369_vm4 = vcmp.ge.f32.partialorder %v2347_v38, 32.0 }
 0x766   : > { %vm2428_vm3 = vcmp.ge.f32.partialorder %v2412_v42, 32.0  ;;  %v2547_v37 = vmul.f32 0.25, %v2539_v12  ;;  %v2563_v52 = vmul.f32 0.5, %v2539_v12  ;;  %v2579_v58 = vmul.f32 0.75, %v2539_v12 }
 0x767   : > { %v2500_v39 = vsel %vm2428_vm3, %v5500_v13, %v2492_v49  ;;  %v2524_v11 = vsel %vm2428_vm3, %v2516_v6, %v5500_v13  ;;  %v2489_v5 = vsel %vm2369_vm4, %v5527_v55, %v5485_v0 }
 0x768   : > { %v5744_v51 = vsel %vm2484_vm2, %v5497_v4, %v2500_v39  ;;  %v2532_v30 = vsel %vm2372_vm1, %v2524_v11, %v5476_v21  ;;  %v2459_v31 = vpop.xlane.xlu1 %2458  ;;  %v5749_v62 = vadd.f32 %v2547_v37, %v5732_v54  ;;  %v5752_v17 = vadd.f32 %v2563_v52, %v5732_v54 }
 0x769   : > { %v2540_v15 = vsub.f32 %v2532_v30, %v5744_v51  ;;  %vm2481_vm5 = vcmp.ge.f32.partialorder %v2459_v31, 32.0  ;;  %v2350_v26 = vpop.xlane.xlu0 %2349  ;;  %v5760_v21 = vadd.f32 %v2579_v58, %v5732_v54 }
 0x76a   : > { %vm2595_vm6 = vcmp.ge.f32.partialorder %v3617_v1, %v5749_v62  ;;  %vm2651_vm7 = vcmp.ge.f32.partialorder %v3617_v1, %v5752_v17  ;;  %v2513_v8 = vsel %vm2481_vm5, %v5489_v9, %v5537_v34  ;;  %vm2370_vm8 = vcmp.ge.f32.partialorder %v2350_v26, 32.0 }
 0x76b   : > { %v3228_v4 = vsel %vm2595_vm6, 1.0, %v6114_v19  ;;  %v3236_v13 = vsel %vm2651_vm7, 1.0, %v6114_v19  ;;  %v2548_v32 = vmul.f32 0.25, %v2540_v15  ;;  %v2564_v49 = vmul.f32 0.5, %v2540_v15 }
 0x76c   : > { %v2403_v45 = vpop.xlane.xlu1 %2402  ;;  %v2623_v12 = vsel %vm314_vm0, %v3228_v4, 0.0  ;;  %v2580_v37 = vmul.f32 0.75, %v2540_v15  ;;  %v2679_v39 = vsel %vm314_vm0, %v3236_v13, 0.0  ;;  %vm2707_vm10 = vcmp.ge.f32.partialorder %v3617_v1, %v5760_v21 }
 0x76d   : > { %vm2425_vm9 = vcmp.ge.f32.partialorder %v2403_v45, 32.0  ;;  %2624 = vadd.xlane.f32.xlu1 %v2623_v12  ;;  %v2462_v42 = vpop.xlane.xlu0 %2461  ;;  %v5772_v6 = vadd.f32 %v2548_v32, %v5744_v51  ;;  %v5790_v30 = vadd.f32 %v2564_v49, %v5744_v51  ;;  %v3244_v31 = vsel %vm2707_vm10, 1.0, %v6114_v19 }
 0x76e   : > { %v2497_v52 = vsel %vm2425_vm9, %v5540_v46, %v2489_v5  ;;  %v2521_v0 = vsel %vm2425_vm9, %v2513_v8, %v5540_v46  ;;  %vm2482_vm11 = vcmp.ge.f32.partialorder %v2462_v42, 32.0  ;;  %v5793_v15 = vadd.f32 %v2580_v37, %v5744_v51 }
 0x76f   : > { %v5781_v9 = vsel %vm2481_vm5, %v5537_v34, %v2497_v52  ;;  %v2529_v11 = vsel %vm2369_vm4, %v2521_v0, %v5527_v55  ;;  %vm2596_vm12 = vcmp.ge.f32.partialorder %v3623_v7, %v5772_v6  ;;  %v2490_v34 = vsel %vm2370_vm8, %v5547_v3, %v5519_v10 }
 0x770   : > { %v2537_v58 = vsub.f32 %v2529_v11, %v5781_v9  ;;  %v3229_v46 = vsel %vm2596_vm12, 1.0, %v6114_v19  ;;  %v2514_v4 = vsel %vm2482_vm11, %v5523_v59, %v5553_v60  ;;  %vm2652_vm14 = vcmp.ge.f32.partialorder %v3623_v7, %v5790_v30 }
 0x771   : > { %2680 = vadd.xlane.f32.xlu1 %v2679_v39  ;;  %v2406_v55 = vpop.xlane.xlu0 %2405  ;;  %v2626_v38 = vsel %vm314_vm0, %v3229_v46, 0.0  ;;  %v3237_v5 = vsel %vm2652_vm14, 1.0, %v6114_v19  ;;  %vm2708_vm15 = vcmp.ge.f32.partialorder %v3623_v7, %v5793_v15  ;;  %v2735_v45 = vsel %vm314_vm0, %v3244_v31, 0.0 }
 0x772   : > { %vm2426_vm13 = vcmp.ge.f32.partialorder %v2406_v55, 32.0  ;;  %2627 = vadd.xlane.f32.xlu0 %v2626_v38  ;;  %v2545_v13 = vmul.f32 0.25, %v2537_v58  ;;  %v2561_v37 = vmul.f32 0.5, %v2537_v58  ;;  %v2577_v52 = vmul.f32 0.75, %v2537_v58 }
 0x773   : > { %v2498_v32 = vsel %vm2426_vm13, %v5558_v53, %v2490_v34  ;;  %v2522_v10 = vsel %vm2426_vm13, %v2514_v4, %v5558_v53  ;;  %v2682_v53 = vsel %vm314_vm0, %v3237_v5, 0.0 }
 0x774   : > { %v5812_v8 = vsel %vm2482_vm11, %v5553_v60, %v2498_v32  ;;  %v2530_v59 = vsel %vm2370_vm8, %v2522_v10, %v5547_v3  ;;  %v5818_v12 = vadd.f32 %v2545_v13, %v5781_v9  ;;  %v3245_v60 = vsel %vm2708_vm15, 1.0, %v6114_v19 }
 0x775   : > { %v2538_v49 = vsub.f32 %v2530_v59, %v5812_v8  ;;  %2736 = vadd.xlane.f32.xlu1 %v2735_v45  ;;  %v5827_v26 = vadd.f32 %v2561_v37, %v5781_v9  ;;  %v5830_v0 = vadd.f32 %v2577_v52, %v5781_v9  ;;  %v2738_v58 = vsel %vm314_vm0, %v3245_v60, 0.0 }
 0x776   : > { %2683 = vadd.xlane.f32.xlu0 %v2682_v53  ;;  %vm2593_vm1 = vcmp.ge.f32.partialorder %v6115_v35, %v5818_v12 }
 0x777   : > { %v3226_v3 = vsel %vm2593_vm1, 1.0, %v6114_v19  ;;  %v2546_v42 = vmul.f32 0.25, %v2538_v49  ;;  %v2562_v11 = vmul.f32 0.5, %v2538_v49  ;;  %v2578_v46 = vmul.f32 0.75, %v2538_v49 }
 0x778   : > { %v2617_v39 = vsel %vm314_vm0, %v3226_v3, 0.0  ;;  %vm2649_vm2 = vcmp.ge.f32.partialorder %v6115_v35, %v5827_v26  ;;  %vm2705_vm3 = vcmp.ge.f32.partialorder %v6115_v35, %v5830_v0 }
 0x779   : > { %2618 = vadd.xlane.f32.xlu1 %v2617_v39  ;;  %v5837_v34 = vadd.f32 %v2546_v42, %v5812_v8  ;;  %v3234_v55 = vsel %vm2649_vm2, 1.0, %v6114_v19  ;;  %v5843_v38 = vadd.f32 %v2562_v11, %v5812_v8  ;;  %v5848_v31 = vadd.f32 %v2578_v46, %v5812_v8 }
 0x77a   : > { %2739 = vadd.xlane.f32.xlu0 %v2738_v58  ;;  %v2673_v4 = vsel %vm314_vm0, %v3234_v55, 0.0  ;;  %v3242_v10 = vsel %vm2705_vm3, 1.0, %v6114_v19 }
 0x77b   : > { %vm2594_vm4 = vcmp.ge.f32.partialorder %v3631_v14, %v5837_v34  ;;  %vm2650_vm5 = vcmp.ge.f32.partialorder %v3631_v14, %v5843_v38  ;;  %vm2706_vm6 = vcmp.ge.f32.partialorder %v3631_v14, %v5848_v31  ;;  %v2729_v59 = vsel %vm314_vm0, %v3242_v10, 0.0 }
 0x77c   : > { %v3227_v13 = vsel %vm2594_vm4, 1.0, %v6114_v19  ;;  %v3235_v5 = vsel %vm2650_vm5, 1.0, %v6114_v19  ;;  %v3243_v49 = vsel %vm2706_vm6, 1.0, %v6114_v19 }
 0x77d   : > { %2674 = vadd.xlane.f32.xlu1 %v2673_v4  ;;  %v2620_v32 = vsel %vm314_vm0, %v3227_v13, 0.0  ;;  %v2676_v45 = vsel %vm314_vm0, %v3235_v5, 0.0  ;;  %v2732_v53 = vsel %vm314_vm0, %v3243_v49, 0.0 }
 0x77e   : > { %2621 = vadd.xlane.f32.xlu0 %v2620_v32 }
 0x781   : > { %2730 = vadd.xlane.f32.xlu1 %v2729_v59 }
 0x782   : > { %2677 = vadd.xlane.f32.xlu0 %v2676_v45 }
 0x786   : > { %2733 = vadd.xlane.f32.xlu0 %v2732_v53 }
 0x7b8   : > { %v2365_v37 = vpop.xlane.xlu1 %2364 }
 0x7b9   : > { %vm2375_vm9 = vcmp.ge.f32.partialorder %v2365_v37, 32.0 }
 0x7bc   : > { %v2477_v52 = vpop.xlane.xlu1 %2476 }
 0x7bd   : > { %v2368_v60 = vpop.xlane.xlu0 %2367  ;;  %vm2487_vm10 = vcmp.ge.f32.partialorder %v2477_v52, 32.0 }
 0x7be   : > { %vm2376_vm14 = vcmp.ge.f32.partialorder %v2368_v60, 32.0 }
 0x7c0   : > { %v2359_v3 = vpop.xlane.xlu1 %2358 }
 0x7c1   : > { %v2480_v42 = vpop.xlane.xlu0 %2479  ;;  %vm2373_vm7 = vcmp.ge.f32.partialorder %v2359_v3, 32.0 }
 0x7c2   : > { %v2493_v58 = vsel %vm2373_vm7, %v5652_v47, %v5580_v56  ;;  %v2495_v56 = vsel %vm2375_vm9, %v5640_v33, %v5603_v48  ;;  %vm2488_vm15 = vcmp.ge.f32.partialorder %v2480_v42, 32.0 }
 0x7c4   : > { %v2471_v39 = vpop.xlane.xlu1 %2470 }
 0x7c5   : > { %v2362_v11 = vpop.xlane.xlu0 %2361  ;;  %vm2485_vm8 = vcmp.ge.f32.partialorder %v2471_v39, 32.0 }
 0x7c6   : > { %v2517_v55 = vsel %vm2485_vm8, %v5583_v16, %v5666_v57  ;;  %vm2374_vm12 = vcmp.ge.f32.partialorder %v2362_v11, 32.0  ;;  %v2519_v16 = vsel %vm2487_vm10, %v5607_v25, %v5643_v24 }
 0x7c8   : > { %v2415_v46 = vpop.xlane.xlu1 %2414 }
 0x7c9   : > { %vm2429_vm11 = vcmp.ge.f32.partialorder %v2415_v46, 32.0  ;;  %v2474_v4 = vpop.xlane.xlu0 %2473 }
 0x7ca   : > { %v2501_v13 = vsel %vm2429_vm11, %v5683_v28, %v2493_v58  ;;  %v2525_v32 = vsel %vm2429_vm11, %v2517_v55, %v5683_v28  ;;  %vm2486_vm13 = vcmp.ge.f32.partialorder %v2474_v4, 32.0  ;;  %v2494_v28 = vsel %vm2374_vm12, %v5673_v41, %v5615_v50 }
 0x7cb   : > { %v5870_v10 = vsel %vm2485_vm8, %v5666_v57, %v2501_v13  ;;  %v2533_v5 = vsel %vm2373_vm7, %v2525_v32, %v5652_v47  ;;  %v2518_v57 = vsel %vm2486_vm13, %v5619_v29, %v5688_v61 }
 0x7cc   : > { %v2421_v59 = vpop.xlane.xlu1 %2420  ;;  %v2541_v45 = vsub.f32 %v2533_v5, %v5870_v10 }
 0x7cd   : > { %vm2431_vm1 = vcmp.ge.f32.partialorder %v2421_v59, 32.0  ;;  %v2418_v47 = vpop.xlane.xlu0 %2417 }
 0x7ce   : > { %v2503_v48 = vsel %vm2431_vm1, %v5697_v63, %v2495_v56  ;;  %v2527_v49 = vsel %vm2431_vm1, %v2519_v16, %v5697_v63  ;;  %vm2430_vm2 = vcmp.ge.f32.partialorder %v2418_v47, 32.0  ;;  %v2549_v46 = vmul.f32 0.25, %v2541_v45 }
 0x7cf   : > { %v5890_v25 = vsel %vm2487_vm10, %v5643_v24, %v2503_v48  ;;  %v2535_v50 = vsel %vm2375_vm9, %v2527_v49, %v5640_v33  ;;  %v2502_v53 = vsel %vm2430_vm2, %v5702_v23, %v2494_v28  ;;  %v2526_v29 = vsel %vm2430_vm2, %v2518_v57, %v5702_v23 }
 0x7d0   : > { %v2543_v3 = vsub.f32 %v2535_v50, %v5890_v25  ;;  %v5899_v39 = vsel %vm2486_vm13, %v5688_v61, %v2502_v53  ;;  %v2534_v63 = vsel %vm2374_vm12, %v2526_v29, %v5673_v41  ;;  %v2496_v24 = vsel %vm2376_vm14, %v5658_v40, %v5633_v2 }
 0x7d1   : > { %v2520_v33 = vsel %vm2488_vm15, %v5637_v43, %v5661_v44  ;;  %v2424_v37 = vpop.xlane.xlu0 %2423  ;;  %v2542_v58 = vsub.f32 %v2534_v63, %v5899_v39  ;;  %v2581_v28 = vmul.f32 0.75, %v2541_v45 }
 0x7d2   : > { %vm2432_vm3 = vcmp.ge.f32.partialorder %v2424_v37, 32.0  ;;  %v2551_v23 = vmul.f32 0.25, %v2543_v3  ;;  %v2567_v52 = vmul.f32 0.5, %v2543_v3  ;;  %v2583_v63 = vmul.f32 0.75, %v2543_v3 }
 0x7d3   : > { %v2504_v61 = vsel %vm2432_vm3, %v5713_v36, %v2496_v24  ;;  %v2528_v11 = vsel %vm2432_vm3, %v2520_v33, %v5713_v36  ;;  %v2565_v36 = vmul.f32 0.5, %v2541_v45  ;;  %v2550_v13 = vmul.f32 0.25, %v2542_v58 }
 0x7d4   : > { %v5914_v41 = vsel %vm2488_vm15, %v5661_v44, %v2504_v61  ;;  %v2536_v2 = vsel %vm2376_vm14, %v2528_v11, %v5658_v40  ;;  %v5919_v43 = vadd.f32 %v2551_v23, %v5890_v25  ;;  %v5922_v55 = vadd.f32 %v2567_v52, %v5890_v25 }
 0x7d5   : > { %v2544_v4 = vsub.f32 %v2536_v2, %v5914_v41  ;;  %v5930_v44 = vadd.f32 %v2549_v46, %v5870_v10  ;;  %v5944_v59 = vadd.f32 %v2565_v36, %v5870_v10  ;;  %v5951_v57 = vadd.f32 %v2550_v13, %v5899_v39 }
 0x7d6   : > { %vm2599_vm4 = vcmp.ge.f32.partialorder %v3637_v20, %v5919_v43  ;;  %vm2655_vm5 = vcmp.ge.f32.partialorder %v3637_v20, %v5922_v55  ;;  %v2566_v47 = vmul.f32 0.5, %v2542_v58  ;;  %v5961_v29 = vadd.f32 %v2581_v28, %v5870_v10 }
 0x7d7   : > { %v3232_v40 = vsel %vm2599_vm4, 1.0, %v6114_v19  ;;  %v2552_v60 = vmul.f32 0.25, %v2544_v4  ;;  %v2568_v42 = vmul.f32 0.5, %v2544_v4  ;;  %v3240_v5 = vsel %vm2655_vm5, 1.0, %v6114_v19 }
 0x7d8   : > { %v2635_v32 = vsel %vm314_vm0, %v3232_v40, 0.0  ;;  %vm2597_vm6 = vcmp.ge.f32.partialorder %v3641_v22, %v5930_v44  ;;  %v2691_v48 = vsel %vm314_vm0, %v3240_v5, 0.0  ;;  %vm2653_vm9 = vcmp.ge.f32.partialorder %v3641_v22, %v5944_v59 }
 0x7d9   : > { %2636 = vadd.xlane.f32.xlu1 %v2635_v32  ;;  %v5936_v56 = vadd.f32 %v2552_v60, %v5914_v41  ;;  %v5939_v16 = vadd.f32 %v2568_v42, %v5914_v41  ;;  %v3230_v53 = vsel %vm2597_vm6, 1.0, %v6114_v19  ;;  %vm2598_vm10 = vcmp.ge.f32.partialorder %v3653_v18, %v5951_v57 }
 0x7da   : > { %v5966_v24 = vadd.f32 %v2566_v47, %v5899_v39  ;;  %v2582_v33 = vmul.f32 0.75, %v2542_v58  ;;  %v2629_v37 = vsel %vm314_vm0, %v3230_v53, 0.0  ;;  %v3238_v52 = vsel %vm2653_vm9, 1.0, %v6114_v19 }
 0x7db   : > { %vm2600_vm7 = vcmp.ge.f32.partialorder %v3647_v27, %v5936_v56  ;;  %vm2656_vm8 = vcmp.ge.f32.partialorder %v3647_v27, %v5939_v16  ;;  %v3231_v46 = vsel %vm2598_vm10, 1.0, %v6114_v19  ;;  %vm2709_vm11 = vcmp.ge.f32.partialorder %v3641_v22, %v5961_v29 }
 0x7dc   : > { %v3233_v49 = vsel %vm2600_vm7, 1.0, %v6114_v19  ;;  %v3241_v45 = vsel %vm2656_vm8, 1.0, %v6114_v19  ;;  %v5975_v3 = vadd.f32 %v2583_v63, %v5890_v25  ;;  %vm2654_vm12 = vcmp.ge.f32.partialorder %v3653_v18, %v5966_v24 }
 0x7dd   : > { %2692 = vadd.xlane.f32.xlu1 %v2691_v48  ;;  %v2638_v50 = vsel %vm314_vm0, %v3233_v49, 0.0  ;;  %v2694_v23 = vsel %vm314_vm0, %v3241_v45, 0.0  ;;  %v5980_v58 = vadd.f32 %v2582_v33, %v5899_v39  ;;  %v2584_v61 = vmul.f32 0.75, %v2544_v4 }
 0x7de   : > { %2639 = vadd.xlane.f32.xlu0 %v2638_v50  ;;  %v2685_v11 = vsel %vm314_vm0, %v3238_v52, 0.0  ;;  %v2632_v2 = vsel %vm314_vm0, %v3231_v46, 0.0  ;;  %v3246_v36 = vsel %vm2709_vm11, 1.0, %v6114_v19  ;;  %v3239_v40 = vsel %vm2654_vm12, 1.0, %v6114_v19 }
 0x7df   : > { %vm2711_vm13 = vcmp.ge.f32.partialorder %v3637_v20, %v5975_v3  ;;  %vm2710_vm14 = vcmp.ge.f32.partialorder %v3653_v18, %v5980_v58  ;;  %v5991_v60 = vadd.f32 %v2584_v61, %v5914_v41  ;;  %v2741_v4 = vsel %vm314_vm0, %v3246_v36, 0.0 }
 0x7e0   : > { %v2688_v42 = vsel %vm314_vm0, %v3239_v40, 0.0  ;;  %v3248_v13 = vsel %vm2711_vm13, 1.0, %v6114_v19  ;;  %v3247_v32 = vsel %vm2710_vm14, 1.0, %v6114_v19 }
 0x7e1   : > { %2630 = vadd.xlane.f32.xlu1 %v2629_v37  ;;  %vm2712_vm15 = vcmp.ge.f32.partialorder %v3647_v27, %v5991_v60  ;;  %v2747_v5 = vsel %vm314_vm0, %v3248_v13, 0.0  ;;  %v2744_v28 = vsel %vm314_vm0, %v3247_v32, 0.0 }
 0x7e2   : > { %2695 = vadd.xlane.f32.xlu0 %v2694_v23  ;;  %v3249_v47 = vsel %vm2712_vm15, 1.0, %v6114_v19 }
 0x7e3   : > { %v2750_v48 = vsel %vm314_vm0, %v3249_v47, 0.0 }
 0x7e5   : > { %2686 = vadd.xlane.f32.xlu1 %v2685_v11 }
 0x7e6   : > { %2633 = vadd.xlane.f32.xlu0 %v2632_v2 }
 0x7e9   : > { %2742 = vadd.xlane.f32.xlu1 %v2741_v4 }
 0x7ea   : > { %2689 = vadd.xlane.f32.xlu0 %v2688_v42 }
 0x7ed   : > { %2748 = vadd.xlane.f32.xlu1 %v2747_v5 }
 0x7ee   : > { %2745 = vadd.xlane.f32.xlu0 %v2744_v28 }
 0x7f2   : > { %2751 = vadd.xlane.f32.xlu0 %v2750_v48 }
 0x7fa   : > { %v2625_v49 = vpop.xlane.xlu1 %2624 }
 0x7fb   : > { %vm2643_vm1 = vcmp.ge.f32.partialorder %v2625_v49, 32.0 }
 0x7fc   : > { %v2763_v45 = vsel %vm2643_vm1, %v5749_v62, %v5732_v54 }
 0x7fe   : > { %v2681_v50 = vpop.xlane.xlu1 %2680 }
 0x7ff   : > { %v2628_v53 = vpop.xlane.xlu0 %2627  ;;  %vm2699_vm2 = vcmp.ge.f32.partialorder %v2681_v50, 32.0 }
 0x800   : > { %v2771_v33 = vsel %vm2699_vm2, %v5752_v17, %v2763_v45  ;;  %vm2644_vm4 = vcmp.ge.f32.partialorder %v2628_v53, 32.0 }
 0x801   : > { %v2764_v46 = vsel %vm2644_vm4, %v5772_v6, %v5744_v51 }
 0x802   : > { %v2737_v63 = vpop.xlane.xlu1 %2736 }
 0x803   : > { %vm2755_vm3 = vcmp.ge.f32.partialorder %v2737_v63, 32.0  ;;  %v2684_v37 = vpop.xlane.xlu0 %2683 }
 0x804   : > { %v2779_v23 = vsel %vm2755_vm3, %v5760_v21, %v2771_v33  ;;  %vm2700_vm5 = vcmp.ge.f32.partialorder %v2684_v37, 32.0 }
 0x805   : > { %vm2787_vm6 = vcmp.ge.f32.partialorder %v3617_v1, %v2779_v23  ;;  %v2772_v62 = vsel %vm2700_vm5, %v5790_v30, %v2764_v46 }
 0x806   : > { %v2619_v19 = vpop.xlane.xlu1 %2618  ;;  %v6009_v52 = vsel %vm2787_vm6, %v3617_v1, 0.0 }
 0x807   : > { %v2740_v61 = vpop.xlane.xlu0 %2739  ;;  %v2807_v54 = vsel %vm314_vm0, %v6009_v52, -inf  ;;  %vm2641_vm9 = vcmp.ge.f32.partialorder %v2619_v19, 32.0 }
 0x808   : > { %vm2756_vm7 = vcmp.ge.f32.partialorder %v2740_v61, 32.0  ;;  %2808 = vmax.xlane.f32.xlu1 %v2807_v54  ;;  %v2761_v6 = vsel %vm2641_vm9, %v5818_v12, %v5781_v9 }
 0x809   : > { %v2780_v17 = vsel %vm2756_vm7, %v5793_v15, %v2772_v62 }
 0x80a   : > { %v2675_v21 = vpop.xlane.xlu1 %2674  ;;  %vm2788_vm8 = vcmp.ge.f32.partialorder %v3623_v7, %v2780_v17 }
 0x80b   : > { %v2622_v11 = vpop.xlane.xlu0 %2621  ;;  %v6019_v1 = vsel %vm2788_vm8, %v3623_v7, 0.0  ;;  %vm2697_vm10 = vcmp.ge.f32.partialorder %v2675_v21, 32.0 }
 0x80c   : > { %v2810_v51 = vsel %vm314_vm0, %v6019_v1, -inf  ;;  %v2769_v2 = vsel %vm2697_vm10, %v5827_v26, %v2761_v6  ;;  %vm2642_vm12 = vcmp.ge.f32.partialorder %v2622_v11, 32.0 }
 0x80d   : > { %2811 = vmax.xlane.f32.xlu0 %v2810_v51  ;;  %v2762_v40 = vsel %vm2642_vm12, %v5837_v34, %v5812_v8 }
 0x80e   : > { %v2731_v30 = vpop.xlane.xlu1 %2730 }
 0x80f   : > { %vm2753_vm11 = vcmp.ge.f32.partialorder %v2731_v30, 32.0  ;;  %v2678_v15 = vpop.xlane.xlu0 %2677 }
 0x810   : > { %v2777_v36 = vsel %vm2753_vm11, %v5830_v0, %v2769_v2  ;;  %vm2698_vm13 = vcmp.ge.f32.partialorder %v2678_v15, 32.0 }
 0x811   : > { %vm2785_vm14 = vcmp.ge.f32.partialorder %v6115_v35, %v2777_v36  ;;  %v2770_v12 = vsel %vm2698_vm13, %v5843_v38, %v2762_v40 }
 0x812   : > { %v6029_v7 = vsel %vm2785_vm14, %v6115_v35, 0.0 }
 0x813   : > { %v2734_v4 = vpop.xlane.xlu0 %2733  ;;  %v2801_v9 = vsel %vm314_vm0, %v6029_v7, -inf }
 0x814   : > { %vm2754_vm15 = vcmp.ge.f32.partialorder %v2734_v4, 32.0  ;;  %2802 = vmax.xlane.f32.xlu1 %v2801_v9 }
 0x815   : > { %v2778_v26 = vsel %vm2754_vm15, %v5848_v31, %v2770_v12 }
 0x816   : > { %vm2786_vm1 = vcmp.ge.f32.partialorder %v3631_v14, %v2778_v26 }
 0x817   : > { %v6039_v0 = vsel %vm2786_vm1, %v3631_v14, 0.0 }
 0x818   : > { %v2804_v35 = vsel %vm314_vm0, %v6039_v0, -inf }
 0x819   : > { %2805 = vmax.xlane.f32.xlu0 %v2804_v35 }
 0x866   : > { %v2637_v8 = vpop.xlane.xlu1 %2636 }
 0x867   : > { %vm2647_vm4 = vcmp.ge.f32.partialorder %v2637_v8, 32.0 }
 0x868   : > { %v2767_v49 = vsel %vm2647_vm4, %v5919_v43, %v5890_v25 }
 0x86a   : > { %v2693_v34 = vpop.xlane.xlu1 %2692 }
 0x86b   : > { %v2640_v42 = vpop.xlane.xlu0 %2639  ;;  %vm2703_vm6 = vcmp.ge.f32.partialorder %v2693_v34, 32.0 }
 0x86c   : > { %vm2648_vm11 = vcmp.ge.f32.partialorder %v2640_v42, 32.0 }
 0x86e   : > { %v2631_v13 = vpop.xlane.xlu1 %2630 }
 0x86f   : > { %v2696_v32 = vpop.xlane.xlu0 %2695  ;;  %vm2645_vm2 = vcmp.ge.f32.partialorder %v2631_v13, 32.0 }
 0x870   : > { %v2765_v31 = vsel %vm2645_vm2, %v5930_v44, %v5870_v10  ;;  %v2775_v10 = vsel %vm2703_vm6, %v5922_v55, %v2767_v49  ;;  %vm2704_vm13 = vcmp.ge.f32.partialorder %v2696_v32, 32.0 }
 0x872   : > { %v2687_v5 = vpop.xlane.xlu1 %2686 }
 0x873   : > { %v2634_v38 = vpop.xlane.xlu0 %2633  ;;  %vm2701_vm3 = vcmp.ge.f32.partialorder %v2687_v5, 32.0 }
 0x874   : > { %v2773_v14 = vsel %vm2701_vm3, %v5944_v59, %v2765_v31  ;;  %vm2646_vm7 = vcmp.ge.f32.partialorder %v2634_v38, 32.0 }
 0x875   : > { %v2766_v44 = vsel %vm2646_vm7, %v5951_v57, %v5899_v39  ;;  %v2768_v39 = vsel %vm2648_vm11, %v5936_v56, %v5914_v41 }
 0x876   : > { %v2743_v28 = vpop.xlane.xlu1 %2742 }
 0x877   : > { %vm2757_vm5 = vcmp.ge.f32.partialorder %v2743_v28, 32.0  ;;  %v2690_v47 = vpop.xlane.xlu0 %2689 }
 0x878   : > { %v2781_v48 = vsel %vm2757_vm5, %v5961_v29, %v2773_v14  ;;  %vm2702_vm8 = vcmp.ge.f32.partialorder %v2690_v47, 32.0 }
 0x879   : > { %vm2789_vm9 = vcmp.ge.f32.partialorder %v3641_v22, %v2781_v48  ;;  %v2774_v29 = vsel %vm2702_vm8, %v5966_v24, %v2766_v44  ;;  %v2776_v24 = vsel %vm2704_vm13, %v5939_v16, %v2768_v39 }
 0x87a   : > { %v2749_v50 = vpop.xlane.xlu1 %2748  ;;  %v2797_v53 = vsel %vm2789_vm9, %v3641_v22, 0.0 }
 0x87b   : > { %vm2759_vm10 = vcmp.ge.f32.partialorder %v2749_v50, 32.0  ;;  %v2746_v59 = vpop.xlane.xlu0 %2745  ;;  %v2813_v45 = vsel %vm314_vm0, %v2797_v53, -inf }
 0x87c   : > { %v2783_v63 = vsel %vm2759_vm10, %v5975_v3, %v2775_v10  ;;  %vm2758_vm12 = vcmp.ge.f32.partialorder %v2746_v59, 32.0  ;;  %2814 = vmax.xlane.f32.xlu1 %v2813_v45 }
 0x87d   : > { %v2782_v25 = vsel %vm2758_vm12, %v5980_v58, %v2774_v29  ;;  %vm2791_vm14 = vcmp.ge.f32.partialorder %v3637_v20, %v2783_v63 }
 0x87e   : > { %v2799_v22 = vsel %vm2791_vm14, %v3637_v20, 0.0  ;;  %vm2790_vm15 = vcmp.ge.f32.partialorder %v3653_v18, %v2782_v25 }
 0x87f   : > { %v2752_v43 = vpop.xlane.xlu0 %2751  ;;  %v2819_v55 = vsel %vm314_vm0, %v2799_v22, -inf  ;;  %v2798_v57 = vsel %vm2790_vm15, %v3653_v18, 0.0 }
 0x880   : > { %vm2760_vm1 = vcmp.ge.f32.partialorder %v2752_v43, 32.0  ;;  %2820 = vmax.xlane.f32.xlu1 %v2819_v55  ;;  %v2816_v3 = vsel %vm314_vm0, %v2798_v57, -inf }
 0x881   : > { %v2784_v58 = vsel %vm2760_vm1, %v5991_v60, %v2776_v24  ;;  %2817 = vmax.xlane.f32.xlu0 %v2816_v3 }
 0x882   : > { %vm2792_vm2 = vcmp.ge.f32.partialorder %v3647_v27, %v2784_v58 }
 0x883   : > { %v2800_v20 = vsel %vm2792_vm2, %v3647_v27, 0.0 }
 0x884   : > { %v2822_v41 = vsel %vm314_vm0, %v2800_v20, -inf }
 0x885   : > { %2823 = vmax.xlane.f32.xlu0 %v2822_v41 }
 0x895   : > { %v2809_v56 = vpop.xlane.xlu1 %2808 }
 0x896   : > { %v2827_v33 = vsub.f32 %v6009_v52, %v2809_v56 }
 0x898   : > { %v2837_v18 = vmul.f32 1.442695, %v2827_v33 }
 0x89a   : > { %3341 = vpow2.f32 %v2837_v18  ;;  %v2812_v16 = vpop.xlane.xlu0 %2811 }
 0x89b   : > { %v2828_v37 = vsub.f32 %v6019_v1, %v2812_v16 }
 0x89d   : > { %v2839_v23 = vmul.f32 1.442695, %v2828_v37 }
 0x89f   : > { %3343 = vpow2.f32 %v2839_v23 }
 0x8a1   : > { %v2803_v19 = vpop.xlane.xlu1 %2802 }
 0x8a2   : > { %v2825_v60 = vsub.f32 %v6029_v7, %v2803_v19 }
 0x8a4   : > { %v3342_v46 = vpop.eup %3341  ;;  %v2833_v61 = vmul.f32 1.442695, %v2825_v60 }
 0x8a5   : > { %v2855_v27 = vsel %vm314_vm0, %v3342_v46, 0.0 }
 0x8a6   : > { %3345 = vpow2.f32 %v2833_v61  ;;  %2856 = vadd.xlane.f32.xlu1 %v2855_v27  ;;  %v2806_v54 = vpop.xlane.xlu0 %2805 }
 0x8a7   : > { %v2826_v62 = vsub.f32 %v6039_v0, %v2806_v54 }
 0x8a9   : > { %v3344_v52 = vpop.eup %3343  ;;  %v2835_v17 = vmul.f32 1.442695, %v2826_v62 }
 0x8aa   : > { %v2858_v21 = vsel %vm314_vm0, %v3344_v52, 0.0 }
 0x8ab   : > { %3347 = vpow2.f32 %v2835_v17  ;;  %2859 = vadd.xlane.f32.xlu0 %v2858_v21 }
 0x8b0   : > { %v3346_v11 = vpop.eup %3345 }
 0x8b1   : > { %v2849_v1 = vsel %vm314_vm0, %v3346_v11, 0.0 }
 0x8b2   : > { %2850 = vadd.xlane.f32.xlu1 %v2849_v1 }
 0x8b5   : > { %v3348_v51 = vpop.eup %3347 }
 0x8b6   : > { %v2852_v6 = vsel %vm314_vm0, %v3348_v51, 0.0 }
 0x8b7   : > { %2853 = vadd.xlane.f32.xlu0 %v2852_v6 }
 0x909   : > { %v2815_v30 = vpop.xlane.xlu1 %2814 }
 0x90a   : > { %v2829_v2 = vsub.f32 %v2797_v53, %v2815_v30 }
 0x90c   : > { %v2841_v15 = vmul.f32 1.442695, %v2829_v2 }
 0x90d   : > { %v2821_v36 = vpop.xlane.xlu1 %2820 }
 0x90e   : > { %3349 = vpow2.f32 %v2841_v15  ;;  %v2831_v7 = vsub.f32 %v2799_v22, %v2821_v36  ;;  %v2818_v40 = vpop.xlane.xlu0 %2817 }
 0x90f   : > { %v2830_v4 = vsub.f32 %v2798_v57, %v2818_v40 }
 0x910   : > { %v2845_v9 = vmul.f32 1.442695, %v2831_v7 }
 0x911   : > { %v2843_v12 = vmul.f32 1.442695, %v2830_v4 }
 0x912   : > { %3351 = vpow2.f32 %v2845_v9  ;;  %v2824_v26 = vpop.xlane.xlu0 %2823 }
 0x913   : > { %3353 = vpow2.f32 %v2843_v12  ;;  %v2832_v0 = vsub.f32 %v2800_v20, %v2824_v26 }
 0x915   : > { %v2847_v35 = vmul.f32 1.442695, %v2832_v0 }
 0x917   : > { %3355 = vpow2.f32 %v2847_v35 }
 0x918   : > { %v3350_v8 = vpop.eup %3349 }
 0x919   : > { %v2861_v34 = vsel %vm314_vm0, %v3350_v8, 0.0 }
 0x91a   : > { %2862 = vadd.xlane.f32.xlu1 %v2861_v34 }
 0x91c   : > { %v3352_v42 = vpop.eup %3351 }
 0x91d   : > { %v3354_v13 = vpop.eup %3353  ;;  %v2867_v32 = vsel %vm314_vm0, %v3352_v42, 0.0 }
 0x91e   : > { %2868 = vadd.xlane.f32.xlu1 %v2867_v32  ;;  %v2864_v5 = vsel %vm314_vm0, %v3354_v13, 0.0 }
 0x91f   : > { %2865 = vadd.xlane.f32.xlu0 %v2864_v5 }
 0x921   : > { %v3356_v38 = vpop.eup %3355 }
 0x922   : > { %v2870_v31 = vsel %vm314_vm0, %v3356_v38, 0.0 }
 0x923   : > { %2871 = vadd.xlane.f32.xlu0 %v2870_v31 }
 0x933   : > { %v2857_v28 = vpop.xlane.xlu1 %2856 }
 0x938   : > { %v2860_v14 = vpop.xlane.xlu0 %2859 }
 0x939   : > { %3357 = vrcp.f32 %v2860_v14 }
 0x93f   : > { %v2851_v47 = vpop.xlane.xlu1 %2850 }
 0x940   : > { %3359 = vrcp.f32 %v2851_v47 }
 0x941   : > { %3361 = vrcp.f32 %v2857_v28 }
 0x943   : > { %v3358_v49 = vpop.eup %3357 }
 0x944   : > { %v2854_v48 = vpop.xlane.xlu0 %2853  ;;  %v2884_v44 = vmul.f32 %v3358_v49, %v3344_v52 }
 0x945   : > { %3363 = vrcp.f32 %v2854_v48 }
 0x94a   : > { %v3360_v50 = vpop.eup %3359 }
 0x94b   : > { %v3362_v53 = vpop.eup %3361  ;;  %v2881_v59 = vmul.f32 %v3360_v50, %v3346_v11 }
 0x94c   : > { %v2883_v29 = vmul.f32 %v3362_v53, %v3342_v46 }
 0x94e   : > { %v2890_v25 = vpack.c.bf16 %v2884_v44, %v2883_v29 }
 0x94f   : > { %v3364_v10 = vpop.eup %3363 }
 0x950   : > { %v2882_v45 = vmul.f32 %v3364_v10, %v3348_v51 }
 0x952   : > { %v2889_v63 = vpack.c.bf16 %v2882_v45, %v2881_v59 }
 0x954   : > { %3298 = vmatprep.mubr.msk.bf16.mxu0 %vm314_vm0, %v2889_v63 }
 0x955   : > { %3299 = vmatmul.mubr.msk.bf16.vlgmr.msra.gmra.mrb[16].mxu0 %vm314_vm0, %v2890_v25 }
 0x9a7   : > { %v2863_v22 = vpop.xlane.xlu1 %2862 }
 0x9a8   : > { %3365 = vrcp.f32 %v2863_v22 }
 0x9ab   : > { %v2869_v39 = vpop.xlane.xlu1 %2868 }
 0x9ac   : > { %v2866_v43 = vpop.xlane.xlu0 %2865 }
 0x9ad   : > { %3367 = vrcp.f32 %v2866_v43 }
 0x9ae   : > { %3369 = vrcp.f32 %v2869_v39 }
 0x9b0   : > { %v2872_v55 = vpop.xlane.xlu0 %2871 }
 0x9b1   : > { %3371 = vrcp.f32 %v2872_v55 }
 0x9b2   : > { %v3366_v57 = vpop.eup %3365 }
 0x9b3   : > { %v2885_v3 = vmul.f32 %v3366_v57, %v3350_v8 }
 0x9b7   : > { %v3368_v24 = vpop.eup %3367 }
 0x9b8   : > { %v2886_v58 = vmul.f32 %v3368_v24, %v3354_v13  ;;  %v3370_v20 = vpop.eup %3369 }
 0x9b9   : > { %v2887_v33 = vmul.f32 %v3370_v20, %v3352_v42 }
 0x9ba   : > { %v2891_v41 = vpack.c.bf16 %v2886_v58, %v2885_v3 }
 0x9bb   : > { %v3372_v56 = vpop.eup %3371 }
 0x9bc   : > { %v2888_v18 = vmul.f32 %v3372_v56, %v3356_v38  ;;  %3302 = vmatprep.mubr.msk.bf16.mxu1 %vm314_vm0, %v2891_v41 }
 0x9be   : > { %v2892_v16 = vpack.c.bf16 %v2888_v18, %v2887_v33 }
 0x9c0   : > { %3303 = vmatmul.mubr.msk.bf16.vlgmr.msra.gmra.mrb[8].mxu1 %vm314_vm0, %v2892_v16 }
 0xa28   : > { %v3300_v37 = vpop.f32.mrb[16].mxu0 }
 0xa29   : > { %2972 = vst.msk [vmem:[%s224_s9 + $0x10] sm:$0xff] %vm314_vm0, %v3300_v37  ;;  %v2939_v23 = vpop.f32.mrb[17].mxu0 }
 0xa2a   : > { %2970 = vst.msk [vmem:[%s224_s9] sm:$0xff] %vm314_vm0, %v2939_v23  ;;  %v3301_v19 = vpop.f32.mrb[18].mxu0 }
 0xa2b   : > { %2973 = vst.msk [vmem:[%s224_s9 + $0x18] sm:$0xff] %vm314_vm0, %v3301_v19  ;;  %v2942_v60 = vpop.f32.mrb[19].mxu0 }
 0xa2c   : > { %2971 = vst.msk [vmem:[%s224_s9 + $0x8] sm:$0xff] %vm314_vm0, %v2942_v60 }
 0xa93   : > { %v3304_v46 = vpop.f32.mrb[8].mxu1 }
 0xa94   : > { %2976 = vst.msk [vmem:[%s224_s9 + $0x30] sm:$0xff] %vm314_vm0, %v3304_v46  ;;  %v2955_v61 = vpop.f32.mrb[9].mxu1 }
 0xa95   : > { %2974 = vst.msk [vmem:[%s224_s9 + $0x20] sm:$0xff] %vm314_vm0, %v2955_v61  ;;  %v3305_v27 = vpop.f32.mrb[10].mxu1 }
 0xa96   : > { %2977 = vst.msk [vmem:[%s224_s9 + $0x38] sm:$0xff] %vm314_vm0, %v3305_v27  ;;  %v2958_v54 = vpop.f32.mrb[11].mxu1 }
 0xa97   : > { %2975 = vst.msk [vmem:[%s224_s9 + $0x28] sm:$0xff] %vm314_vm0, %v2958_v54 }
 0xa98 PF: > { %s15_s18 = sadd.s32 1, %s3379_s18  }
 0xa99   : > { %p12_p4 = scmp.ge.s32.totalorder %s15_s18, 4  }
 0xa9b   :  { %14 = sbr.rel (!%p12_p4) target bundleno = 1 (0x1), region = 70 }

</bundles_post_ra>
